<compile_context>
chip_gen: v7x
topology: tpu7x:2x2x1
jax: 0.10.0
libtpu: 0.0.40
codegen_flags: <defaults>
</compile_context>

<pallas_src>
import jax
import jax.numpy as jnp
from jax.experimental import pallas as pl
from jax.experimental.pallas import tpu as pltpu


# ----------------------------------------------------------------------------
# geometry helpers
# ----------------------------------------------------------------------------
def _geom(H, W):
    Hp, Wp = H + 2, W + 2
    PF = Hp * Wp                               # padded-flat spatial length (324)
    PF_pad = ((PF + 127) // 128) * 128         # lane-pad to a 128 multiple (384)
    return Hp, Wp, PF, PF_pad


def _interior_mask(H, W, PF_pad):
    """(1, PF_pad) float mask: 1 on true pixels, 0 on the zero-pad border and
    on the lane-padding tail."""
    Hp, Wp = H + 2, W + 2
    m = jnp.zeros((Hp, Wp), jnp.float32).at[1:H + 1, 1:W + 1].set(1.0)
    m = m.reshape(1, Hp * Wp)
    return jnp.pad(m, ((0, 0), (0, PF_pad - Hp * Wp)))


# ----------------------------------------------------------------------------
# fused Pallas kernel (one batch element per grid step)
# ----------------------------------------------------------------------------
def _make_fused_kernel(H, W, growth):
    Hp, Wp, PF, PF_pad = _geom(H, W)
    g2 = 2 * growth            # packed channels produced by one SingleLayer (8)
    c0 = 4 * growth            # packed channels of a block input / transition (16)
    c_work = 10 * growth       # widest dense concat (40)
    P1 = c_work                # scratch row offset where p1 is parked (40, 8-aligned)
    CUR = c_work + c0          # scratch row offset of the running residual (56)
    # flat offset of each tap of a 3x3 "same" conv, tap order = kh*3 + kw
    offs = [(dh - 1) * Wp + (dw - 1) for dh in range(3) for dw in range(3)]
    # roll-the-output trick:  out[:, r] = sum_t Y_t[:, r + offs[t]]
    # interior r has r + offs in [0, PF), so the circular wrap only pollutes
    # border / lane-pad positions, which are masked (or discarded) downstream.
    shifts = [(-o) % PF_pad for o in offs]

    def kernel(*refs):
        x_ref, mask_ref = refs[0], refs[1]
        w_first = refs[2]                  # conv1_desnet   (9*c0, 2)
        dense_w = refs[3:19]               # sl1..3,trans1, ..., sl10..12,trans4
        w_last = refs[19]                  # conv4          (9*g2, c0) cout padded 2->g2
        b_last = refs[20]                  # conv4 bias     (2, 1)
        o_ref = refs[21]                   # (2, PF_pad)
        buf = refs[22]                     # VMEM scratch   (c_work + 2*c0, PF_pad)

        mask = mask_ref[...]               # (1, PF_pad), only 3 vregs

        def conv3x3(x, w_ref, cout, taps_per_group):
            """3x3 'same' conv in the transposed layout.

            x     : (cin, PF_pad) activation slab (zero border / lane pad)
            w_ref : (9*cout, cin) packed weights, rows tap-major
            Returns (cout, PF_pad); only interior spatial columns are valid.
            """
            acc = None
            for g0 in range(0, 9, taps_per_group):
                g1 = min(9, g0 + taps_per_group)
                wg = w_ref[g0 * cout:g1 * cout, :]               # aligned slice
                y = jax.lax.dot_general(
                    wg, x,
                    dimension_numbers=(((1,), (0,)), ((), ())),
                    preferred_element_type=jnp.float32)          # (n*cout, PF_pad)
                for t in range(g0, g1):
                    k = t - g0
                    chunk = y[k * cout:(k + 1) * cout, :]        # 8-aligned rows
                    if shifts[t]:
                        chunk = pltpu.roll(chunk, shifts[t], axis=1)   # XLU lane roll
                    acc = chunk if acc is None else acc + chunk
            return acc

        def conv1x1(x, w_ref):
            return jax.lax.dot_general(
                w_ref[...], x,
                dimension_numbers=(((1,), (0,)), ((), ())),
                preferred_element_type=jnp.float32)

        # ---- conv1_desnet straight off the input slab (never staged in scratch)
        p1 = conv3x3(x_ref[...], w_first, c0, 3)                 # (c0, PF_pad)
        buf[P1:P1 + c0, :] = p1 * mask                           # park p1 (border-clean)
        buf[CUR:CUR + c0, :] = buf[P1:P1 + c0, :]                # cur = p1

        # ---- 4 dense blocks with residual subtraction
        wi = 0
        for _blk in range(4):
            # block input = relu(cur); cur is border/lane-pad clean by construction
            buf[0:c0, :] = jnp.maximum(buf[CUR:CUR + c0, :], 0.0)
            cin = c0
            for _j in range(3):                                  # SingleLayer x3
                y = conv3x3(buf[0:cin, :], dense_w[wi], g2, 9)
                wi += 1
                # dense concat is just a write into the next 8-aligned row range
                buf[cin:cin + g2, :] = jnp.maximum(y, 0.0) * mask
                cin += g2
            # Transition: 1x1 conv over the relu'd concatenation; border columns
            # of the input are zero, so its output is border-clean without masking.
            t = conv1x1(buf[0:c_work, :], dense_w[wi])
            wi += 1
            buf[CUR:CUR + c0, :] = buf[CUR:CUR + c0, :] - t      # cur -= transition

        # ---- final residual + conv4 (bias=True, no input relu)
        buf[0:c0, :] = buf[P1:P1 + c0, :] - buf[CUR:CUR + c0, :]     # p6 = p1 - cur
        y = conv3x3(buf[0:c0, :], w_last, g2, 9)                 # (g2, PF_pad)
        o_ref[...] = (y[0:2, :] + b_last[...]).astype(o_ref.dtype)

    return kernel


# ----------------------------------------------------------------------------
# wrapper: one pallas_call for the whole network
# ----------------------------------------------------------------------------
def _layer_names():
    names = ["conv1_desnet"]
    for blk in range(4):
        names += [f"sl{blk * 3 + j + 1}" for j in range(3)]
        names.append(f"trans{blk + 1}")
    names.append("conv4")
    return names


def fused_forward(packed, x, growth):
    """x: (B, 2, H, W) float32 -- channel 0 = real, channel 1 = imag."""
    B, _, H, W = x.shape
    Hp, Wp, PF, PF_pad = _geom(H, W)
    c_scr = 10 * growth + 2 * (4 * growth)                       # 72 scratch rows

    names = _layer_names()
    weights = [packed[nm]["w"] for nm in names]
    bias4 = packed["conv4"]["b"]

    # zero-pad spatially once, flatten to padded-flat, lane-pad to PF_pad
    x_p = jnp.pad(x, ((0, 0), (0, 0), (1, 1), (1, 1))).reshape(B, 2, PF)
    x_p = jnp.pad(x_p, ((0, 0), (0, 0), (0, PF_pad - PF)))
    mask = _interior_mask(H, W, PF_pad)

    in_specs = [pl.BlockSpec((None, 2, PF_pad), lambda b: (b, 0, 0)),
                pl.BlockSpec((1, PF_pad), lambda b: (0, 0))]
    for w in weights:
        in_specs.append(pl.BlockSpec(w.shape, lambda b: (0, 0)))
    in_specs.append(pl.BlockSpec(bias4.shape, lambda b: (0, 0)))

    out = pl.pallas_call(
        _make_fused_kernel(H, W, growth),
        out_shape=jax.ShapeDtypeStruct((B, 2, PF_pad), jnp.float32),
        grid=(B,),
        in_specs=in_specs,
        out_specs=pl.BlockSpec((None, 2, PF_pad), lambda b: (b, 0, 0)),
        scratch_shapes=[pltpu.VMEM((c_scr, PF_pad), jnp.float32)],
        compiler_params=pltpu.CompilerParams(dimension_semantics=("parallel",)),
    )(x_p, mask, *weights, bias4)

    # drop the lane padding, un-flatten, drop the 1-pixel border
    out = out[:, :, :PF].reshape(B, 2, Hp, Wp)[:, :, 1:H + 1, 1:W + 1]
    return out


# ----------------------------------------------------------------------------
# parameters: synthetic init (shapes follow the module) + init-time packing
# ----------------------------------------------------------------------------
def _init_complex_conv(key, K, cin, cout, bias):
    k1, k2, k3, k4 = jax.random.split(key, 4)
    scale = (K * K * cin) ** -0.5
    Wr = scale * jax.random.normal(k1, (K, K, cin, cout), jnp.float32)
    Wi = scale * jax.random.normal(k2, (K, K, cin, cout), jnp.float32)
    if bias:
        br = scale * jax.random.normal(k3, (cout,), jnp.float32)
        bi = scale * jax.random.normal(k4, (cout,), jnp.float32)
    else:
        br = jnp.zeros((cout,), jnp.float32)
        bi = jnp.zeros((cout,), jnp.float32)
    return dict(Wr=Wr, Wi=Wi, br=br, bi=bi)


def init_params(seed=0, growth=4):
    g = growth
    specs = [("conv1_desnet", 3, 1, 2 * g, False)]
    ch = 2 * g
    for blk in range(4):
        for j in range(3):
            specs.append((f"sl{blk * 3 + j + 1}", 3, ch, g, False))
            ch += g
        specs.append((f"trans{blk + 1}", 1, ch, 2 * g, False))
        ch = 2 * g
    specs.append(("conv4", 3, 2 * g, 1, True))
    keys = jax.random.split(jax.random.PRNGKey(seed), len(specs))
    return {nm: _init_complex_conv(k, K, cin, cout, bias)
            for k, (nm, K, cin, cout, bias) in zip(keys, specs)}


def _std_layout(n, base=0):
    # packed channel order produced by a conv: [real_0..real_{n-1}, imag_0..imag_{n-1}]
    return [(base + c, 0) for c in range(n)] + [(base + c, 1) for c in range(n)]


def _pack_layer(p, in_layout, pad_cout_to=None):
    """Pack a complex conv (yr = xr*Wr - xi*Wi + (br-bi), yi = xi*Wr + xr*Wi + (br+bi),
    i.e. the complexPyTorch convention) into one real conv in the kernel's
    transposed layout.

    Returns:
      w: (K*K*cout_p, cin_p)  rows tap-major, each tap block is W[t]^T
      b: (2*cout, 1)          rows [br - bi, br + bi]
    """
    Wr, Wi = p["Wr"], p["Wi"]
    K = Wr.shape[0]
    cout = Wr.shape[3]
    rows = []
    for (c, part) in in_layout:
        if part == 0:
            rows.append(jnp.concatenate([Wr[:, :, c, :], Wi[:, :, c, :]], axis=-1))
        else:
            rows.append(jnp.concatenate([-Wi[:, :, c, :], Wr[:, :, c, :]], axis=-1))
    w_pack = jnp.stack(rows, axis=2).reshape(K * K, len(in_layout), 2 * cout)
    cout_p = 2 * cout
    if pad_cout_to is not None and pad_cout_to > cout_p:
        w_pack = jnp.pad(w_pack, ((0, 0), (0, 0), (0, pad_cout_to - cout_p)))
        cout_p = pad_cout_to
    w_t = jnp.transpose(w_pack, (0, 2, 1)).reshape(K * K * cout_p, len(in_layout))
    b_t = jnp.concatenate([p["br"] - p["bi"], p["br"] + p["bi"]]).reshape(2 * cout, 1)
    return {"w": w_t, "b": b_t}


def pack_params(params, growth):
    g = growth
    packed = {"conv1_desnet": _pack_layer(params["conv1_desnet"], _std_layout(1))}
    for blk in range(4):
        layout = _std_layout(2 * g)              # block input (standard order)
        n = 2 * g
        for j in range(3):
            nm = f"sl{blk * 3 + j + 1}"
            packed[nm] = _pack_layer(params[nm], layout)
            layout = layout + _std_layout(g, base=n)   # dense concat appends a segment
            n += g
        packed[f"trans{blk + 1}"] = _pack_layer(params[f"trans{blk + 1}"], layout)
    # conv4: pad packed cout 2 -> 2*g so tap chunks stay 8-aligned in the kernel
    packed["conv4"] = _pack_layer(params["conv4"], _std_layout(2 * g), pad_cout_to=2 * g)
    return packed


# ----------------------------------------------------------------------------
# pure-JAX reference (mirrors NewNet_ComplexNet.forward) for validation
# ----------------------------------------------------------------------------
def cconv_ref(p, xr, xi, relu):
    K = p["Wr"].shape[0]
    pad = (K - 1) // 2
    if relu:
        xr = jnp.maximum(xr, 0.0)
        xi = jnp.maximum(xi, 0.0)
    conv = lambda x, w: jax.lax.conv_general_dilated(
        x, w, window_strides=(1, 1), padding=[(pad, pad), (pad, pad)],
        dimension_numbers=("NHWC", "HWIO", "NHWC"),
        precision=jax.lax.Precision.HIGHEST)
    yr = conv(xr, p["Wr"]) - conv(xi, p["Wi"]) + (p["br"] - p["bi"])
    yi = conv(xi, p["Wr"]) + conv(xr, p["Wi"]) + (p["br"] + p["bi"])
    return yr, yi


def forward_ref(params, x):
    xr = jnp.transpose(x[:, 0:1], (0, 2, 3, 1))
    xi = jnp.transpose(x[:, 1:2], (0, 2, 3, 1))
    xr1, xi1 = cconv_ref(params["conv1_desnet"], xr, xi, False)

    def dense_block(xr_in, xi_in, blk):
        xr_c, xi_c = xr_in, xi_in
        for j in range(3):
            nm = f"sl{blk * 3 + j + 1}"
            yr, yi = cconv_ref(params[nm], xr_c, xi_c, True)
            xr_c = jnp.concatenate([xr_c, yr], axis=-1)
            xi_c = jnp.concatenate([xi_c, yi], axis=-1)
        return cconv_ref(params[f"trans{blk + 1}"], xr_c, xi_c, True)

    xr_cur, xi_cur = xr1, xi1
    for blk in range(4):
        tr, ti = dense_block(xr_cur, xi_cur, blk)
        xr_cur = xr_cur - tr
        xi_cur = xi_cur - ti

    xr6 = xr1 - xr_cur
    xi6 = xi1 - xi_cur
    yr, yi = cconv_ref(params["conv4"], xr6, xi6, False)
    out = jnp.concatenate([yr, yi], axis=-1)
    return jnp.transpose(out, (0, 3, 1, 2))


# TODO(synk): conv1/conv2/conv3, bn1 (ComplexBatchNorm2d) and fc (ComplexLinear)
#             are constructed by the module but never used in forward(); they
#             are intentionally not implemented.

# ----------------------------------------------------------------------------
if __name__ == "__main__":
    B, H, W = 2, 16, 16
    growth = 4

    params = init_params(seed=0, growth=growth)
    packed = pack_params(params, growth)
    x = jax.random.normal(jax.random.PRNGKey(0), (B, 2, H, W), jnp.float32)

    fwd = jax.jit(lambda p, xx: fused_forward(p, xx, growth))
    out = jax.block_until_ready(fwd(packed, x))

    ref = forward_ref(params, x)
    assert out.shape == (B, 2, H, W)
    rel_err = float(jnp.max(jnp.abs(out - ref)) / (jnp.max(jnp.abs(ref)) + 1e-6))
    assert rel_err < 1e-3, f"mismatch vs reference, rel_err={rel_err}"

    print("KERNEL_OK")
</pallas_src>

<mosaic_0001>
module attributes {stable_mosaic.version = 11 : i64} {
  func.func @kernel(%arg0: i32, %arg1: memref<1x2x384xf32, #tpu.memory_space<vmem>>, %arg2: memref<1x384xf32, #tpu.memory_space<vmem>>, %arg3: memref<144x2xf32, #tpu.memory_space<vmem>>, %arg4: memref<72x16xf32, #tpu.memory_space<vmem>>, %arg5: memref<72x24xf32, #tpu.memory_space<vmem>>, %arg6: memref<72x32xf32, #tpu.memory_space<vmem>>, %arg7: memref<16x40xf32, #tpu.memory_space<vmem>>, %arg8: memref<72x16xf32, #tpu.memory_space<vmem>>, %arg9: memref<72x24xf32, #tpu.memory_space<vmem>>, %arg10: memref<72x32xf32, #tpu.memory_space<vmem>>, %arg11: memref<16x40xf32, #tpu.memory_space<vmem>>, %arg12: memref<72x16xf32, #tpu.memory_space<vmem>>, %arg13: memref<72x24xf32, #tpu.memory_space<vmem>>, %arg14: memref<72x32xf32, #tpu.memory_space<vmem>>, %arg15: memref<16x40xf32, #tpu.memory_space<vmem>>, %arg16: memref<72x16xf32, #tpu.memory_space<vmem>>, %arg17: memref<72x24xf32, #tpu.memory_space<vmem>>, %arg18: memref<72x32xf32, #tpu.memory_space<vmem>>, %arg19: memref<16x40xf32, #tpu.memory_space<vmem>>, %arg20: memref<72x16xf32, #tpu.memory_space<vmem>>, %arg21: memref<2x1xf32, #tpu.memory_space<vmem>>, %arg22: memref<1x2x384xf32, #tpu.memory_space<vmem>>, %arg23: memref<72x384xf32, #tpu.memory_space<vmem>>) attributes {dimension_semantics = [#tpu.dimension_semantics<parallel>], iteration_bounds = array<i64: 2>, scalar_prefetch = 0 : i64, scratch_operands = 1 : i64, tpu.core_type = #tpu.core_type<tc>, window_params = [{transform_indices = @transform_0, window_bounds = array<i64: 1, 2, 384>}, {pipeline_mode = #tpu.pipeline_mode<synchronous>, transform_indices = @transform_1, window_bounds = array<i64: 1, 384>}, {pipeline_mode = #tpu.pipeline_mode<synchronous>, transform_indices = @transform_2, window_bounds = array<i64: 144, 2>}, {pipeline_mode = #tpu.pipeline_mode<synchronous>, transform_indices = @transform_3, window_bounds = array<i64: 72, 16>}, {pipeline_mode = #tpu.pipeline_mode<synchronous>, transform_indices = @transform_4, window_bounds = array<i64: 72, 24>}, {pipeline_mode = #tpu.pipeline_mode<synchronous>, transform_indices = @transform_5, window_bounds = array<i64: 72, 32>}, {pipeline_mode = #tpu.pipeline_mode<synchronous>, transform_indices = @transform_6, window_bounds = array<i64: 16, 40>}, {pipeline_mode = #tpu.pipeline_mode<synchronous>, transform_indices = @transform_7, window_bounds = array<i64: 72, 16>}, {pipeline_mode = #tpu.pipeline_mode<synchronous>, transform_indices = @transform_8, window_bounds = array<i64: 72, 24>}, {pipeline_mode = #tpu.pipeline_mode<synchronous>, transform_indices = @transform_9, window_bounds = array<i64: 72, 32>}, {pipeline_mode = #tpu.pipeline_mode<synchronous>, transform_indices = @transform_10, window_bounds = array<i64: 16, 40>}, {pipeline_mode = #tpu.pipeline_mode<synchronous>, transform_indices = @transform_11, window_bounds = array<i64: 72, 16>}, {pipeline_mode = #tpu.pipeline_mode<synchronous>, transform_indices = @transform_12, window_bounds = array<i64: 72, 24>}, {pipeline_mode = #tpu.pipeline_mode<synchronous>, transform_indices = @transform_13, window_bounds = array<i64: 72, 32>}, {pipeline_mode = #tpu.pipeline_mode<synchronous>, transform_indices = @transform_14, window_bounds = array<i64: 16, 40>}, {pipeline_mode = #tpu.pipeline_mode<synchronous>, transform_indices = @transform_15, window_bounds = array<i64: 72, 16>}, {pipeline_mode = #tpu.pipeline_mode<synchronous>, transform_indices = @transform_16, window_bounds = array<i64: 72, 24>}, {pipeline_mode = #tpu.pipeline_mode<synchronous>, transform_indices = @transform_17, window_bounds = array<i64: 72, 32>}, {pipeline_mode = #tpu.pipeline_mode<synchronous>, transform_indices = @transform_18, window_bounds = array<i64: 16, 40>}, {pipeline_mode = #tpu.pipeline_mode<synchronous>, transform_indices = @transform_19, window_bounds = array<i64: 72, 16>}, {pipeline_mode = #tpu.pipeline_mode<synchronous>, transform_indices = @transform_20, window_bounds = array<i64: 2, 1>}, {transform_indices = @transform_21, window_bounds = array<i64: 1, 2, 384>}]} {
    %c0 = arith.constant 0 : index
    %c0_0 = arith.constant 0 : index
    %0 = vector.load %arg2[%c0, %c0_0] : memref<1x384xf32, #tpu.memory_space<vmem>>, vector<1x384xf32>
    %c0_1 = arith.constant 0 : index
    %c0_2 = arith.constant 0 : index
    %c0_3 = arith.constant 0 : index
    %1 = vector.load %arg1[%c0_1, %c0_2, %c0_3] : memref<1x2x384xf32, #tpu.memory_space<vmem>>, vector<1x2x384xf32>
    %2 = vector.shape_cast %1 : vector<1x2x384xf32> to vector<2x384xf32>
    %c0_4 = arith.constant 0 : index
    %c0_5 = arith.constant 0 : index
    %3 = vector.load %arg3[%c0_4, %c0_5] : memref<144x2xf32, #tpu.memory_space<vmem>>, vector<48x2xf32>
    %cst = arith.constant dense<0.000000e+00> : vector<48x384xf32>
    %4 = tpu.matmul %3, %2, %cst {dimension_numbers = #tpu.dot_dimension_numbers<[1], [0], [0], [1], [0, 0, 1, 1], [], []>} : vector<48x2xf32>, vector<2x384xf32>, vector<48x384xf32> -> vector<48x384xf32>
    %5 = vector.extract_strided_slice %4 {offsets = [0, 0], sizes = [16, 384], strides = [1, 1]} : vector<48x384xf32> to vector<16x384xf32>
    %c19_i32 = arith.constant 19 : i32
    %6 = tpu.dynamic_rotate %5 by %c19_i32 dim 1 : vector<16x384xf32>, i32 -> vector<16x384xf32>
    %7 = vector.extract_strided_slice %4 {offsets = [16, 0], sizes = [16, 384], strides = [1, 1]} : vector<48x384xf32> to vector<16x384xf32>
    %c18_i32 = arith.constant 18 : i32
    %8 = tpu.dynamic_rotate %7 by %c18_i32 dim 1 : vector<16x384xf32>, i32 -> vector<16x384xf32>
    %9 = arith.addf %6, %8 : vector<16x384xf32>
    %10 = vector.extract_strided_slice %4 {offsets = [32, 0], sizes = [16, 384], strides = [1, 1]} : vector<48x384xf32> to vector<16x384xf32>
    %c17_i32 = arith.constant 17 : i32
    %11 = tpu.dynamic_rotate %10 by %c17_i32 dim 1 : vector<16x384xf32>, i32 -> vector<16x384xf32>
    %12 = arith.addf %9, %11 : vector<16x384xf32>
    %c48 = arith.constant 48 : index
    %c0_6 = arith.constant 0 : index
    %13 = vector.load %arg3[%c48, %c0_6] : memref<144x2xf32, #tpu.memory_space<vmem>>, vector<48x2xf32>
    %cst_7 = arith.constant dense<0.000000e+00> : vector<48x384xf32>
    %14 = tpu.matmul %13, %2, %cst_7 {dimension_numbers = #tpu.dot_dimension_numbers<[1], [0], [0], [1], [0, 0, 1, 1], [], []>} : vector<48x2xf32>, vector<2x384xf32>, vector<48x384xf32> -> vector<48x384xf32>
    %15 = vector.extract_strided_slice %14 {offsets = [0, 0], sizes = [16, 384], strides = [1, 1]} : vector<48x384xf32> to vector<16x384xf32>
    %c1_i32 = arith.constant 1 : i32
    %16 = tpu.dynamic_rotate %15 by %c1_i32 dim 1 : vector<16x384xf32>, i32 -> vector<16x384xf32>
    %17 = arith.addf %12, %16 : vector<16x384xf32>
    %18 = vector.extract_strided_slice %14 {offsets = [16, 0], sizes = [16, 384], strides = [1, 1]} : vector<48x384xf32> to vector<16x384xf32>
    %19 = arith.addf %17, %18 : vector<16x384xf32>
    %20 = vector.extract_strided_slice %14 {offsets = [32, 0], sizes = [16, 384], strides = [1, 1]} : vector<48x384xf32> to vector<16x384xf32>
    %c383_i32 = arith.constant 383 : i32
    %21 = tpu.dynamic_rotate %20 by %c383_i32 dim 1 : vector<16x384xf32>, i32 -> vector<16x384xf32>
    %22 = arith.addf %19, %21 : vector<16x384xf32>
    %c96 = arith.constant 96 : index
    %c0_8 = arith.constant 0 : index
    %23 = vector.load %arg3[%c96, %c0_8] : memref<144x2xf32, #tpu.memory_space<vmem>>, vector<48x2xf32>
    %cst_9 = arith.constant dense<0.000000e+00> : vector<48x384xf32>
    %24 = tpu.matmul %23, %2, %cst_9 {dimension_numbers = #tpu.dot_dimension_numbers<[1], [0], [0], [1], [0, 0, 1, 1], [], []>} : vector<48x2xf32>, vector<2x384xf32>, vector<48x384xf32> -> vector<48x384xf32>
    %25 = vector.extract_strided_slice %24 {offsets = [0, 0], sizes = [16, 384], strides = [1, 1]} : vector<48x384xf32> to vector<16x384xf32>
    %c367_i32 = arith.constant 367 : i32
    %26 = tpu.dynamic_rotate %25 by %c367_i32 dim 1 : vector<16x384xf32>, i32 -> vector<16x384xf32>
    %27 = arith.addf %22, %26 : vector<16x384xf32>
    %28 = vector.extract_strided_slice %24 {offsets = [16, 0], sizes = [16, 384], strides = [1, 1]} : vector<48x384xf32> to vector<16x384xf32>
    %c366_i32 = arith.constant 366 : i32
    %29 = tpu.dynamic_rotate %28 by %c366_i32 dim 1 : vector<16x384xf32>, i32 -> vector<16x384xf32>
    %30 = arith.addf %27, %29 : vector<16x384xf32>
    %31 = vector.extract_strided_slice %24 {offsets = [32, 0], sizes = [16, 384], strides = [1, 1]} : vector<48x384xf32> to vector<16x384xf32>
    %c365_i32 = arith.constant 365 : i32
    %32 = tpu.dynamic_rotate %31 by %c365_i32 dim 1 : vector<16x384xf32>, i32 -> vector<16x384xf32>
    %33 = arith.addf %30, %32 : vector<16x384xf32>
    %34 = vector.broadcast %0 : vector<1x384xf32> to vector<16x384xf32>
    %35 = arith.mulf %33, %34 : vector<16x384xf32>
    %c40 = arith.constant 40 : index
    %c0_10 = arith.constant 0 : index
    %36 = vector.load %arg23[%c40, %c0_10] : memref<72x384xf32, #tpu.memory_space<vmem>>, vector<16x384xf32>
    tpu.vector_store %arg23[%c40, %c0_10], %35 {strides = array<i32>} : memref<72x384xf32, #tpu.memory_space<vmem>>, vector<16x384xf32>,
    %c40_11 = arith.constant 40 : index
    %c0_12 = arith.constant 0 : index
    %37 = vector.load %arg23[%c40_11, %c0_12] : memref<72x384xf32, #tpu.memory_space<vmem>>, vector<16x384xf32>
    %c56 = arith.constant 56 : index
    %c0_13 = arith.constant 0 : index
    %38 = vector.load %arg23[%c56, %c0_13] : memref<72x384xf32, #tpu.memory_space<vmem>>, vector<16x384xf32>
    tpu.vector_store %arg23[%c56, %c0_13], %37 {strides = array<i32>} : memref<72x384xf32, #tpu.memory_space<vmem>>, vector<16x384xf32>,
    %c56_14 = arith.constant 56 : index
    %c0_15 = arith.constant 0 : index
    %39 = vector.load %arg23[%c56_14, %c0_15] : memref<72x384xf32, #tpu.memory_space<vmem>>, vector<16x384xf32>
    %cst_16 = arith.constant 0.000000e+00 : f32
    %40 = vector.broadcast %cst_16 : f32 to vector<16x384xf32>
    %41 = arith.maximumf %39, %40 : vector<16x384xf32>
    %c0_17 = arith.constant 0 : index
    %c0_18 = arith.constant 0 : index
    %42 = vector.load %arg23[%c0_17, %c0_18] : memref<72x384xf32, #tpu.memory_space<vmem>>, vector<16x384xf32>
    tpu.vector_store %arg23[%c0_17, %c0_18], %41 {strides = array<i32>} : memref<72x384xf32, #tpu.memory_space<vmem>>, vector<16x384xf32>,
    %c0_19 = arith.constant 0 : index
    %c0_20 = arith.constant 0 : index
    %43 = vector.load %arg23[%c0_19, %c0_20] : memref<72x384xf32, #tpu.memory_space<vmem>>, vector<16x384xf32>
    %c0_21 = arith.constant 0 : index
    %c0_22 = arith.constant 0 : index
    %44 = vector.load %arg4[%c0_21, %c0_22] : memref<72x16xf32, #tpu.memory_space<vmem>>, vector<72x16xf32>
    %cst_23 = arith.constant dense<0.000000e+00> : vector<72x384xf32>
    %45 = tpu.matmul %44, %43, %cst_23 {dimension_numbers = #tpu.dot_dimension_numbers<[1], [0], [0], [1], [0, 0, 1, 1], [], []>} : vector<72x16xf32>, vector<16x384xf32>, vector<72x384xf32> -> vector<72x384xf32>
    %46 = vector.extract_strided_slice %45 {offsets = [0, 0], sizes = [8, 384], strides = [1, 1]} : vector<72x384xf32> to vector<8x384xf32>
    %c19_i32_24 = arith.constant 19 : i32
    %47 = tpu.dynamic_rotate %46 by %c19_i32_24 dim 1 : vector<8x384xf32>, i32 -> vector<8x384xf32>
    %48 = vector.extract_strided_slice %45 {offsets = [8, 0], sizes = [8, 384], strides = [1, 1]} : vector<72x384xf32> to vector<8x384xf32>
    %c18_i32_25 = arith.constant 18 : i32
    %49 = tpu.dynamic_rotate %48 by %c18_i32_25 dim 1 : vector<8x384xf32>, i32 -> vector<8x384xf32>
    %50 = arith.addf %47, %49 : vector<8x384xf32>
    %51 = vector.extract_strided_slice %45 {offsets = [16, 0], sizes = [8, 384], strides = [1, 1]} : vector<72x384xf32> to vector<8x384xf32>
    %c17_i32_26 = arith.constant 17 : i32
    %52 = tpu.dynamic_rotate %51 by %c17_i32_26 dim 1 : vector<8x384xf32>, i32 -> vector<8x384xf32>
    %53 = arith.addf %50, %52 : vector<8x384xf32>
    %54 = vector.extract_strided_slice %45 {offsets = [24, 0], sizes = [8, 384], strides = [1, 1]} : vector<72x384xf32> to vector<8x384xf32>
    %c1_i32_27 = arith.constant 1 : i32
    %55 = tpu.dynamic_rotate %54 by %c1_i32_27 dim 1 : vector<8x384xf32>, i32 -> vector<8x384xf32>
    %56 = arith.addf %53, %55 : vector<8x384xf32>
    %57 = vector.extract_strided_slice %45 {offsets = [32, 0], sizes = [8, 384], strides = [1, 1]} : vector<72x384xf32> to vector<8x384xf32>
    %58 = arith.addf %56, %57 : vector<8x384xf32>
    %59 = vector.extract_strided_slice %45 {offsets = [40, 0], sizes = [8, 384], strides = [1, 1]} : vector<72x384xf32> to vector<8x384xf32>
    %c383_i32_28 = arith.constant 383 : i32
    %60 = tpu.dynamic_rotate %59 by %c383_i32_28 dim 1 : vector<8x384xf32>, i32 -> vector<8x384xf32>
    %61 = arith.addf %58, %60 : vector<8x384xf32>
    %62 = vector.extract_strided_slice %45 {offsets = [48, 0], sizes = [8, 384], strides = [1, 1]} : vector<72x384xf32> to vector<8x384xf32>
    %c367_i32_29 = arith.constant 367 : i32
    %63 = tpu.dynamic_rotate %62 by %c367_i32_29 dim 1 : vector<8x384xf32>, i32 -> vector<8x384xf32>
    %64 = arith.addf %61, %63 : vector<8x384xf32>
    %65 = vector.extract_strided_slice %45 {offsets = [56, 0], sizes = [8, 384], strides = [1, 1]} : vector<72x384xf32> to vector<8x384xf32>
    %c366_i32_30 = arith.constant 366 : i32
    %66 = tpu.dynamic_rotate %65 by %c366_i32_30 dim 1 : vector<8x384xf32>, i32 -> vector<8x384xf32>
    %67 = arith.addf %64, %66 : vector<8x384xf32>
    %68 = vector.extract_strided_slice %45 {offsets = [64, 0], sizes = [8, 384], strides = [1, 1]} : vector<72x384xf32> to vector<8x384xf32>
    %c365_i32_31 = arith.constant 365 : i32
    %69 = tpu.dynamic_rotate %68 by %c365_i32_31 dim 1 : vector<8x384xf32>, i32 -> vector<8x384xf32>
    %70 = arith.addf %67, %69 : vector<8x384xf32>
    %cst_32 = arith.constant 0.000000e+00 : f32
    %71 = vector.broadcast %cst_32 : f32 to vector<8x384xf32>
    %72 = arith.maximumf %70, %71 : vector<8x384xf32>
    %73 = vector.broadcast %0 : vector<1x384xf32> to vector<8x384xf32>
    %74 = arith.mulf %72, %73 : vector<8x384xf32>
    %c16 = arith.constant 16 : index
    %c0_33 = arith.constant 0 : index
    %75 = vector.load %arg23[%c16, %c0_33] : memref<72x384xf32, #tpu.memory_space<vmem>>, vector<8x384xf32>
    tpu.vector_store %arg23[%c16, %c0_33], %74 {strides = array<i32>} : memref<72x384xf32, #tpu.memory_space<vmem>>, vector<8x384xf32>,
    %c0_34 = arith.constant 0 : index
    %c0_35 = arith.constant 0 : index
    %76 = vector.load %arg23[%c0_34, %c0_35] : memref<72x384xf32, #tpu.memory_space<vmem>>, vector<24x384xf32>
    %c0_36 = arith.constant 0 : index
    %c0_37 = arith.constant 0 : index
    %77 = vector.load %arg5[%c0_36, %c0_37] : memref<72x24xf32, #tpu.memory_space<vmem>>, vector<72x24xf32>
    %cst_38 = arith.constant dense<0.000000e+00> : vector<72x384xf32>
    %78 = tpu.matmul %77, %76, %cst_38 {dimension_numbers = #tpu.dot_dimension_numbers<[1], [0], [0], [1], [0, 0, 1, 1], [], []>} : vector<72x24xf32>, vector<24x384xf32>, vector<72x384xf32> -> vector<72x384xf32>
    %79 = vector.extract_strided_slice %78 {offsets = [0, 0], sizes = [8, 384], strides = [1, 1]} : vector<72x384xf32> to vector<8x384xf32>
    %c19_i32_39 = arith.constant 19 : i32
    %80 = tpu.dynamic_rotate %79 by %c19_i32_39 dim 1 : vector<8x384xf32>, i32 -> vector<8x384xf32>
    %81 = vector.extract_strided_slice %78 {offsets = [8, 0], sizes = [8, 384], strides = [1, 1]} : vector<72x384xf32> to vector<8x384xf32>
    %c18_i32_40 = arith.constant 18 : i32
    %82 = tpu.dynamic_rotate %81 by %c18_i32_40 dim 1 : vector<8x384xf32>, i32 -> vector<8x384xf32>
    %83 = arith.addf %80, %82 : vector<8x384xf32>
    %84 = vector.extract_strided_slice %78 {offsets = [16, 0], sizes = [8, 384], strides = [1, 1]} : vector<72x384xf32> to vector<8x384xf32>
    %c17_i32_41 = arith.constant 17 : i32
    %85 = tpu.dynamic_rotate %84 by %c17_i32_41 dim 1 : vector<8x384xf32>, i32 -> vector<8x384xf32>
    %86 = arith.addf %83, %85 : vector<8x384xf32>
    %87 = vector.extract_strided_slice %78 {offsets = [24, 0], sizes = [8, 384], strides = [1, 1]} : vector<72x384xf32> to vector<8x384xf32>
    %c1_i32_42 = arith.constant 1 : i32
    %88 = tpu.dynamic_rotate %87 by %c1_i32_42 dim 1 : vector<8x384xf32>, i32 -> vector<8x384xf32>
    %89 = arith.addf %86, %88 : vector<8x384xf32>
    %90 = vector.extract_strided_slice %78 {offsets = [32, 0], sizes = [8, 384], strides = [1, 1]} : vector<72x384xf32> to vector<8x384xf32>
    %91 = arith.addf %89, %90 : vector<8x384xf32>
    %92 = vector.extract_strided_slice %78 {offsets = [40, 0], sizes = [8, 384], strides = [1, 1]} : vector<72x384xf32> to vector<8x384xf32>
    %c383_i32_43 = arith.constant 383 : i32
    %93 = tpu.dynamic_rotate %92 by %c383_i32_43 dim 1 : vector<8x384xf32>, i32 -> vector<8x384xf32>
    %94 = arith.addf %91, %93 : vector<8x384xf32>
    %95 = vector.extract_strided_slice %78 {offsets = [48, 0], sizes = [8, 384], strides = [1, 1]} : vector<72x384xf32> to vector<8x384xf32>
    %c367_i32_44 = arith.constant 367 : i32
    %96 = tpu.dynamic_rotate %95 by %c367_i32_44 dim 1 : vector<8x384xf32>, i32 -> vector<8x384xf32>
    %97 = arith.addf %94, %96 : vector<8x384xf32>
    %98 = vector.extract_strided_slice %78 {offsets = [56, 0], sizes = [8, 384], strides = [1, 1]} : vector<72x384xf32> to vector<8x384xf32>
    %c366_i32_45 = arith.constant 366 : i32
    %99 = tpu.dynamic_rotate %98 by %c366_i32_45 dim 1 : vector<8x384xf32>, i32 -> vector<8x384xf32>
    %100 = arith.addf %97, %99 : vector<8x384xf32>
    %101 = vector.extract_strided_slice %78 {offsets = [64, 0], sizes = [8, 384], strides = [1, 1]} : vector<72x384xf32> to vector<8x384xf32>
    %c365_i32_46 = arith.constant 365 : i32
    %102 = tpu.dynamic_rotate %101 by %c365_i32_46 dim 1 : vector<8x384xf32>, i32 -> vector<8x384xf32>
    %103 = arith.addf %100, %102 : vector<8x384xf32>
    %cst_47 = arith.constant 0.000000e+00 : f32
    %104 = vector.broadcast %cst_47 : f32 to vector<8x384xf32>
    %105 = arith.maximumf %103, %104 : vector<8x384xf32>
    %106 = vector.broadcast %0 : vector<1x384xf32> to vector<8x384xf32>
    %107 = arith.mulf %105, %106 : vector<8x384xf32>
    %c24 = arith.constant 24 : index
    %c0_48 = arith.constant 0 : index
    %108 = vector.load %arg23[%c24, %c0_48] : memref<72x384xf32, #tpu.memory_space<vmem>>, vector<8x384xf32>
    tpu.vector_store %arg23[%c24, %c0_48], %107 {strides = array<i32>} : memref<72x384xf32, #tpu.memory_space<vmem>>, vector<8x384xf32>,
    %c0_49 = arith.constant 0 : index
    %c0_50 = arith.constant 0 : index
    %109 = vector.load %arg23[%c0_49, %c0_50] : memref<72x384xf32, #tpu.memory_space<vmem>>, vector<32x384xf32>
    %c0_51 = arith.constant 0 : index
    %c0_52 = arith.constant 0 : index
    %110 = vector.load %arg6[%c0_51, %c0_52] : memref<72x32xf32, #tpu.memory_space<vmem>>, vector<72x32xf32>
    %cst_53 = arith.constant dense<0.000000e+00> : vector<72x384xf32>
    %111 = tpu.matmul %110, %109, %cst_53 {dimension_numbers = #tpu.dot_dimension_numbers<[1], [0], [0], [1], [0, 0, 1, 1], [], []>} : vector<72x32xf32>, vector<32x384xf32>, vector<72x384xf32> -> vector<72x384xf32>
    %112 = vector.extract_strided_slice %111 {offsets = [0, 0], sizes = [8, 384], strides = [1, 1]} : vector<72x384xf32> to vector<8x384xf32>
    %c19_i32_54 = arith.constant 19 : i32
    %113 = tpu.dynamic_rotate %112 by %c19_i32_54 dim 1 : vector<8x384xf32>, i32 -> vector<8x384xf32>
    %114 = vector.extract_strided_slice %111 {offsets = [8, 0], sizes = [8, 384], strides = [1, 1]} : vector<72x384xf32> to vector<8x384xf32>
    %c18_i32_55 = arith.constant 18 : i32
    %115 = tpu.dynamic_rotate %114 by %c18_i32_55 dim 1 : vector<8x384xf32>, i32 -> vector<8x384xf32>
    %116 = arith.addf %113, %115 : vector<8x384xf32>
    %117 = vector.extract_strided_slice %111 {offsets = [16, 0], sizes = [8, 384], strides = [1, 1]} : vector<72x384xf32> to vector<8x384xf32>
    %c17_i32_56 = arith.constant 17 : i32
    %118 = tpu.dynamic_rotate %117 by %c17_i32_56 dim 1 : vector<8x384xf32>, i32 -> vector<8x384xf32>
    %119 = arith.addf %116, %118 : vector<8x384xf32>
    %120 = vector.extract_strided_slice %111 {offsets = [24, 0], sizes = [8, 384], strides = [1, 1]} : vector<72x384xf32> to vector<8x384xf32>
    %c1_i32_57 = arith.constant 1 : i32
    %121 = tpu.dynamic_rotate %120 by %c1_i32_57 dim 1 : vector<8x384xf32>, i32 -> vector<8x384xf32>
    %122 = arith.addf %119, %121 : vector<8x384xf32>
    %123 = vector.extract_strided_slice %111 {offsets = [32, 0], sizes = [8, 384], strides = [1, 1]} : vector<72x384xf32> to vector<8x384xf32>
    %124 = arith.addf %122, %123 : vector<8x384xf32>
    %125 = vector.extract_strided_slice %111 {offsets = [40, 0], sizes = [8, 384], strides = [1, 1]} : vector<72x384xf32> to vector<8x384xf32>
    %c383_i32_58 = arith.constant 383 : i32
    %126 = tpu.dynamic_rotate %125 by %c383_i32_58 dim 1 : vector<8x384xf32>, i32 -> vector<8x384xf32>
    %127 = arith.addf %124, %126 : vector<8x384xf32>
    %128 = vector.extract_strided_slice %111 {offsets = [48, 0], sizes = [8, 384], strides = [1, 1]} : vector<72x384xf32> to vector<8x384xf32>
    %c367_i32_59 = arith.constant 367 : i32
    %129 = tpu.dynamic_rotate %128 by %c367_i32_59 dim 1 : vector<8x384xf32>, i32 -> vector<8x384xf32>
    %130 = arith.addf %127, %129 : vector<8x384xf32>
    %131 = vector.extract_strided_slice %111 {offsets = [56, 0], sizes = [8, 384], strides = [1, 1]} : vector<72x384xf32> to vector<8x384xf32>
    %c366_i32_60 = arith.constant 366 : i32
    %132 = tpu.dynamic_rotate %131 by %c366_i32_60 dim 1 : vector<8x384xf32>, i32 -> vector<8x384xf32>
    %133 = arith.addf %130, %132 : vector<8x384xf32>
    %134 = vector.extract_strided_slice %111 {offsets = [64, 0], sizes = [8, 384], strides = [1, 1]} : vector<72x384xf32> to vector<8x384xf32>
    %c365_i32_61 = arith.constant 365 : i32
    %135 = tpu.dynamic_rotate %134 by %c365_i32_61 dim 1 : vector<8x384xf32>, i32 -> vector<8x384xf32>
    %136 = arith.addf %133, %135 : vector<8x384xf32>
    %cst_62 = arith.constant 0.000000e+00 : f32
    %137 = vector.broadcast %cst_62 : f32 to vector<8x384xf32>
    %138 = arith.maximumf %136, %137 : vector<8x384xf32>
    %139 = vector.broadcast %0 : vector<1x384xf32> to vector<8x384xf32>
    %140 = arith.mulf %138, %139 : vector<8x384xf32>
    %c32 = arith.constant 32 : index
    %c0_63 = arith.constant 0 : index
    %141 = vector.load %arg23[%c32, %c0_63] : memref<72x384xf32, #tpu.memory_space<vmem>>, vector<8x384xf32>
    tpu.vector_store %arg23[%c32, %c0_63], %140 {strides = array<i32>} : memref<72x384xf32, #tpu.memory_space<vmem>>, vector<8x384xf32>,
    %c0_64 = arith.constant 0 : index
    %c0_65 = arith.constant 0 : index
    %142 = vector.load %arg23[%c0_64, %c0_65] : memref<72x384xf32, #tpu.memory_space<vmem>>, vector<40x384xf32>
    %c0_66 = arith.constant 0 : index
    %c0_67 = arith.constant 0 : index
    %143 = vector.load %arg7[%c0_66, %c0_67] : memref<16x40xf32, #tpu.memory_space<vmem>>, vector<16x40xf32>
    %cst_68 = arith.constant dense<0.000000e+00> : vector<16x384xf32>
    %144 = tpu.matmul %143, %142, %cst_68 {dimension_numbers = #tpu.dot_dimension_numbers<[1], [0], [0], [1], [0, 0, 1, 1], [], []>} : vector<16x40xf32>, vector<40x384xf32>, vector<16x384xf32> -> vector<16x384xf32>
    %c56_69 = arith.constant 56 : index
    %c0_70 = arith.constant 0 : index
    %145 = vector.load %arg23[%c56_69, %c0_70] : memref<72x384xf32, #tpu.memory_space<vmem>>, vector<16x384xf32>
    %146 = arith.subf %145, %144 : vector<16x384xf32>
    %c56_71 = arith.constant 56 : index
    %c0_72 = arith.constant 0 : index
    %147 = vector.load %arg23[%c56_71, %c0_72] : memref<72x384xf32, #tpu.memory_space<vmem>>, vector<16x384xf32>
    tpu.vector_store %arg23[%c56_71, %c0_72], %146 {strides = array<i32>} : memref<72x384xf32, #tpu.memory_space<vmem>>, vector<16x384xf32>,
    %c56_73 = arith.constant 56 : index
    %c0_74 = arith.constant 0 : index
    %148 = vector.load %arg23[%c56_73, %c0_74] : memref<72x384xf32, #tpu.memory_space<vmem>>, vector<16x384xf32>
    %cst_75 = arith.constant 0.000000e+00 : f32
    %149 = vector.broadcast %cst_75 : f32 to vector<16x384xf32>
    %150 = arith.maximumf %148, %149 : vector<16x384xf32>
    %c0_76 = arith.constant 0 : index
    %c0_77 = arith.constant 0 : index
    %151 = vector.load %arg23[%c0_76, %c0_77] : memref<72x384xf32, #tpu.memory_space<vmem>>, vector<16x384xf32>
    tpu.vector_store %arg23[%c0_76, %c0_77], %150 {strides = array<i32>} : memref<72x384xf32, #tpu.memory_space<vmem>>, vector<16x384xf32>,
    %c0_78 = arith.constant 0 : index
    %c0_79 = arith.constant 0 : index
    %152 = vector.load %arg23[%c0_78, %c0_79] : memref<72x384xf32, #tpu.memory_space<vmem>>, vector<16x384xf32>
    %c0_80 = arith.constant 0 : index
    %c0_81 = arith.constant 0 : index
    %153 = vector.load %arg8[%c0_80, %c0_81] : memref<72x16xf32, #tpu.memory_space<vmem>>, vector<72x16xf32>
    %cst_82 = arith.constant dense<0.000000e+00> : vector<72x384xf32>
    %154 = tpu.matmul %153, %152, %cst_82 {dimension_numbers = #tpu.dot_dimension_numbers<[1], [0], [0], [1], [0, 0, 1, 1], [], []>} : vector<72x16xf32>, vector<16x384xf32>, vector<72x384xf32> -> vector<72x384xf32>
    %155 = vector.extract_strided_slice %154 {offsets = [0, 0], sizes = [8, 384], strides = [1, 1]} : vector<72x384xf32> to vector<8x384xf32>
    %c19_i32_83 = arith.constant 19 : i32
    %156 = tpu.dynamic_rotate %155 by %c19_i32_83 dim 1 : vector<8x384xf32>, i32 -> vector<8x384xf32>
    %157 = vector.extract_strided_slice %154 {offsets = [8, 0], sizes = [8, 384], strides = [1, 1]} : vector<72x384xf32> to vector<8x384xf32>
    %c18_i32_84 = arith.constant 18 : i32
    %158 = tpu.dynamic_rotate %157 by %c18_i32_84 dim 1 : vector<8x384xf32>, i32 -> vector<8x384xf32>
    %159 = arith.addf %156, %158 : vector<8x384xf32>
    %160 = vector.extract_strided_slice %154 {offsets = [16, 0], sizes = [8, 384], strides = [1, 1]} : vector<72x384xf32> to vector<8x384xf32>
    %c17_i32_85 = arith.constant 17 : i32
    %161 = tpu.dynamic_rotate %160 by %c17_i32_85 dim 1 : vector<8x384xf32>, i32 -> vector<8x384xf32>
    %162 = arith.addf %159, %161 : vector<8x384xf32>
    %163 = vector.extract_strided_slice %154 {offsets = [24, 0], sizes = [8, 384], strides = [1, 1]} : vector<72x384xf32> to vector<8x384xf32>
    %c1_i32_86 = arith.constant 1 : i32
    %164 = tpu.dynamic_rotate %163 by %c1_i32_86 dim 1 : vector<8x384xf32>, i32 -> vector<8x384xf32>
    %165 = arith.addf %162, %164 : vector<8x384xf32>
    %166 = vector.extract_strided_slice %154 {offsets = [32, 0], sizes = [8, 384], strides = [1, 1]} : vector<72x384xf32> to vector<8x384xf32>
    %167 = arith.addf %165, %166 : vector<8x384xf32>
    %168 = vector.extract_strided_slice %154 {offsets = [40, 0], sizes = [8, 384], strides = [1, 1]} : vector<72x384xf32> to vector<8x384xf32>
    %c383_i32_87 = arith.constant 383 : i32
    %169 = tpu.dynamic_rotate %168 by %c383_i32_87 dim 1 : vector<8x384xf32>, i32 -> vector<8x384xf32>
    %170 = arith.addf %167, %169 : vector<8x384xf32>
    %171 = vector.extract_strided_slice %154 {offsets = [48, 0], sizes = [8, 384], strides = [1, 1]} : vector<72x384xf32> to vector<8x384xf32>
    %c367_i32_88 = arith.constant 367 : i32
    %172 = tpu.dynamic_rotate %171 by %c367_i32_88 dim 1 : vector<8x384xf32>, i32 -> vector<8x384xf32>
    %173 = arith.addf %170, %172 : vector<8x384xf32>
    %174 = vector.extract_strided_slice %154 {offsets = [56, 0], sizes = [8, 384], strides = [1, 1]} : vector<72x384xf32> to vector<8x384xf32>
    %c366_i32_89 = arith.constant 366 : i32
    %175 = tpu.dynamic_rotate %174 by %c366_i32_89 dim 1 : vector<8x384xf32>, i32 -> vector<8x384xf32>
    %176 = arith.addf %173, %175 : vector<8x384xf32>
    %177 = vector.extract_strided_slice %154 {offsets = [64, 0], sizes = [8, 384], strides = [1, 1]} : vector<72x384xf32> to vector<8x384xf32>
    %c365_i32_90 = arith.constant 365 : i32
    %178 = tpu.dynamic_rotate %177 by %c365_i32_90 dim 1 : vector<8x384xf32>, i32 -> vector<8x384xf32>
    %179 = arith.addf %176, %178 : vector<8x384xf32>
    %cst_91 = arith.constant 0.000000e+00 : f32
    %180 = vector.broadcast %cst_91 : f32 to vector<8x384xf32>
    %181 = arith.maximumf %179, %180 : vector<8x384xf32>
    %182 = vector.broadcast %0 : vector<1x384xf32> to vector<8x384xf32>
    %183 = arith.mulf %181, %182 : vector<8x384xf32>
    %c16_92 = arith.constant 16 : index
    %c0_93 = arith.constant 0 : index
    %184 = vector.load %arg23[%c16_92, %c0_93] : memref<72x384xf32, #tpu.memory_space<vmem>>, vector<8x384xf32>
    tpu.vector_store %arg23[%c16_92, %c0_93], %183 {strides = array<i32>} : memref<72x384xf32, #tpu.memory_space<vmem>>, vector<8x384xf32>,
    %c0_94 = arith.constant 0 : index
    %c0_95 = arith.constant 0 : index
    %185 = vector.load %arg23[%c0_94, %c0_95] : memref<72x384xf32, #tpu.memory_space<vmem>>, vector<24x384xf32>
    %c0_96 = arith.constant 0 : index
    %c0_97 = arith.constant 0 : index
    %186 = vector.load %arg9[%c0_96, %c0_97] : memref<72x24xf32, #tpu.memory_space<vmem>>, vector<72x24xf32>
    %cst_98 = arith.constant dense<0.000000e+00> : vector<72x384xf32>
    %187 = tpu.matmul %186, %185, %cst_98 {dimension_numbers = #tpu.dot_dimension_numbers<[1], [0], [0], [1], [0, 0, 1, 1], [], []>} : vector<72x24xf32>, vector<24x384xf32>, vector<72x384xf32> -> vector<72x384xf32>
    %188 = vector.extract_strided_slice %187 {offsets = [0, 0], sizes = [8, 384], strides = [1, 1]} : vector<72x384xf32> to vector<8x384xf32>
    %c19_i32_99 = arith.constant 19 : i32
    %189 = tpu.dynamic_rotate %188 by %c19_i32_99 dim 1 : vector<8x384xf32>, i32 -> vector<8x384xf32>
    %190 = vector.extract_strided_slice %187 {offsets = [8, 0], sizes = [8, 384], strides = [1, 1]} : vector<72x384xf32> to vector<8x384xf32>
    %c18_i32_100 = arith.constant 18 : i32
    %191 = tpu.dynamic_rotate %190 by %c18_i32_100 dim 1 : vector<8x384xf32>, i32 -> vector<8x384xf32>
    %192 = arith.addf %189, %191 : vector<8x384xf32>
    %193 = vector.extract_strided_slice %187 {offsets = [16, 0], sizes = [8, 384], strides = [1, 1]} : vector<72x384xf32> to vector<8x384xf32>
    %c17_i32_101 = arith.constant 17 : i32
    %194 = tpu.dynamic_rotate %193 by %c17_i32_101 dim 1 : vector<8x384xf32>, i32 -> vector<8x384xf32>
    %195 = arith.addf %192, %194 : vector<8x384xf32>
    %196 = vector.extract_strided_slice %187 {offsets = [24, 0], sizes = [8, 384], strides = [1, 1]} : vector<72x384xf32> to vector<8x384xf32>
    %c1_i32_102 = arith.constant 1 : i32
    %197 = tpu.dynamic_rotate %196 by %c1_i32_102 dim 1 : vector<8x384xf32>, i32 -> vector<8x384xf32>
    %198 = arith.addf %195, %197 : vector<8x384xf32>
    %199 = vector.extract_strided_slice %187 {offsets = [32, 0], sizes = [8, 384], strides = [1, 1]} : vector<72x384xf32> to vector<8x384xf32>
    %200 = arith.addf %198, %199 : vector<8x384xf32>
    %201 = vector.extract_strided_slice %187 {offsets = [40, 0], sizes = [8, 384], strides = [1, 1]} : vector<72x384xf32> to vector<8x384xf32>
    %c383_i32_103 = arith.constant 383 : i32
    %202 = tpu.dynamic_rotate %201 by %c383_i32_103 dim 1 : vector<8x384xf32>, i32 -> vector<8x384xf32>
    %203 = arith.addf %200, %202 : vector<8x384xf32>
    %204 = vector.extract_strided_slice %187 {offsets = [48, 0], sizes = [8, 384], strides = [1, 1]} : vector<72x384xf32> to vector<8x384xf32>
    %c367_i32_104 = arith.constant 367 : i32
    %205 = tpu.dynamic_rotate %204 by %c367_i32_104 dim 1 : vector<8x384xf32>, i32 -> vector<8x384xf32>
    %206 = arith.addf %203, %205 : vector<8x384xf32>
    %207 = vector.extract_strided_slice %187 {offsets = [56, 0], sizes = [8, 384], strides = [1, 1]} : vector<72x384xf32> to vector<8x384xf32>
    %c366_i32_105 = arith.constant 366 : i32
    %208 = tpu.dynamic_rotate %207 by %c366_i32_105 dim 1 : vector<8x384xf32>, i32 -> vector<8x384xf32>
    %209 = arith.addf %206, %208 : vector<8x384xf32>
    %210 = vector.extract_strided_slice %187 {offsets = [64, 0], sizes = [8, 384], strides = [1, 1]} : vector<72x384xf32> to vector<8x384xf32>
    %c365_i32_106 = arith.constant 365 : i32
    %211 = tpu.dynamic_rotate %210 by %c365_i32_106 dim 1 : vector<8x384xf32>, i32 -> vector<8x384xf32>
    %212 = arith.addf %209, %211 : vector<8x384xf32>
    %cst_107 = arith.constant 0.000000e+00 : f32
    %213 = vector.broadcast %cst_107 : f32 to vector<8x384xf32>
    %214 = arith.maximumf %212, %213 : vector<8x384xf32>
    %215 = vector.broadcast %0 : vector<1x384xf32> to vector<8x384xf32>
    %216 = arith.mulf %214, %215 : vector<8x384xf32>
    %c24_108 = arith.constant 24 : index
    %c0_109 = arith.constant 0 : index
    %217 = vector.load %arg23[%c24_108, %c0_109] : memref<72x384xf32, #tpu.memory_space<vmem>>, vector<8x384xf32>
    tpu.vector_store %arg23[%c24_108, %c0_109], %216 {strides = array<i32>} : memref<72x384xf32, #tpu.memory_space<vmem>>, vector<8x384xf32>,
    %c0_110 = arith.constant 0 : index
    %c0_111 = arith.constant 0 : index
    %218 = vector.load %arg23[%c0_110, %c0_111] : memref<72x384xf32, #tpu.memory_space<vmem>>, vector<32x384xf32>
    %c0_112 = arith.constant 0 : index
    %c0_113 = arith.constant 0 : index
    %219 = vector.load %arg10[%c0_112, %c0_113] : memref<72x32xf32, #tpu.memory_space<vmem>>, vector<72x32xf32>
    %cst_114 = arith.constant dense<0.000000e+00> : vector<72x384xf32>
    %220 = tpu.matmul %219, %218, %cst_114 {dimension_numbers = #tpu.dot_dimension_numbers<[1], [0], [0], [1], [0, 0, 1, 1], [], []>} : vector<72x32xf32>, vector<32x384xf32>, vector<72x384xf32> -> vector<72x384xf32>
    %221 = vector.extract_strided_slice %220 {offsets = [0, 0], sizes = [8, 384], strides = [1, 1]} : vector<72x384xf32> to vector<8x384xf32>
    %c19_i32_115 = arith.constant 19 : i32
    %222 = tpu.dynamic_rotate %221 by %c19_i32_115 dim 1 : vector<8x384xf32>, i32 -> vector<8x384xf32>
    %223 = vector.extract_strided_slice %220 {offsets = [8, 0], sizes = [8, 384], strides = [1, 1]} : vector<72x384xf32> to vector<8x384xf32>
    %c18_i32_116 = arith.constant 18 : i32
    %224 = tpu.dynamic_rotate %223 by %c18_i32_116 dim 1 : vector<8x384xf32>, i32 -> vector<8x384xf32>
    %225 = arith.addf %222, %224 : vector<8x384xf32>
    %226 = vector.extract_strided_slice %220 {offsets = [16, 0], sizes = [8, 384], strides = [1, 1]} : vector<72x384xf32> to vector<8x384xf32>
    %c17_i32_117 = arith.constant 17 : i32
    %227 = tpu.dynamic_rotate %226 by %c17_i32_117 dim 1 : vector<8x384xf32>, i32 -> vector<8x384xf32>
    %228 = arith.addf %225, %227 : vector<8x384xf32>
    %229 = vector.extract_strided_slice %220 {offsets = [24, 0], sizes = [8, 384], strides = [1, 1]} : vector<72x384xf32> to vector<8x384xf32>
    %c1_i32_118 = arith.constant 1 : i32
    %230 = tpu.dynamic_rotate %229 by %c1_i32_118 dim 1 : vector<8x384xf32>, i32 -> vector<8x384xf32>
    %231 = arith.addf %228, %230 : vector<8x384xf32>
    %232 = vector.extract_strided_slice %220 {offsets = [32, 0], sizes = [8, 384], strides = [1, 1]} : vector<72x384xf32> to vector<8x384xf32>
    %233 = arith.addf %231, %232 : vector<8x384xf32>
    %234 = vector.extract_strided_slice %220 {offsets = [40, 0], sizes = [8, 384], strides = [1, 1]} : vector<72x384xf32> to vector<8x384xf32>
    %c383_i32_119 = arith.constant 383 : i32
    %235 = tpu.dynamic_rotate %234 by %c383_i32_119 dim 1 : vector<8x384xf32>, i32 -> vector<8x384xf32>
    %236 = arith.addf %233, %235 : vector<8x384xf32>
    %237 = vector.extract_strided_slice %220 {offsets = [48, 0], sizes = [8, 384], strides = [1, 1]} : vector<72x384xf32> to vector<8x384xf32>
    %c367_i32_120 = arith.constant 367 : i32
    %238 = tpu.dynamic_rotate %237 by %c367_i32_120 dim 1 : vector<8x384xf32>, i32 -> vector<8x384xf32>
    %239 = arith.addf %236, %238 : vector<8x384xf32>
    %240 = vector.extract_strided_slice %220 {offsets = [56, 0], sizes = [8, 384], strides = [1, 1]} : vector<72x384xf32> to vector<8x384xf32>
    %c366_i32_121 = arith.constant 366 : i32
    %241 = tpu.dynamic_rotate %240 by %c366_i32_121 dim 1 : vector<8x384xf32>, i32 -> vector<8x384xf32>
    %242 = arith.addf %239, %241 : vector<8x384xf32>
    %243 = vector.extract_strided_slice %220 {offsets = [64, 0], sizes = [8, 384], strides = [1, 1]} : vector<72x384xf32> to vector<8x384xf32>
    %c365_i32_122 = arith.constant 365 : i32
    %244 = tpu.dynamic_rotate %243 by %c365_i32_122 dim 1 : vector<8x384xf32>, i32 -> vector<8x384xf32>
    %245 = arith.addf %242, %244 : vector<8x384xf32>
    %cst_123 = arith.constant 0.000000e+00 : f32
    %246 = vector.broadcast %cst_123 : f32 to vector<8x384xf32>
    %247 = arith.maximumf %245, %246 : vector<8x384xf32>
    %248 = vector.broadcast %0 : vector<1x384xf32> to vector<8x384xf32>
    %249 = arith.mulf %247, %248 : vector<8x384xf32>
    %c32_124 = arith.constant 32 : index
    %c0_125 = arith.constant 0 : index
    %250 = vector.load %arg23[%c32_124, %c0_125] : memref<72x384xf32, #tpu.memory_space<vmem>>, vector<8x384xf32>
    tpu.vector_store %arg23[%c32_124, %c0_125], %249 {strides = array<i32>} : memref<72x384xf32, #tpu.memory_space<vmem>>, vector<8x384xf32>,
    %c0_126 = arith.constant 0 : index
    %c0_127 = arith.constant 0 : index
    %251 = vector.load %arg23[%c0_126, %c0_127] : memref<72x384xf32, #tpu.memory_space<vmem>>, vector<40x384xf32>
    %c0_128 = arith.constant 0 : index
    %c0_129 = arith.constant 0 : index
    %252 = vector.load %arg11[%c0_128, %c0_129] : memref<16x40xf32, #tpu.memory_space<vmem>>, vector<16x40xf32>
    %cst_130 = arith.constant dense<0.000000e+00> : vector<16x384xf32>
    %253 = tpu.matmul %252, %251, %cst_130 {dimension_numbers = #tpu.dot_dimension_numbers<[1], [0], [0], [1], [0, 0, 1, 1], [], []>} : vector<16x40xf32>, vector<40x384xf32>, vector<16x384xf32> -> vector<16x384xf32>
    %c56_131 = arith.constant 56 : index
    %c0_132 = arith.constant 0 : index
    %254 = vector.load %arg23[%c56_131, %c0_132] : memref<72x384xf32, #tpu.memory_space<vmem>>, vector<16x384xf32>
    %255 = arith.subf %254, %253 : vector<16x384xf32>
    %c56_133 = arith.constant 56 : index
    %c0_134 = arith.constant 0 : index
    %256 = vector.load %arg23[%c56_133, %c0_134] : memref<72x384xf32, #tpu.memory_space<vmem>>, vector<16x384xf32>
    tpu.vector_store %arg23[%c56_133, %c0_134], %255 {strides = array<i32>} : memref<72x384xf32, #tpu.memory_space<vmem>>, vector<16x384xf32>,
    %c56_135 = arith.constant 56 : index
    %c0_136 = arith.constant 0 : index
    %257 = vector.load %arg23[%c56_135, %c0_136] : memref<72x384xf32, #tpu.memory_space<vmem>>, vector<16x384xf32>
    %cst_137 = arith.constant 0.000000e+00 : f32
    %258 = vector.broadcast %cst_137 : f32 to vector<16x384xf32>
    %259 = arith.maximumf %257, %258 : vector<16x384xf32>
    %c0_138 = arith.constant 0 : index
    %c0_139 = arith.constant 0 : index
    %260 = vector.load %arg23[%c0_138, %c0_139] : memref<72x384xf32, #tpu.memory_space<vmem>>, vector<16x384xf32>
    tpu.vector_store %arg23[%c0_138, %c0_139], %259 {strides = array<i32>} : memref<72x384xf32, #tpu.memory_space<vmem>>, vector<16x384xf32>,
    %c0_140 = arith.constant 0 : index
    %c0_141 = arith.constant 0 : index
    %261 = vector.load %arg23[%c0_140, %c0_141] : memref<72x384xf32, #tpu.memory_space<vmem>>, vector<16x384xf32>
    %c0_142 = arith.constant 0 : index
    %c0_143 = arith.constant 0 : index
    %262 = vector.load %arg12[%c0_142, %c0_143] : memref<72x16xf32, #tpu.memory_space<vmem>>, vector<72x16xf32>
    %cst_144 = arith.constant dense<0.000000e+00> : vector<72x384xf32>
    %263 = tpu.matmul %262, %261, %cst_144 {dimension_numbers = #tpu.dot_dimension_numbers<[1], [0], [0], [1], [0, 0, 1, 1], [], []>} : vector<72x16xf32>, vector<16x384xf32>, vector<72x384xf32> -> vector<72x384xf32>
    %264 = vector.extract_strided_slice %263 {offsets = [0, 0], sizes = [8, 384], strides = [1, 1]} : vector<72x384xf32> to vector<8x384xf32>
    %c19_i32_145 = arith.constant 19 : i32
    %265 = tpu.dynamic_rotate %264 by %c19_i32_145 dim 1 : vector<8x384xf32>, i32 -> vector<8x384xf32>
    %266 = vector.extract_strided_slice %263 {offsets = [8, 0], sizes = [8, 384], strides = [1, 1]} : vector<72x384xf32> to vector<8x384xf32>
    %c18_i32_146 = arith.constant 18 : i32
    %267 = tpu.dynamic_rotate %266 by %c18_i32_146 dim 1 : vector<8x384xf32>, i32 -> vector<8x384xf32>
    %268 = arith.addf %265, %267 : vector<8x384xf32>
    %269 = vector.extract_strided_slice %263 {offsets = [16, 0], sizes = [8, 384], strides = [1, 1]} : vector<72x384xf32> to vector<8x384xf32>
    %c17_i32_147 = arith.constant 17 : i32
    %270 = tpu.dynamic_rotate %269 by %c17_i32_147 dim 1 : vector<8x384xf32>, i32 -> vector<8x384xf32>
    %271 = arith.addf %268, %270 : vector<8x384xf32>
    %272 = vector.extract_strided_slice %263 {offsets = [24, 0], sizes = [8, 384], strides = [1, 1]} : vector<72x384xf32> to vector<8x384xf32>
    %c1_i32_148 = arith.constant 1 : i32
    %273 = tpu.dynamic_rotate %272 by %c1_i32_148 dim 1 : vector<8x384xf32>, i32 -> vector<8x384xf32>
    %274 = arith.addf %271, %273 : vector<8x384xf32>
    %275 = vector.extract_strided_slice %263 {offsets = [32, 0], sizes = [8, 384], strides = [1, 1]} : vector<72x384xf32> to vector<8x384xf32>
    %276 = arith.addf %274, %275 : vector<8x384xf32>
    %277 = vector.extract_strided_slice %263 {offsets = [40, 0], sizes = [8, 384], strides = [1, 1]} : vector<72x384xf32> to vector<8x384xf32>
    %c383_i32_149 = arith.constant 383 : i32
    %278 = tpu.dynamic_rotate %277 by %c383_i32_149 dim 1 : vector<8x384xf32>, i32 -> vector<8x384xf32>
    %279 = arith.addf %276, %278 : vector<8x384xf32>
    %280 = vector.extract_strided_slice %263 {offsets = [48, 0], sizes = [8, 384], strides = [1, 1]} : vector<72x384xf32> to vector<8x384xf32>
    %c367_i32_150 = arith.constant 367 : i32
    %281 = tpu.dynamic_rotate %280 by %c367_i32_150 dim 1 : vector<8x384xf32>, i32 -> vector<8x384xf32>
    %282 = arith.addf %279, %281 : vector<8x384xf32>
    %283 = vector.extract_strided_slice %263 {offsets = [56, 0], sizes = [8, 384], strides = [1, 1]} : vector<72x384xf32> to vector<8x384xf32>
    %c366_i32_151 = arith.constant 366 : i32
    %284 = tpu.dynamic_rotate %283 by %c366_i32_151 dim 1 : vector<8x384xf32>, i32 -> vector<8x384xf32>
    %285 = arith.addf %282, %284 : vector<8x384xf32>
    %286 = vector.extract_strided_slice %263 {offsets = [64, 0], sizes = [8, 384], strides = [1, 1]} : vector<72x384xf32> to vector<8x384xf32>
    %c365_i32_152 = arith.constant 365 : i32
    %287 = tpu.dynamic_rotate %286 by %c365_i32_152 dim 1 : vector<8x384xf32>, i32 -> vector<8x384xf32>
    %288 = arith.addf %285, %287 : vector<8x384xf32>
    %cst_153 = arith.constant 0.000000e+00 : f32
    %289 = vector.broadcast %cst_153 : f32 to vector<8x384xf32>
    %290 = arith.maximumf %288, %289 : vector<8x384xf32>
    %291 = vector.broadcast %0 : vector<1x384xf32> to vector<8x384xf32>
    %292 = arith.mulf %290, %291 : vector<8x384xf32>
    %c16_154 = arith.constant 16 : index
    %c0_155 = arith.constant 0 : index
    %293 = vector.load %arg23[%c16_154, %c0_155] : memref<72x384xf32, #tpu.memory_space<vmem>>, vector<8x384xf32>
    tpu.vector_store %arg23[%c16_154, %c0_155], %292 {strides = array<i32>} : memref<72x384xf32, #tpu.memory_space<vmem>>, vector<8x384xf32>,
    %c0_156 = arith.constant 0 : index
    %c0_157 = arith.constant 0 : index
    %294 = vector.load %arg23[%c0_156, %c0_157] : memref<72x384xf32, #tpu.memory_space<vmem>>, vector<24x384xf32>
    %c0_158 = arith.constant 0 : index
    %c0_159 = arith.constant 0 : index
    %295 = vector.load %arg13[%c0_158, %c0_159] : memref<72x24xf32, #tpu.memory_space<vmem>>, vector<72x24xf32>
    %cst_160 = arith.constant dense<0.000000e+00> : vector<72x384xf32>
    %296 = tpu.matmul %295, %294, %cst_160 {dimension_numbers = #tpu.dot_dimension_numbers<[1], [0], [0], [1], [0, 0, 1, 1], [], []>} : vector<72x24xf32>, vector<24x384xf32>, vector<72x384xf32> -> vector<72x384xf32>
    %297 = vector.extract_strided_slice %296 {offsets = [0, 0], sizes = [8, 384], strides = [1, 1]} : vector<72x384xf32> to vector<8x384xf32>
    %c19_i32_161 = arith.constant 19 : i32
    %298 = tpu.dynamic_rotate %297 by %c19_i32_161 dim 1 : vector<8x384xf32>, i32 -> vector<8x384xf32>
    %299 = vector.extract_strided_slice %296 {offsets = [8, 0], sizes = [8, 384], strides = [1, 1]} : vector<72x384xf32> to vector<8x384xf32>
    %c18_i32_162 = arith.constant 18 : i32
    %300 = tpu.dynamic_rotate %299 by %c18_i32_162 dim 1 : vector<8x384xf32>, i32 -> vector<8x384xf32>
    %301 = arith.addf %298, %300 : vector<8x384xf32>
    %302 = vector.extract_strided_slice %296 {offsets = [16, 0], sizes = [8, 384], strides = [1, 1]} : vector<72x384xf32> to vector<8x384xf32>
    %c17_i32_163 = arith.constant 17 : i32
    %303 = tpu.dynamic_rotate %302 by %c17_i32_163 dim 1 : vector<8x384xf32>, i32 -> vector<8x384xf32>
    %304 = arith.addf %301, %303 : vector<8x384xf32>
    %305 = vector.extract_strided_slice %296 {offsets = [24, 0], sizes = [8, 384], strides = [1, 1]} : vector<72x384xf32> to vector<8x384xf32>
    %c1_i32_164 = arith.constant 1 : i32
    %306 = tpu.dynamic_rotate %305 by %c1_i32_164 dim 1 : vector<8x384xf32>, i32 -> vector<8x384xf32>
    %307 = arith.addf %304, %306 : vector<8x384xf32>
    %308 = vector.extract_strided_slice %296 {offsets = [32, 0], sizes = [8, 384], strides = [1, 1]} : vector<72x384xf32> to vector<8x384xf32>
    %309 = arith.addf %307, %308 : vector<8x384xf32>
    %310 = vector.extract_strided_slice %296 {offsets = [40, 0], sizes = [8, 384], strides = [1, 1]} : vector<72x384xf32> to vector<8x384xf32>
    %c383_i32_165 = arith.constant 383 : i32
    %311 = tpu.dynamic_rotate %310 by %c383_i32_165 dim 1 : vector<8x384xf32>, i32 -> vector<8x384xf32>
    %312 = arith.addf %309, %311 : vector<8x384xf32>
    %313 = vector.extract_strided_slice %296 {offsets = [48, 0], sizes = [8, 384], strides = [1, 1]} : vector<72x384xf32> to vector<8x384xf32>
    %c367_i32_166 = arith.constant 367 : i32
    %314 = tpu.dynamic_rotate %313 by %c367_i32_166 dim 1 : vector<8x384xf32>, i32 -> vector<8x384xf32>
    %315 = arith.addf %312, %314 : vector<8x384xf32>
    %316 = vector.extract_strided_slice %296 {offsets = [56, 0], sizes = [8, 384], strides = [1, 1]} : vector<72x384xf32> to vector<8x384xf32>
    %c366_i32_167 = arith.constant 366 : i32
    %317 = tpu.dynamic_rotate %316 by %c366_i32_167 dim 1 : vector<8x384xf32>, i32 -> vector<8x384xf32>
    %318 = arith.addf %315, %317 : vector<8x384xf32>
    %319 = vector.extract_strided_slice %296 {offsets = [64, 0], sizes = [8, 384], strides = [1, 1]} : vector<72x384xf32> to vector<8x384xf32>
    %c365_i32_168 = arith.constant 365 : i32
    %320 = tpu.dynamic_rotate %319 by %c365_i32_168 dim 1 : vector<8x384xf32>, i32 -> vector<8x384xf32>
    %321 = arith.addf %318, %320 : vector<8x384xf32>
    %cst_169 = arith.constant 0.000000e+00 : f32
    %322 = vector.broadcast %cst_169 : f32 to vector<8x384xf32>
    %323 = arith.maximumf %321, %322 : vector<8x384xf32>
    %324 = vector.broadcast %0 : vector<1x384xf32> to vector<8x384xf32>
    %325 = arith.mulf %323, %324 : vector<8x384xf32>
    %c24_170 = arith.constant 24 : index
    %c0_171 = arith.constant 0 : index
    %326 = vector.load %arg23[%c24_170, %c0_171] : memref<72x384xf32, #tpu.memory_space<vmem>>, vector<8x384xf32>
    tpu.vector_store %arg23[%c24_170, %c0_171], %325 {strides = array<i32>} : memref<72x384xf32, #tpu.memory_space<vmem>>, vector<8x384xf32>,
    %c0_172 = arith.constant 0 : index
    %c0_173 = arith.constant 0 : index
    %327 = vector.load %arg23[%c0_172, %c0_173] : memref<72x384xf32, #tpu.memory_space<vmem>>, vector<32x384xf32>
    %c0_174 = arith.constant 0 : index
    %c0_175 = arith.constant 0 : index
    %328 = vector.load %arg14[%c0_174, %c0_175] : memref<72x32xf32, #tpu.memory_space<vmem>>, vector<72x32xf32>
    %cst_176 = arith.constant dense<0.000000e+00> : vector<72x384xf32>
    %329 = tpu.matmul %328, %327, %cst_176 {dimension_numbers = #tpu.dot_dimension_numbers<[1], [0], [0], [1], [0, 0, 1, 1], [], []>} : vector<72x32xf32>, vector<32x384xf32>, vector<72x384xf32> -> vector<72x384xf32>
    %330 = vector.extract_strided_slice %329 {offsets = [0, 0], sizes = [8, 384], strides = [1, 1]} : vector<72x384xf32> to vector<8x384xf32>
    %c19_i32_177 = arith.constant 19 : i32
    %331 = tpu.dynamic_rotate %330 by %c19_i32_177 dim 1 : vector<8x384xf32>, i32 -> vector<8x384xf32>
    %332 = vector.extract_strided_slice %329 {offsets = [8, 0], sizes = [8, 384], strides = [1, 1]} : vector<72x384xf32> to vector<8x384xf32>
    %c18_i32_178 = arith.constant 18 : i32
    %333 = tpu.dynamic_rotate %332 by %c18_i32_178 dim 1 : vector<8x384xf32>, i32 -> vector<8x384xf32>
    %334 = arith.addf %331, %333 : vector<8x384xf32>
    %335 = vector.extract_strided_slice %329 {offsets = [16, 0], sizes = [8, 384], strides = [1, 1]} : vector<72x384xf32> to vector<8x384xf32>
    %c17_i32_179 = arith.constant 17 : i32
    %336 = tpu.dynamic_rotate %335 by %c17_i32_179 dim 1 : vector<8x384xf32>, i32 -> vector<8x384xf32>
    %337 = arith.addf %334, %336 : vector<8x384xf32>
    %338 = vector.extract_strided_slice %329 {offsets = [24, 0], sizes = [8, 384], strides = [1, 1]} : vector<72x384xf32> to vector<8x384xf32>
    %c1_i32_180 = arith.constant 1 : i32
    %339 = tpu.dynamic_rotate %338 by %c1_i32_180 dim 1 : vector<8x384xf32>, i32 -> vector<8x384xf32>
    %340 = arith.addf %337, %339 : vector<8x384xf32>
    %341 = vector.extract_strided_slice %329 {offsets = [32, 0], sizes = [8, 384], strides = [1, 1]} : vector<72x384xf32> to vector<8x384xf32>
    %342 = arith.addf %340, %341 : vector<8x384xf32>
    %343 = vector.extract_strided_slice %329 {offsets = [40, 0], sizes = [8, 384], strides = [1, 1]} : vector<72x384xf32> to vector<8x384xf32>
    %c383_i32_181 = arith.constant 383 : i32
    %344 = tpu.dynamic_rotate %343 by %c383_i32_181 dim 1 : vector<8x384xf32>, i32 -> vector<8x384xf32>
    %345 = arith.addf %342, %344 : vector<8x384xf32>
    %346 = vector.extract_strided_slice %329 {offsets = [48, 0], sizes = [8, 384], strides = [1, 1]} : vector<72x384xf32> to vector<8x384xf32>
    %c367_i32_182 = arith.constant 367 : i32
    %347 = tpu.dynamic_rotate %346 by %c367_i32_182 dim 1 : vector<8x384xf32>, i32 -> vector<8x384xf32>
    %348 = arith.addf %345, %347 : vector<8x384xf32>
    %349 = vector.extract_strided_slice %329 {offsets = [56, 0], sizes = [8, 384], strides = [1, 1]} : vector<72x384xf32> to vector<8x384xf32>
    %c366_i32_183 = arith.constant 366 : i32
    %350 = tpu.dynamic_rotate %349 by %c366_i32_183 dim 1 : vector<8x384xf32>, i32 -> vector<8x384xf32>
    %351 = arith.addf %348, %350 : vector<8x384xf32>
    %352 = vector.extract_strided_slice %329 {offsets = [64, 0], sizes = [8, 384], strides = [1, 1]} : vector<72x384xf32> to vector<8x384xf32>
    %c365_i32_184 = arith.constant 365 : i32
    %353 = tpu.dynamic_rotate %352 by %c365_i32_184 dim 1 : vector<8x384xf32>, i32 -> vector<8x384xf32>
    %354 = arith.addf %351, %353 : vector<8x384xf32>
    %cst_185 = arith.constant 0.000000e+00 : f32
    %355 = vector.broadcast %cst_185 : f32 to vector<8x384xf32>
    %356 = arith.maximumf %354, %355 : vector<8x384xf32>
    %357 = vector.broadcast %0 : vector<1x384xf32> to vector<8x384xf32>
    %358 = arith.mulf %356, %357 : vector<8x384xf32>
    %c32_186 = arith.constant 32 : index
    %c0_187 = arith.constant 0 : index
    %359 = vector.load %arg23[%c32_186, %c0_187] : memref<72x384xf32, #tpu.memory_space<vmem>>, vector<8x384xf32>
    tpu.vector_store %arg23[%c32_186, %c0_187], %358 {strides = array<i32>} : memref<72x384xf32, #tpu.memory_space<vmem>>, vector<8x384xf32>,
    %c0_188 = arith.constant 0 : index
    %c0_189 = arith.constant 0 : index
    %360 = vector.load %arg23[%c0_188, %c0_189] : memref<72x384xf32, #tpu.memory_space<vmem>>, vector<40x384xf32>
    %c0_190 = arith.constant 0 : index
    %c0_191 = arith.constant 0 : index
    %361 = vector.load %arg15[%c0_190, %c0_191] : memref<16x40xf32, #tpu.memory_space<vmem>>, vector<16x40xf32>
    %cst_192 = arith.constant dense<0.000000e+00> : vector<16x384xf32>
    %362 = tpu.matmul %361, %360, %cst_192 {dimension_numbers = #tpu.dot_dimension_numbers<[1], [0], [0], [1], [0, 0, 1, 1], [], []>} : vector<16x40xf32>, vector<40x384xf32>, vector<16x384xf32> -> vector<16x384xf32>
    %c56_193 = arith.constant 56 : index
    %c0_194 = arith.constant 0 : index
    %363 = vector.load %arg23[%c56_193, %c0_194] : memref<72x384xf32, #tpu.memory_space<vmem>>, vector<16x384xf32>
    %364 = arith.subf %363, %362 : vector<16x384xf32>
    %c56_195 = arith.constant 56 : index
    %c0_196 = arith.constant 0 : index
    %365 = vector.load %arg23[%c56_195, %c0_196] : memref<72x384xf32, #tpu.memory_space<vmem>>, vector<16x384xf32>
    tpu.vector_store %arg23[%c56_195, %c0_196], %364 {strides = array<i32>} : memref<72x384xf32, #tpu.memory_space<vmem>>, vector<16x384xf32>,
    %c56_197 = arith.constant 56 : index
    %c0_198 = arith.constant 0 : index
    %366 = vector.load %arg23[%c56_197, %c0_198] : memref<72x384xf32, #tpu.memory_space<vmem>>, vector<16x384xf32>
    %cst_199 = arith.constant 0.000000e+00 : f32
    %367 = vector.broadcast %cst_199 : f32 to vector<16x384xf32>
    %368 = arith.maximumf %366, %367 : vector<16x384xf32>
    %c0_200 = arith.constant 0 : index
    %c0_201 = arith.constant 0 : index
    %369 = vector.load %arg23[%c0_200, %c0_201] : memref<72x384xf32, #tpu.memory_space<vmem>>, vector<16x384xf32>
    tpu.vector_store %arg23[%c0_200, %c0_201], %368 {strides = array<i32>} : memref<72x384xf32, #tpu.memory_space<vmem>>, vector<16x384xf32>,
    %c0_202 = arith.constant 0 : index
    %c0_203 = arith.constant 0 : index
    %370 = vector.load %arg23[%c0_202, %c0_203] : memref<72x384xf32, #tpu.memory_space<vmem>>, vector<16x384xf32>
    %c0_204 = arith.constant 0 : index
    %c0_205 = arith.constant 0 : index
    %371 = vector.load %arg16[%c0_204, %c0_205] : memref<72x16xf32, #tpu.memory_space<vmem>>, vector<72x16xf32>
    %cst_206 = arith.constant dense<0.000000e+00> : vector<72x384xf32>
    %372 = tpu.matmul %371, %370, %cst_206 {dimension_numbers = #tpu.dot_dimension_numbers<[1], [0], [0], [1], [0, 0, 1, 1], [], []>} : vector<72x16xf32>, vector<16x384xf32>, vector<72x384xf32> -> vector<72x384xf32>
    %373 = vector.extract_strided_slice %372 {offsets = [0, 0], sizes = [8, 384], strides = [1, 1]} : vector<72x384xf32> to vector<8x384xf32>
    %c19_i32_207 = arith.constant 19 : i32
    %374 = tpu.dynamic_rotate %373 by %c19_i32_207 dim 1 : vector<8x384xf32>, i32 -> vector<8x384xf32>
    %375 = vector.extract_strided_slice %372 {offsets = [8, 0], sizes = [8, 384], strides = [1, 1]} : vector<72x384xf32> to vector<8x384xf32>
    %c18_i32_208 = arith.constant 18 : i32
    %376 = tpu.dynamic_rotate %375 by %c18_i32_208 dim 1 : vector<8x384xf32>, i32 -> vector<8x384xf32>
    %377 = arith.addf %374, %376 : vector<8x384xf32>
    %378 = vector.extract_strided_slice %372 {offsets = [16, 0], sizes = [8, 384], strides = [1, 1]} : vector<72x384xf32> to vector<8x384xf32>
    %c17_i32_209 = arith.constant 17 : i32
    %379 = tpu.dynamic_rotate %378 by %c17_i32_209 dim 1 : vector<8x384xf32>, i32 -> vector<8x384xf32>
    %380 = arith.addf %377, %379 : vector<8x384xf32>
    %381 = vector.extract_strided_slice %372 {offsets = [24, 0], sizes = [8, 384], strides = [1, 1]} : vector<72x384xf32> to vector<8x384xf32>
    %c1_i32_210 = arith.constant 1 : i32
    %382 = tpu.dynamic_rotate %381 by %c1_i32_210 dim 1 : vector<8x384xf32>, i32 -> vector<8x384xf32>
    %383 = arith.addf %380, %382 : vector<8x384xf32>
    %384 = vector.extract_strided_slice %372 {offsets = [32, 0], sizes = [8, 384], strides = [1, 1]} : vector<72x384xf32> to vector<8x384xf32>
    %385 = arith.addf %383, %384 : vector<8x384xf32>
    %386 = vector.extract_strided_slice %372 {offsets = [40, 0], sizes = [8, 384], strides = [1, 1]} : vector<72x384xf32> to vector<8x384xf32>
    %c383_i32_211 = arith.constant 383 : i32
    %387 = tpu.dynamic_rotate %386 by %c383_i32_211 dim 1 : vector<8x384xf32>, i32 -> vector<8x384xf32>
    %388 = arith.addf %385, %387 : vector<8x384xf32>
    %389 = vector.extract_strided_slice %372 {offsets = [48, 0], sizes = [8, 384], strides = [1, 1]} : vector<72x384xf32> to vector<8x384xf32>
    %c367_i32_212 = arith.constant 367 : i32
    %390 = tpu.dynamic_rotate %389 by %c367_i32_212 dim 1 : vector<8x384xf32>, i32 -> vector<8x384xf32>
    %391 = arith.addf %388, %390 : vector<8x384xf32>
    %392 = vector.extract_strided_slice %372 {offsets = [56, 0], sizes = [8, 384], strides = [1, 1]} : vector<72x384xf32> to vector<8x384xf32>
    %c366_i32_213 = arith.constant 366 : i32
    %393 = tpu.dynamic_rotate %392 by %c366_i32_213 dim 1 : vector<8x384xf32>, i32 -> vector<8x384xf32>
    %394 = arith.addf %391, %393 : vector<8x384xf32>
    %395 = vector.extract_strided_slice %372 {offsets = [64, 0], sizes = [8, 384], strides = [1, 1]} : vector<72x384xf32> to vector<8x384xf32>
    %c365_i32_214 = arith.constant 365 : i32
    %396 = tpu.dynamic_rotate %395 by %c365_i32_214 dim 1 : vector<8x384xf32>, i32 -> vector<8x384xf32>
    %397 = arith.addf %394, %396 : vector<8x384xf32>
    %cst_215 = arith.constant 0.000000e+00 : f32
    %398 = vector.broadcast %cst_215 : f32 to vector<8x384xf32>
    %399 = arith.maximumf %397, %398 : vector<8x384xf32>
    %400 = vector.broadcast %0 : vector<1x384xf32> to vector<8x384xf32>
    %401 = arith.mulf %399, %400 : vector<8x384xf32>
    %c16_216 = arith.constant 16 : index
    %c0_217 = arith.constant 0 : index
    %402 = vector.load %arg23[%c16_216, %c0_217] : memref<72x384xf32, #tpu.memory_space<vmem>>, vector<8x384xf32>
    tpu.vector_store %arg23[%c16_216, %c0_217], %401 {strides = array<i32>} : memref<72x384xf32, #tpu.memory_space<vmem>>, vector<8x384xf32>,
    %c0_218 = arith.constant 0 : index
    %c0_219 = arith.constant 0 : index
    %403 = vector.load %arg23[%c0_218, %c0_219] : memref<72x384xf32, #tpu.memory_space<vmem>>, vector<24x384xf32>
    %c0_220 = arith.constant 0 : index
    %c0_221 = arith.constant 0 : index
    %404 = vector.load %arg17[%c0_220, %c0_221] : memref<72x24xf32, #tpu.memory_space<vmem>>, vector<72x24xf32>
    %cst_222 = arith.constant dense<0.000000e+00> : vector<72x384xf32>
    %405 = tpu.matmul %404, %403, %cst_222 {dimension_numbers = #tpu.dot_dimension_numbers<[1], [0], [0], [1], [0, 0, 1, 1], [], []>} : vector<72x24xf32>, vector<24x384xf32>, vector<72x384xf32> -> vector<72x384xf32>
    %406 = vector.extract_strided_slice %405 {offsets = [0, 0], sizes = [8, 384], strides = [1, 1]} : vector<72x384xf32> to vector<8x384xf32>
    %c19_i32_223 = arith.constant 19 : i32
    %407 = tpu.dynamic_rotate %406 by %c19_i32_223 dim 1 : vector<8x384xf32>, i32 -> vector<8x384xf32>
    %408 = vector.extract_strided_slice %405 {offsets = [8, 0], sizes = [8, 384], strides = [1, 1]} : vector<72x384xf32> to vector<8x384xf32>
    %c18_i32_224 = arith.constant 18 : i32
    %409 = tpu.dynamic_rotate %408 by %c18_i32_224 dim 1 : vector<8x384xf32>, i32 -> vector<8x384xf32>
    %410 = arith.addf %407, %409 : vector<8x384xf32>
    %411 = vector.extract_strided_slice %405 {offsets = [16, 0], sizes = [8, 384], strides = [1, 1]} : vector<72x384xf32> to vector<8x384xf32>
    %c17_i32_225 = arith.constant 17 : i32
    %412 = tpu.dynamic_rotate %411 by %c17_i32_225 dim 1 : vector<8x384xf32>, i32 -> vector<8x384xf32>
    %413 = arith.addf %410, %412 : vector<8x384xf32>
    %414 = vector.extract_strided_slice %405 {offsets = [24, 0], sizes = [8, 384], strides = [1, 1]} : vector<72x384xf32> to vector<8x384xf32>
    %c1_i32_226 = arith.constant 1 : i32
    %415 = tpu.dynamic_rotate %414 by %c1_i32_226 dim 1 : vector<8x384xf32>, i32 -> vector<8x384xf32>
    %416 = arith.addf %413, %415 : vector<8x384xf32>
    %417 = vector.extract_strided_slice %405 {offsets = [32, 0], sizes = [8, 384], strides = [1, 1]} : vector<72x384xf32> to vector<8x384xf32>
    %418 = arith.addf %416, %417 : vector<8x384xf32>
    %419 = vector.extract_strided_slice %405 {offsets = [40, 0], sizes = [8, 384], strides = [1, 1]} : vector<72x384xf32> to vector<8x384xf32>
    %c383_i32_227 = arith.constant 383 : i32
    %420 = tpu.dynamic_rotate %419 by %c383_i32_227 dim 1 : vector<8x384xf32>, i32 -> vector<8x384xf32>
    %421 = arith.addf %418, %420 : vector<8x384xf32>
    %422 = vector.extract_strided_slice %405 {offsets = [48, 0], sizes = [8, 384], strides = [1, 1]} : vector<72x384xf32> to vector<8x384xf32>
    %c367_i32_228 = arith.constant 367 : i32
    %423 = tpu.dynamic_rotate %422 by %c367_i32_228 dim 1 : vector<8x384xf32>, i32 -> vector<8x384xf32>
    %424 = arith.addf %421, %423 : vector<8x384xf32>
    %425 = vector.extract_strided_slice %405 {offsets = [56, 0], sizes = [8, 384], strides = [1, 1]} : vector<72x384xf32> to vector<8x384xf32>
    %c366_i32_229 = arith.constant 366 : i32
    %426 = tpu.dynamic_rotate %425 by %c366_i32_229 dim 1 : vector<8x384xf32>, i32 -> vector<8x384xf32>
    %427 = arith.addf %424, %426 : vector<8x384xf32>
    %428 = vector.extract_strided_slice %405 {offsets = [64, 0], sizes = [8, 384], strides = [1, 1]} : vector<72x384xf32> to vector<8x384xf32>
    %c365_i32_230 = arith.constant 365 : i32
    %429 = tpu.dynamic_rotate %428 by %c365_i32_230 dim 1 : vector<8x384xf32>, i32 -> vector<8x384xf32>
    %430 = arith.addf %427, %429 : vector<8x384xf32>
    %cst_231 = arith.constant 0.000000e+00 : f32
    %431 = vector.broadcast %cst_231 : f32 to vector<8x384xf32>
    %432 = arith.maximumf %430, %431 : vector<8x384xf32>
    %433 = vector.broadcast %0 : vector<1x384xf32> to vector<8x384xf32>
    %434 = arith.mulf %432, %433 : vector<8x384xf32>
    %c24_232 = arith.constant 24 : index
    %c0_233 = arith.constant 0 : index
    %435 = vector.load %arg23[%c24_232, %c0_233] : memref<72x384xf32, #tpu.memory_space<vmem>>, vector<8x384xf32>
    tpu.vector_store %arg23[%c24_232, %c0_233], %434 {strides = array<i32>} : memref<72x384xf32, #tpu.memory_space<vmem>>, vector<8x384xf32>,
    %c0_234 = arith.constant 0 : index
    %c0_235 = arith.constant 0 : index
    %436 = vector.load %arg23[%c0_234, %c0_235] : memref<72x384xf32, #tpu.memory_space<vmem>>, vector<32x384xf32>
    %c0_236 = arith.constant 0 : index
    %c0_237 = arith.constant 0 : index
    %437 = vector.load %arg18[%c0_236, %c0_237] : memref<72x32xf32, #tpu.memory_space<vmem>>, vector<72x32xf32>
    %cst_238 = arith.constant dense<0.000000e+00> : vector<72x384xf32>
    %438 = tpu.matmul %437, %436, %cst_238 {dimension_numbers = #tpu.dot_dimension_numbers<[1], [0], [0], [1], [0, 0, 1, 1], [], []>} : vector<72x32xf32>, vector<32x384xf32>, vector<72x384xf32> -> vector<72x384xf32>
    %439 = vector.extract_strided_slice %438 {offsets = [0, 0], sizes = [8, 384], strides = [1, 1]} : vector<72x384xf32> to vector<8x384xf32>
    %c19_i32_239 = arith.constant 19 : i32
    %440 = tpu.dynamic_rotate %439 by %c19_i32_239 dim 1 : vector<8x384xf32>, i32 -> vector<8x384xf32>
    %441 = vector.extract_strided_slice %438 {offsets = [8, 0], sizes = [8, 384], strides = [1, 1]} : vector<72x384xf32> to vector<8x384xf32>
    %c18_i32_240 = arith.constant 18 : i32
    %442 = tpu.dynamic_rotate %441 by %c18_i32_240 dim 1 : vector<8x384xf32>, i32 -> vector<8x384xf32>
    %443 = arith.addf %440, %442 : vector<8x384xf32>
    %444 = vector.extract_strided_slice %438 {offsets = [16, 0], sizes = [8, 384], strides = [1, 1]} : vector<72x384xf32> to vector<8x384xf32>
    %c17_i32_241 = arith.constant 17 : i32
    %445 = tpu.dynamic_rotate %444 by %c17_i32_241 dim 1 : vector<8x384xf32>, i32 -> vector<8x384xf32>
    %446 = arith.addf %443, %445 : vector<8x384xf32>
    %447 = vector.extract_strided_slice %438 {offsets = [24, 0], sizes = [8, 384], strides = [1, 1]} : vector<72x384xf32> to vector<8x384xf32>
    %c1_i32_242 = arith.constant 1 : i32
    %448 = tpu.dynamic_rotate %447 by %c1_i32_242 dim 1 : vector<8x384xf32>, i32 -> vector<8x384xf32>
    %449 = arith.addf %446, %448 : vector<8x384xf32>
    %450 = vector.extract_strided_slice %438 {offsets = [32, 0], sizes = [8, 384], strides = [1, 1]} : vector<72x384xf32> to vector<8x384xf32>
    %451 = arith.addf %449, %450 : vector<8x384xf32>
    %452 = vector.extract_strided_slice %438 {offsets = [40, 0], sizes = [8, 384], strides = [1, 1]} : vector<72x384xf32> to vector<8x384xf32>
    %c383_i32_243 = arith.constant 383 : i32
    %453 = tpu.dynamic_rotate %452 by %c383_i32_243 dim 1 : vector<8x384xf32>, i32 -> vector<8x384xf32>
    %454 = arith.addf %451, %453 : vector<8x384xf32>
    %455 = vector.extract_strided_slice %438 {offsets = [48, 0], sizes = [8, 384], strides = [1, 1]} : vector<72x384xf32> to vector<8x384xf32>
    %c367_i32_244 = arith.constant 367 : i32
    %456 = tpu.dynamic_rotate %455 by %c367_i32_244 dim 1 : vector<8x384xf32>, i32 -> vector<8x384xf32>
    %457 = arith.addf %454, %456 : vector<8x384xf32>
    %458 = vector.extract_strided_slice %438 {offsets = [56, 0], sizes = [8, 384], strides = [1, 1]} : vector<72x384xf32> to vector<8x384xf32>
    %c366_i32_245 = arith.constant 366 : i32
    %459 = tpu.dynamic_rotate %458 by %c366_i32_245 dim 1 : vector<8x384xf32>, i32 -> vector<8x384xf32>
    %460 = arith.addf %457, %459 : vector<8x384xf32>
    %461 = vector.extract_strided_slice %438 {offsets = [64, 0], sizes = [8, 384], strides = [1, 1]} : vector<72x384xf32> to vector<8x384xf32>
    %c365_i32_246 = arith.constant 365 : i32
    %462 = tpu.dynamic_rotate %461 by %c365_i32_246 dim 1 : vector<8x384xf32>, i32 -> vector<8x384xf32>
    %463 = arith.addf %460, %462 : vector<8x384xf32>
    %cst_247 = arith.constant 0.000000e+00 : f32
    %464 = vector.broadcast %cst_247 : f32 to vector<8x384xf32>
    %465 = arith.maximumf %463, %464 : vector<8x384xf32>
    %466 = vector.broadcast %0 : vector<1x384xf32> to vector<8x384xf32>
    %467 = arith.mulf %465, %466 : vector<8x384xf32>
    %c32_248 = arith.constant 32 : index
    %c0_249 = arith.constant 0 : index
    %468 = vector.load %arg23[%c32_248, %c0_249] : memref<72x384xf32, #tpu.memory_space<vmem>>, vector<8x384xf32>
    tpu.vector_store %arg23[%c32_248, %c0_249], %467 {strides = array<i32>} : memref<72x384xf32, #tpu.memory_space<vmem>>, vector<8x384xf32>,
    %c0_250 = arith.constant 0 : index
    %c0_251 = arith.constant 0 : index
    %469 = vector.load %arg23[%c0_250, %c0_251] : memref<72x384xf32, #tpu.memory_space<vmem>>, vector<40x384xf32>
    %c0_252 = arith.constant 0 : index
    %c0_253 = arith.constant 0 : index
    %470 = vector.load %arg19[%c0_252, %c0_253] : memref<16x40xf32, #tpu.memory_space<vmem>>, vector<16x40xf32>
    %cst_254 = arith.constant dense<0.000000e+00> : vector<16x384xf32>
    %471 = tpu.matmul %470, %469, %cst_254 {dimension_numbers = #tpu.dot_dimension_numbers<[1], [0], [0], [1], [0, 0, 1, 1], [], []>} : vector<16x40xf32>, vector<40x384xf32>, vector<16x384xf32> -> vector<16x384xf32>
    %c56_255 = arith.constant 56 : index
    %c0_256 = arith.constant 0 : index
    %472 = vector.load %arg23[%c56_255, %c0_256] : memref<72x384xf32, #tpu.memory_space<vmem>>, vector<16x384xf32>
    %473 = arith.subf %472, %471 : vector<16x384xf32>
    %c56_257 = arith.constant 56 : index
    %c0_258 = arith.constant 0 : index
    %474 = vector.load %arg23[%c56_257, %c0_258] : memref<72x384xf32, #tpu.memory_space<vmem>>, vector<16x384xf32>
    tpu.vector_store %arg23[%c56_257, %c0_258], %473 {strides = array<i32>} : memref<72x384xf32, #tpu.memory_space<vmem>>, vector<16x384xf32>,
    %c40_259 = arith.constant 40 : index
    %c0_260 = arith.constant 0 : index
    %475 = vector.load %arg23[%c40_259, %c0_260] : memref<72x384xf32, #tpu.memory_space<vmem>>, vector<16x384xf32>
    %c56_261 = arith.constant 56 : index
    %c0_262 = arith.constant 0 : index
    %476 = vector.load %arg23[%c56_261, %c0_262] : memref<72x384xf32, #tpu.memory_space<vmem>>, vector<16x384xf32>
    %477 = arith.subf %475, %476 : vector<16x384xf32>
    %c0_263 = arith.constant 0 : index
    %c0_264 = arith.constant 0 : index
    %478 = vector.load %arg23[%c0_263, %c0_264] : memref<72x384xf32, #tpu.memory_space<vmem>>, vector<16x384xf32>
    tpu.vector_store %arg23[%c0_263, %c0_264], %477 {strides = array<i32>} : memref<72x384xf32, #tpu.memory_space<vmem>>, vector<16x384xf32>,
    %c0_265 = arith.constant 0 : index
    %c0_266 = arith.constant 0 : index
    %479 = vector.load %arg23[%c0_265, %c0_266] : memref<72x384xf32, #tpu.memory_space<vmem>>, vector<16x384xf32>
    %c0_267 = arith.constant 0 : index
    %c0_268 = arith.constant 0 : index
    %480 = vector.load %arg20[%c0_267, %c0_268] : memref<72x16xf32, #tpu.memory_space<vmem>>, vector<72x16xf32>
    %cst_269 = arith.constant dense<0.000000e+00> : vector<72x384xf32>
    %481 = tpu.matmul %480, %479, %cst_269 {dimension_numbers = #tpu.dot_dimension_numbers<[1], [0], [0], [1], [0, 0, 1, 1], [], []>} : vector<72x16xf32>, vector<16x384xf32>, vector<72x384xf32> -> vector<72x384xf32>
    %482 = vector.extract_strided_slice %481 {offsets = [0, 0], sizes = [8, 384], strides = [1, 1]} : vector<72x384xf32> to vector<8x384xf32>
    %c19_i32_270 = arith.constant 19 : i32
    %483 = tpu.dynamic_rotate %482 by %c19_i32_270 dim 1 : vector<8x384xf32>, i32 -> vector<8x384xf32>
    %484 = vector.extract_strided_slice %481 {offsets = [8, 0], sizes = [8, 384], strides = [1, 1]} : vector<72x384xf32> to vector<8x384xf32>
    %c18_i32_271 = arith.constant 18 : i32
    %485 = tpu.dynamic_rotate %484 by %c18_i32_271 dim 1 : vector<8x384xf32>, i32 -> vector<8x384xf32>
    %486 = arith.addf %483, %485 : vector<8x384xf32>
    %487 = vector.extract_strided_slice %481 {offsets = [16, 0], sizes = [8, 384], strides = [1, 1]} : vector<72x384xf32> to vector<8x384xf32>
    %c17_i32_272 = arith.constant 17 : i32
    %488 = tpu.dynamic_rotate %487 by %c17_i32_272 dim 1 : vector<8x384xf32>, i32 -> vector<8x384xf32>
    %489 = arith.addf %486, %488 : vector<8x384xf32>
    %490 = vector.extract_strided_slice %481 {offsets = [24, 0], sizes = [8, 384], strides = [1, 1]} : vector<72x384xf32> to vector<8x384xf32>
    %c1_i32_273 = arith.constant 1 : i32
    %491 = tpu.dynamic_rotate %490 by %c1_i32_273 dim 1 : vector<8x384xf32>, i32 -> vector<8x384xf32>
    %492 = arith.addf %489, %491 : vector<8x384xf32>
    %493 = vector.extract_strided_slice %481 {offsets = [32, 0], sizes = [8, 384], strides = [1, 1]} : vector<72x384xf32> to vector<8x384xf32>
    %494 = arith.addf %492, %493 : vector<8x384xf32>
    %495 = vector.extract_strided_slice %481 {offsets = [40, 0], sizes = [8, 384], strides = [1, 1]} : vector<72x384xf32> to vector<8x384xf32>
    %c383_i32_274 = arith.constant 383 : i32
    %496 = tpu.dynamic_rotate %495 by %c383_i32_274 dim 1 : vector<8x384xf32>, i32 -> vector<8x384xf32>
    %497 = arith.addf %494, %496 : vector<8x384xf32>
    %498 = vector.extract_strided_slice %481 {offsets = [48, 0], sizes = [8, 384], strides = [1, 1]} : vector<72x384xf32> to vector<8x384xf32>
    %c367_i32_275 = arith.constant 367 : i32
    %499 = tpu.dynamic_rotate %498 by %c367_i32_275 dim 1 : vector<8x384xf32>, i32 -> vector<8x384xf32>
    %500 = arith.addf %497, %499 : vector<8x384xf32>
    %501 = vector.extract_strided_slice %481 {offsets = [56, 0], sizes = [8, 384], strides = [1, 1]} : vector<72x384xf32> to vector<8x384xf32>
    %c366_i32_276 = arith.constant 366 : i32
    %502 = tpu.dynamic_rotate %501 by %c366_i32_276 dim 1 : vector<8x384xf32>, i32 -> vector<8x384xf32>
    %503 = arith.addf %500, %502 : vector<8x384xf32>
    %504 = vector.extract_strided_slice %481 {offsets = [64, 0], sizes = [8, 384], strides = [1, 1]} : vector<72x384xf32> to vector<8x384xf32>
    %c365_i32_277 = arith.constant 365 : i32
    %505 = tpu.dynamic_rotate %504 by %c365_i32_277 dim 1 : vector<8x384xf32>, i32 -> vector<8x384xf32>
    %506 = arith.addf %503, %505 : vector<8x384xf32>
    %507 = vector.extract_strided_slice %506 {offsets = [0, 0], sizes = [2, 384], strides = [1, 1]} : vector<8x384xf32> to vector<2x384xf32>
    %c0_278 = arith.constant 0 : index
    %c0_279 = arith.constant 0 : index
    %508 = vector.load %arg21[%c0_278, %c0_279] : memref<2x1xf32, #tpu.memory_space<vmem>>, vector<2x1xf32>
    %509 = vector.broadcast %508 : vector<2x1xf32> to vector<2x384xf32>
    %510 = arith.addf %507, %509 : vector<2x384xf32>
    %c0_280 = arith.constant 0 : index
    %c0_281 = arith.constant 0 : index
    %c0_282 = arith.constant 0 : index
    %511 = vector.load %arg22[%c0_280, %c0_281, %c0_282] : memref<1x2x384xf32, #tpu.memory_space<vmem>>, vector<1x2x384xf32>
    %512 = vector.shape_cast %511 : vector<1x2x384xf32> to vector<2x384xf32>
    %513 = vector.shape_cast %510 : vector<2x384xf32> to vector<1x2x384xf32>
    tpu.vector_store %arg22[%c0_280, %c0_281, %c0_282], %513 {strides = array<i32>} : memref<1x2x384xf32, #tpu.memory_space<vmem>>, vector<1x2x384xf32>,
    return
  }
  func.func @transform_0(%arg0: i32) -> (i32, i32, i32) {
    %c0_i32 = arith.constant 0 : i32
    %c0_i32_0 = arith.constant 0 : i32
    %c0_i32_1 = arith.constant 0 : i32
    return %arg0, %c0_i32, %c0_i32_0 : i32, i32, i32
  }
  func.func @transform_1(%arg0: i32) -> (i32, i32) {
    %c0_i32 = arith.constant 0 : i32
    %c0_i32_0 = arith.constant 0 : i32
    %c0_i32_1 = arith.constant 0 : i32
    return %c0_i32, %c0_i32_0 : i32, i32
  }
  func.func @transform_2(%arg0: i32) -> (i32, i32) {
    %c0_i32 = arith.constant 0 : i32
    %c0_i32_0 = arith.constant 0 : i32
    %c0_i32_1 = arith.constant 0 : i32
    return %c0_i32, %c0_i32_0 : i32, i32
  }
  func.func @transform_3(%arg0: i32) -> (i32, i32) {
    %c0_i32 = arith.constant 0 : i32
    %c0_i32_0 = arith.constant 0 : i32
    %c0_i32_1 = arith.constant 0 : i32
    return %c0_i32, %c0_i32_0 : i32, i32
  }
  func.func @transform_4(%arg0: i32) -> (i32, i32) {
    %c0_i32 = arith.constant 0 : i32
    %c0_i32_0 = arith.constant 0 : i32
    %c0_i32_1 = arith.constant 0 : i32
    return %c0_i32, %c0_i32_0 : i32, i32
  }
  func.func @transform_5(%arg0: i32) -> (i32, i32) {
    %c0_i32 = arith.constant 0 : i32
    %c0_i32_0 = arith.constant 0 : i32
    %c0_i32_1 = arith.constant 0 : i32
    return %c0_i32, %c0_i32_0 : i32, i32
  }
  func.func @transform_6(%arg0: i32) -> (i32, i32) {
    %c0_i32 = arith.constant 0 : i32
    %c0_i32_0 = arith.constant 0 : i32
    %c0_i32_1 = arith.constant 0 : i32
    return %c0_i32, %c0_i32_0 : i32, i32
  }
  func.func @transform_7(%arg0: i32) -> (i32, i32) {
    %c0_i32 = arith.constant 0 : i32
    %c0_i32_0 = arith.constant 0 : i32
    %c0_i32_1 = arith.constant 0 : i32
    return %c0_i32, %c0_i32_0 : i32, i32
  }
  func.func @transform_8(%arg0: i32) -> (i32, i32) {
    %c0_i32 = arith.constant 0 : i32
    %c0_i32_0 = arith.constant 0 : i32
    %c0_i32_1 = arith.constant 0 : i32
    return %c0_i32, %c0_i32_0 : i32, i32
  }
  func.func @transform_9(%arg0: i32) -> (i32, i32) {
    %c0_i32 = arith.constant 0 : i32
    %c0_i32_0 = arith.constant 0 : i32
    %c0_i32_1 = arith.constant 0 : i32
    return %c0_i32, %c0_i32_0 : i32, i32
  }
  func.func @transform_10(%arg0: i32) -> (i32, i32) {
    %c0_i32 = arith.constant 0 : i32
    %c0_i32_0 = arith.constant 0 : i32
    %c0_i32_1 = arith.constant 0 : i32
    return %c0_i32, %c0_i32_0 : i32, i32
  }
  func.func @transform_11(%arg0: i32) -> (i32, i32) {
    %c0_i32 = arith.constant 0 : i32
    %c0_i32_0 = arith.constant 0 : i32
    %c0_i32_1 = arith.constant 0 : i32
    return %c0_i32, %c0_i32_0 : i32, i32
  }
  func.func @transform_12(%arg0: i32) -> (i32, i32) {
    %c0_i32 = arith.constant 0 : i32
    %c0_i32_0 = arith.constant 0 : i32
    %c0_i32_1 = arith.constant 0 : i32
    return %c0_i32, %c0_i32_0 : i32, i32
  }
  func.func @transform_13(%arg0: i32) -> (i32, i32) {
    %c0_i32 = arith.constant 0 : i32
    %c0_i32_0 = arith.constant 0 : i32
    %c0_i32_1 = arith.constant 0 : i32
    return %c0_i32, %c0_i32_0 : i32, i32
  }
  func.func @transform_14(%arg0: i32) -> (i32, i32) {
    %c0_i32 = arith.constant 0 : i32
    %c0_i32_0 = arith.constant 0 : i32
    %c0_i32_1 = arith.constant 0 : i32
    return %c0_i32, %c0_i32_0 : i32, i32
  }
  func.func @transform_15(%arg0: i32) -> (i32, i32) {
    %c0_i32 = arith.constant 0 : i32
    %c0_i32_0 = arith.constant 0 : i32
    %c0_i32_1 = arith.constant 0 : i32
    return %c0_i32, %c0_i32_0 : i32, i32
  }
  func.func @transform_16(%arg0: i32) -> (i32, i32) {
    %c0_i32 = arith.constant 0 : i32
    %c0_i32_0 = arith.constant 0 : i32
    %c0_i32_1 = arith.constant 0 : i32
    return %c0_i32, %c0_i32_0 : i32, i32
  }
  func.func @transform_17(%arg0: i32) -> (i32, i32) {
    %c0_i32 = arith.constant 0 : i32
    %c0_i32_0 = arith.constant 0 : i32
    %c0_i32_1 = arith.constant 0 : i32
    return %c0_i32, %c0_i32_0 : i32, i32
  }
  func.func @transform_18(%arg0: i32) -> (i32, i32) {
    %c0_i32 = arith.constant 0 : i32
    %c0_i32_0 = arith.constant 0 : i32
    %c0_i32_1 = arith.constant 0 : i32
    return %c0_i32, %c0_i32_0 : i32, i32
  }
  func.func @transform_19(%arg0: i32) -> (i32, i32) {
    %c0_i32 = arith.constant 0 : i32
    %c0_i32_0 = arith.constant 0 : i32
    %c0_i32_1 = arith.constant 0 : i32
    return %c0_i32, %c0_i32_0 : i32, i32
  }
  func.func @transform_20(%arg0: i32) -> (i32, i32) {
    %c0_i32 = arith.constant 0 : i32
    %c0_i32_0 = arith.constant 0 : i32
    %c0_i32_1 = arith.constant 0 : i32
    return %c0_i32, %c0_i32_0 : i32, i32
  }
  func.func @transform_21(%arg0: i32) -> (i32, i32, i32) {
    %c0_i32 = arith.constant 0 : i32
    %c0_i32_0 = arith.constant 0 : i32
    %c0_i32_1 = arith.constant 0 : i32
    return %arg0, %c0_i32, %c0_i32_0 : i32, i32, i32
  }
}

</mosaic_0001>

<bundles_post_ra>
// kernel: _lambda_.1
= control target key start
LH: loop header
LB: loop body
LE: loop exit
PB: predicated region body
PF: predicated region fallthrough
CT: control target
= control target key end

     0   :  { %s11570_s0 = inlined_call_operand.vmem [shape: f32[2,2,384], index: 0, kind: input, shape index: {}]   ;;  %s11571_s1 = inlined_call_operand.vmem [shape: f32[1,384], index: 1, kind: input, shape index: {}]   ;;  %s11572_s2 = inlined_call_operand.vmem [shape: f32[144,2], index: 2, kind: input, shape index: {}]   ;;  %s11573_s3 = inlined_call_operand.vmem [shape: f32[72,16], index: 3, kind: input, shape index: {}]   ;;  %s11574_s4 = inlined_call_operand.vmem [shape: f32[72,24], index: 4, kind: input, shape index: {}]   ;;  %s11575_s5 = inlined_call_operand.vmem [shape: f32[72,32], index: 5, kind: input, shape index: {}]   ;;  %s11576_s6 = inlined_call_operand.vmem [shape: f32[16,40], index: 6, kind: input, shape index: {}]   ;;  %s11577_s7 = inlined_call_operand.vmem [shape: f32[72,16], index: 7, kind: input, shape index: {}]   ;;  %s11578_s8 = inlined_call_operand.vmem [shape: f32[72,24], index: 8, kind: input, shape index: {}]   ;;  %s11579_s9 = inlined_call_operand.vmem [shape: f32[72,32], index: 9, kind: input, shape index: {}]   ;;  %s11580_s10 = inlined_call_operand.vmem [shape: f32[16,40], index: 10, kind: input, shape index: {}]   ;;  %s11581_s11 = inlined_call_operand.vmem [shape: f32[72,16], index: 11, kind: input, shape index: {}]   ;;  %s11582_s12 = inlined_call_operand.vmem [shape: f32[72,24], index: 12, kind: input, shape index: {}]   ;;  %s11583_s13 = inlined_call_operand.vmem [shape: f32[72,32], index: 13, kind: input, shape index: {}]   ;;  %s11584_s14 = inlined_call_operand.vmem [shape: f32[16,40], index: 14, kind: input, shape index: {}]   ;;  %s11585_s15 = inlined_call_operand.vmem [shape: f32[72,16], index: 15, kind: input, shape index: {}]   ;;  %s11586_s16 = inlined_call_operand.vmem [shape: f32[72,24], index: 16, kind: input, shape index: {}]   ;;  %s11587_s17 = inlined_call_operand.vmem [shape: f32[72,32], index: 17, kind: input, shape index: {}]   ;;  %s11588_s18 = inlined_call_operand.vmem [shape: f32[16,40], index: 18, kind: input, shape index: {}]   ;;  %s11589_s19 = inlined_call_operand.vmem [shape: f32[72,16], index: 19, kind: input, shape index: {}]   ;;  %s11590_s20 = inlined_call_operand.vmem [shape: f32[2,1], index: 20, kind: input, shape index: {}]   ;;  %s11591_s21 = inlined_call_operand.vmem [shape: f32[2,2,384], index: 21, kind: output, shape index: {}]  }
   0x1   :  { %11615 = sst [smem:[#allocation3_spill]] %s11570_s0 }
   0x2   :  { %11616 = sst [smem:[#allocation4_spill]] %s11571_s1 }
   0x3   :  { %11617 = sst [smem:[#allocation5_spill]] %s11572_s2  ;;  %s8816_s2 = smov 0  }
   0x4   :  { %11618 = sst [smem:[#allocation6_spill]] %s11573_s3 }
   0x5   :  { %11619 = sst [smem:[#allocation7_spill]] %s11574_s4 }
   0x6   :  { %11620 = sst [smem:[#allocation8_spill]] %s11575_s5 }
   0x7   :  { %11621 = sst [smem:[#allocation9_spill]] %s11576_s6 }
   0x8 LB: > { %s7458_s25 = sadd.s32 4294967295, %s8691_s2   ;;  %p7462_p0 = scmp.ge.s32.totalorder %s8691_s2, 1  ;;  %s8691_s2 = sphi %s8816_s2, %s31_s2  }
   0x9   : > { %p587_p1 = scmp.lt.s32.totalorder %s8691_s2, 3 }
   0xb   : > { %p588_p2 = pnand %p7462_p0, %p587_p1 }
   0xc   : > { %p647_p3 = scmp.lt.s32.totalorder (!%p588_p2), %s7458_s25, 1  ;;  %v670_v0 = vlaneseq (!%p588_p2)  ;;  %v8693_v1 = vmov (!%p588_p2), 1983009808   ;;  %s11622_s3 = sld [smem:[#allocation5_spill]] (!%p588_p2)  ;;  %vm682_vm0 = vcmask (!%p588_p2), 15360   ;;  %v8694_v5 = vmov (!%p588_p2), 0.0  }
   0xd   : > { %591 = sbr.rel (%p588_p2) target bundleno = 6331 (0x18bb), region = 104  ;;  %v668_v2 = vunpack.c.l.s4 (!%p588_p2), %v8693_v1  ;;  %772 = vmatprep.mubr.f32.mxu0 (!%p588_p2), %v8694_v5  ;;  %s11623_s4 = sld [smem:[#allocation3_spill]] (!%p588_p2)  ;;  %vm701_vm1 = vcmask (!%p588_p2), 1041408   ;;  %vm8704_vm2 = vmmov (!%p588_p2), 0   ;;  %vm1619_vm11 = vcmask (!%p588_p2), 130048  }
   0xe   : > { %v8830_v4 = vshrl.u32 (!%p588_p2), %v670_v0, 7  ;;  %s11611_s22 = smov (!%p588_p2), 19   ;;  %s11609_s23 = smov (!%p588_p2), 18   ;;  %vm1999_vm12 = vcmask (!%p588_p2), 195584   ;;  %vm2382_vm13 = vcmask (!%p588_p2), 261120   ;;  %vm2761_vm14 = vcmask (!%p588_p2), 326656  }
   0xf   : > { %v669_v6 = vunpack.c.0.s8 (!%p588_p2), %v668_v2  ;;  %s11607_s1 = smov (!%p588_p2), 17   ;;  %s11605_s24 = smov (!%p588_p2), 1  }
  0x10   : > { %s11603_s26 = smov (!%p588_p2), 127   ;;  %s11601_s27 = smov (!%p588_p2), 111  }
  0x11   : > { %v8836_v7 = vsub.s32 (!%p588_p2), %v669_v6, %v8830_v4  ;;  %s11599_s29 = smov (!%p588_p2), 110   ;;  %s11597_s0 = smov (!%p588_p2), 109  }
  0x12   : > { %v659_v3 = vld [vmem:[%s11622_s3] sm:$0xff] (!%p588_p2)  ;;  %v660_v13 = vld [vmem:[%s11622_s3 + $0x8] sm:$0xff] (!%p588_p2)  ;;  %v661_v14 = vld [vmem:[%s11622_s3 + $0x10] sm:$0xff] (!%p588_p2)  ;;  %s11624_s5 = sld [smem:[#allocation4_spill]] (!%p588_p2)  ;;  %s11634_s6 = sld [smem:[#allocation9_spill]] (!%p588_p2) }
  0x13   : > { %7968 = vmatprep.mubr.msk.f32.mxu1 (!%p588_p2), %vm682_vm0, %v659_v3  ;;  %v662_v15 = vld [vmem:[%s11622_s3 + $0x18] sm:$0xff] (!%p588_p2)  ;;  %v663_v16 = vld [vmem:[%s11622_s3 + $0x20] sm:$0xff] (!%p588_p2)  ;;  %v664_v17 = vld [vmem:[%s11622_s3 + $0x28] sm:$0xff] (!%p588_p2) }
  0x14   : > { %s11639_s25 = smov (!%p647_p3, %s7458_s25), 1  ;;  %v975_v18 = vld [vmem:[%s11622_s3 + $0x30] sm:$0xff]  ;;  %v976_v19 = vld [vmem:[%s11622_s3 + $0x38] sm:$0xff]  ;;  %v977_v20 = vld [vmem:[%s11622_s3 + $0x40] sm:$0xff] }
  0x15   : > { %s11596_s28 = smul.u32 6, %s11639_s25  ;;  %v978_v21 = vld [vmem:[%s11622_s3 + $0x48] sm:$0xff]  ;;  %v979_v22 = vld [vmem:[%s11622_s3 + $0x50] sm:$0xff]  ;;  %v980_v23 = vld [vmem:[%s11622_s3 + $0x58] sm:$0xff] }
  0x16   : > { %v1251_v24 = vld [vmem:[%s11622_s3 + $0x60] sm:$0xff]  ;;  %v1252_v25 = vld [vmem:[%s11622_s3 + $0x68] sm:$0xff]  ;;  %v1253_v26 = vld [vmem:[%s11622_s3 + $0x70] sm:$0xff] }
  0x17   : > { %s651_s30 = scalar_lea.vmem %s11623_s4, %s11596_s28  ;;  %v1254_v27 = vld [vmem:[%s11622_s3 + $0x78] sm:$0xff]  ;;  %v1255_v28 = vld [vmem:[%s11622_s3 + $0x80] sm:$0xff]  ;;  %v1256_v29 = vld [vmem:[%s11622_s3 + $0x88] sm:$0xff]  ;;  %s11626_s28 = smov 109  }
  0x18   : > { %v658_v8 = vld [vmem:[%s651_s30] sm:$0x3f]  ;;  %s11627_s30 = sld [smem:[#allocation7_spill]]  ;;  %s11629_s4 = smov 110  }
  0x19   : > { %v666_v9 = vcombine.high %v658_v8, %v658_v8  ;;  %v673_v10 = vrot.slane %v658_v8, %v8836_v7 }
  0x1b   : > { %v680_v11 = vrot.slane %v666_v9, %v8836_v7  ;;  %v681_v12 = vcombine.high %v673_v10, %v673_v10 }
  0x1d   : > { %7465 = vmatprep.subr.msk.mxu0 %vm701_vm1, %v681_v12  ;;  %7966 = vmatprep.subr.msk.mxu1 %vm701_vm1, %v680_v11 }
  0x1e   : > { %7466 = vmatpush1.msk.msra.mxu0 %vm701_vm1, %v673_v10  ;;  %7967 = vmatpush3.msk.msra.mxu1 %vm701_vm1, %v680_v11 }
  0x1f   : > { %7467 = vmatmul.mubr.msk.f32.vlgmr.msra.gmra.mrb[0].mxu0 %vm682_vm0, %v659_v3  ;;  %7969 = vmatmul.mubr.msk.f32.vlgmr.msra.gmra.mrb[0].mxu1 %vm682_vm0, %v660_v13 }
  0x20   : > { %778 = vmatprep.mubr.f32.mxu0 %v8694_v5  ;;  %7971 = vmatprep.mubr.msk.f32.mxu1 %vm682_vm0, %v661_v14 }
  0x21   : > { %7480 = vmatprep.subr.msk.mxu1 %vm701_vm1, %v681_v12  ;;  %7977 = vmatprep.subr.msk.mxu0 %vm701_vm1, %v680_v11 }
  0x22   : > { %7481 = vmatpush1.msk.msra.mxu1 %vm701_vm1, %v673_v10  ;;  %7978 = vmatpush3.msk.msra.mxu0 %vm701_vm1, %v680_v11 }
  0x23   : > { %7468 = vmatmul.mubr.msk.f32.gmra.mrb[2].mxu0 %vm682_vm0, %v660_v13  ;;  %7972 = vmatmul.mubr.msk.f32.gmra.mrb[2].mxu1 %vm682_vm0, %v662_v15 }
  0x24   : > { %784 = vmatprep.mubr.f32.mxu0 %v8694_v5  ;;  %7974 = vmatprep.mubr.msk.f32.mxu1 %vm682_vm0, %v663_v16 }
  0x25   : > { %7495 = vmatprep.subr.msk.mxu0 %vm701_vm1, %v681_v12  ;;  %7988 = vmatprep.subr.msk.mxu1 %vm701_vm1, %v680_v11 }
  0x27   : > { %7469 = vmatmul.mubr.msk.f32.gmra.mrb[4].mxu0 %vm682_vm0, %v661_v14  ;;  %7975 = vmatmul.mubr.msk.f32.gmra.mrb[4].mxu1 %vm682_vm0, %v664_v17 }
  0x28   : > { %790 = vmatprep.mubr.f32.mxu0 %v8694_v5  ;;  %1063 = vmatprep.mubr.f32.mxu1 %v8694_v5 }
  0x2b   : > { %7470 = vmatmul.mubr.msk.f32.gmra.mrb[6].mxu0 %vm682_vm0, %v662_v15  ;;  %7482 = vmatmul.mubr.msk.f32.vlgmr.msra.gmra.mrb[6].mxu1 %vm682_vm0, %v975_v18 }
  0x2c   : > { %1069 = vmatprep.mubr.f32.mxu1 %v8694_v5  ;;  %796 = vmatprep.mubr.f32.mxu0 %v8694_v5 }
  0x2d   : > { %7989 = vmatpush3.msk.msra.mxu1 %vm701_vm1, %v680_v11 }
  0x2f   : > { %7483 = vmatmul.mubr.msk.f32.gmra.mrb[8].mxu1 %vm682_vm0, %v976_v19  ;;  %7471 = vmatmul.mubr.msk.f32.gmra.mrb[8].mxu0 %vm682_vm0, %v663_v16 }
  0x30   : > { %802 = vmatprep.mubr.f32.mxu0 %v8694_v5  ;;  %1075 = vmatprep.mubr.f32.mxu1 %v8694_v5 }
  0x33   : > { %7472 = vmatmul.mubr.msk.f32.gmra.mrb[10].mxu0 %vm682_vm0, %v664_v17  ;;  %7484 = vmatmul.mubr.msk.f32.gmra.mrb[10].mxu1 %vm682_vm0, %v977_v20 }
  0x34   : > { %7979 = vmatprep.mubr.msk.f32.mxu0 %vm682_vm0, %v975_v18  ;;  %1081 = vmatprep.mubr.f32.mxu1 %v8694_v5 }
  0x37   : > { %7980 = vmatmul.mubr.msk.f32.vlgmr.msra.gmra.mrb[12].mxu0 %vm682_vm0, %v976_v19  ;;  %7485 = vmatmul.mubr.msk.f32.gmra.mrb[12].mxu1 %vm682_vm0, %v978_v21 }
  0x38   : > { %7982 = vmatprep.mubr.msk.f32.mxu0 %vm682_vm0, %v977_v20  ;;  %1087 = vmatprep.mubr.f32.mxu1 %v8694_v5 }
  0x39   : > { %7496 = vmatpush1.msk.msra.mxu0 %vm701_vm1, %v673_v10 }
  0x3b   : > { %7983 = vmatmul.mubr.msk.f32.gmra.mrb[14].mxu0 %vm682_vm0, %v978_v21  ;;  %7486 = vmatmul.mubr.msk.f32.gmra.mrb[14].mxu1 %vm682_vm0, %v979_v22 }
  0x3c   : > { %7985 = vmatprep.mubr.msk.f32.mxu0 %vm682_vm0, %v979_v22  ;;  %1093 = vmatprep.mubr.f32.mxu1 %v8694_v5 }
  0x3f   : > { %7986 = vmatmul.mubr.msk.f32.gmra.mrb[16].mxu0 %vm682_vm0, %v980_v23  ;;  %7487 = vmatmul.mubr.msk.f32.gmra.mrb[16].mxu1 %vm682_vm0, %v980_v23 }
  0x40   : > { %1339 = vmatprep.mubr.f32.mxu0 %v8694_v5  ;;  %7990 = vmatprep.mubr.msk.f32.mxu1 %vm682_vm0, %v1251_v24 }
  0x43   : > { %7497 = vmatmul.mubr.msk.f32.vlgmr.msra.gmra.mrb[18].mxu0 %vm682_vm0, %v1251_v24  ;;  %7991 = vmatmul.mubr.msk.f32.vlgmr.msra.gmra.mrb[18].mxu1 %vm682_vm0, %v1252_v25  ;;  %v8703_v24 = vmov 0.0|0.0  }
  0x44   : > { %1345 = vmatprep.mubr.f32.mxu0 %v8694_v5  ;;  %7993 = vmatprep.mubr.msk.f32.mxu1 %vm682_vm0, %v1253_v26 }
  0x45   : > { %8482 = vmatprep.subr.bf16.mxu0 %v8703_v24 }
  0x47   : > { %7498 = vmatmul.mubr.msk.f32.gmra.mrb[20].mxu0 %vm682_vm0, %v1252_v25  ;;  %7994 = vmatmul.mubr.msk.f32.gmra.mrb[20].mxu1 %vm682_vm0, %v1254_v27 }
  0x48   : > { %1351 = vmatprep.mubr.f32.mxu0 %v8694_v5  ;;  %7996 = vmatprep.mubr.msk.f32.mxu1 %vm682_vm0, %v1255_v28 }
  0x4b   : > { %7499 = vmatmul.mubr.msk.f32.gmra.mrb[22].mxu0 %vm682_vm0, %v1253_v26  ;;  %7997 = vmatmul.mubr.msk.f32.gmra.mrb[22].mxu1 %vm682_vm0, %v1256_v29 }
  0x4c   : > { %1357 = vmatprep.mubr.f32.mxu0 %v8694_v5  ;;  %1711 = vmatprep.mubr.f32.mxu1 %v8694_v5 }
  0x4f   : > { %7500 = vmatmul.mubr.msk.f32.gmra.mrb[24].mxu0 %vm682_vm0, %v1254_v27 }
  0x50   : > { %1363 = vmatprep.mubr.f32.mxu0 %v8694_v5 }
  0x53   : > { %7501 = vmatmul.mubr.msk.f32.gmra.mrb[26].mxu0 %vm682_vm0, %v1255_v28 }
  0x54   : > { %1369 = vmatprep.mubr.f32.mxu0 %v8694_v5 }
  0x57   : > { %7502 = vmatmul.mubr.msk.f32.gmra.mrb[28].mxu0 %vm682_vm0, %v1256_v29 }
  0x58   : > { %8003 = vmatprep.mubr.msk.f32.mxu0 %vm8704_vm2, %v8694_v5 }
  0xf2   : > { %v774_v30 = vpop.f32.mrb[0].mxu0  ;;  %v7970_v31 = vpop.f32.mrb[0].mxu1 }
  0xf3   : > { %904 = vrot.lane.b32.xlu0 %v774_v30, %s11611_s22  ;;  %v776_v32 = vpop.f32.mrb[1].mxu0  ;;  %914 = vrot.lane.b32.xlu1 %v7970_v31, %s11611_s22  ;;  %v875_v33 = vpop.f32.mrb[1].mxu1 }
  0xf6   : > { %v780_v34 = vpop.f32.mrb[2].mxu0  ;;  %v7973_v35 = vpop.f32.mrb[2].mxu1 }
  0xf7   : > { %908 = vrot.lane.b32.xlu1 %v776_v32, %s11611_s22  ;;  %912 = vrot.lane.b32.xlu0 %v875_v33, %s11611_s22  ;;  %v782_v36 = vpop.f32.mrb[3].mxu0  ;;  %v885_v37 = vpop.f32.mrb[3].mxu1 }
  0xfa   : > { %v786_v38 = vpop.f32.mrb[4].mxu0  ;;  %v7976_v39 = vpop.f32.mrb[4].mxu1 }
  0xfb   : > { %906 = vrot.lane.b32.xlu0 %v780_v34, %s11611_s22  ;;  %935 = vrot.lane.b32.xlu1 %v7973_v35, %s11609_s23  ;;  %v788_v40 = vpop.f32.mrb[5].mxu0  ;;  %v895_v41 = vpop.f32.mrb[5].mxu1 }
  0xfe   : > { %v792_v42 = vpop.f32.mrb[6].mxu0  ;;  %v1065_v43 = vpop.f32.mrb[6].mxu1 }
  0xff   : > { %910 = vrot.lane.b32.xlu1 %v782_v36, %s11611_s22  ;;  %933 = vrot.lane.b32.xlu0 %v885_v37, %s11609_s23  ;;  %v794_v44 = vpop.f32.mrb[7].mxu0  ;;  %v1067_v45 = vpop.f32.mrb[7].mxu1 }
 0x102   : > { %v1071_v46 = vpop.f32.mrb[8].mxu1  ;;  %v798_v47 = vpop.f32.mrb[8].mxu0 }
 0x103   : > { %925 = vrot.lane.b32.xlu0 %v786_v38, %s11609_s23  ;;  %960 = vrot.lane.b32.xlu1 %v7976_v39, %s11607_s1  ;;  %v1073_v48 = vpop.f32.mrb[9].mxu1  ;;  %v800_v49 = vpop.f32.mrb[9].mxu0 }
 0x106   : > { %v804_v50 = vpop.f32.mrb[10].mxu0  ;;  %v8971_v51 = vpop.f32.mrb[10].mxu1 }
 0x107   : > { %929 = vrot.lane.b32.xlu0 %v788_v40, %s11609_s23  ;;  %927 = vrot.lane.b32.xlu1 %v792_v42, %s11609_s23  ;;  %v806_v52 = vpop.f32.mrb[11].mxu0  ;;  %v8975_v53 = vpop.f32.mrb[11].mxu1 }
 0x10a   : > { %v7981_v54 = vpop.f32.mrb[12].mxu0  ;;  %v8977_v55 = vpop.f32.mrb[12].mxu1 }
 0x10b   : > { %931 = vrot.lane.b32.xlu1 %v794_v44, %s11609_s23  ;;  %958 = vrot.lane.b32.xlu0 %v895_v41, %s11607_s1  ;;  %v1166_v56 = vpop.f32.mrb[13].mxu0  ;;  %v8981_v57 = vpop.f32.mrb[13].mxu1 }
 0x10e   : > { %v8983_v58 = vpop.f32.mrb[14].mxu0  ;;  %v1089_v59 = vpop.f32.mrb[14].mxu1 }
 0x10f   : > { %1195 = vrot.lane.b32.xlu0 %v1065_v43, %s11605_s24  ;;  %1197 = vrot.lane.b32.xlu1 %v1071_v46, %s11605_s24  ;;  %v8987_v60 = vpop.f32.mrb[15].mxu0  ;;  %v1091_v61 = vpop.f32.mrb[15].mxu1 }
 0x112   : > { %v7987_v62 = vpop.f32.mrb[16].mxu0  ;;  %v1095_v63 = vpop.f32.mrb[16].mxu1 }
 0x113   : > { %1199 = vrot.lane.b32.xlu0 %v1067_v45, %s11605_s24  ;;  %1201 = vrot.lane.b32.xlu1 %v1073_v48, %s11605_s24  ;;  %v1186_v1 = vpop.f32.mrb[17].mxu0  ;;  %v1097_v2 = vpop.f32.mrb[17].mxu1 }
 0x116   : > { %v1341_v3 = vpop.f32.mrb[18].mxu0  ;;  %v7992_v6 = vpop.f32.mrb[18].mxu1 }
 0x117   : > { %950 = vrot.lane.b32.xlu0 %v798_v47, %s11607_s1  ;;  %952 = vrot.lane.b32.xlu1 %v804_v50, %s11607_s1  ;;  %v1343_v8 = vpop.f32.mrb[19].mxu0  ;;  %v1442_v9 = vpop.f32.mrb[19].mxu1 }
 0x11a   : > { %v1347_v10 = vpop.f32.mrb[20].mxu0  ;;  %v7995_v11 = vpop.f32.mrb[20].mxu1 }
 0x11b   : > { %954 = vrot.lane.b32.xlu0 %v800_v49, %s11607_s1  ;;  %956 = vrot.lane.b32.xlu1 %v806_v52, %s11607_s1  ;;  %v1349_v12 = vpop.f32.mrb[21].mxu0  ;;  %v1452_v13 = vpop.f32.mrb[21].mxu1 }
 0x11e   : > { %v1353_v14 = vpop.f32.mrb[22].mxu0  ;;  %v7998_v15 = vpop.f32.mrb[22].mxu1 }
 0x11f   : > { %1203 = vrot.lane.b32.xlu0 %v1166_v56, %s11605_s24  ;;  %1205 = vrot.lane.b32.xlu1 %v7981_v54, %s11605_s24  ;;  %v1355_v16 = vpop.f32.mrb[23].mxu0  ;;  %v1462_v17 = vpop.f32.mrb[23].mxu1 }
 0x122   : > { %v1359_v18 = vpop.f32.mrb[24].mxu0 }
 0x123   : > { %1236 = vrot.lane.b32.xlu1 %v7987_v62, %s11603_s26  ;;  %1226 = vrot.lane.b32.xlu0 %v1089_v59, %s11603_s26  ;;  %v1361_v19 = vpop.f32.mrb[25].mxu0 }
 0x126   : > { %v1365_v20 = vpop.f32.mrb[26].mxu0 }
 0x127   : > { %1230 = vrot.lane.b32.xlu0 %v1091_v61, %s11603_s26  ;;  %1228 = vrot.lane.b32.xlu1 %v1095_v63, %s11603_s26  ;;  %v1367_v21 = vpop.f32.mrb[27].mxu0  ;;  %v9043_v63 = vand.u32 127, %v670_v0 }
 0x129   : > { %vm918_vm3 = vcmp.lt.s32.totalorder %v9043_v63, 19  ;;  %vm937_vm4 = vcmp.lt.s32.totalorder %v9043_v63, 18  ;;  %vm962_vm5 = vcmp.lt.s32.totalorder %v9043_v63, 17  ;;  %vm1207_vm6 = vcmp.lt.s32.totalorder %v9043_v63, 1 }
 0x12a   : > { %v1371_v22 = vpop.f32.mrb[28].mxu0  ;;  %vm1238_vm7 = vcmp.lt.s32.totalorder %v9043_v63, 127  ;;  %vm1483_vm8 = vcmp.lt.s32.totalorder %v9043_v63, 111  ;;  %vm1508_vm9 = vcmp.lt.s32.totalorder %v9043_v63, 110  ;;  %vm1533_vm10 = vcmp.lt.s32.totalorder %v9043_v63, 109 }
 0x12b   : > { %1234 = vrot.lane.b32.xlu0 %v1186_v1, %s11603_s26  ;;  %1232 = vrot.lane.b32.xlu1 %v1097_v2, %s11603_s26  ;;  %v1373_v23 = vpop.f32.mrb[29].mxu0 }
 0x12f   : > { %1471 = vrot.lane.b32.xlu0 %v1341_v3, %s11601_s27  ;;  %1481 = vrot.lane.b32.xlu1 %v7992_v6, %s11601_s27  ;;  %v1553_v3 = vsub.s32 1, %v8830_v4 }
 0x133   : > { %1475 = vrot.lane.b32.xlu0 %v1343_v8, %s11601_s27  ;;  %1473 = vrot.lane.b32.xlu1 %v1347_v10, %s11601_s27 }
 0x137   : > { %1479 = vrot.lane.b32.xlu0 %v1442_v9, %s11601_s27  ;;  %1506 = vrot.lane.b32.xlu1 %v7995_v11, %s11599_s29 }
 0x13b   : > { %1477 = vrot.lane.b32.xlu1 %v1349_v12, %s11601_s27  ;;  %1504 = vrot.lane.b32.xlu0 %v1452_v13, %s11599_s29 }
 0x13f   : > { %1496 = vrot.lane.b32.xlu0 %v1353_v14, %s11599_s29  ;;  %1531 = vrot.lane.b32.xlu1 %v7998_v15, %s11597_s0 }
 0x143   : > { %1500 = vrot.lane.b32.xlu0 %v1355_v16, %s11599_s29  ;;  %1498 = vrot.lane.b32.xlu1 %v1359_v18, %s11599_s29 }
 0x147   : > { %1502 = vrot.lane.b32.xlu1 %v1361_v19, %s11599_s29  ;;  %1529 = vrot.lane.b32.xlu0 %v1462_v17, %s11597_s0 }
 0x14b   : > { %1527 = vrot.lane.b32.xlu1 %v1373_v23, %s11597_s0  ;;  %1525 = vrot.lane.b32.xlu0 %v1367_v21, %s11597_s0 }
 0x14f   : > { %1523 = vrot.lane.b32.xlu1 %v1371_v22, %s11597_s0  ;;  %1521 = vrot.lane.b32.xlu0 %v1365_v20, %s11597_s0  ;;  %s11628_s0 = smov 111  }
 0x165   : > { %v905_v25 = vpop.permute.xlu0 %904  ;;  %v915_v26 = vpop.permute.xlu1 %914 }
 0x169   : > { %v909_v27 = vpop.permute.xlu1 %908  ;;  %v913_v28 = vpop.permute.xlu0 %912 }
 0x16a   : > { %v921_v8 = vsel %vm918_vm3, %v905_v25, %v909_v27  ;;  %v919_v9 = vsel %vm918_vm3, %v909_v27, %v913_v28  ;;  %v923_v14 = vsel %vm918_vm3, %v913_v28, %v905_v25 }
 0x16d   : > { %v907_v29 = vpop.permute.xlu0 %906  ;;  %v936_v30 = vpop.permute.xlu1 %935 }
 0x16e   : > { %v924_v22 = vsel %vm918_vm3, %v915_v26, %v907_v29 }
 0x171   : > { %v911_v31 = vpop.permute.xlu1 %910  ;;  %v934_v32 = vpop.permute.xlu0 %933 }
 0x172   : > { %v922_v15 = vsel %vm918_vm3, %v907_v29, %v911_v31  ;;  %v920_v23 = vsel %vm918_vm3, %v911_v31, %v915_v26 }
 0x175   : > { %v926_v33 = vpop.permute.xlu0 %925  ;;  %v961_v34 = vpop.permute.xlu1 %960 }
 0x176   : > { %v942_v10 = vsel %vm937_vm4, %v934_v32, %v926_v33 }
 0x177   : > { %v944_v25 = vadd.f32 %v942_v10, %v923_v14 }
 0x179   : > { %v930_v35 = vpop.permute.xlu0 %929  ;;  %v928_v36 = vpop.permute.xlu1 %927 }
 0x17a   : > { %v940_v6 = vsel %vm937_vm4, %v926_v33, %v930_v35  ;;  %v938_v11 = vsel %vm937_vm4, %v930_v35, %v934_v32  ;;  %v943_v19 = vsel %vm937_vm4, %v936_v30, %v928_v36 }
 0x17b   : > { %v945_v18 = vadd.f32 %v940_v6, %v921_v8  ;;  %v946_v27 = vadd.f32 %v938_v11, %v919_v9 }
 0x17d   : > { %v932_v37 = vpop.permute.xlu1 %931  ;;  %v959_v38 = vpop.permute.xlu0 %958 }
 0x17e   : > { %v941_v0 = vsel %vm937_vm4, %v928_v36, %v932_v37  ;;  %v939_v20 = vsel %vm937_vm4, %v932_v37, %v936_v30  ;;  %v947_v37 = vadd.f32 %v943_v19, %v924_v22 }
 0x17f   : > { %v948_v21 = vadd.f32 %v941_v0, %v922_v15  ;;  %v949_v6 = vadd.f32 %v939_v20, %v920_v23 }
 0x181   : > { %v1196_v39 = vpop.permute.xlu0 %1195  ;;  %v9024_v40 = vpop.permute.xlu1 %1197 }
 0x185   : > { %v1200_v41 = vpop.permute.xlu0 %1199  ;;  %v1202_v42 = vpop.permute.xlu1 %1201 }
 0x186   : > { %v1210_v31 = vsel %vm1207_vm6, %v1196_v39, %v1200_v41 }
 0x189   : > { %v951_v43 = vpop.permute.xlu0 %950  ;;  %v953_v44 = vpop.permute.xlu1 %952 }
 0x18a   : > { %v967_v28 = vsel %vm962_vm5, %v959_v38, %v951_v43  ;;  %v968_v29 = vsel %vm962_vm5, %v961_v34, %v953_v44 }
 0x18b   : > { %v969_v8 = vadd.f32 %v967_v28, %v944_v25 }
 0x18d   : > { %v955_v45 = vpop.permute.xlu0 %954  ;;  %v957_v46 = vpop.permute.xlu1 %956 }
 0x18e   : > { %v965_v16 = vsel %vm962_vm5, %v951_v43, %v955_v45  ;;  %v966_v17 = vsel %vm962_vm5, %v953_v44, %v957_v46  ;;  %v964_v33 = vsel %vm962_vm5, %v957_v46, %v961_v34  ;;  %v963_v26 = vsel %vm962_vm5, %v955_v45, %v959_v38 }
 0x18f   : > { %v970_v32 = vadd.f32 %v965_v16, %v945_v18  ;;  %v973_v35 = vadd.f32 %v966_v17, %v948_v21  ;;  %v1211_v43 = vsel %vm1207_vm6, %v9024_v40, %v1202_v42  ;;  %v974_v9 = vadd.f32 %v964_v33, %v949_v6 }
 0x190   : > { %v972_v44 = vadd.f32 %v968_v29, %v947_v37  ;;  %v971_v45 = vadd.f32 %v963_v26, %v946_v27  ;;  %v1557_v17 = vsub.s32 2, %v8830_v4 }
 0x191   : > { %v1204_v47 = vpop.permute.xlu0 %1203  ;;  %v1206_v48 = vpop.permute.xlu1 %1205  ;;  %v1215_v10 = vadd.f32 %v1210_v31, %v970_v32  ;;  %v1218_v11 = vadd.f32 %v1211_v43, %v973_v35 }
 0x192   : > { %v1212_v46 = vsel %vm1207_vm6, %v1204_v47, %v1196_v39  ;;  %v1209_v0 = vsel %vm1207_vm6, %v1202_v42, %v1206_v48  ;;  %v1208_v34 = vsel %vm1207_vm6, %v1200_v41, %v1204_v47  ;;  %v1213_v38 = vsel %vm1207_vm6, %v1206_v48, %v9024_v40  ;;  %v657_v39 = vld [vmem:[%s11624_s5] sm:$0x7]  ;;  %s11625_s5 = sld [smem:[#allocation6_spill]] }
 0x193   : > { %v1214_v42 = vadd.f32 %v1212_v46, %v969_v8  ;;  %v1219_v16 = vadd.f32 %v1209_v0, %v974_v9  ;;  %v1216_v41 = vadd.f32 %v1208_v34, %v971_v45  ;;  %v1217_v47 = vadd.f32 %v1213_v38, %v972_v44 }
 0x194   : > { %v1549_v40 = vsub.s32 0, %v8830_v4  ;;  %v9122_v48 = vrot.slane %v657_v39, %v1553_v3  ;;  %v1221_v18 = vadd.f32 %v1215_v10, %v8975_v53  ;;  %v1224_v19 = vadd.f32 %v1218_v11, %v8981_v57 }
 0x195   : > { %v9026_v49 = vpop.permute.xlu1 %1236  ;;  %v9028_v50 = vpop.permute.xlu0 %1226  ;;  %v1220_v22 = vadd.f32 %v1214_v42, %v8971_v51  ;;  %v1225_v23 = vadd.f32 %v8983_v58, %v1219_v16  ;;  %v1222_v57 = vadd.f32 %v1216_v41, %v8987_v60  ;;  %v1223_v58 = vadd.f32 %v1217_v47, %v8977_v55 }
 0x196   : > { %v9200_v11 = vrot.slane %v657_v39, %v1549_v40 }
 0x199   : > { %v9030_v52 = vpop.permute.xlu0 %1230  ;;  %v9032_v54 = vpop.permute.xlu1 %1228 }
 0x19a   : > { %v1241_v53 = vsel %vm1238_vm7, %v9028_v50, %v9030_v52  ;;  %v1244_v3 = vsel %vm1238_vm7, %v9026_v49, %v9032_v54 }
 0x19b   : > { %v1245_v28 = vadd.f32 %v1241_v53, %v1220_v22  ;;  %v1250_v37 = vadd.f32 %v1244_v3, %v1225_v23 }
 0x19d   : > { %v9034_v56 = vpop.permute.xlu0 %1234  ;;  %v9036_v59 = vpop.permute.xlu1 %1232 }
 0x19e   : > { %v1239_v25 = vsel %vm1238_vm7, %v9030_v52, %v9034_v56  ;;  %v1240_v4 = vsel %vm1238_vm7, %v9036_v59, %v9026_v49  ;;  %v1243_v51 = vsel %vm1238_vm7, %v9034_v56, %v9028_v50  ;;  %v1242_v27 = vsel %vm1238_vm7, %v9032_v54, %v9036_v59 }
 0x19f   : > { %v1246_v50 = vadd.f32 %v1239_v25, %v1221_v18  ;;  %v1249_v52 = vadd.f32 %v1240_v4, %v1224_v19  ;;  %v1247_v32 = vadd.f32 %v1243_v51, %v1222_v57  ;;  %v1248_v6 = vadd.f32 %v1242_v27, %v1223_v58 }
 0x1a1   : > { %v9038_v61 = vpop.permute.xlu0 %1471  ;;  %v9040_v62 = vpop.permute.xlu1 %1481 }
 0x1a5   : > { %v9045_v1 = vpop.permute.xlu0 %1475  ;;  %v9047_v2 = vpop.permute.xlu1 %1473 }
 0x1a6   : > { %v1486_v49 = vsel %vm1483_vm8, %v9038_v61, %v9045_v1 }
 0x1a7   : > { %v1490_v26 = vadd.f32 %v1486_v49, %v1245_v28  ;;  %v1612_v28 = vld [vmem:[%s11625_s5 + $0x10] sm:$0xff] }
 0x1a9   : > { %v9066_v12 = vpop.permute.xlu0 %1479  ;;  %v9068_v13 = vpop.permute.xlu1 %1506 }
 0x1aa   : > { %v1484_v60 = vsel %vm1483_vm8, %v9045_v1, %v9066_v12  ;;  %v1488_v54 = vsel %vm1483_vm8, %v9066_v12, %v9038_v61  ;;  %v1489_v61 = vsel %vm1483_vm8, %v9040_v62, %v9047_v2 }
 0x1ab   : > { %v1491_v1 = vadd.f32 %v1484_v60, %v1246_v50  ;;  %v1492_v12 = vadd.f32 %v1488_v54, %v1247_v32  ;;  %v1613_v32 = vld [vmem:[%s11625_s5 + $0x18] sm:$0xff] }
 0x1ad   : > { %v9090_v36 = vpop.permute.xlu1 %1477  ;;  %v9092_v30 = vpop.permute.xlu0 %1504 }
 0x1ae   : > { %v1485_v55 = vsel %vm1483_vm8, %v9090_v36, %v9040_v62  ;;  %v1487_v31 = vsel %vm1483_vm8, %v9047_v2, %v9090_v36 }
 0x1af   : > { %v1494_v29 = vadd.f32 %v1485_v55, %v1249_v52  ;;  %v1493_v44 = vadd.f32 %v1487_v31, %v1248_v6  ;;  %v1617_v6 = vld [vmem:[%s11625_s5 + $0x38] sm:$0xff] }
 0x1b1   : > { %v1497_v14 = vpop.permute.xlu0 %1496  ;;  %v9112_v15 = vpop.permute.xlu1 %1531 }
 0x1b2   : > { %v1513_v43 = vsel %vm1508_vm9, %v9092_v30, %v1497_v14 }
 0x1b3   : > { %v1517_v42 = vadd.f32 %v1513_v43, %v1492_v12 }
 0x1b5   : > { %v1501_v20 = vpop.permute.xlu0 %1500  ;;  %v1499_v21 = vpop.permute.xlu1 %1498 }
 0x1b6   : > { %v1509_v33 = vsel %vm1508_vm9, %v1501_v20, %v9092_v30  ;;  %v1511_v46 = vsel %vm1508_vm9, %v1497_v14, %v1501_v20  ;;  %v1514_v62 = vsel %vm1508_vm9, %v9068_v13, %v1499_v21  ;;  %v1495_v30 = vadd.f32 %v1489_v61, %v1250_v37  ;;  %v1616_v37 = vld [vmem:[%s11625_s5 + $0x30] sm:$0xff] }
 0x1b7   : > { %v1516_v0 = vadd.f32 %v1509_v33, %v1491_v1  ;;  %v9202_v14 = vrot.slane %v657_v39, %v1557_v17  ;;  %v1614_v33 = vld [vmem:[%s11625_s5 + $0x20] sm:$0xff] }
 0x1b8   : > { %v1520_v16 = vadd.f32 %v1514_v62, %v1495_v30  ;;  %v1618_v1 = vld [vmem:[%s11625_s5 + $0x40] sm:$0xff] }
 0x1b9   : > { %v1503_v56 = vpop.permute.xlu1 %1502  ;;  %v1530_v59 = vpop.permute.xlu0 %1529 }
 0x1ba   : > { %v1510_v35 = vsel %vm1508_vm9, %v1503_v56, %v9068_v13  ;;  %v1512_v38 = vsel %vm1508_vm9, %v1499_v21, %v1503_v56  ;;  %v1515_v13 = vadd.f32 %v1511_v46, %v1490_v26  ;;  %v1610_v56 = vld [vmem:[%s11625_s5] sm:$0xff] }
 0x1bb   : > { %v1519_v8 = vadd.f32 %v1510_v35, %v1494_v29  ;;  %v1518_v41 = vadd.f32 %v1512_v38, %v1493_v44  ;;  %v1615_v35 = vld [vmem:[%s11625_s5 + $0x28] sm:$0xff] }
 0x1bd   : > { %v1528_v9 = vpop.permute.xlu1 %1527  ;;  %v1526_v34 = vpop.permute.xlu0 %1525 }
 0x1be   : > { %v1535_v2 = vsel %vm1533_vm10, %v1528_v9, %v9112_v15  ;;  %v1534_v36 = vsel %vm1533_vm10, %v1526_v34, %v1530_v59 }
 0x1bf   : > { %v1544_v45 = vadd.f32 %v1535_v2, %v1519_v8  ;;  %v1541_v10 = vadd.f32 %v1534_v36, %v1516_v0 }
 0x1c1   : > { %v9205_v47 = vmul.f32 %v9122_v48, %v1544_v45  ;;  %v9208_v18 = vmul.f32 %v9122_v48, %v1541_v10  ;;  %v1524_v19 = vpop.permute.xlu1 %1523  ;;  %v1522_v20 = vpop.permute.xlu0 %1521 }
 0x1c2   : > { %v1537_v21 = vsel %vm1533_vm10, %v1524_v19, %v1528_v9  ;;  %v1539_v39 = vsel %vm1533_vm10, %v9112_v15, %v1524_v19  ;;  %v1536_v40 = vsel %vm1533_vm10, %v1522_v20, %v1526_v34  ;;  %v1538_v17 = vsel %vm1533_vm10, %v1530_v59, %v1522_v20  ;;  %v1611_v59 = vld [vmem:[%s11625_s5 + $0x8] sm:$0xff] }
 0x1c3   : > { %v1543_v22 = vadd.f32 %v1537_v21, %v1518_v41  ;;  %v1545_v23 = vadd.f32 %v1539_v39, %v1520_v16  ;;  %v1540_v25 = vadd.f32 %v1536_v40, %v1515_v13  ;;  %v1542_v4 = vadd.f32 %v1538_v17, %v1517_v42 }
 0x1c4   : > { %v1593_v53 = vmax.f32 %v9208_v18, 0.0  ;;  %v1596_v57 = vmax.f32 %v9205_v47, 0.0 }
 0x1c5   : > { %v9222_v51 = vmul.f32 %v9200_v11, %v1543_v22  ;;  %v9225_v58 = vmul.f32 %v9202_v14, %v1545_v23  ;;  %v9228_v15 = vmul.f32 %v9200_v11, %v1540_v25  ;;  %v9231_v3 = vmul.f32 %v9202_v14, %v1542_v4 }
 0x1c6   : > { %v9233_v27 = vpack.c.bf16 %v1596_v57, %v1593_v53 }
 0x1c7   : > { %v1597_v60 = vmax.f32 %v9225_v58, 0.0  ;;  %v1594_v55 = vmax.f32 %v9231_v3, 0.0  ;;  %v1592_v50 = vmax.f32 %v9228_v15, 0.0  ;;  %v1595_v52 = vmax.f32 %v9222_v51, 0.0 }
 0x1c8   : > { %8479 = vmatprep.subr.bf16.mxu1 %v9233_v27 }
 0x1c9   : > { %v9240_v49 = vpack.c.bf16 %v1595_v52, %v1592_v50  ;;  %v9242_v54 = vpack.c.bf16 %v1597_v60, %v1594_v55 }
 0x1cb   : > { %8481 = vmatpush1.bf16.msra.mxu1 %v9240_v49  ;;  %8484 = vmatpush3.bf16.msra.mxu0 %v9242_v54 }
 0x1cc   : > { %8486 = vmatprep.subr.bf16.mxu1 %v9233_v27  ;;  %8489 = vmatprep.subr.bf16.mxu0 %v8703_v24 }
 0x1ce   : > { %7510 = vmatmul.mubr.msk.f32.vlgmr.msra.gmra.mrb[24].mxu1 %vm1619_vm11, %v1610_v56  ;;  %8004 = vmatmul.mubr.msk.f32.vlgmr.msra.gmra.mrb[30].mxu0 %vm1619_vm11, %v1610_v56 }
 0x1cf   : > { %8488 = vmatpush1.bf16.msra.mxu1 %v9240_v49  ;;  %8491 = vmatpush3.bf16.msra.mxu0 %v9242_v54 }
 0x1d0   : > { %8006 = vmatprep.mubr.msk.f32.mxu0 %vm8704_vm2, %v8694_v5  ;;  %1717 = vmatprep.mubr.f32.mxu1 %v8694_v5 }
 0x1d1   : > { %8034 = vmatprep.subr.mxu0 %v8694_v5 }
 0x1d2   : > { %8007 = vmatmul.mubr.msk.f32.gmra.mrb[32].mxu0 %vm1619_vm11, %v1611_v59  ;;  %7511 = vmatmul.mubr.msk.f32.gmra.mrb[26].mxu1 %vm1619_vm11, %v1611_v59 }
 0x1d3   : > { %1723 = vmatprep.mubr.f32.mxu1 %v8694_v5  ;;  %8009 = vmatprep.mubr.msk.f32.mxu0 %vm8704_vm2, %v8694_v5 }
 0x1d6   : > { %7512 = vmatmul.mubr.msk.f32.gmra.mrb[28].mxu1 %vm1619_vm11, %v1612_v28  ;;  %8010 = vmatmul.mubr.msk.f32.gmra.mrb[34].mxu0 %vm1619_vm11, %v1612_v28 }
 0x1d7   : > { %1729 = vmatprep.mubr.f32.mxu1 %v8694_v5  ;;  %8012 = vmatprep.mubr.msk.f32.mxu0 %vm8704_vm2, %v8694_v5 }
 0x1da   : > { %7513 = vmatmul.mubr.msk.f32.gmra.mrb[30].mxu1 %vm1619_vm11, %v1613_v32  ;;  %8013 = vmatmul.mubr.msk.f32.gmra.mrb[36].mxu0 %vm1619_vm11, %v1613_v32 }
 0x1db   : > { %1735 = vmatprep.mubr.f32.mxu1 %v8694_v5  ;;  %8015 = vmatprep.mubr.msk.f32.mxu0 %vm8704_vm2, %v8694_v5 }
 0x1de   : > { %7514 = vmatmul.mubr.msk.f32.gmra.mrb[32].mxu1 %vm1619_vm11, %v1614_v33  ;;  %8016 = vmatmul.mubr.msk.f32.gmra.mrb[38].mxu0 %vm1619_vm11, %v1614_v33 }
 0x1df   : > { %1741 = vmatprep.mubr.f32.mxu1 %v8694_v5  ;;  %8018 = vmatprep.mubr.msk.f32.mxu0 %vm8704_vm2, %v8694_v5 }
 0x1e2   : > { %7515 = vmatmul.mubr.msk.f32.gmra.mrb[34].mxu1 %vm1619_vm11, %v1615_v35  ;;  %8019 = vmatmul.mubr.msk.f32.gmra.mrb[40].mxu0 %vm1619_vm11, %v1615_v35 }
 0x1e3   : > { %1747 = vmatprep.mubr.f32.mxu1 %v8694_v5  ;;  %8021 = vmatprep.mubr.msk.f32.mxu0 %vm8704_vm2, %v8694_v5 }
 0x1e6   : > { %7516 = vmatmul.mubr.msk.f32.gmra.mrb[36].mxu1 %vm1619_vm11, %v1616_v37  ;;  %8022 = vmatmul.mubr.msk.f32.gmra.mrb[42].mxu0 %vm1619_vm11, %v1616_v37 }
 0x1e7   : > { %1753 = vmatprep.mubr.f32.mxu1 %v8694_v5  ;;  %8024 = vmatprep.mubr.msk.f32.mxu0 %vm8704_vm2, %v8694_v5 }
 0x1ea   : > { %7517 = vmatmul.mubr.msk.f32.gmra.mrb[38].mxu1 %vm1619_vm11, %v1617_v6  ;;  %8025 = vmatmul.mubr.msk.f32.gmra.mrb[44].mxu0 %vm1619_vm11, %v1617_v6 }
 0x1eb   : > { %1759 = vmatprep.mubr.f32.mxu1 %v8694_v5  ;;  %8027 = vmatprep.mubr.msk.f32.mxu0 %vm8704_vm2, %v8694_v5 }
 0x1ee   : > { %7518 = vmatmul.mubr.msk.f32.gmra.mrb[40].mxu1 %vm1619_vm11, %v1618_v1  ;;  %8028 = vmatmul.mubr.msk.f32.gmra.mrb[46].mxu0 %vm1619_vm11, %v1618_v1 }
 0x1ef   : > { %2091 = vmatprep.mubr.f32.mxu1 %v8694_v5  ;;  %8036 = vmatprep.mubr.msk.f32.mxu0 %vm8704_vm2, %v8694_v5 }
 0x2a1   : > { %v1713_v29 = vpop.f32.mrb[24].mxu1  ;;  %v1832_v26 = vpop.f32.mrb[30].mxu0 }
 0x2a2   : > { %1880 = vrot.lane.b32.xlu0 %v1832_v26, %s11611_s22  ;;  %v1715_v61 = vpop.f32.mrb[25].mxu1  ;;  %v8005_v12 = vpop.f32.mrb[31].mxu0 }
 0x2a3   : > { %1878 = vrot.lane.b32.xlu1 %v1715_v61, %s11611_s22 }
 0x2a5   : > { %v1837_v31 = vpop.f32.mrb[32].mxu0  ;;  %v1719_v43 = vpop.f32.mrb[26].mxu1 }
 0x2a6   : > { %v8008_v46 = vpop.f32.mrb[33].mxu0  ;;  %1876 = vrot.lane.b32.xlu0 %v1713_v29, %s11611_s22  ;;  %v1721_v0 = vpop.f32.mrb[27].mxu1 }
 0x2a7   : > { %1889 = vrot.lane.b32.xlu1 %v1837_v31, %s11609_s23 }
 0x2a9   : > { %v1725_v8 = vpop.f32.mrb[28].mxu1  ;;  %v1842_v9 = vpop.f32.mrb[34].mxu0 }
 0x2aa   : > { %1885 = vrot.lane.b32.xlu0 %v1719_v43, %s11609_s23  ;;  %v1727_v34 = vpop.f32.mrb[29].mxu1  ;;  %v8011_v62 = vpop.f32.mrb[35].mxu0 }
 0x2ab   : > { %1887 = vrot.lane.b32.xlu1 %v1721_v0, %s11609_s23 }
 0x2ad   : > { %v1731_v38 = vpop.f32.mrb[30].mxu1  ;;  %v1847_v2 = vpop.f32.mrb[36].mxu0 }
 0x2ae   : > { %1901 = vrot.lane.b32.xlu0 %v1842_v9, %s11607_s1  ;;  %v1733_v36 = vpop.f32.mrb[31].mxu1  ;;  %v8014_v30 = vpop.f32.mrb[37].mxu0 }
 0x2af   : > { %1899 = vrot.lane.b32.xlu1 %v1727_v34, %s11607_s1 }
 0x2b1   : > { %v9331_v44 = vpop.f32.mrb[32].mxu1  ;;  %v9333_v45 = vpop.f32.mrb[38].mxu0 }
 0x2b2   : > { %1897 = vrot.lane.b32.xlu0 %v1725_v8, %s11607_s1  ;;  %v9336_v10 = vpop.f32.mrb[33].mxu1  ;;  %v8017_v42 = vpop.f32.mrb[39].mxu0 }
 0x2b3   : > { %1913 = vrot.lane.b32.xlu1 %v1847_v2, %s11605_s24 }
 0x2b5   : > { %v1743_v13 = vpop.f32.mrb[34].mxu1  ;;  %v1857_v16 = vpop.f32.mrb[40].mxu0 }
 0x2b6   : > { %1911 = vrot.lane.b32.xlu0 %v1733_v36, %s11605_s24  ;;  %v1745_v41 = vpop.f32.mrb[35].mxu1  ;;  %v8020_v19 = vpop.f32.mrb[41].mxu0 }
 0x2b7   : > { %1909 = vrot.lane.b32.xlu1 %v1731_v38, %s11605_s24 }
 0x2b9   : > { %v1749_v20 = vpop.f32.mrb[36].mxu1  ;;  %v1862_v21 = vpop.f32.mrb[42].mxu0 }
 0x2ba   : > { %1924 = vrot.lane.b32.xlu0 %v1743_v13, %s11603_s26  ;;  %v1751_v39 = vpop.f32.mrb[37].mxu1  ;;  %v8023_v40 = vpop.f32.mrb[43].mxu0 }
 0x2bb   : > { %1928 = vrot.lane.b32.xlu1 %v1857_v16, %s11603_s26 }
 0x2bd   : > { %v1755_v17 = vpop.f32.mrb[38].mxu1  ;;  %v1867_v22 = vpop.f32.mrb[44].mxu0 }
 0x2be   : > { %1926 = vrot.lane.b32.xlu0 %v1745_v41, %s11603_s26  ;;  %v1757_v23 = vpop.f32.mrb[39].mxu1  ;;  %v8026_v25 = vpop.f32.mrb[45].mxu0 }
 0x2bf   : > { %1936 = vrot.lane.b32.xlu1 %v1749_v20, %s11601_s27 }
 0x2c1   : > { %v1761_v4 = vpop.f32.mrb[40].mxu1  ;;  %v1872_v53 = vpop.f32.mrb[46].mxu0 }
 0x2c2   : > { %1940 = vrot.lane.b32.xlu0 %v1862_v21, %s11601_s27  ;;  %v1763_v57 = vpop.f32.mrb[41].mxu1  ;;  %v8029_v60 = vpop.f32.mrb[47].mxu0 }
 0x2c3   : > { %1938 = vrot.lane.b32.xlu1 %v1751_v39, %s11601_s27  ;;  %s11633_s27 = smov 127  }
 0x2c6   : > { %1948 = vrot.lane.b32.xlu0 %v1755_v17, %s11599_s29 }
 0x2c7   : > { %1952 = vrot.lane.b32.xlu1 %v1867_v22, %s11599_s29 }
 0x2ca   : > { %1950 = vrot.lane.b32.xlu0 %v1757_v23, %s11599_s29  ;;  %s11636_s29 = smov 18  }
 0x2cb   : > { %1962 = vrot.lane.b32.xlu1 %v1763_v57, %s11626_s28 }
 0x2ce   : > { %1964 = vrot.lane.b32.xlu0 %v1872_v53, %s11626_s28 }
 0x2cf   : > { %1960 = vrot.lane.b32.xlu1 %v1761_v4, %s11626_s28 }
 0x314   : > { %v1881_v55 = vpop.permute.xlu0 %1880 }
 0x315   : > { %v1879_v50 = vpop.permute.xlu1 %1878 }
 0x316   : > { %v1882_v31 = vsel %vm918_vm3, %v1879_v50, %v1881_v55 }
 0x318   : > { %v1877_v52 = vpop.permute.xlu0 %1876 }
 0x319   : > { %v1890_v56 = vpop.permute.xlu1 %1889  ;;  %v1883_v8 = vsel %vm918_vm3, %v1877_v52, %v1879_v50  ;;  %v1884_v38 = vsel %vm918_vm3, %v1881_v55, %v1877_v52 }
 0x31c   : > { %v1886_v59 = vpop.permute.xlu0 %1885 }
 0x31d   : > { %v1888_v28 = vpop.permute.xlu1 %1887  ;;  %v1893_v43 = vsel %vm937_vm4, %v1890_v56, %v1886_v59 }
 0x31e   : > { %v1891_v61 = vsel %vm937_vm4, %v1888_v28, %v1890_v56  ;;  %v1892_v12 = vsel %vm937_vm4, %v1886_v59, %v1888_v28  ;;  %v1894_v42 = vadd.f32 %v1893_v43, %v1884_v38 }
 0x31f   : > { %v1896_v9 = vadd.f32 %v1891_v61, %v1882_v31  ;;  %v1895_v2 = vadd.f32 %v1892_v12, %v1883_v8 }
 0x320   : > { %v1902_v32 = vpop.permute.xlu0 %1901 }
 0x321   : > { %v1900_v33 = vpop.permute.xlu1 %1899 }
 0x322   : > { %v1903_v46 = vsel %vm962_vm5, %v1900_v33, %v1902_v32 }
 0x323   : > { %v1908_v13 = vadd.f32 %v1903_v46, %v1896_v9 }
 0x324   : > { %v1898_v35 = vpop.permute.xlu0 %1897 }
 0x325   : > { %v1914_v37 = vpop.permute.xlu1 %1913  ;;  %v1904_v34 = vsel %vm962_vm5, %v1898_v35, %v1900_v33  ;;  %v1905_v36 = vsel %vm962_vm5, %v1902_v32, %v1898_v35 }
 0x326   : > { %v1907_v41 = vadd.f32 %v1904_v34, %v1895_v2  ;;  %v1906_v21 = vadd.f32 %v1905_v36, %v1894_v42 }
 0x328   : > { %v1912_v6 = vpop.permute.xlu0 %1911 }
 0x329   : > { %v1910_v1 = vpop.permute.xlu1 %1909  ;;  %v1915_v30 = vsel %vm1207_vm6, %v1912_v6, %v1914_v37 }
 0x32a   : > { %v1916_v16 = vsel %vm1207_vm6, %v1910_v1, %v1912_v6  ;;  %v1917_v19 = vsel %vm1207_vm6, %v1914_v37, %v1910_v1  ;;  %v1920_v39 = vadd.f32 %v1915_v30, %v1908_v13 }
 0x32b   : > { %v1919_v17 = vadd.f32 %v1916_v16, %v1907_v41  ;;  %v1918_v22 = vadd.f32 %v1917_v19, %v1906_v21  ;;  %v1990_v16 = vld [vmem:[%s11627_s30] sm:$0xff]  ;;  %v1991_v41 = vld [vmem:[%s11627_s30 + $0x8] sm:$0xff]  ;;  %v1992_v19 = vld [vmem:[%s11627_s30 + $0x10] sm:$0xff] }
 0x32c   : > { %v1925_v29 = vpop.permute.xlu0 %1924  ;;  %v1923_v25 = vadd.f32 %v1920_v39, %v9333_v45  ;;  %v1994_v21 = vld [vmem:[%s11627_s30 + $0x20] sm:$0xff]  ;;  %v1995_v39 = vld [vmem:[%s11627_s30 + $0x28] sm:$0xff] }
 0x32d   : > { %v1929_v26 = vpop.permute.xlu1 %1928  ;;  %v1922_v60 = vadd.f32 %v1919_v17, %v9336_v10  ;;  %v1921_v50 = vadd.f32 %v1918_v22, %v9331_v44  ;;  %v1997_v17 = vld [vmem:[%s11627_s30 + $0x38] sm:$0xff]  ;;  %v1998_v22 = vld [vmem:[%s11627_s30 + $0x40] sm:$0xff] }
 0x32e   : > { %v1932_v57 = vsel %vm1238_vm7, %v1929_v26, %v1925_v29 }
 0x32f   : > { %v1935_v32 = vadd.f32 %v1932_v57, %v1923_v25 }
 0x330   : > { %v1927_v0 = vpop.permute.xlu0 %1926 }
 0x331   : > { %v1937_v62 = vpop.permute.xlu1 %1936  ;;  %v1930_v4 = vsel %vm1238_vm7, %v1927_v0, %v1929_v26  ;;  %v1931_v55 = vsel %vm1238_vm7, %v1925_v29, %v1927_v0 }
 0x332   : > { %v1934_v56 = vadd.f32 %v1930_v4, %v1922_v60  ;;  %v1933_v33 = vadd.f32 %v1931_v55, %v1921_v50 }
 0x334   : > { %v1941_v20 = vpop.permute.xlu0 %1940 }
 0x335   : > { %v1939_v40 = vpop.permute.xlu1 %1938  ;;  %v1944_v45 = vsel %vm1483_vm8, %v1941_v20, %v1937_v62 }
 0x336   : > { %v1942_v52 = vsel %vm1483_vm8, %v1939_v40, %v1941_v20  ;;  %v1943_v59 = vsel %vm1483_vm8, %v1937_v62, %v1939_v40  ;;  %v1947_v1 = vadd.f32 %v1944_v45, %v1935_v32  ;;  %v1993_v20 = vld [vmem:[%s11627_s30 + $0x18] sm:$0xff]  ;;  %v1996_v40 = vld [vmem:[%s11627_s30 + $0x30] sm:$0xff] }
 0x337   : > { %v1946_v37 = vadd.f32 %v1942_v52, %v1934_v56  ;;  %v1945_v29 = vadd.f32 %v1943_v59, %v1933_v33 }
 0x338   : > { %v1949_v23 = vpop.permute.xlu0 %1948 }
 0x339   : > { %v1953_v53 = vpop.permute.xlu1 %1952 }
 0x33a   : > { %v1956_v44 = vsel %vm1508_vm9, %v1953_v53, %v1949_v23 }
 0x33b   : > { %v1959_v12 = vadd.f32 %v1956_v44, %v1947_v1 }
 0x33c   : > { %v1951_v28 = vpop.permute.xlu0 %1950 }
 0x33d   : > { %v1954_v10 = vsel %vm1508_vm9, %v1951_v28, %v1953_v53  ;;  %v1963_v35 = vpop.permute.xlu1 %1962  ;;  %v1955_v6 = vsel %vm1508_vm9, %v1949_v23, %v1951_v28 }
 0x33e   : > { %v1958_v26 = vadd.f32 %v1954_v10, %v1946_v37  ;;  %v1957_v31 = vadd.f32 %v1955_v6, %v1945_v29 }
 0x340   : > { %v1965_v61 = vpop.permute.xlu0 %1964 }
 0x341   : > { %v1966_v43 = vsel %vm1533_vm10, %v1963_v35, %v1965_v61  ;;  %v1961_v46 = vpop.permute.xlu1 %1960 }
 0x342   : > { %v1970_v0 = vadd.f32 %v1966_v43, %v1958_v26  ;;  %v1967_v8 = vsel %vm1533_vm10, %v1961_v46, %v1963_v35  ;;  %v1968_v9 = vsel %vm1533_vm10, %v1965_v61, %v1961_v46 }
 0x343   : > { %v1969_v34 = vadd.f32 %v1967_v8, %v1957_v31  ;;  %v1971_v62 = vadd.f32 %v1968_v9, %v1959_v12 }
 0x344   : > { %v1973_v38 = vmax.f32 %v1970_v0, 0.0 }
 0x345   : > { %v1972_v2 = vmax.f32 %v1969_v34, 0.0  ;;  %v1974_v36 = vmax.f32 %v1971_v62, 0.0 }
 0x346   : > { %v9405_v30 = vmul.f32 %v1973_v38, %v9122_v48 }
 0x347   : > { %v9408_v42 = vmul.f32 %v1972_v2, %v9200_v11  ;;  %v9411_v13 = vmul.f32 %v1974_v36, %v9202_v14 }
 0x348   : > { %2031 = vmatprep.subr.mxu1 %v9405_v30 }
 0x349   : > { %2032 = vmatpush1.msra.mxu1 %v9408_v42  ;;  %8035 = vmatpush3.msra.mxu0 %v9411_v13 }
 0x34a   : > { %7528 = vmatmul.mubr.msk.f32.vlgmr.msra.gmra.mrb[42].mxu1 %vm1999_vm12, %v1990_v16  ;;  %8037 = vmatmul.mubr.msk.f32.vlgmr.msra.gmra.mrb[48].mxu0 %vm1999_vm12, %v1990_v16 }
 0x34b   : > { %8493 = vmatprep.subr.bf16.mxu1 %v9233_v27  ;;  %8500 = vmatprep.subr.bf16.mxu0 %v8703_v24 }
 0x34c   : > { %8495 = vmatpush1.bf16.msra.mxu1 %v9240_v49  ;;  %8502 = vmatpush3.bf16.msra.mxu0 %v9242_v54 }
 0x34d   : > { %8039 = vmatprep.mubr.msk.f32.mxu0 %vm8704_vm2, %v8694_v5  ;;  %2097 = vmatprep.mubr.f32.mxu1 %v8694_v5 }
 0x34e   : > { %8040 = vmatmul.mubr.msk.f32.gmra.mrb[50].mxu0 %vm1999_vm12, %v1991_v41  ;;  %7529 = vmatmul.mubr.msk.f32.gmra.mrb[44].mxu1 %vm1999_vm12, %v1991_v41 }
 0x34f   : > { %2103 = vmatprep.mubr.f32.mxu1 %v8694_v5  ;;  %8042 = vmatprep.mubr.msk.f32.mxu0 %vm8704_vm2, %v8694_v5 }
 0x350   : > { %8503 = vmatprep.subr.bf16.mxu0 %v8703_v24 }
 0x352   : > { %7530 = vmatmul.mubr.msk.f32.gmra.mrb[46].mxu1 %vm1999_vm12, %v1992_v19  ;;  %8043 = vmatmul.mubr.msk.f32.gmra.mrb[52].mxu0 %vm1999_vm12, %v1992_v19 }
 0x353   : > { %2109 = vmatprep.mubr.f32.mxu1 %v8694_v5  ;;  %8045 = vmatprep.mubr.msk.f32.mxu0 %vm8704_vm2, %v8694_v5 }
 0x356   : > { %7531 = vmatmul.mubr.msk.f32.gmra.mrb[48].mxu1 %vm1999_vm12, %v1993_v20  ;;  %8046 = vmatmul.mubr.msk.f32.gmra.mrb[54].mxu0 %vm1999_vm12, %v1993_v20 }
 0x357   : > { %2115 = vmatprep.mubr.f32.mxu1 %v8694_v5  ;;  %8048 = vmatprep.mubr.msk.f32.mxu0 %vm8704_vm2, %v8694_v5 }
 0x35a   : > { %7532 = vmatmul.mubr.msk.f32.gmra.mrb[50].mxu1 %vm1999_vm12, %v1994_v21  ;;  %8049 = vmatmul.mubr.msk.f32.gmra.mrb[56].mxu0 %vm1999_vm12, %v1994_v21 }
 0x35b   : > { %2121 = vmatprep.mubr.f32.mxu1 %v8694_v5  ;;  %8051 = vmatprep.mubr.msk.f32.mxu0 %vm8704_vm2, %v8694_v5 }
 0x35e   : > { %7533 = vmatmul.mubr.msk.f32.gmra.mrb[52].mxu1 %vm1999_vm12, %v1995_v39  ;;  %8052 = vmatmul.mubr.msk.f32.gmra.mrb[58].mxu0 %vm1999_vm12, %v1995_v39 }
 0x35f   : > { %2127 = vmatprep.mubr.f32.mxu1 %v8694_v5  ;;  %8054 = vmatprep.mubr.msk.f32.mxu0 %vm8704_vm2, %v8694_v5 }
 0x362   : > { %7534 = vmatmul.mubr.msk.f32.gmra.mrb[54].mxu1 %vm1999_vm12, %v1996_v40  ;;  %8055 = vmatmul.mubr.msk.f32.gmra.mrb[60].mxu0 %vm1999_vm12, %v1996_v40 }
 0x363   : > { %2133 = vmatprep.mubr.f32.mxu1 %v8694_v5  ;;  %8057 = vmatprep.mubr.msk.f32.mxu0 %vm8704_vm2, %v8694_v5 }
 0x366   : > { %7535 = vmatmul.mubr.msk.f32.gmra.mrb[56].mxu1 %vm1999_vm12, %v1997_v17  ;;  %8058 = vmatmul.mubr.msk.f32.gmra.mrb[62].mxu0 %vm1999_vm12, %v1997_v17 }
 0x367   : > { %2139 = vmatprep.mubr.f32.mxu1 %v8694_v5  ;;  %8060 = vmatprep.mubr.msk.f32.mxu0 %vm8704_vm2, %v8694_v5 }
 0x36a   : > { %7536 = vmatmul.mubr.msk.f32.gmra.mrb[58].mxu1 %vm1999_vm12, %v1998_v22  ;;  %8061 = vmatmul.mubr.msk.f32.gmra.mrb[64].mxu0 %vm1999_vm12, %v1998_v22 }
 0x36b   : > { %2474 = vmatprep.mubr.f32.mxu1 %v8694_v5  ;;  %8071 = vmatprep.mubr.msk.f32.mxu0 %vm8704_vm2, %v8694_v5 }
 0x41d   : > { %v2093_v23 = vpop.f32.mrb[42].mxu1  ;;  %v2212_v25 = vpop.f32.mrb[48].mxu0 }
 0x41e   : > { %2260 = vrot.lane.b32.xlu0 %v2212_v25, %s11611_s22  ;;  %v2095_v4 = vpop.f32.mrb[43].mxu1  ;;  %v8038_v53 = vpop.f32.mrb[49].mxu0 }
 0x41f   : > { %2258 = vrot.lane.b32.xlu1 %v2095_v4, %s11611_s22 }
 0x421   : > { %v2217_v57 = vpop.f32.mrb[50].mxu0  ;;  %v2099_v60 = vpop.f32.mrb[44].mxu1 }
 0x422   : > { %v8041_v55 = vpop.f32.mrb[51].mxu0  ;;  %2256 = vrot.lane.b32.xlu0 %v2093_v23, %s11611_s22  ;;  %v2101_v50 = vpop.f32.mrb[45].mxu1 }
 0x423   : > { %2269 = vrot.lane.b32.xlu1 %v2217_v57, %s11609_s23 }
 0x425   : > { %v2105_v52 = vpop.f32.mrb[46].mxu1  ;;  %v2222_v56 = vpop.f32.mrb[52].mxu0 }
 0x426   : > { %2265 = vrot.lane.b32.xlu0 %v2099_v60, %s11609_s23  ;;  %v2107_v45 = vpop.f32.mrb[47].mxu1  ;;  %v8044_v59 = vpop.f32.mrb[53].mxu0 }
 0x427   : > { %2267 = vrot.lane.b32.xlu1 %v2101_v50, %s11609_s23 }
 0x429   : > { %v2111_v28 = vpop.f32.mrb[48].mxu1  ;;  %v2227_v32 = vpop.f32.mrb[54].mxu0 }
 0x42a   : > { %2281 = vrot.lane.b32.xlu0 %v2222_v56, %s11607_s1  ;;  %v2113_v33 = vpop.f32.mrb[49].mxu1  ;;  %v8047_v10 = vpop.f32.mrb[55].mxu0 }
 0x42b   : > { %2279 = vrot.lane.b32.xlu1 %v2107_v45, %s11607_s1 }
 0x42d   : > { %v9501_v35 = vpop.f32.mrb[50].mxu1  ;;  %v9503_v37 = vpop.f32.mrb[56].mxu0 }
 0x42e   : > { %2277 = vrot.lane.b32.xlu0 %v2105_v52, %s11607_s1  ;;  %v9506_v44 = vpop.f32.mrb[51].mxu1  ;;  %v8050_v6 = vpop.f32.mrb[57].mxu0  ;;  %s11631_s1 = smov 17  }
 0x42f   : > { %2293 = vrot.lane.b32.xlu1 %v2227_v32, %s11605_s24 }
 0x431   : > { %v2123_v1 = vpop.f32.mrb[52].mxu1  ;;  %v2237_v29 = vpop.f32.mrb[58].mxu0 }
 0x432   : > { %2291 = vrot.lane.b32.xlu0 %v2113_v33, %s11605_s24  ;;  %v2125_v26 = vpop.f32.mrb[53].mxu1  ;;  %v8053_v61 = vpop.f32.mrb[59].mxu0 }
 0x433   : > { %2289 = vrot.lane.b32.xlu1 %v2111_v28, %s11605_s24  ;;  %s11632_s24 = smov 1  }
 0x435   : > { %v2129_v12 = vpop.f32.mrb[54].mxu1  ;;  %v2242_v31 = vpop.f32.mrb[60].mxu0 }
 0x436   : > { %2304 = vrot.lane.b32.xlu0 %v2123_v1, %s11603_s26  ;;  %v2131_v43 = vpop.f32.mrb[55].mxu1  ;;  %v8056_v46 = vpop.f32.mrb[61].mxu0 }
 0x437   : > { %2308 = vrot.lane.b32.xlu1 %v2237_v29, %s11603_s26 }
 0x439   : > { %v2135_v0 = vpop.f32.mrb[56].mxu1  ;;  %v2247_v8 = vpop.f32.mrb[62].mxu0 }
 0x43a   : > { %2306 = vrot.lane.b32.xlu0 %v2125_v26, %s11603_s26  ;;  %v2137_v9 = vpop.f32.mrb[57].mxu1  ;;  %v8059_v34 = vpop.f32.mrb[63].mxu0  ;;  %s11630_s26 = sld [smem:[#allocation8_spill]] }
 0x43b   : > { %2316 = vrot.lane.b32.xlu1 %v2129_v12, %s11628_s0 }
 0x43d   : > { %v2141_v62 = vpop.f32.mrb[58].mxu1  ;;  %v2252_v38 = vpop.f32.mrb[64].mxu0 }
 0x43e   : > { %2320 = vrot.lane.b32.xlu0 %v2242_v31, %s11628_s0  ;;  %v2143_v2 = vpop.f32.mrb[59].mxu1  ;;  %v8062_v36 = vpop.f32.mrb[65].mxu0 }
 0x43f   : > { %2318 = vrot.lane.b32.xlu1 %v2131_v43, %s11628_s0 }
 0x442   : > { %2328 = vrot.lane.b32.xlu0 %v2135_v0, %s11629_s4 }
 0x443   : > { %2332 = vrot.lane.b32.xlu1 %v2247_v8, %s11629_s4 }
 0x446   : > { %2330 = vrot.lane.b32.xlu0 %v2137_v9, %s11629_s4 }
 0x447   : > { %2342 = vrot.lane.b32.xlu1 %v2143_v2, %s11626_s28 }
 0x44a   : > { %2344 = vrot.lane.b32.xlu0 %v2252_v38, %s11626_s28 }
 0x44b   : > { %2340 = vrot.lane.b32.xlu1 %v2141_v62, %s11626_s28 }
 0x490   : > { %v2261_v16 = vpop.permute.xlu0 %2260 }
 0x491   : > { %v2259_v41 = vpop.permute.xlu1 %2258 }
 0x492   : > { %v2262_v50 = vsel %vm918_vm3, %v2259_v41, %v2261_v16 }
 0x494   : > { %v2257_v19 = vpop.permute.xlu0 %2256 }
 0x495   : > { %v2270_v20 = vpop.permute.xlu1 %2269  ;;  %v2263_v59 = vsel %vm918_vm3, %v2257_v19, %v2259_v41  ;;  %v2264_v10 = vsel %vm918_vm3, %v2261_v16, %v2257_v19 }
 0x498   : > { %v2266_v21 = vpop.permute.xlu0 %2265 }
 0x499   : > { %v2268_v39 = vpop.permute.xlu1 %2267  ;;  %v2273_v52 = vsel %vm937_vm4, %v2270_v20, %v2266_v21 }
 0x49a   : > { %v2271_v60 = vsel %vm937_vm4, %v2268_v39, %v2270_v20  ;;  %v2272_v55 = vsel %vm937_vm4, %v2266_v21, %v2268_v39  ;;  %v2274_v26 = vadd.f32 %v2273_v52, %v2264_v10 }
 0x49b   : > { %v2276_v28 = vadd.f32 %v2271_v60, %v2262_v50  ;;  %v2275_v6 = vadd.f32 %v2272_v55, %v2263_v59 }
 0x49c   : > { %v2282_v40 = vpop.permute.xlu0 %2281 }
 0x49d   : > { %v2280_v17 = vpop.permute.xlu1 %2279 }
 0x49e   : > { %v2283_v56 = vsel %vm962_vm5, %v2280_v17, %v2282_v40 }
 0x49f   : > { %v2288_v61 = vadd.f32 %v2283_v56, %v2276_v28 }
 0x4a0   : > { %v2278_v22 = vpop.permute.xlu0 %2277 }
 0x4a1   : > { %v2294_v23 = vpop.permute.xlu1 %2293  ;;  %v2284_v32 = vsel %vm962_vm5, %v2278_v22, %v2280_v17  ;;  %v2285_v1 = vsel %vm962_vm5, %v2282_v40, %v2278_v22 }
 0x4a2   : > { %v2287_v31 = vadd.f32 %v2284_v32, %v2275_v6  ;;  %v2286_v0 = vadd.f32 %v2285_v1, %v2274_v26 }
 0x4a4   : > { %v2292_v25 = vpop.permute.xlu0 %2291 }
 0x4a5   : > { %v2290_v4 = vpop.permute.xlu1 %2289  ;;  %v2295_v29 = vsel %vm1207_vm6, %v2292_v25, %v2294_v23 }
 0x4a6   : > { %v2296_v12 = vsel %vm1207_vm6, %v2290_v4, %v2292_v25  ;;  %v2297_v43 = vsel %vm1207_vm6, %v2294_v23, %v2290_v4  ;;  %v2300_v8 = vadd.f32 %v2295_v29, %v2288_v61 }
 0x4a7   : > { %v2299_v34 = vadd.f32 %v2296_v12, %v2287_v31  ;;  %v2298_v62 = vadd.f32 %v2297_v43, %v2286_v0 }
 0x4a8   : > { %v2305_v53 = vpop.permute.xlu0 %2304  ;;  %v2303_v2 = vadd.f32 %v2300_v8, %v9503_v37 }
 0x4a9   : > { %v2309_v57 = vpop.permute.xlu1 %2308  ;;  %v2302_v19 = vadd.f32 %v2299_v34, %v9506_v44  ;;  %v2301_v21 = vadd.f32 %v2298_v62, %v9501_v35  ;;  %v2379_v34 = vld [vmem:[%s11630_s26 + $0x30] sm:$0xff]  ;;  %v2380_v62 = vld [vmem:[%s11630_s26 + $0x38] sm:$0xff] }
 0x4aa   : > { %v2312_v41 = vsel %vm1238_vm7, %v2309_v57, %v2305_v53 }
 0x4ab   : > { %v2315_v23 = vadd.f32 %v2312_v41, %v2303_v2 }
 0x4ac   : > { %v2307_v45 = vpop.permute.xlu0 %2306 }
 0x4ad   : > { %v2317_v33 = vpop.permute.xlu1 %2316  ;;  %v2310_v36 = vsel %vm1238_vm7, %v2307_v45, %v2309_v57  ;;  %v2311_v20 = vsel %vm1238_vm7, %v2305_v53, %v2307_v45 }
 0x4ae   : > { %v2314_v40 = vadd.f32 %v2310_v36, %v2302_v19  ;;  %v2313_v25 = vadd.f32 %v2311_v20, %v2301_v21 }
 0x4b0   : > { %v2321_v46 = vpop.permute.xlu0 %2320 }
 0x4b1   : > { %v2319_v9 = vpop.permute.xlu1 %2318  ;;  %v2324_v37 = vsel %vm1483_vm8, %v2321_v46, %v2317_v33 }
 0x4b2   : > { %v2322_v39 = vsel %vm1483_vm8, %v2319_v9, %v2321_v46  ;;  %v2323_v17 = vsel %vm1483_vm8, %v2317_v33, %v2319_v9  ;;  %v2327_v60 = vadd.f32 %v2324_v37, %v2315_v23  ;;  %v2373_v9 = vld [vmem:[%s11630_s26] sm:$0xff] }
 0x4b3   : > { %v2326_v53 = vadd.f32 %v2322_v39, %v2314_v40  ;;  %v2325_v55 = vadd.f32 %v2323_v17, %v2313_v25 }
 0x4b4   : > { %v2329_v38 = vpop.permute.xlu0 %2328 }
 0x4b5   : > { %v2333_v16 = vpop.permute.xlu1 %2332 }
 0x4b6   : > { %v2336_v35 = vsel %vm1508_vm9, %v2333_v16, %v2329_v38 }
 0x4b7   : > { %v2339_v56 = vadd.f32 %v2336_v35, %v2327_v60 }
 0x4b8   : > { %v2331_v22 = vpop.permute.xlu0 %2330 }
 0x4b9   : > { %v2334_v44 = vsel %vm1508_vm9, %v2331_v22, %v2333_v16  ;;  %v2343_v4 = vpop.permute.xlu1 %2342  ;;  %v2335_v57 = vsel %vm1508_vm9, %v2329_v38, %v2331_v22  ;;  %v2381_v38 = vld [vmem:[%s11630_s26 + $0x40] sm:$0xff] }
 0x4ba   : > { %v2338_v50 = vadd.f32 %v2334_v44, %v2326_v53  ;;  %v2337_v45 = vadd.f32 %v2335_v57, %v2325_v55 }
 0x4bc   : > { %v2345_v52 = vpop.permute.xlu0 %2344 }
 0x4bd   : > { %v2346_v59 = vsel %vm1533_vm10, %v2343_v4, %v2345_v52  ;;  %v2341_v28 = vpop.permute.xlu1 %2340 }
 0x4be   : > { %v2350_v32 = vadd.f32 %v2346_v59, %v2338_v50  ;;  %v2347_v33 = vsel %vm1533_vm10, %v2341_v28, %v2343_v4  ;;  %v2348_v10 = vsel %vm1533_vm10, %v2345_v52, %v2341_v28 }
 0x4bf   : > { %v2349_v6 = vadd.f32 %v2347_v33, %v2337_v45  ;;  %v2351_v1 = vadd.f32 %v2348_v10, %v2339_v56 }
 0x4c0   : > { %v2353_v29 = vmax.f32 %v2350_v32, 0.0 }
 0x4c1   : > { %v2352_v26 = vmax.f32 %v2349_v6, 0.0  ;;  %v2354_v61 = vmax.f32 %v2351_v1, 0.0 }
 0x4c2   : > { %v2356_v12 = vmul.f32 %v2353_v29, %v9122_v48 }
 0x4c3   : > { %v2355_v31 = vmul.f32 %v2352_v26, %v9200_v11  ;;  %v2357_v43 = vmul.f32 %v2354_v61, %v9202_v14 }
 0x4c4   : > { %v8496_v46 = vpack.c.bf16 %v2356_v12, %v9405_v30  ;;  %v2374_v30 = vld [vmem:[%s11630_s26 + $0x8] sm:$0xff] }
 0x4c5   : > { %v8498_v0 = vpack.c.bf16 %v2355_v31, %v9408_v42  ;;  %v9580_v8 = vpack.c.bf16 %v2357_v43, %v9411_v13  ;;  %v2377_v42 = vld [vmem:[%s11630_s26 + $0x20] sm:$0xff]  ;;  %v2378_v13 = vld [vmem:[%s11630_s26 + $0x28] sm:$0xff] }
 0x4c6   : > { %8497 = vmatprep.subr.bf16.mxu1 %v8496_v46 }
 0x4c7   : > { %8499 = vmatpush1.bf16.msra.mxu1 %v8498_v0  ;;  %8505 = vmatpush3.bf16.msra.mxu0 %v9580_v8 }
 0x4c8   : > { %8507 = vmatprep.subr.bf16.mxu1 %v9233_v27  ;;  %v2375_v27 = vld [vmem:[%s11630_s26 + $0x10] sm:$0xff] }
 0x4ca   : > { %7546 = vmatmul.mubr.msk.f32.vlgmr.msra.gmra.mrb[60].mxu1 %vm2382_vm13, %v2373_v9  ;;  %8072 = vmatmul.mubr.msk.f32.vlgmr.msra.gmra.mrb[66].mxu0 %vm2382_vm13, %v2373_v9 }
 0x4cb   : > { %8509 = vmatpush1.bf16.msra.mxu1 %v9240_v49  ;;  %8074 = vmatprep.mubr.msk.f32.mxu0 %vm8704_vm2, %v8694_v5  ;;  %v2376_v49 = vld [vmem:[%s11630_s26 + $0x18] sm:$0xff] }
 0x4cc   : > { %8511 = vmatprep.subr.bf16.mxu1 %v8496_v46  ;;  %2480 = vmatprep.mubr.f32.mxu1 %v8694_v5 }
 0x4ce   : > { %8075 = vmatmul.mubr.msk.f32.gmra.mrb[68].mxu0 %vm2382_vm13, %v2374_v30  ;;  %7547 = vmatmul.mubr.msk.f32.gmra.mrb[62].mxu1 %vm2382_vm13, %v2374_v30 }
 0x4cf   : > { %8513 = vmatpush1.bf16.msra.mxu1 %v8498_v0  ;;  %2486 = vmatprep.mubr.f32.mxu1 %v8694_v5 }
 0x4d0   : > { %8077 = vmatprep.mubr.msk.f32.mxu0 %vm8704_vm2, %v8694_v5 }
 0x4d2   : > { %7548 = vmatmul.mubr.msk.f32.gmra.mrb[64].mxu1 %vm2382_vm13, %v2375_v27  ;;  %8078 = vmatmul.mubr.msk.f32.gmra.mrb[70].mxu0 %vm2382_vm13, %v2375_v27 }
 0x4d3   : > { %2492 = vmatprep.mubr.f32.mxu1 %v8694_v5  ;;  %8080 = vmatprep.mubr.msk.f32.mxu0 %vm8704_vm2, %v8694_v5 }
 0x4d6   : > { %7549 = vmatmul.mubr.msk.f32.gmra.mrb[66].mxu1 %vm2382_vm13, %v2376_v49  ;;  %8081 = vmatmul.mubr.msk.f32.gmra.mrb[72].mxu0 %vm2382_vm13, %v2376_v49 }
 0x4d7   : > { %2498 = vmatprep.mubr.f32.mxu1 %v8694_v5  ;;  %8083 = vmatprep.mubr.msk.f32.mxu0 %vm8704_vm2, %v8694_v5 }
 0x4da   : > { %7550 = vmatmul.mubr.msk.f32.gmra.mrb[68].mxu1 %vm2382_vm13, %v2377_v42  ;;  %8084 = vmatmul.mubr.msk.f32.gmra.mrb[74].mxu0 %vm2382_vm13, %v2377_v42 }
 0x4db   : > { %2504 = vmatprep.mubr.f32.mxu1 %v8694_v5  ;;  %8086 = vmatprep.mubr.msk.f32.mxu0 %vm8704_vm2, %v8694_v5 }
 0x4de   : > { %7551 = vmatmul.mubr.msk.f32.gmra.mrb[70].mxu1 %vm2382_vm13, %v2378_v13  ;;  %8087 = vmatmul.mubr.msk.f32.gmra.mrb[76].mxu0 %vm2382_vm13, %v2378_v13 }
 0x4df   : > { %2510 = vmatprep.mubr.f32.mxu1 %v8694_v5  ;;  %8089 = vmatprep.mubr.msk.f32.mxu0 %vm8704_vm2, %v8694_v5 }
 0x4e2   : > { %7552 = vmatmul.mubr.msk.f32.gmra.mrb[72].mxu1 %vm2382_vm13, %v2379_v34  ;;  %8090 = vmatmul.mubr.msk.f32.gmra.mrb[78].mxu0 %vm2382_vm13, %v2379_v34 }
 0x4e3   : > { %2516 = vmatprep.mubr.f32.mxu1 %v8694_v5  ;;  %8092 = vmatprep.mubr.msk.f32.mxu0 %vm8704_vm2, %v8694_v5 }
 0x4e6   : > { %7553 = vmatmul.mubr.msk.f32.gmra.mrb[74].mxu1 %vm2382_vm13, %v2380_v62  ;;  %8093 = vmatmul.mubr.msk.f32.gmra.mrb[80].mxu0 %vm2382_vm13, %v2380_v62 }
 0x4e7   : > { %2522 = vmatprep.mubr.f32.mxu1 %v8694_v5  ;;  %8095 = vmatprep.mubr.msk.f32.mxu0 %vm8704_vm2, %v8694_v5 }
 0x4ea   : > { %7554 = vmatmul.mubr.msk.f32.gmra.mrb[76].mxu1 %vm2382_vm13, %v2381_v38  ;;  %8096 = vmatmul.mubr.msk.f32.gmra.mrb[82].mxu0 %vm2382_vm13, %v2381_v38 }
 0x4eb   : > { %2832 = vmatprep.mubr.f32.mxu1 %v8694_v5  ;;  %3062 = vmatprep.mubr.f32.mxu0 %v8694_v5 }
 0x59d   : > { %v2476_v2 = vpop.f32.mrb[60].mxu1  ;;  %v2595_v36 = vpop.f32.mrb[66].mxu0 }
 0x59e   : > { %2643 = vrot.lane.b32.xlu0 %v2595_v36, %s11611_s22  ;;  %v2478_v16 = vpop.f32.mrb[61].mxu1  ;;  %v8073_v41 = vpop.f32.mrb[67].mxu0 }
 0x59f   : > { %2641 = vrot.lane.b32.xlu1 %v2478_v16, %s11611_s22 }
 0x5a1   : > { %v2600_v19 = vpop.f32.mrb[68].mxu0  ;;  %v2482_v20 = vpop.f32.mrb[62].mxu1 }
 0x5a2   : > { %v8076_v21 = vpop.f32.mrb[69].mxu0  ;;  %2639 = vrot.lane.b32.xlu0 %v2476_v2, %s11611_s22  ;;  %v2484_v39 = vpop.f32.mrb[63].mxu1 }
 0x5a3   : > { %2652 = vrot.lane.b32.xlu1 %v2600_v19, %s11609_s23 }
 0x5a5   : > { %v2488_v40 = vpop.f32.mrb[64].mxu1  ;;  %v2605_v37 = vpop.f32.mrb[70].mxu0 }
 0x5a6   : > { %2648 = vrot.lane.b32.xlu0 %v2482_v20, %s11609_s23  ;;  %v2490_v17 = vpop.f32.mrb[65].mxu1  ;;  %v8079_v22 = vpop.f32.mrb[71].mxu0 }
 0x5a7   : > { %2650 = vrot.lane.b32.xlu1 %v2484_v39, %s11609_s23  ;;  %s11635_s23 = smov 19  }
 0x5a9   : > { %v2494_v23 = vpop.f32.mrb[66].mxu1  ;;  %v2610_v25 = vpop.f32.mrb[72].mxu0 }
 0x5aa   : > { %2664 = vrot.lane.b32.xlu0 %v2605_v37, %s11631_s1  ;;  %v2496_v44 = vpop.f32.mrb[67].mxu1  ;;  %v8082_v4 = vpop.f32.mrb[73].mxu0 }
 0x5ab   : > { %2662 = vrot.lane.b32.xlu1 %v2490_v17, %s11631_s1 }
 0x5ad   : > { %v9664_v53 = vpop.f32.mrb[68].mxu1  ;;  %v9666_v35 = vpop.f32.mrb[74].mxu0 }
 0x5ae   : > { %2660 = vrot.lane.b32.xlu0 %v2488_v40, %s11631_s1  ;;  %v9669_v57 = vpop.f32.mrb[69].mxu1  ;;  %v8085_v60 = vpop.f32.mrb[75].mxu0 }
 0x5af   : > { %2676 = vrot.lane.b32.xlu1 %v2610_v25, %s11632_s24 }
 0x5b1   : > { %v2506_v55 = vpop.f32.mrb[70].mxu1  ;;  %v2620_v50 = vpop.f32.mrb[76].mxu0 }
 0x5b2   : > { %2674 = vrot.lane.b32.xlu0 %v2496_v44, %s11632_s24  ;;  %v2508_v52 = vpop.f32.mrb[71].mxu1  ;;  %v8088_v56 = vpop.f32.mrb[77].mxu0 }
 0x5b3   : > { %2672 = vrot.lane.b32.xlu1 %v2494_v23, %s11632_s24 }
 0x5b5   : > { %v2512_v45 = vpop.f32.mrb[72].mxu1  ;;  %v2625_v59 = vpop.f32.mrb[78].mxu0 }
 0x5b6   : > { %2687 = vrot.lane.b32.xlu0 %v2506_v55, %s11633_s27  ;;  %v2514_v28 = vpop.f32.mrb[73].mxu1  ;;  %v8091_v32 = vpop.f32.mrb[79].mxu0 }
 0x5b7   : > { %2691 = vrot.lane.b32.xlu1 %v2620_v50, %s11633_s27 }
 0x5b9   : > { %v2518_v33 = vpop.f32.mrb[74].mxu1  ;;  %v2630_v10 = vpop.f32.mrb[80].mxu0 }
 0x5ba   : > { %2689 = vrot.lane.b32.xlu0 %v2508_v52, %s11633_s27  ;;  %v2520_v6 = vpop.f32.mrb[75].mxu1  ;;  %v8094_v1 = vpop.f32.mrb[81].mxu0 }
 0x5bb   : > { %2699 = vrot.lane.b32.xlu1 %v2512_v45, %s11628_s0 }
 0x5bd   : > { %v2524_v29 = vpop.f32.mrb[76].mxu1  ;;  %v2635_v26 = vpop.f32.mrb[82].mxu0 }
 0x5be   : > { %2703 = vrot.lane.b32.xlu0 %v2625_v59, %s11628_s0  ;;  %v2526_v61 = vpop.f32.mrb[77].mxu1  ;;  %v8097_v12 = vpop.f32.mrb[83].mxu0 }
 0x5bf   : > { %2701 = vrot.lane.b32.xlu1 %v2514_v28, %s11628_s0 }
 0x5c2   : > { %2711 = vrot.lane.b32.xlu0 %v2518_v33, %s11629_s4 }
 0x5c3   : > { %2715 = vrot.lane.b32.xlu1 %v2630_v10, %s11629_s4 }
 0x5c6   : > { %2713 = vrot.lane.b32.xlu0 %v2520_v6, %s11629_s4 }
 0x5c7   : > { %2725 = vrot.lane.b32.xlu1 %v2526_v61, %s11626_s28 }
 0x5ca   : > { %2727 = vrot.lane.b32.xlu0 %v2635_v26, %s11626_s28 }
 0x5cb   : > { %2723 = vrot.lane.b32.xlu1 %v2524_v29, %s11626_s28 }
 0x610   : > { %v2644_v31 = vpop.permute.xlu0 %2643 }
 0x611   : > { %v2642_v43 = vpop.permute.xlu1 %2641 }
 0x612   : > { %v2645_v22 = vsel %vm918_vm3, %v2642_v43, %v2644_v31 }
 0x614   : > { %v2640_v46 = vpop.permute.xlu0 %2639 }
 0x615   : > { %v2653_v0 = vpop.permute.xlu1 %2652  ;;  %v2646_v19 = vsel %vm918_vm3, %v2640_v46, %v2642_v43  ;;  %v2647_v40 = vsel %vm918_vm3, %v2644_v31, %v2640_v46 }
 0x618   : > { %v2649_v9 = vpop.permute.xlu0 %2648 }
 0x619   : > { %v2651_v30 = vpop.permute.xlu1 %2650  ;;  %v2656_v16 = vsel %vm937_vm4, %v2653_v0, %v2649_v9 }
 0x61a   : > { %v2655_v36 = vsel %vm937_vm4, %v2649_v9, %v2651_v30  ;;  %v2654_v20 = vsel %vm937_vm4, %v2651_v30, %v2653_v0  ;;  %v2657_v23 = vadd.f32 %v2656_v16, %v2647_v40 }
 0x61b   : > { %v2658_v37 = vadd.f32 %v2655_v36, %v2646_v19  ;;  %v2659_v4 = vadd.f32 %v2654_v20, %v2645_v22 }
 0x61c   : > { %v2665_v27 = vpop.permute.xlu0 %2664 }
 0x61d   : > { %v2663_v49 = vpop.permute.xlu1 %2662 }
 0x61e   : > { %v2666_v25 = vsel %vm962_vm5, %v2663_v49, %v2665_v27 }
 0x61f   : > { %v2671_v59 = vadd.f32 %v2666_v25, %v2659_v4 }
 0x620   : > { %v2661_v42 = vpop.permute.xlu0 %2660 }
 0x621   : > { %v2677_v13 = vpop.permute.xlu1 %2676  ;;  %v2667_v21 = vsel %vm962_vm5, %v2661_v42, %v2663_v49  ;;  %v2668_v17 = vsel %vm962_vm5, %v2665_v27, %v2661_v42 }
 0x622   : > { %v2670_v60 = vadd.f32 %v2667_v21, %v2658_v37  ;;  %v2669_v52 = vadd.f32 %v2668_v17, %v2657_v23 }
 0x624   : > { %v2675_v34 = vpop.permute.xlu0 %2674 }
 0x625   : > { %v2673_v62 = vpop.permute.xlu1 %2672  ;;  %v2678_v56 = vsel %vm1207_vm6, %v2675_v34, %v2677_v13 }
 0x626   : > { %v2679_v44 = vsel %vm1207_vm6, %v2673_v62, %v2675_v34  ;;  %v2680_v55 = vsel %vm1207_vm6, %v2677_v13, %v2673_v62  ;;  %v2683_v33 = vadd.f32 %v2678_v56, %v2671_v59 }
 0x627   : > { %v2682_v28 = vadd.f32 %v2679_v44, %v2670_v60  ;;  %v2681_v32 = vadd.f32 %v2680_v55, %v2669_v52  ;;  %v2759_v44 = vld [vmem:[%s11634_s6] sm:$0xff]  ;;  %v2760_v60 = vld [vmem:[%s11634_s6 + $0x8] sm:$0xff] }
 0x628   : > { %v2688_v38 = vpop.permute.xlu0 %2687  ;;  %v2686_v31 = vadd.f32 %v2683_v33, %v9666_v35 }
 0x629   : > { %v2692_v2 = vpop.permute.xlu1 %2691  ;;  %v2685_v29 = vadd.f32 %v2682_v28, %v9669_v57  ;;  %v2684_v61 = vadd.f32 %v2681_v32, %v9664_v53 }
 0x62a   : > { %v2695_v9 = vsel %vm1238_vm7, %v2692_v2, %v2688_v38 }
 0x62b   : > { %v2698_v13 = vadd.f32 %v2695_v9, %v2686_v31 }
 0x62c   : > { %v2690_v41 = vpop.permute.xlu0 %2689 }
 0x62d   : > { %v2700_v39 = vpop.permute.xlu1 %2699  ;;  %v2693_v6 = vsel %vm1238_vm7, %v2690_v41, %v2692_v2  ;;  %v2694_v26 = vsel %vm1238_vm7, %v2688_v38, %v2690_v41 }
 0x62e   : > { %v2697_v43 = vadd.f32 %v2693_v6, %v2685_v29  ;;  %v2696_v30 = vadd.f32 %v2694_v26, %v2684_v61 }
 0x630   : > { %v2704_v50 = vpop.permute.xlu0 %2703 }
 0x631   : > { %v2702_v45 = vpop.permute.xlu1 %2701  ;;  %v2707_v35 = vsel %vm1483_vm8, %v2704_v50, %v2700_v39 }
 0x632   : > { %v2705_v12 = vsel %vm1483_vm8, %v2702_v45, %v2704_v50  ;;  %v2706_v46 = vsel %vm1483_vm8, %v2700_v39, %v2702_v45  ;;  %v2710_v41 = vadd.f32 %v2707_v35, %v2698_v13  ;;  %v2968_v35 = vld [vmem:[%s11577_s7 + $0x30] sm:$0xff]  ;;  %v2970_v13 = vld [vmem:[%s11577_s7 + $0x40] sm:$0xff] }
 0x633   : > { %v2709_v49 = vadd.f32 %v2705_v12, %v2697_v43  ;;  %v2708_v42 = vadd.f32 %v2706_v46, %v2696_v30  ;;  %v2962_v46 = vld [vmem:[%s11577_s7] sm:$0xff]  ;;  %v2963_v30 = vld [vmem:[%s11577_s7 + $0x8] sm:$0xff] }
 0x634   : > { %v2712_v10 = vpop.permute.xlu0 %2711 }
 0x635   : > { %v2716_v1 = vpop.permute.xlu1 %2715 }
 0x636   : > { %v2719_v36 = vsel %vm1508_vm9, %v2716_v1, %v2712_v10 }
 0x637   : > { %v2722_v40 = vadd.f32 %v2719_v36, %v2710_v41 }
 0x638   : > { %v2714_v0 = vpop.permute.xlu0 %2713 }
 0x639   : > { %v2717_v57 = vsel %vm1508_vm9, %v2714_v0, %v2716_v1  ;;  %v2726_v27 = vpop.permute.xlu1 %2725  ;;  %v2718_v53 = vsel %vm1508_vm9, %v2712_v10, %v2714_v0 }
 0x63a   : > { %v2721_v34 = vadd.f32 %v2717_v57, %v2709_v49  ;;  %v2720_v38 = vadd.f32 %v2718_v53, %v2708_v42  ;;  %v2964_v57 = vld [vmem:[%s11577_s7 + $0x10] sm:$0xff]  ;;  %v2966_v49 = vld [vmem:[%s11577_s7 + $0x20] sm:$0xff]  ;;  %v2967_v53 = vld [vmem:[%s11577_s7 + $0x28] sm:$0xff] }
 0x63b   : > { %v2969_v42 = vld [vmem:[%s11577_s7 + $0x38] sm:$0xff] }
 0x63c   : > { %v2728_v62 = vpop.permute.xlu0 %2727 }
 0x63d   : > { %v2729_v2 = vsel %vm1533_vm10, %v2726_v27, %v2728_v62  ;;  %v2724_v16 = vpop.permute.xlu1 %2723 }
 0x63e   : > { %v2733_v19 = vadd.f32 %v2729_v2, %v2721_v34  ;;  %v2730_v20 = vsel %vm1533_vm10, %v2724_v16, %v2726_v27  ;;  %v2731_v21 = vsel %vm1533_vm10, %v2728_v62, %v2724_v16  ;;  %v2965_v27 = vld [vmem:[%s11577_s7 + $0x18] sm:$0xff] }
 0x63f   : > { %v2732_v39 = vadd.f32 %v2730_v20, %v2720_v38  ;;  %v2734_v22 = vadd.f32 %v2731_v21, %v2722_v40 }
 0x640   : > { %v2736_v37 = vmax.f32 %v2733_v19, 0.0 }
 0x641   : > { %v2735_v17 = vmax.f32 %v2732_v39, 0.0  ;;  %v2737_v4 = vmax.f32 %v2734_v22, 0.0 }
 0x642   : > { %v2739_v23 = vmul.f32 %v2736_v37, %v9122_v48 }
 0x643   : > { %v2738_v25 = vmul.f32 %v2735_v17, %v9200_v11  ;;  %v2740_v55 = vmul.f32 %v2737_v4, %v9202_v14 }
 0x644   : > { %2776 = vmatprep.subr.mxu1 %v2739_v23 }
 0x645   : > { %2777 = vmatpush1.msra.mxu1 %v2738_v25 }
 0x646   : > { %7564 = vmatmul.mubr.msk.f32.vlgmr.msra.gmra.mrb[78].mxu1 %vm2761_vm14, %v2759_v44  ;;  %8515 = vmatprep.subr.bf16.mxu1 %v9242_v54 }
 0x647   : > { %8517 = vmatpush3.bf16.msra.mxu1 %v9242_v54  ;;  %2838 = vmatprep.mubr.f32.mxu1 %v8694_v5 }
 0x648   : > { %8519 = vmatprep.subr.bf16.mxu1 %v9580_v8 }
 0x64a   : > { %7565 = vmatmul.mubr.msk.f32.gmra.mrb[80].mxu1 %vm2761_vm14, %v2760_v60 }
 0x64b   : > { %8521 = vmatpush3.bf16.msra.mxu1 %v9580_v8  ;;  %8108 = vmatprep.mubr.msk.f32.mxu1 %vm2761_vm14, %v2759_v44 }
 0x64c   : > { %8106 = vmatprep.subr.mxu1 %v2740_v55 }
 0x64f   : > { %8107 = vmatpush3.msra.mxu1 %v2740_v55 }
 0x650   : > { %8109 = vmatmul.mubr.msk.f32.vlgmr.msra.gmra.mrb[82].mxu1 %vm2761_vm14, %v2760_v60  ;;  %8526 = vmatprep.subr.bf16.mxu1 %v8703_v24 }
 0x651   : > { %8115 = vmatprep.mubr.msk.f32.mxu1 %vm8704_vm2, %v8694_v5 }
 0x719   : > { %v2834_v54 = vpop.f32.mrb[78].mxu1 }
 0x71a   : > { %v2836_v50 = vpop.f32.mrb[79].mxu1  ;;  %v9762_v45 = vsub.f32 %v9228_v15, %v2834_v54 }
 0x71b   : > { %v9759_v52 = vsub.f32 %v9208_v18, %v2836_v50 }
 0x71c   : > { %v2944_v6 = vmax.f32 %v9762_v45, 0.0 }
 0x71d   : > { %v2840_v56 = vpop.f32.mrb[80].mxu1  ;;  %v2945_v33 = vmax.f32 %v9759_v52, 0.0 }
 0x71e   : > { %v9765_v8 = vsub.f32 %v9222_v51, %v2840_v56  ;;  %v2842_v59 = vpop.f32.mrb[81].mxu1 }
 0x71f   : > { %v9768_v28 = vsub.f32 %v9205_v47, %v2842_v59 }
 0x720   : > { %v2947_v32 = vmax.f32 %v9765_v8, 0.0 }
 0x721   : > { %v2948_v10 = vmax.f32 %v9768_v28, 0.0 }
 0x722   : > { %v9776_v26 = vpack.c.bf16 %v2947_v32, %v2944_v6 }
 0x723   : > { %v9774_v1 = vpack.c.bf16 %v2948_v10, %v2945_v33  ;;  %v8110_v29 = vpop.f32.mrb[82].mxu1 }
 0x724   : > { %v9779_v61 = vsub.f32 %v9225_v58, %v8110_v29  ;;  %v2911_v12 = vpop.f32.mrb[83].mxu1 }
 0x725   : > { %v9782_v31 = vsub.f32 %v9231_v3, %v2911_v12  ;;  %8523 = vmatprep.subr.bf16.mxu0 %v9774_v1 }
 0x726   : > { %v2949_v43 = vmax.f32 %v9779_v61, 0.0  ;;  %8525 = vmatpush1.bf16.msra.mxu0 %v9776_v26 }
 0x727   : > { %v2946_v0 = vmax.f32 %v9782_v31, 0.0  ;;  %8530 = vmatprep.subr.bf16.mxu0 %v9774_v1 }
 0x729   : > { %v9792_v9 = vpack.c.bf16 %v2949_v43, %v2946_v0  ;;  %7568 = vmatmul.mubr.msk.f32.vlgmr.msra.gmra.mrb[84].mxu0 %vm1619_vm11, %v2962_v46 }
 0x72a   : > { %8532 = vmatpush1.bf16.msra.mxu0 %v9776_v26  ;;  %3068 = vmatprep.mubr.f32.mxu0 %v8694_v5 }
 0x72b   : > { %8528 = vmatpush3.bf16.msra.mxu1 %v9792_v9 }
 0x72c   : > { %8533 = vmatprep.subr.bf16.mxu1 %v8703_v24 }
 0x72d   : > { %7569 = vmatmul.mubr.msk.f32.gmra.mrb[86].mxu0 %vm1619_vm11, %v2963_v30 }
 0x72e   : > { %8116 = vmatmul.mubr.msk.f32.vlgmr.msra.gmra.mrb[84].mxu1 %vm1619_vm11, %v2962_v46  ;;  %3074 = vmatprep.mubr.f32.mxu0 %v8694_v5 }
 0x72f   : > { %8535 = vmatpush3.bf16.msra.mxu1 %v9792_v9  ;;  %8118 = vmatprep.mubr.msk.f32.mxu1 %vm8704_vm2, %v8694_v5 }
 0x730   : > { %8146 = vmatprep.subr.mxu1 %v8694_v5 }
 0x731   : > { %7570 = vmatmul.mubr.msk.f32.gmra.mrb[88].mxu0 %vm1619_vm11, %v2964_v57 }
 0x732   : > { %8119 = vmatmul.mubr.msk.f32.gmra.mrb[86].mxu1 %vm1619_vm11, %v2963_v30  ;;  %3080 = vmatprep.mubr.f32.mxu0 %v8694_v5 }
 0x733   : > { %8121 = vmatprep.mubr.msk.f32.mxu1 %vm8704_vm2, %v8694_v5 }
 0x735   : > { %7571 = vmatmul.mubr.msk.f32.gmra.mrb[90].mxu0 %vm1619_vm11, %v2965_v27 }
 0x736   : > { %3086 = vmatprep.mubr.f32.mxu0 %v8694_v5  ;;  %8122 = vmatmul.mubr.msk.f32.gmra.mrb[88].mxu1 %vm1619_vm11, %v2964_v57 }
 0x737   : > { %8124 = vmatprep.mubr.msk.f32.mxu1 %vm8704_vm2, %v8694_v5 }
 0x739   : > { %7572 = vmatmul.mubr.msk.f32.gmra.mrb[92].mxu0 %vm1619_vm11, %v2966_v49 }
 0x73a   : > { %3092 = vmatprep.mubr.f32.mxu0 %v8694_v5  ;;  %8125 = vmatmul.mubr.msk.f32.gmra.mrb[90].mxu1 %vm1619_vm11, %v2965_v27 }
 0x73b   : > { %8127 = vmatprep.mubr.msk.f32.mxu1 %vm8704_vm2, %v8694_v5 }
 0x73d   : > { %7573 = vmatmul.mubr.msk.f32.gmra.mrb[94].mxu0 %vm1619_vm11, %v2967_v53 }
 0x73e   : > { %3098 = vmatprep.mubr.f32.mxu0 %v8694_v5  ;;  %8128 = vmatmul.mubr.msk.f32.gmra.mrb[92].mxu1 %vm1619_vm11, %v2966_v49 }
 0x73f   : > { %8130 = vmatprep.mubr.msk.f32.mxu1 %vm8704_vm2, %v8694_v5 }
 0x741   : > { %7574 = vmatmul.mubr.msk.f32.gmra.mrb[96].mxu0 %vm1619_vm11, %v2968_v35 }
 0x742   : > { %8131 = vmatmul.mubr.msk.f32.gmra.mrb[94].mxu1 %vm1619_vm11, %v2967_v53  ;;  %3104 = vmatprep.mubr.f32.mxu0 %v8694_v5 }
 0x743   : > { %8133 = vmatprep.mubr.msk.f32.mxu1 %vm8704_vm2, %v8694_v5 }
 0x745   : > { %7575 = vmatmul.mubr.msk.f32.gmra.mrb[98].mxu0 %vm1619_vm11, %v2969_v42 }
 0x746   : > { %8134 = vmatmul.mubr.msk.f32.gmra.mrb[96].mxu1 %vm1619_vm11, %v2968_v35  ;;  %3110 = vmatprep.mubr.f32.mxu0 %v8694_v5 }
 0x747   : > { %8136 = vmatprep.mubr.msk.f32.mxu1 %vm8704_vm2, %v8694_v5 }
 0x749   : > { %7576 = vmatmul.mubr.msk.f32.gmra.mrb[100].mxu0 %vm1619_vm11, %v2970_v13 }
 0x74a   : > { %8137 = vmatmul.mubr.msk.f32.gmra.mrb[98].mxu1 %vm1619_vm11, %v2969_v42  ;;  %3441 = vmatprep.mubr.f32.mxu0 %v8694_v5 }
 0x74b   : > { %8139 = vmatprep.mubr.msk.f32.mxu1 %vm8704_vm2, %v8694_v5 }
 0x74e   : > { %8140 = vmatmul.mubr.msk.f32.gmra.mrb[100].mxu1 %vm1619_vm11, %v2970_v13 }
 0x74f   : > { %8148 = vmatprep.mubr.msk.f32.mxu1 %vm8704_vm2, %v8694_v5 }
 0x7fc   : > { %v3064_v34 = vpop.f32.mrb[84].mxu0 }
 0x7fd   : > { %3227 = vrot.lane.b32.xlu0 %v3064_v34, %s11635_s23  ;;  %v3066_v62 = vpop.f32.mrb[85].mxu0 }
 0x7fe   : > { %3229 = vrot.lane.b32.xlu1 %v3066_v62, %s11635_s23 }
 0x800   : > { %v3070_v36 = vpop.f32.mrb[86].mxu0 }
 0x801   : > { %3236 = vrot.lane.b32.xlu0 %v3070_v36, %s11636_s29  ;;  %v3072_v38 = vpop.f32.mrb[87].mxu0  ;;  %v3183_v2 = vpop.f32.mrb[84].mxu1 }
 0x802   : > { %3238 = vrot.lane.b32.xlu1 %v3072_v38, %s11636_s29  ;;  %v8117_v16 = vpop.f32.mrb[85].mxu1 }
 0x804   : > { %v3076_v41 = vpop.f32.mrb[88].mxu0 }
 0x805   : > { %3231 = vrot.lane.b32.xlu0 %v3183_v2, %s11635_s23  ;;  %v3188_v19 = vpop.f32.mrb[86].mxu1  ;;  %v3078_v20 = vpop.f32.mrb[89].mxu0 }
 0x806   : > { %3240 = vrot.lane.b32.xlu1 %v3188_v19, %s11636_s29  ;;  %v8120_v21 = vpop.f32.mrb[87].mxu1 }
 0x808   : > { %v3082_v39 = vpop.f32.mrb[90].mxu0 }
 0x809   : > { %3248 = vrot.lane.b32.xlu0 %v3076_v41, %s11631_s1  ;;  %v3193_v40 = vpop.f32.mrb[88].mxu1  ;;  %v3084_v37 = vpop.f32.mrb[91].mxu0 }
 0x80a   : > { %3250 = vrot.lane.b32.xlu1 %v3078_v20, %s11631_s1  ;;  %v8123_v17 = vpop.f32.mrb[89].mxu1 }
 0x80c   : > { %v9876_v22 = vpop.f32.mrb[92].mxu0 }
 0x80d   : > { %3252 = vrot.lane.b32.xlu0 %v3193_v40, %s11631_s1  ;;  %v3198_v23 = vpop.f32.mrb[90].mxu1  ;;  %v9879_v25 = vpop.f32.mrb[93].mxu0 }
 0x80e   : > { %3260 = vrot.lane.b32.xlu1 %v3082_v39, %s11632_s24  ;;  %v8126_v44 = vpop.f32.mrb[91].mxu1 }
 0x810   : > { %v3094_v4 = vpop.f32.mrb[94].mxu0 }
 0x811   : > { %3262 = vrot.lane.b32.xlu0 %v3084_v37, %s11632_s24  ;;  %v3096_v60 = vpop.f32.mrb[95].mxu0  ;;  %v9883_v55 = vpop.f32.mrb[92].mxu1 }
 0x812   : > { %3264 = vrot.lane.b32.xlu1 %v3198_v23, %s11632_s24  ;;  %v8129_v54 = vpop.f32.mrb[93].mxu1 }
 0x814   : > { %v3100_v50 = vpop.f32.mrb[96].mxu0 }
 0x815   : > { %3275 = vrot.lane.b32.xlu0 %v3094_v4, %s11633_s27  ;;  %v3208_v56 = vpop.f32.mrb[94].mxu1  ;;  %v3102_v59 = vpop.f32.mrb[97].mxu0 }
 0x816   : > { %3287 = vrot.lane.b32.xlu1 %v3100_v50, %s11628_s0  ;;  %v8132_v32 = vpop.f32.mrb[95].mxu1 }
 0x818   : > { %v3106_v33 = vpop.f32.mrb[98].mxu0 }
 0x819   : > { %3277 = vrot.lane.b32.xlu0 %v3096_v60, %s11633_s27  ;;  %v3213_v10 = vpop.f32.mrb[96].mxu1  ;;  %v3108_v6 = vpop.f32.mrb[99].mxu0 }
 0x81a   : > { %3279 = vrot.lane.b32.xlu1 %v3208_v56, %s11633_s27  ;;  %v8135_v29 = vpop.f32.mrb[97].mxu1 }
 0x81c   : > { %v3112_v12 = vpop.f32.mrb[100].mxu0 }
 0x81d   : > { %3299 = vrot.lane.b32.xlu0 %v3106_v33, %s11629_s4  ;;  %v3218_v43 = vpop.f32.mrb[98].mxu1  ;;  %v3114_v46 = vpop.f32.mrb[101].mxu0 }
 0x81e   : > { %3289 = vrot.lane.b32.xlu1 %v3102_v59, %s11628_s0  ;;  %v8138_v0 = vpop.f32.mrb[99].mxu1 }
 0x821   : > { %3291 = vrot.lane.b32.xlu0 %v3213_v10, %s11628_s0  ;;  %v3223_v30 = vpop.f32.mrb[100].mxu1 }
 0x822   : > { %3303 = vrot.lane.b32.xlu1 %v3218_v43, %s11629_s4  ;;  %v8141_v57 = vpop.f32.mrb[101].mxu1 }
 0x825   : > { %3301 = vrot.lane.b32.xlu0 %v3108_v6, %s11629_s4 }
 0x826   : > { %3313 = vrot.lane.b32.xlu1 %v3114_v46, %s11626_s28 }
 0x829   : > { %3315 = vrot.lane.b32.xlu0 %v3223_v30, %s11626_s28 }
 0x82a   : > { %3311 = vrot.lane.b32.xlu1 %v3112_v12, %s11626_s28 }
 0x86f   : > { %v3228_v27 = vpop.permute.xlu0 %3227 }
 0x870   : > { %v3230_v49 = vpop.permute.xlu1 %3229 }
 0x871   : > { %v3234_v44 = vsel %vm918_vm3, %v3228_v27, %v3230_v49 }
 0x873   : > { %v3237_v53 = vpop.permute.xlu0 %3236 }
 0x874   : > { %v3239_v35 = vpop.permute.xlu1 %3238 }
 0x875   : > { %v3243_v39 = vsel %vm937_vm4, %v3237_v53, %v3239_v35 }
 0x876   : > { %v3246_v50 = vadd.f32 %v3243_v39, %v3234_v44 }
 0x877   : > { %v3232_v42 = vpop.permute.xlu0 %3231 }
 0x878   : > { %v3241_v13 = vpop.permute.xlu1 %3240  ;;  %v3233_v20 = vsel %vm918_vm3, %v3230_v49, %v3232_v42  ;;  %v3235_v40 = vsel %vm918_vm3, %v3232_v42, %v3228_v27 }
 0x879   : > { %v3242_v21 = vsel %vm937_vm4, %v3239_v35, %v3241_v13  ;;  %v3244_v37 = vsel %vm937_vm4, %v3241_v13, %v3237_v53 }
 0x87a   : > { %v3247_v4 = vadd.f32 %v3242_v21, %v3233_v20  ;;  %v3245_v32 = vadd.f32 %v3244_v37, %v3235_v40 }
 0x87b   : > { %v3249_v34 = vpop.permute.xlu0 %3248 }
 0x87c   : > { %v3251_v62 = vpop.permute.xlu1 %3250 }
 0x87d   : > { %v3255_v60 = vsel %vm962_vm5, %v3249_v34, %v3251_v62 }
 0x87e   : > { %v3258_v6 = vadd.f32 %v3255_v60, %v3246_v50 }
 0x87f   : > { %v3253_v36 = vpop.permute.xlu0 %3252 }
 0x880   : > { %v3261_v38 = vpop.permute.xlu1 %3260  ;;  %v3254_v17 = vsel %vm962_vm5, %v3251_v62, %v3253_v36  ;;  %v3256_v56 = vsel %vm962_vm5, %v3253_v36, %v3249_v34 }
 0x881   : > { %v3259_v33 = vadd.f32 %v3254_v17, %v3247_v4  ;;  %v3257_v43 = vadd.f32 %v3256_v56, %v3245_v32 }
 0x883   : > { %v3263_v2 = vpop.permute.xlu0 %3262 }
 0x884   : > { %v3265_v16 = vpop.permute.xlu1 %3264  ;;  %v3267_v10 = vsel %vm1207_vm6, %v3261_v38, %v3263_v2 }
 0x885   : > { %v3266_v59 = vsel %vm1207_vm6, %v3263_v2, %v3265_v16  ;;  %v3268_v29 = vsel %vm1207_vm6, %v3265_v16, %v3261_v38  ;;  %v3270_v30 = vadd.f32 %v3267_v10, %v3258_v6 }
 0x886   : > { %v3271_v46 = vadd.f32 %v3266_v59, %v3259_v33  ;;  %v3269_v57 = vadd.f32 %v3268_v29, %v3257_v43 }
 0x887   : > { %v3276_v41 = vpop.permute.xlu0 %3275  ;;  %v3273_v34 = vadd.f32 %v3270_v30, %v9879_v25  ;;  %v3342_v30 = vld [vmem:[%s11578_s8 + $0x8] sm:$0xff] }
 0x888   : > { %v3288_v19 = vpop.permute.xlu1 %3287  ;;  %v3274_v53 = vadd.f32 %v3271_v46, %v9883_v55  ;;  %v3272_v36 = vadd.f32 %v3269_v57, %v9876_v22  ;;  %v3343_v57 = vld [vmem:[%s11578_s8 + $0x10] sm:$0xff] }
 0x88b   : > { %v3278_v23 = vpop.permute.xlu0 %3277 }
 0x88c   : > { %v3280_v54 = vpop.permute.xlu1 %3279  ;;  %v3282_v13 = vsel %vm1238_vm7, %v3276_v41, %v3278_v23 }
 0x88d   : > { %v3283_v27 = vsel %vm1238_vm7, %v3280_v54, %v3276_v41  ;;  %v3281_v35 = vsel %vm1238_vm7, %v3278_v23, %v3280_v54  ;;  %v3284_v21 = vadd.f32 %v3282_v13, %v3272_v36  ;;  %v3349_v13 = vld [vmem:[%s11578_s8 + $0x40] sm:$0xff] }
 0x88e   : > { %v3286_v38 = vadd.f32 %v3283_v27, %v3274_v53  ;;  %v3285_v16 = vadd.f32 %v3281_v35, %v3273_v34  ;;  %v3344_v27 = vld [vmem:[%s11578_s8 + $0x18] sm:$0xff]  ;;  %v3346_v53 = vld [vmem:[%s11578_s8 + $0x28] sm:$0xff]  ;;  %v3347_v35 = vld [vmem:[%s11578_s8 + $0x30] sm:$0xff] }
 0x88f   : > { %v3300_v12 = vpop.permute.xlu0 %3299 }
 0x890   : > { %v3290_v0 = vpop.permute.xlu1 %3289 }
 0x891   : > { %v3294_v55 = vsel %vm1483_vm8, %v3288_v19, %v3290_v0 }
 0x892   : > { %v3296_v17 = vadd.f32 %v3294_v55, %v3284_v21 }
 0x893   : > { %v3292_v49 = vpop.permute.xlu0 %3291 }
 0x894   : > { %v3304_v42 = vpop.permute.xlu1 %3303  ;;  %v3295_v62 = vsel %vm1483_vm8, %v3292_v49, %v3288_v19  ;;  %v3293_v2 = vsel %vm1483_vm8, %v3290_v0, %v3292_v49  ;;  %v3341_v0 = vld [vmem:[%s11578_s8] sm:$0xff] }
 0x895   : > { %v3298_v39 = vadd.f32 %v3295_v62, %v3286_v38  ;;  %v3297_v40 = vadd.f32 %v3293_v2, %v3285_v16  ;;  %v3307_v37 = vsel %vm1508_vm9, %v3304_v42, %v3300_v12  ;;  %v3345_v49 = vld [vmem:[%s11578_s8 + $0x20] sm:$0xff] }
 0x897   : > { %v3302_v20 = vpop.permute.xlu0 %3301  ;;  %v3310_v4 = vadd.f32 %v3307_v37, %v3298_v39 }
 0x898   : > { %v3305_v41 = vsel %vm1508_vm9, %v3302_v20, %v3304_v42  ;;  %v3314_v25 = vpop.permute.xlu1 %3313  ;;  %v3306_v22 = vsel %vm1508_vm9, %v3300_v12, %v3302_v20  ;;  %v3348_v42 = vld [vmem:[%s11578_s8 + $0x38] sm:$0xff] }
 0x899   : > { %v3309_v23 = vadd.f32 %v3305_v41, %v3297_v40  ;;  %v3308_v60 = vadd.f32 %v3306_v22, %v3296_v17 }
 0x89b   : > { %v3316_v44 = vpop.permute.xlu0 %3315 }
 0x89c   : > { %v3317_v19 = vsel %vm1533_vm10, %v3314_v25, %v3316_v44  ;;  %v3312_v54 = vpop.permute.xlu1 %3311 }
 0x89d   : > { %v3321_v50 = vadd.f32 %v3317_v19, %v3309_v23  ;;  %v3318_v56 = vsel %vm1533_vm10, %v3312_v54, %v3314_v25  ;;  %v3319_v59 = vsel %vm1533_vm10, %v3316_v44, %v3312_v54 }
 0x89e   : > { %v3320_v32 = vadd.f32 %v3318_v56, %v3308_v60  ;;  %v3322_v33 = vadd.f32 %v3319_v59, %v3310_v4 }
 0x89f   : > { %v3324_v10 = vmax.f32 %v3321_v50, 0.0 }
 0x8a0   : > { %v3323_v6 = vmax.f32 %v3320_v32, 0.0  ;;  %v3325_v29 = vmax.f32 %v3322_v33, 0.0 }
 0x8a1   : > { %v9950_v12 = vmul.f32 %v3324_v10, %v9122_v48 }
 0x8a2   : > { %v9953_v43 = vmul.f32 %v3323_v6, %v9200_v11  ;;  %v9956_v46 = vmul.f32 %v3325_v29, %v9202_v14 }
 0x8a3   : > { %3381 = vmatprep.subr.mxu0 %v9950_v12 }
 0x8a4   : > { %3382 = vmatpush1.msra.mxu0 %v9953_v43  ;;  %8147 = vmatpush3.msra.mxu1 %v9956_v46 }
 0x8a5   : > { %7586 = vmatmul.mubr.msk.f32.vlgmr.msra.gmra.mrb[102].mxu0 %vm1999_vm12, %v3341_v0  ;;  %8149 = vmatmul.mubr.msk.f32.vlgmr.msra.gmra.mrb[102].mxu1 %vm1999_vm12, %v3341_v0 }
 0x8a6   : > { %8537 = vmatprep.subr.bf16.mxu0 %v9774_v1  ;;  %8544 = vmatprep.subr.bf16.mxu1 %v8703_v24 }
 0x8a7   : > { %8539 = vmatpush1.bf16.msra.mxu0 %v9776_v26  ;;  %8546 = vmatpush3.bf16.msra.mxu1 %v9792_v9 }
 0x8a8   : > { %8151 = vmatprep.mubr.msk.f32.mxu1 %vm8704_vm2, %v8694_v5  ;;  %3447 = vmatprep.mubr.f32.mxu0 %v8694_v5 }
 0x8a9   : > { %8152 = vmatmul.mubr.msk.f32.gmra.mrb[104].mxu1 %vm1999_vm12, %v3342_v30  ;;  %7587 = vmatmul.mubr.msk.f32.gmra.mrb[104].mxu0 %vm1999_vm12, %v3342_v30 }
 0x8aa   : > { %3453 = vmatprep.mubr.f32.mxu0 %v8694_v5  ;;  %8154 = vmatprep.mubr.msk.f32.mxu1 %vm8704_vm2, %v8694_v5 }
 0x8ab   : > { %8547 = vmatprep.subr.bf16.mxu1 %v8703_v24 }
 0x8ad   : > { %7588 = vmatmul.mubr.msk.f32.gmra.mrb[106].mxu0 %vm1999_vm12, %v3343_v57  ;;  %8155 = vmatmul.mubr.msk.f32.gmra.mrb[106].mxu1 %vm1999_vm12, %v3343_v57 }
 0x8ae   : > { %3459 = vmatprep.mubr.f32.mxu0 %v8694_v5  ;;  %8157 = vmatprep.mubr.msk.f32.mxu1 %vm8704_vm2, %v8694_v5 }
 0x8b1   : > { %7589 = vmatmul.mubr.msk.f32.gmra.mrb[108].mxu0 %vm1999_vm12, %v3344_v27  ;;  %8158 = vmatmul.mubr.msk.f32.gmra.mrb[108].mxu1 %vm1999_vm12, %v3344_v27 }
 0x8b2   : > { %3465 = vmatprep.mubr.f32.mxu0 %v8694_v5  ;;  %8160 = vmatprep.mubr.msk.f32.mxu1 %vm8704_vm2, %v8694_v5 }
 0x8b5   : > { %7590 = vmatmul.mubr.msk.f32.gmra.mrb[110].mxu0 %vm1999_vm12, %v3345_v49  ;;  %8161 = vmatmul.mubr.msk.f32.gmra.mrb[110].mxu1 %vm1999_vm12, %v3345_v49 }
 0x8b6   : > { %3471 = vmatprep.mubr.f32.mxu0 %v8694_v5  ;;  %8163 = vmatprep.mubr.msk.f32.mxu1 %vm8704_vm2, %v8694_v5 }
 0x8b9   : > { %7591 = vmatmul.mubr.msk.f32.gmra.mrb[112].mxu0 %vm1999_vm12, %v3346_v53  ;;  %8164 = vmatmul.mubr.msk.f32.gmra.mrb[112].mxu1 %vm1999_vm12, %v3346_v53 }
 0x8ba   : > { %3477 = vmatprep.mubr.f32.mxu0 %v8694_v5  ;;  %8166 = vmatprep.mubr.msk.f32.mxu1 %vm8704_vm2, %v8694_v5 }
 0x8bd   : > { %7592 = vmatmul.mubr.msk.f32.gmra.mrb[114].mxu0 %vm1999_vm12, %v3347_v35  ;;  %8167 = vmatmul.mubr.msk.f32.gmra.mrb[114].mxu1 %vm1999_vm12, %v3347_v35 }
 0x8be   : > { %3483 = vmatprep.mubr.f32.mxu0 %v8694_v5  ;;  %8169 = vmatprep.mubr.msk.f32.mxu1 %vm8704_vm2, %v8694_v5 }
 0x8c1   : > { %7593 = vmatmul.mubr.msk.f32.gmra.mrb[116].mxu0 %vm1999_vm12, %v3348_v42  ;;  %8170 = vmatmul.mubr.msk.f32.gmra.mrb[116].mxu1 %vm1999_vm12, %v3348_v42 }
 0x8c2   : > { %3489 = vmatprep.mubr.f32.mxu0 %v8694_v5  ;;  %8172 = vmatprep.mubr.msk.f32.mxu1 %vm8704_vm2, %v8694_v5 }
 0x8c5   : > { %7594 = vmatmul.mubr.msk.f32.gmra.mrb[118].mxu0 %vm1999_vm12, %v3349_v13  ;;  %8173 = vmatmul.mubr.msk.f32.gmra.mrb[118].mxu1 %vm1999_vm12, %v3349_v13 }
 0x8c6   : > { %3823 = vmatprep.mubr.f32.mxu0 %v8694_v5  ;;  %8183 = vmatprep.mubr.msk.f32.mxu1 %vm8704_vm2, %v8694_v5 }
 0x978   : > { %v3443_v34 = vpop.f32.mrb[102].mxu0  ;;  %v3562_v62 = vpop.f32.mrb[102].mxu1 }
 0x979   : > { %v3445_v36 = vpop.f32.mrb[103].mxu0  ;;  %3610 = vrot.lane.b32.xlu0 %v3562_v62, %s11635_s23  ;;  %v8150_v38 = vpop.f32.mrb[103].mxu1 }
 0x97a   : > { %3608 = vrot.lane.b32.xlu1 %v3445_v36, %s11635_s23 }
 0x97c   : > { %v3567_v2 = vpop.f32.mrb[104].mxu1  ;;  %v3449_v16 = vpop.f32.mrb[104].mxu0 }
 0x97d   : > { %3606 = vrot.lane.b32.xlu0 %v3443_v34, %s11635_s23  ;;  %v3451_v55 = vpop.f32.mrb[105].mxu0  ;;  %v8153_v20 = vpop.f32.mrb[105].mxu1 }
 0x97e   : > { %3619 = vrot.lane.b32.xlu1 %v3567_v2, %s11636_s29 }
 0x980   : > { %v3455_v21 = vpop.f32.mrb[106].mxu0  ;;  %v3572_v39 = vpop.f32.mrb[106].mxu1 }
 0x981   : > { %3615 = vrot.lane.b32.xlu0 %v3449_v16, %s11636_s29  ;;  %v3457_v41 = vpop.f32.mrb[107].mxu0  ;;  %v8156_v25 = vpop.f32.mrb[107].mxu1 }
 0x982   : > { %3617 = vrot.lane.b32.xlu1 %v3451_v55, %s11636_s29 }
 0x984   : > { %v3577_v40 = vpop.f32.mrb[108].mxu1  ;;  %v3461_v37 = vpop.f32.mrb[108].mxu0 }
 0x985   : > { %3631 = vrot.lane.b32.xlu0 %v3572_v39, %s11631_s1  ;;  %v3463_v22 = vpop.f32.mrb[109].mxu0  ;;  %v8159_v17 = vpop.f32.mrb[109].mxu1 }
 0x986   : > { %3629 = vrot.lane.b32.xlu1 %v3457_v41, %s11631_s1 }
 0x988   : > { %v10046_v23 = vpop.f32.mrb[110].mxu0  ;;  %v10048_v44 = vpop.f32.mrb[110].mxu1 }
 0x989   : > { %3627 = vrot.lane.b32.xlu0 %v3455_v21, %s11631_s1  ;;  %v10051_v4 = vpop.f32.mrb[111].mxu0  ;;  %v8162_v60 = vpop.f32.mrb[111].mxu1 }
 0x98a   : > { %3643 = vrot.lane.b32.xlu1 %v3577_v40, %s11632_s24 }
 0x98c   : > { %v3473_v19 = vpop.f32.mrb[112].mxu0  ;;  %v3587_v54 = vpop.f32.mrb[112].mxu1 }
 0x98d   : > { %3641 = vrot.lane.b32.xlu0 %v3463_v22, %s11632_s24  ;;  %v3475_v50 = vpop.f32.mrb[113].mxu0  ;;  %v8165_v56 = vpop.f32.mrb[113].mxu1 }
 0x98e   : > { %3639 = vrot.lane.b32.xlu1 %v3461_v37, %s11632_s24 }
 0x990   : > { %v3479_v59 = vpop.f32.mrb[114].mxu0  ;;  %v3592_v32 = vpop.f32.mrb[114].mxu1 }
 0x991   : > { %3654 = vrot.lane.b32.xlu0 %v3473_v19, %s11633_s27  ;;  %v3481_v33 = vpop.f32.mrb[115].mxu0  ;;  %v8168_v10 = vpop.f32.mrb[115].mxu1 }
 0x992   : > { %3658 = vrot.lane.b32.xlu1 %v3587_v54, %s11633_s27 }
 0x994   : > { %v3485_v6 = vpop.f32.mrb[116].mxu0  ;;  %v3597_v29 = vpop.f32.mrb[116].mxu1 }
 0x995   : > { %3656 = vrot.lane.b32.xlu0 %v3475_v50, %s11633_s27  ;;  %v3487_v0 = vpop.f32.mrb[117].mxu0  ;;  %v8171_v30 = vpop.f32.mrb[117].mxu1 }
 0x996   : > { %3666 = vrot.lane.b32.xlu1 %v3479_v59, %s11628_s0 }
 0x998   : > { %v3491_v57 = vpop.f32.mrb[118].mxu0  ;;  %v3602_v27 = vpop.f32.mrb[118].mxu1 }
 0x999   : > { %3670 = vrot.lane.b32.xlu0 %v3592_v32, %s11628_s0  ;;  %v3493_v49 = vpop.f32.mrb[119].mxu0  ;;  %v8174_v53 = vpop.f32.mrb[119].mxu1 }
 0x99a   : > { %3668 = vrot.lane.b32.xlu1 %v3481_v33, %s11628_s0 }
 0x99d   : > { %3678 = vrot.lane.b32.xlu0 %v3485_v6, %s11629_s4 }
 0x99e   : > { %3682 = vrot.lane.b32.xlu1 %v3597_v29, %s11629_s4 }
 0x9a1   : > { %3680 = vrot.lane.b32.xlu0 %v3487_v0, %s11629_s4 }
 0x9a2   : > { %3692 = vrot.lane.b32.xlu1 %v3493_v49, %s11626_s28 }
 0x9a5   : > { %3694 = vrot.lane.b32.xlu0 %v3602_v27, %s11626_s28 }
 0x9a6   : > { %3690 = vrot.lane.b32.xlu1 %v3491_v57, %s11626_s28 }
 0x9eb   : > { %v3611_v35 = vpop.permute.xlu0 %3610 }
 0x9ec   : > { %v3609_v42 = vpop.permute.xlu1 %3608 }
 0x9ed   : > { %v3612_v37 = vsel %vm918_vm3, %v3609_v42, %v3611_v35 }
 0x9ef   : > { %v3607_v13 = vpop.permute.xlu0 %3606 }
 0x9f0   : > { %v3620_v34 = vpop.permute.xlu1 %3619  ;;  %v3613_v19 = vsel %vm918_vm3, %v3607_v13, %v3609_v42  ;;  %v3614_v59 = vsel %vm918_vm3, %v3611_v35, %v3607_v13 }
 0x9f3   : > { %v3616_v62 = vpop.permute.xlu0 %3615 }
 0x9f4   : > { %v3618_v36 = vpop.permute.xlu1 %3617  ;;  %v3623_v22 = vsel %vm937_vm4, %v3620_v34, %v3616_v62 }
 0x9f5   : > { %v3621_v25 = vsel %vm937_vm4, %v3618_v36, %v3620_v34  ;;  %v3622_v40 = vsel %vm937_vm4, %v3616_v62, %v3618_v36  ;;  %v3624_v6 = vadd.f32 %v3623_v22, %v3614_v59 }
 0x9f6   : > { %v3626_v54 = vadd.f32 %v3621_v25, %v3612_v37  ;;  %v3625_v32 = vadd.f32 %v3622_v40, %v3613_v19 }
 0x9f7   : > { %v3632_v38 = vpop.permute.xlu0 %3631 }
 0x9f8   : > { %v3630_v2 = vpop.permute.xlu1 %3629 }
 0x9f9   : > { %v3633_v17 = vsel %vm962_vm5, %v3630_v2, %v3632_v38 }
 0x9fa   : > { %v3638_v29 = vadd.f32 %v3633_v17, %v3626_v54 }
 0x9fb   : > { %v3628_v16 = vpop.permute.xlu0 %3627 }
 0x9fc   : > { %v3644_v55 = vpop.permute.xlu1 %3643  ;;  %v3634_v50 = vsel %vm962_vm5, %v3628_v16, %v3630_v2  ;;  %v3635_v33 = vsel %vm962_vm5, %v3632_v38, %v3628_v16 }
 0x9fd   : > { %v3637_v30 = vadd.f32 %v3634_v50, %v3625_v32  ;;  %v3636_v49 = vadd.f32 %v3635_v33, %v3624_v6 }
 0x9ff   : > { %v3642_v20 = vpop.permute.xlu0 %3641 }
 0xa00   : > { %v3640_v21 = vpop.permute.xlu1 %3639  ;;  %v3645_v10 = vsel %vm1207_vm6, %v3642_v20, %v3644_v55 }
 0xa01   : > { %v3646_v0 = vsel %vm1207_vm6, %v3640_v21, %v3642_v20  ;;  %v3647_v57 = vsel %vm1207_vm6, %v3644_v55, %v3640_v21  ;;  %v3650_v53 = vadd.f32 %v3645_v10, %v3638_v29 }
 0xa02   : > { %v3649_v42 = vadd.f32 %v3646_v0, %v3637_v30  ;;  %v3648_v13 = vadd.f32 %v3647_v57, %v3636_v49 }
 0xa03   : > { %v3655_v39 = vpop.permute.xlu0 %3654  ;;  %v3653_v62 = vadd.f32 %v3650_v53, %v10048_v44 }
 0xa04   : > { %v3659_v41 = vpop.permute.xlu1 %3658  ;;  %v3652_v16 = vadd.f32 %v3649_v42, %v10051_v4  ;;  %v3651_v20 = vadd.f32 %v3648_v13, %v10046_v23 }
 0xa05   : > { %v3662_v2 = vsel %vm1238_vm7, %v3659_v41, %v3655_v39 }
 0xa06   : > { %v3665_v22 = vadd.f32 %v3662_v2, %v3653_v62  ;;  %v3730_v2 = vld [vmem:[%s11579_s9 + $0x38] sm:$0xff] }
 0xa07   : > { %v3657_v60 = vpop.permute.xlu0 %3656 }
 0xa08   : > { %v3667_v56 = vpop.permute.xlu1 %3666  ;;  %v3660_v36 = vsel %vm1238_vm7, %v3657_v60, %v3659_v41  ;;  %v3661_v55 = vsel %vm1238_vm7, %v3655_v39, %v3657_v60 }
 0xa09   : > { %v3664_v25 = vadd.f32 %v3660_v36, %v3652_v16  ;;  %v3663_v41 = vadd.f32 %v3661_v55, %v3651_v20  ;;  %v3731_v16 = vld [vmem:[%s11579_s9 + $0x40] sm:$0xff] }
 0xa0b   : > { %v3671_v27 = vpop.permute.xlu0 %3670 }
 0xa0c   : > { %v3669_v35 = vpop.permute.xlu1 %3668  ;;  %v3674_v44 = vsel %vm1483_vm8, %v3671_v27, %v3667_v56 }
 0xa0d   : > { %v3672_v21 = vsel %vm1483_vm8, %v3669_v35, %v3671_v27  ;;  %v3673_v40 = vsel %vm1483_vm8, %v3667_v56, %v3669_v35  ;;  %v3677_v19 = vadd.f32 %v3674_v44, %v3665_v22 }
 0xa0e   : > { %v3676_v39 = vadd.f32 %v3672_v21, %v3664_v25  ;;  %v3675_v54 = vadd.f32 %v3673_v40, %v3663_v41 }
 0xa0f   : > { %v3679_v34 = vpop.permute.xlu0 %3678 }
 0xa10   : > { %v3683_v38 = vpop.permute.xlu1 %3682 }
 0xa11   : > { %v3686_v23 = vsel %vm1508_vm9, %v3683_v38, %v3679_v34 }
 0xa12   : > { %v3689_v32 = vadd.f32 %v3686_v23, %v3677_v19 }
 0xa13   : > { %v3681_v37 = vpop.permute.xlu0 %3680 }
 0xa14   : > { %v3684_v4 = vsel %vm1508_vm9, %v3681_v37, %v3683_v38  ;;  %v3693_v17 = vpop.permute.xlu1 %3692  ;;  %v3685_v60 = vsel %vm1508_vm9, %v3679_v34, %v3681_v37  ;;  %v3723_v38 = vld [vmem:[%s11579_s9] sm:$0xff] }
 0xa15   : > { %v3688_v50 = vadd.f32 %v3684_v4, %v3676_v39  ;;  %v3687_v56 = vadd.f32 %v3685_v60, %v3675_v54 }
 0xa17   : > { %v3695_v59 = vpop.permute.xlu0 %3694 }
 0xa18   : > { %v3696_v33 = vsel %vm1533_vm10, %v3693_v17, %v3695_v59  ;;  %v3691_v10 = vpop.permute.xlu1 %3690 }
 0xa19   : > { %v3700_v6 = vadd.f32 %v3696_v33, %v3688_v50  ;;  %v3697_v29 = vsel %vm1533_vm10, %v3691_v10, %v3693_v17  ;;  %v3698_v0 = vsel %vm1533_vm10, %v3695_v59, %v3691_v10 }
 0xa1a   : > { %v3699_v30 = vadd.f32 %v3697_v29, %v3687_v56  ;;  %v3701_v57 = vadd.f32 %v3698_v0, %v3689_v32 }
 0xa1b   : > { %v3703_v27 = vmax.f32 %v3700_v6, 0.0 }
 0xa1c   : > { %v3702_v49 = vmax.f32 %v3699_v30, 0.0  ;;  %v3704_v53 = vmax.f32 %v3701_v57, 0.0 }
 0xa1d   : > { %v3706_v35 = vmul.f32 %v3703_v27, %v9122_v48 }
 0xa1e   : > { %v3705_v42 = vmul.f32 %v3702_v49, %v9200_v11  ;;  %v3707_v13 = vmul.f32 %v3704_v53, %v9202_v14 }
 0xa1f   : > { %v8540_v34 = vpack.c.bf16 %v3706_v35, %v9950_v12  ;;  %v3724_v12 = vld [vmem:[%s11579_s9 + $0x8] sm:$0xff] }
 0xa20   : > { %v8542_v62 = vpack.c.bf16 %v3705_v42, %v9953_v43  ;;  %v8548_v36 = vpack.c.bf16 %v3707_v13, %v9956_v46  ;;  %v3728_v43 = vld [vmem:[%s11579_s9 + $0x28] sm:$0xff]  ;;  %v3729_v46 = vld [vmem:[%s11579_s9 + $0x30] sm:$0xff] }
 0xa21   : > { %8541 = vmatprep.subr.bf16.mxu0 %v8540_v34 }
 0xa22   : > { %8543 = vmatpush1.bf16.msra.mxu0 %v8542_v62  ;;  %8549 = vmatpush3.bf16.msra.mxu1 %v8548_v36 }
 0xa23   : > { %8551 = vmatprep.subr.bf16.mxu0 %v9774_v1  ;;  %8559 = vmatprep.subr.bf16.mxu1 %v9792_v9  ;;  %v3725_v1 = vld [vmem:[%s11579_s9 + $0x10] sm:$0xff] }
 0xa25   : > { %7604 = vmatmul.mubr.msk.f32.vlgmr.msra.gmra.mrb[120].mxu0 %vm2382_vm13, %v3723_v38  ;;  %8184 = vmatmul.mubr.msk.f32.vlgmr.msra.gmra.mrb[120].mxu1 %vm2382_vm13, %v3723_v38  ;;  %v10228_v38 = vld [vmem:[%s11580_s10] sm:$0xff] }
 0xa26   : > { %8553 = vmatpush1.bf16.msra.mxu0 %v9776_v26  ;;  %8561 = vmatpush3.bf16.msra.mxu1 %v9792_v9  ;;  %v3726_v26 = vld [vmem:[%s11579_s9 + $0x18] sm:$0xff]  ;;  %v3727_v9 = vld [vmem:[%s11579_s9 + $0x20] sm:$0xff] }
 0xa27   : > { %8555 = vmatprep.subr.bf16.mxu0 %v8540_v34  ;;  %8563 = vmatprep.subr.bf16.mxu1 %v8548_v36 }
 0xa28   : > { %8186 = vmatprep.mubr.msk.f32.mxu1 %vm8704_vm2, %v8694_v5  ;;  %3829 = vmatprep.mubr.f32.mxu0 %v8694_v5 }
 0xa29   : > { %8187 = vmatmul.mubr.msk.f32.gmra.mrb[122].mxu1 %vm2382_vm13, %v3724_v12  ;;  %7605 = vmatmul.mubr.msk.f32.gmra.mrb[122].mxu0 %vm2382_vm13, %v3724_v12 }
 0xa2a   : > { %8557 = vmatpush1.bf16.msra.mxu0 %v8542_v62  ;;  %8565 = vmatpush3.bf16.msra.mxu1 %v8548_v36 }
 0xa2b   : > { %3835 = vmatprep.mubr.f32.mxu0 %v8694_v5  ;;  %8189 = vmatprep.mubr.msk.f32.mxu1 %vm8704_vm2, %v8694_v5 }
 0xa2d   : > { %7606 = vmatmul.mubr.msk.f32.gmra.mrb[124].mxu0 %vm2382_vm13, %v3725_v1  ;;  %8190 = vmatmul.mubr.msk.f32.gmra.mrb[124].mxu1 %vm2382_vm13, %v3725_v1 }
 0xa2e   : > { %3841 = vmatprep.mubr.f32.mxu0 %v8694_v5  ;;  %8192 = vmatprep.mubr.msk.f32.mxu1 %vm8704_vm2, %v8694_v5 }
 0xa31   : > { %7607 = vmatmul.mubr.msk.f32.gmra.mrb[126].mxu0 %vm2382_vm13, %v3726_v26  ;;  %8193 = vmatmul.mubr.msk.f32.gmra.mrb[126].mxu1 %vm2382_vm13, %v3726_v26 }
 0xa32   : > { %3847 = vmatprep.mubr.f32.mxu0 %v8694_v5  ;;  %8195 = vmatprep.mubr.msk.f32.mxu1 %vm8704_vm2, %v8694_v5 }
 0xa35   : > { %7608 = vmatmul.mubr.msk.f32.gmra.mrb[128].mxu0 %vm2382_vm13, %v3727_v9  ;;  %8196 = vmatmul.mubr.msk.f32.gmra.mrb[128].mxu1 %vm2382_vm13, %v3727_v9 }
 0xa36   : > { %3853 = vmatprep.mubr.f32.mxu0 %v8694_v5  ;;  %8198 = vmatprep.mubr.msk.f32.mxu1 %vm8704_vm2, %v8694_v5 }
 0xa39   : > { %7609 = vmatmul.mubr.msk.f32.gmra.mrb[130].mxu0 %vm2382_vm13, %v3728_v43  ;;  %8199 = vmatmul.mubr.msk.f32.gmra.mrb[130].mxu1 %vm2382_vm13, %v3728_v43 }
 0xa3a   : > { %3859 = vmatprep.mubr.f32.mxu0 %v8694_v5  ;;  %8201 = vmatprep.mubr.msk.f32.mxu1 %vm8704_vm2, %v8694_v5 }
 0xa3d   : > { %7610 = vmatmul.mubr.msk.f32.gmra.mrb[132].mxu0 %vm2382_vm13, %v3729_v46  ;;  %8202 = vmatmul.mubr.msk.f32.gmra.mrb[132].mxu1 %vm2382_vm13, %v3729_v46 }
 0xa3e   : > { %3865 = vmatprep.mubr.f32.mxu0 %v8694_v5  ;;  %8204 = vmatprep.mubr.msk.f32.mxu1 %vm8704_vm2, %v8694_v5 }
 0xa41   : > { %7611 = vmatmul.mubr.msk.f32.gmra.mrb[134].mxu0 %vm2382_vm13, %v3730_v2  ;;  %8205 = vmatmul.mubr.msk.f32.gmra.mrb[134].mxu1 %vm2382_vm13, %v3730_v2 }
 0xa42   : > { %3871 = vmatprep.mubr.f32.mxu0 %v8694_v5  ;;  %8207 = vmatprep.mubr.msk.f32.mxu1 %vm8704_vm2, %v8694_v5 }
 0xa45   : > { %7612 = vmatmul.mubr.msk.f32.gmra.mrb[136].mxu0 %vm2382_vm13, %v3731_v16  ;;  %8208 = vmatmul.mubr.msk.f32.gmra.mrb[136].mxu1 %vm2382_vm13, %v3731_v16 }
 0xa46   : > { %4180 = vmatprep.mubr.f32.mxu0 %v8694_v5  ;;  %8220 = vmatprep.mubr.msk.f32.mxu1 %vm2761_vm14, %v10228_v38 }
 0xaf8   : > { %v3825_v55 = vpop.f32.mrb[120].mxu0  ;;  %v3944_v20 = vpop.f32.mrb[120].mxu1 }
 0xaf9   : > { %v3827_v21 = vpop.f32.mrb[121].mxu0  ;;  %3992 = vrot.lane.b32.xlu0 %v3944_v20, %s11635_s23  ;;  %v8185_v25 = vpop.f32.mrb[121].mxu1 }
 0xafa   : > { %3990 = vrot.lane.b32.xlu1 %v3827_v21, %s11635_s23 }
 0xafc   : > { %v3949_v44 = vpop.f32.mrb[122].mxu1  ;;  %v3831_v40 = vpop.f32.mrb[122].mxu0 }
 0xafd   : > { %3988 = vrot.lane.b32.xlu0 %v3825_v55, %s11635_s23  ;;  %v3833_v37 = vpop.f32.mrb[123].mxu0  ;;  %v8188_v22 = vpop.f32.mrb[123].mxu1 }
 0xafe   : > { %4001 = vrot.lane.b32.xlu1 %v3949_v44, %s11636_s29 }
 0xb00   : > { %v3837_v41 = vpop.f32.mrb[124].mxu0  ;;  %v3954_v4 = vpop.f32.mrb[124].mxu1 }
 0xb01   : > { %3997 = vrot.lane.b32.xlu0 %v3831_v40, %s11636_s29  ;;  %v3839_v17 = vpop.f32.mrb[125].mxu0  ;;  %v8191_v39 = vpop.f32.mrb[125].mxu1 }
 0xb02   : > { %3999 = vrot.lane.b32.xlu1 %v3833_v37, %s11636_s29 }
 0xb04   : > { %v3959_v23 = vpop.f32.mrb[126].mxu1  ;;  %v3843_v60 = vpop.f32.mrb[126].mxu0 }
 0xb05   : > { %4013 = vrot.lane.b32.xlu0 %v3954_v4, %s11631_s1  ;;  %v3845_v19 = vpop.f32.mrb[127].mxu0  ;;  %v8194_v54 = vpop.f32.mrb[127].mxu1 }
 0xb06   : > { %4011 = vrot.lane.b32.xlu1 %v3839_v17, %s11631_s1 }
 0xb08   : > { %v10207_v50 = vpop.f32.mrb[128].mxu0  ;;  %v10209_v59 = vpop.f32.mrb[128].mxu1 }
 0xb09   : > { %4009 = vrot.lane.b32.xlu0 %v3837_v41, %s11631_s1  ;;  %v10212_v32 = vpop.f32.mrb[129].mxu0  ;;  %v8197_v56 = vpop.f32.mrb[129].mxu1 }
 0xb0a   : > { %4025 = vrot.lane.b32.xlu1 %v3959_v23, %s11632_s24 }
 0xb0c   : > { %v3855_v33 = vpop.f32.mrb[130].mxu0  ;;  %v3969_v10 = vpop.f32.mrb[130].mxu1 }
 0xb0d   : > { %4023 = vrot.lane.b32.xlu0 %v3845_v19, %s11632_s24  ;;  %v3857_v6 = vpop.f32.mrb[131].mxu0  ;;  %v8200_v29 = vpop.f32.mrb[131].mxu1 }
 0xb0e   : > { %4021 = vrot.lane.b32.xlu1 %v3843_v60, %s11632_s24 }
 0xb10   : > { %v3861_v0 = vpop.f32.mrb[132].mxu0  ;;  %v3974_v30 = vpop.f32.mrb[132].mxu1 }
 0xb11   : > { %4036 = vrot.lane.b32.xlu0 %v3855_v33, %s11633_s27  ;;  %v3863_v57 = vpop.f32.mrb[133].mxu0  ;;  %v8203_v27 = vpop.f32.mrb[133].mxu1 }
 0xb12   : > { %4040 = vrot.lane.b32.xlu1 %v3969_v10, %s11633_s27 }
 0xb14   : > { %v3867_v49 = vpop.f32.mrb[134].mxu0  ;;  %v3979_v53 = vpop.f32.mrb[134].mxu1 }
 0xb15   : > { %4038 = vrot.lane.b32.xlu0 %v3857_v6, %s11633_s27  ;;  %v3869_v35 = vpop.f32.mrb[135].mxu0  ;;  %v8206_v42 = vpop.f32.mrb[135].mxu1 }
 0xb16   : > { %4048 = vrot.lane.b32.xlu1 %v3861_v0, %s11628_s0 }
 0xb18   : > { %v3873_v13 = vpop.f32.mrb[136].mxu0  ;;  %v3984_v34 = vpop.f32.mrb[136].mxu1 }
 0xb19   : > { %4052 = vrot.lane.b32.xlu0 %v3974_v30, %s11628_s0  ;;  %v3875_v62 = vpop.f32.mrb[137].mxu0  ;;  %v8209_v36 = vpop.f32.mrb[137].mxu1 }
 0xb1a   : > { %4050 = vrot.lane.b32.xlu1 %v3863_v57, %s11628_s0 }
 0xb1d   : > { %4060 = vrot.lane.b32.xlu0 %v3867_v49, %s11629_s4 }
 0xb1e   : > { %4064 = vrot.lane.b32.xlu1 %v3979_v53, %s11629_s4 }
 0xb21   : > { %4062 = vrot.lane.b32.xlu0 %v3869_v35, %s11629_s4 }
 0xb22   : > { %4074 = vrot.lane.b32.xlu1 %v3875_v62, %s11626_s28 }
 0xb25   : > { %4076 = vrot.lane.b32.xlu0 %v3984_v34, %s11626_s28 }
 0xb26   : > { %4072 = vrot.lane.b32.xlu1 %v3873_v13, %s11626_s28 }
 0xb6b   : > { %v3993_v12 = vpop.permute.xlu0 %3992 }
 0xb6c   : > { %v3991_v1 = vpop.permute.xlu1 %3990 }
 0xb6d   : > { %v3994_v41 = vsel %vm918_vm3, %v3991_v1, %v3993_v12 }
 0xb6f   : > { %v3989_v26 = vpop.permute.xlu0 %3988 }
 0xb70   : > { %v4002_v9 = vpop.permute.xlu1 %4001  ;;  %v3995_v23 = vsel %vm918_vm3, %v3989_v26, %v3991_v1  ;;  %v3996_v56 = vsel %vm918_vm3, %v3993_v12, %v3989_v26 }
 0xb73   : > { %v3998_v43 = vpop.permute.xlu0 %3997 }
 0xb74   : > { %v4000_v46 = vpop.permute.xlu1 %3999  ;;  %v4005_v4 = vsel %vm937_vm4, %v4002_v9, %v3998_v43 }
 0xb75   : > { %v4003_v37 = vsel %vm937_vm4, %v4000_v46, %v4002_v9  ;;  %v4004_v22 = vsel %vm937_vm4, %v3998_v43, %v4000_v46  ;;  %v4006_v29 = vadd.f32 %v4005_v4, %v3996_v56 }
 0xb76   : > { %v4008_v60 = vadd.f32 %v4003_v37, %v3994_v41  ;;  %v4007_v33 = vadd.f32 %v4004_v22, %v3995_v23 }
 0xb77   : > { %v4014_v2 = vpop.permute.xlu0 %4013 }
 0xb78   : > { %v4012_v16 = vpop.permute.xlu1 %4011 }
 0xb79   : > { %v4015_v17 = vsel %vm962_vm5, %v4012_v16, %v4014_v2 }
 0xb7a   : > { %v4020_v0 = vadd.f32 %v4015_v17, %v4008_v60 }
 0xb7b   : > { %v4010_v55 = vpop.permute.xlu0 %4009 }
 0xb7c   : > { %v4026_v20 = vpop.permute.xlu1 %4025  ;;  %v4016_v19 = vsel %vm962_vm5, %v4010_v55, %v4012_v16  ;;  %v4017_v10 = vsel %vm962_vm5, %v4014_v2, %v4010_v55 }
 0xb7d   : > { %v4019_v57 = vadd.f32 %v4016_v19, %v4007_v33  ;;  %v4018_v53 = vadd.f32 %v4017_v10, %v4006_v29 }
 0xb7f   : > { %v4024_v21 = vpop.permute.xlu0 %4023 }
 0xb80   : > { %v4022_v25 = vpop.permute.xlu1 %4021  ;;  %v4027_v6 = vsel %vm1207_vm6, %v4024_v21, %v4026_v20 }
 0xb81   : > { %v4028_v30 = vsel %vm1207_vm6, %v4022_v25, %v4024_v21  ;;  %v4029_v27 = vsel %vm1207_vm6, %v4026_v20, %v4022_v25  ;;  %v4032_v35 = vadd.f32 %v4027_v6, %v4020_v0 }
 0xb82   : > { %v4031_v13 = vadd.f32 %v4028_v30, %v4019_v57  ;;  %v4030_v34 = vadd.f32 %v4029_v27, %v4018_v53  ;;  %v4109_v53 = vld [vmem:[%s11580_s10 + $0x8] sm:$0xff] }
 0xb83   : > { %v4037_v44 = vpop.permute.xlu0 %4036  ;;  %v4035_v36 = vadd.f32 %v4032_v35, %v10209_v59 }
 0xb84   : > { %v4041_v40 = vpop.permute.xlu1 %4040  ;;  %v4034_v9 = vadd.f32 %v4031_v13, %v10212_v32  ;;  %v4033_v46 = vadd.f32 %v4030_v34, %v10207_v50 }
 0xb85   : > { %v4044_v26 = vsel %vm1238_vm7, %v4041_v40, %v4037_v44 }
 0xb86   : > { %v4047_v21 = vadd.f32 %v4044_v26, %v4035_v36 }
 0xb87   : > { %v4039_v39 = vpop.permute.xlu0 %4038 }
 0xb88   : > { %v4049_v54 = vpop.permute.xlu1 %4048  ;;  %v4042_v12 = vsel %vm1238_vm7, %v4039_v39, %v4041_v40  ;;  %v4043_v43 = vsel %vm1238_vm7, %v4037_v44, %v4039_v39 }
 0xb89   : > { %v4046_v16 = vadd.f32 %v4042_v12, %v4034_v9  ;;  %v4045_v25 = vadd.f32 %v4043_v43, %v4033_v46 }
 0xb8b   : > { %v4053_v49 = vpop.permute.xlu0 %4052 }
 0xb8c   : > { %v4051_v42 = vpop.permute.xlu1 %4050  ;;  %v4056_v59 = vsel %vm1483_vm8, %v4053_v49, %v4049_v54 }
 0xb8d   : > { %v4054_v2 = vsel %vm1483_vm8, %v4051_v42, %v4053_v49  ;;  %v4055_v55 = vsel %vm1483_vm8, %v4049_v54, %v4051_v42  ;;  %v4059_v22 = vadd.f32 %v4056_v59, %v4047_v21  ;;  %v4313_v21 = vld [vmem:[%s11581_s11 + $0x18] sm:$0xff] }
 0xb8e   : > { %v4058_v44 = vadd.f32 %v4054_v2, %v4046_v16  ;;  %v4057_v41 = vadd.f32 %v4055_v55, %v4045_v25  ;;  %v4311_v55 = vld [vmem:[%s11581_s11 + $0x8] sm:$0xff]  ;;  %v4314_v25 = vld [vmem:[%s11581_s11 + $0x20] sm:$0xff] }
 0xb8f   : > { %v4061_v62 = vpop.permute.xlu0 %4060 }
 0xb90   : > { %v4065_v1 = vpop.permute.xlu1 %4064 }
 0xb91   : > { %v4068_v50 = vsel %vm1508_vm9, %v4065_v1, %v4061_v62 }
 0xb92   : > { %v4071_v39 = vadd.f32 %v4068_v50, %v4059_v22  ;;  %v4318_v50 = vld [vmem:[%s11581_s11 + $0x40] sm:$0xff] }
 0xb93   : > { %v4063_v20 = vpop.permute.xlu0 %4062 }
 0xb94   : > { %v4066_v32 = vsel %vm1508_vm9, %v4063_v20, %v4065_v1  ;;  %v4075_v40 = vpop.permute.xlu1 %4074  ;;  %v4067_v37 = vsel %vm1508_vm9, %v4061_v62, %v4063_v20  ;;  %v4312_v20 = vld [vmem:[%s11581_s11 + $0x10] sm:$0xff] }
 0xb95   : > { %v4070_v4 = vadd.f32 %v4066_v32, %v4058_v44  ;;  %v4069_v23 = vadd.f32 %v4067_v37, %v4057_v41  ;;  %v4315_v32 = vld [vmem:[%s11581_s11 + $0x28] sm:$0xff]  ;;  %v4317_v44 = vld [vmem:[%s11581_s11 + $0x38] sm:$0xff] }
 0xb97   : > { %v4077_v17 = vpop.permute.xlu0 %4076 }
 0xb98   : > { %v4078_v60 = vsel %vm1533_vm10, %v4075_v40, %v4077_v17  ;;  %v4073_v19 = vpop.permute.xlu1 %4072 }
 0xb99   : > { %v4082_v54 = vadd.f32 %v4078_v60, %v4070_v4  ;;  %v4079_v56 = vsel %vm1533_vm10, %v4073_v19, %v4075_v40  ;;  %v4080_v33 = vsel %vm1533_vm10, %v4077_v17, %v4073_v19  ;;  %v4316_v40 = vld [vmem:[%s11581_s11 + $0x30] sm:$0xff] }
 0xb9a   : > { %v4081_v10 = vadd.f32 %v4079_v56, %v4069_v23  ;;  %v4083_v6 = vadd.f32 %v4080_v33, %v4071_v39 }
 0xb9b   : > { %v4085_v29 = vmax.f32 %v4082_v54, 0.0 }
 0xb9c   : > { %v4084_v0 = vmax.f32 %v4081_v10, 0.0  ;;  %v4086_v30 = vmax.f32 %v4083_v6, 0.0 }
 0xb9d   : > { %v4088_v57 = vmul.f32 %v4085_v29, %v9122_v48 }
 0xb9e   : > { %v4087_v27 = vmul.f32 %v4084_v0, %v9200_v11  ;;  %v4089_v49 = vmul.f32 %v4086_v30, %v9202_v14 }
 0xb9f   : > { %4124 = vmatprep.subr.mxu0 %v4088_v57 }
 0xba0   : > { %4125 = vmatpush1.msra.mxu0 %v4087_v27  ;;  %8218 = vmatprep.subr.mxu1 %v4089_v49 }
 0xba1   : > { %7622 = vmatmul.mubr.msk.f32.vlgmr.msra.gmra.mrb[138].mxu0 %vm2761_vm14, %v10228_v38  ;;  %8219 = vmatpush3.msra.mxu1 %v4089_v49 }
 0xba2   : > { %8221 = vmatmul.mubr.msk.f32.vlgmr.msra.gmra.mrb[138].mxu1 %vm2761_vm14, %v4109_v53  ;;  %4186 = vmatprep.mubr.f32.mxu0 %v8694_v5 }
 0xba3   : > { %8570 = vmatprep.subr.bf16.mxu0 %v8703_v24  ;;  %4410 = vmatprep.mubr.f32.mxu1 %v8694_v5 }
 0xba5   : > { %7623 = vmatmul.mubr.msk.f32.gmra.mrb[140].mxu0 %vm2761_vm14, %v4109_v53 }
 0xba6   : > { %8227 = vmatprep.mubr.msk.f32.mxu0 %vm8704_vm2, %v8694_v5 }
 0xc74   : > { %v4182_v35 = vpop.f32.mrb[138].mxu0 }
 0xc75   : > { %v4184_v42 = vpop.f32.mrb[139].mxu0  ;;  %v8222_v13 = vpop.f32.mrb[138].mxu1  ;;  %v10313_v26 = vsub.f32 %v9762_v45, %v4182_v35 }
 0xc76   : > { %v10303_v34 = vsub.f32 %v9779_v61, %v8222_v13  ;;  %v4259_v38 = vpop.f32.mrb[139].mxu1  ;;  %v10309_v36 = vsub.f32 %v9759_v52, %v4184_v42 }
 0xc77   : > { %v10306_v62 = vsub.f32 %v9782_v31, %v4259_v38  ;;  %v4292_v45 = vmax.f32 %v10313_v26, 0.0 }
 0xc78   : > { %v4297_v12 = vmax.f32 %v10303_v34, 0.0  ;;  %v4188_v1 = vpop.f32.mrb[140].mxu0  ;;  %v4293_v2 = vmax.f32 %v10309_v36, 0.0 }
 0xc79   : > { %v4294_v9 = vmax.f32 %v10306_v62, 0.0  ;;  %v10317_v43 = vsub.f32 %v9765_v8, %v4188_v1  ;;  %v4190_v61 = vpop.f32.mrb[141].mxu0  ;;  %v4310_v8 = vld [vmem:[%s11581_s11] sm:$0xff] }
 0xc7a   : > { %v10320_v46 = vsub.f32 %v9768_v28, %v4190_v61 }
 0xc7b   : > { %v10322_v31 = vpack.c.bf16 %v4297_v12, %v4294_v9  ;;  %v4295_v52 = vmax.f32 %v10317_v43, 0.0 }
 0xc7c   : > { %v4296_v16 = vmax.f32 %v10320_v46, 0.0 }
 0xc7d   : > { %8572 = vmatpush3.bf16.msra.mxu0 %v10322_v31  ;;  %v10335_v28 = vpack.c.bf16 %v4295_v52, %v4292_v45 }
 0xc7e   : > { %v10332_v59 = vpack.c.bf16 %v4296_v16, %v4293_v2  ;;  %8577 = vmatprep.subr.bf16.mxu0 %v8703_v24 }
 0xc80   : > { %8567 = vmatprep.subr.bf16.mxu1 %v10332_v59  ;;  %8228 = vmatmul.mubr.msk.f32.vlgmr.msra.gmra.mrb[142].mxu0 %vm1619_vm11, %v4310_v8 }
 0xc81   : > { %8569 = vmatpush1.bf16.msra.mxu1 %v10335_v28  ;;  %8579 = vmatpush3.bf16.msra.mxu0 %v10322_v31 }
 0xc82   : > { %8574 = vmatprep.subr.bf16.mxu1 %v10332_v59  ;;  %8230 = vmatprep.mubr.msk.f32.mxu0 %vm8704_vm2, %v8694_v5 }
 0xc83   : > { %8258 = vmatprep.subr.mxu0 %v8694_v5 }
 0xc84   : > { %7626 = vmatmul.mubr.msk.f32.vlgmr.msra.gmra.mrb[140].mxu1 %vm1619_vm11, %v4310_v8  ;;  %8231 = vmatmul.mubr.msk.f32.gmra.mrb[144].mxu0 %vm1619_vm11, %v4311_v55 }
 0xc85   : > { %8576 = vmatpush1.bf16.msra.mxu1 %v10335_v28  ;;  %8233 = vmatprep.mubr.msk.f32.mxu0 %vm8704_vm2, %v8694_v5 }
 0xc86   : > { %4416 = vmatprep.mubr.f32.mxu1 %v8694_v5 }
 0xc88   : > { %8234 = vmatmul.mubr.msk.f32.gmra.mrb[146].mxu0 %vm1619_vm11, %v4312_v20  ;;  %7627 = vmatmul.mubr.msk.f32.gmra.mrb[142].mxu1 %vm1619_vm11, %v4311_v55 }
 0xc89   : > { %8236 = vmatprep.mubr.msk.f32.mxu0 %vm8704_vm2, %v8694_v5  ;;  %4422 = vmatprep.mubr.f32.mxu1 %v8694_v5 }
 0xc8c   : > { %8237 = vmatmul.mubr.msk.f32.gmra.mrb[148].mxu0 %vm1619_vm11, %v4313_v21  ;;  %7628 = vmatmul.mubr.msk.f32.gmra.mrb[144].mxu1 %vm1619_vm11, %v4312_v20 }
 0xc8d   : > { %8239 = vmatprep.mubr.msk.f32.mxu0 %vm8704_vm2, %v8694_v5  ;;  %4428 = vmatprep.mubr.f32.mxu1 %v8694_v5 }
 0xc90   : > { %8240 = vmatmul.mubr.msk.f32.gmra.mrb[150].mxu0 %vm1619_vm11, %v4314_v25  ;;  %7629 = vmatmul.mubr.msk.f32.gmra.mrb[146].mxu1 %vm1619_vm11, %v4313_v21 }
 0xc91   : > { %8242 = vmatprep.mubr.msk.f32.mxu0 %vm8704_vm2, %v8694_v5  ;;  %4434 = vmatprep.mubr.f32.mxu1 %v8694_v5 }
 0xc94   : > { %8243 = vmatmul.mubr.msk.f32.gmra.mrb[152].mxu0 %vm1619_vm11, %v4315_v32  ;;  %7630 = vmatmul.mubr.msk.f32.gmra.mrb[148].mxu1 %vm1619_vm11, %v4314_v25 }
 0xc95   : > { %8245 = vmatprep.mubr.msk.f32.mxu0 %vm8704_vm2, %v8694_v5  ;;  %4440 = vmatprep.mubr.f32.mxu1 %v8694_v5 }
 0xc98   : > { %8246 = vmatmul.mubr.msk.f32.gmra.mrb[154].mxu0 %vm1619_vm11, %v4316_v40  ;;  %7631 = vmatmul.mubr.msk.f32.gmra.mrb[150].mxu1 %vm1619_vm11, %v4315_v32 }
 0xc99   : > { %4446 = vmatprep.mubr.f32.mxu1 %v8694_v5  ;;  %8248 = vmatprep.mubr.msk.f32.mxu0 %vm8704_vm2, %v8694_v5 }
 0xc9c   : > { %7632 = vmatmul.mubr.msk.f32.gmra.mrb[152].mxu1 %vm1619_vm11, %v4316_v40  ;;  %8249 = vmatmul.mubr.msk.f32.gmra.mrb[156].mxu0 %vm1619_vm11, %v4317_v44 }
 0xc9d   : > { %4452 = vmatprep.mubr.f32.mxu1 %v8694_v5  ;;  %8251 = vmatprep.mubr.msk.f32.mxu0 %vm8704_vm2, %v8694_v5 }
 0xca0   : > { %7633 = vmatmul.mubr.msk.f32.gmra.mrb[154].mxu1 %vm1619_vm11, %v4317_v44  ;;  %8252 = vmatmul.mubr.msk.f32.gmra.mrb[158].mxu0 %vm1619_vm11, %v4318_v50 }
 0xca1   : > { %4458 = vmatprep.mubr.f32.mxu1 %v8694_v5  ;;  %8260 = vmatprep.mubr.msk.f32.mxu0 %vm8704_vm2, %v8694_v5 }
 0xca4   : > { %7634 = vmatmul.mubr.msk.f32.gmra.mrb[156].mxu1 %vm1619_vm11, %v4318_v50 }
 0xca5   : > { %4789 = vmatprep.mubr.f32.mxu1 %v8694_v5 }
 0xd53   : > { %v4531_v37 = vpop.f32.mrb[142].mxu0 }
 0xd54   : > { %4579 = vrot.lane.b32.xlu0 %v4531_v37, %s11635_s23  ;;  %v8229_v22 = vpop.f32.mrb[143].mxu0 }
 0xd57   : > { %v4412_v41 = vpop.f32.mrb[140].mxu1  ;;  %v4536_v4 = vpop.f32.mrb[144].mxu0 }
 0xd58   : > { %4575 = vrot.lane.b32.xlu0 %v4412_v41, %s11635_s23  ;;  %4588 = vrot.lane.b32.xlu1 %v4536_v4, %s11636_s29  ;;  %v8232_v17 = vpop.f32.mrb[145].mxu0  ;;  %v4414_v39 = vpop.f32.mrb[141].mxu1 }
 0xd5b   : > { %v4541_v23 = vpop.f32.mrb[146].mxu0  ;;  %v4418_v60 = vpop.f32.mrb[142].mxu1 }
 0xd5c   : > { %4577 = vrot.lane.b32.xlu1 %v4414_v39, %s11635_s23  ;;  %4600 = vrot.lane.b32.xlu0 %v4541_v23, %s11631_s1  ;;  %v4420_v19 = vpop.f32.mrb[143].mxu1  ;;  %v8235_v54 = vpop.f32.mrb[147].mxu0 }
 0xd5f   : > { %v4424_v56 = vpop.f32.mrb[144].mxu1  ;;  %v4546_v33 = vpop.f32.mrb[148].mxu0 }
 0xd60   : > { %4586 = vrot.lane.b32.xlu1 %v4420_v19, %s11636_s29  ;;  %4584 = vrot.lane.b32.xlu0 %v4418_v60, %s11636_s29  ;;  %v4426_v10 = vpop.f32.mrb[145].mxu1  ;;  %v8238_v6 = vpop.f32.mrb[149].mxu0 }
 0xd63   : > { %v4430_v29 = vpop.f32.mrb[146].mxu1  ;;  %v10419_v0 = vpop.f32.mrb[150].mxu0 }
 0xd64   : > { %4596 = vrot.lane.b32.xlu0 %v4424_v56, %s11631_s1  ;;  %4612 = vrot.lane.b32.xlu1 %v4546_v33, %s11632_s24  ;;  %v4432_v30 = vpop.f32.mrb[147].mxu1  ;;  %v8241_v57 = vpop.f32.mrb[151].mxu0 }
 0xd67   : > { %v4556_v27 = vpop.f32.mrb[152].mxu0  ;;  %v10423_v49 = vpop.f32.mrb[148].mxu1 }
 0xd68   : > { %4610 = vrot.lane.b32.xlu0 %v4432_v30, %s11632_s24  ;;  %4598 = vrot.lane.b32.xlu1 %v4426_v10, %s11631_s1  ;;  %v8244_v53 = vpop.f32.mrb[153].mxu0  ;;  %v10427_v35 = vpop.f32.mrb[149].mxu1 }
 0xd6b   : > { %v4561_v42 = vpop.f32.mrb[154].mxu0  ;;  %v4442_v13 = vpop.f32.mrb[150].mxu1 }
 0xd6c   : > { %4608 = vrot.lane.b32.xlu1 %v4430_v29, %s11632_s24  ;;  %4639 = vrot.lane.b32.xlu0 %v4561_v42, %s11628_s0  ;;  %v8247_v38 = vpop.f32.mrb[155].mxu0  ;;  %v4444_v12 = vpop.f32.mrb[151].mxu1 }
 0xd6f   : > { %v4566_v1 = vpop.f32.mrb[156].mxu0  ;;  %v4448_v9 = vpop.f32.mrb[152].mxu1 }
 0xd70   : > { %4627 = vrot.lane.b32.xlu1 %v4556_v27, %s11633_s27  ;;  %4623 = vrot.lane.b32.xlu0 %v4442_v13, %s11633_s27  ;;  %v4450_v61 = vpop.f32.mrb[153].mxu1  ;;  %v8250_v52 = vpop.f32.mrb[157].mxu0 }
 0xd73   : > { %v4454_v2 = vpop.f32.mrb[154].mxu1  ;;  %v4571_v16 = vpop.f32.mrb[158].mxu0 }
 0xd74   : > { %4625 = vrot.lane.b32.xlu0 %v4444_v12, %s11633_s27  ;;  %4651 = vrot.lane.b32.xlu1 %v4566_v1, %s11629_s4  ;;  %v4456_v45 = vpop.f32.mrb[155].mxu1  ;;  %v8253_v8 = vpop.f32.mrb[159].mxu0 }
 0xd77   : > { %v4460_v55 = vpop.f32.mrb[156].mxu1 }
 0xd78   : > { %4647 = vrot.lane.b32.xlu0 %v4454_v2, %s11629_s4  ;;  %4635 = vrot.lane.b32.xlu1 %v4448_v9, %s11628_s0  ;;  %v4462_v20 = vpop.f32.mrb[157].mxu1 }
 0xd7c   : > { %4649 = vrot.lane.b32.xlu0 %v4456_v45, %s11629_s4  ;;  %4637 = vrot.lane.b32.xlu1 %v4450_v61, %s11628_s0 }
 0xd80   : > { %4661 = vrot.lane.b32.xlu1 %v4462_v20, %s11626_s28  ;;  %4663 = vrot.lane.b32.xlu0 %v4571_v16, %s11626_s28 }
 0xd84   : > { %4659 = vrot.lane.b32.xlu1 %v4460_v55, %s11626_s28 }
 0xdc6   : > { %v4580_v21 = vpop.permute.xlu0 %4579 }
 0xdca   : > { %v4576_v25 = vpop.permute.xlu0 %4575  ;;  %v4589_v32 = vpop.permute.xlu1 %4588 }
 0xdcb   : > { %v4583_v53 = vsel %vm918_vm3, %v4580_v21, %v4576_v25 }
 0xdce   : > { %v4578_v40 = vpop.permute.xlu1 %4577  ;;  %v4601_v44 = vpop.permute.xlu0 %4600 }
 0xdcf   : > { %v4581_v54 = vsel %vm918_vm3, %v4578_v40, %v4580_v21  ;;  %v4582_v10 = vsel %vm918_vm3, %v4576_v25, %v4578_v40 }
 0xdd2   : > { %v4587_v50 = vpop.permute.xlu1 %4586  ;;  %v4585_v37 = vpop.permute.xlu0 %4584 }
 0xdd3   : > { %v4590_v60 = vsel %vm937_vm4, %v4587_v50, %v4589_v32  ;;  %v4591_v19 = vsel %vm937_vm4, %v4585_v37, %v4587_v50  ;;  %v4592_v6 = vsel %vm937_vm4, %v4589_v32, %v4585_v37 }
 0xdd4   : > { %v4595_v57 = vadd.f32 %v4590_v60, %v4581_v54  ;;  %v4594_v27 = vadd.f32 %v4591_v19, %v4582_v10  ;;  %v4593_v38 = vadd.f32 %v4592_v6, %v4583_v53 }
 0xdd6   : > { %v4597_v22 = vpop.permute.xlu0 %4596  ;;  %v4613_v41 = vpop.permute.xlu1 %4612 }
 0xdd7   : > { %v4604_v42 = vsel %vm962_vm5, %v4601_v44, %v4597_v22 }
 0xdd8   : > { %v4605_v2 = vadd.f32 %v4604_v42, %v4593_v38 }
 0xdda   : > { %v4611_v4 = vpop.permute.xlu0 %4610  ;;  %v4599_v17 = vpop.permute.xlu1 %4598 }
 0xddb   : > { %v4602_v29 = vsel %vm962_vm5, %v4599_v17, %v4601_v44  ;;  %v4603_v30 = vsel %vm962_vm5, %v4597_v22, %v4599_v17  ;;  %v4614_v45 = vsel %vm1207_vm6, %v4611_v4, %v4613_v41 }
 0xddc   : > { %v4606_v12 = vadd.f32 %v4603_v30, %v4594_v27  ;;  %v4607_v1 = vadd.f32 %v4602_v29, %v4595_v57 }
 0xdde   : > { %v4609_v39 = vpop.permute.xlu1 %4608  ;;  %v4640_v23 = vpop.permute.xlu0 %4639  ;;  %v4619_v8 = vadd.f32 %v4614_v45, %v4607_v1 }
 0xddf   : > { %v4615_v13 = vsel %vm1207_vm6, %v4609_v39, %v4611_v4  ;;  %v4616_v52 = vsel %vm1207_vm6, %v4613_v41, %v4609_v39 }
 0xde0   : > { %v4618_v16 = vadd.f32 %v4615_v13, %v4606_v12  ;;  %v4617_v55 = vadd.f32 %v4616_v52, %v4605_v2  ;;  %v4622_v50 = vadd.f32 %v4619_v8, %v10419_v0  ;;  %v4689_v8 = vld [vmem:[%s11582_s12] sm:$0xff] }
 0xde2   : > { %v4628_v56 = vpop.permute.xlu1 %4627  ;;  %v4624_v33 = vpop.permute.xlu0 %4623  ;;  %v4621_v32 = vadd.f32 %v4618_v16, %v10427_v35  ;;  %v4620_v37 = vadd.f32 %v4617_v55, %v10423_v49  ;;  %v4690_v55 = vld [vmem:[%s11582_s12 + $0x8] sm:$0xff] }
 0xde3   : > { %v4631_v40 = vsel %vm1238_vm7, %v4628_v56, %v4624_v33 }
 0xde4   : > { %v4634_v60 = vadd.f32 %v4631_v40, %v4622_v50  ;;  %v4695_v40 = vld [vmem:[%s11582_s12 + $0x30] sm:$0xff]  ;;  %v4697_v50 = vld [vmem:[%s11582_s12 + $0x40] sm:$0xff] }
 0xde6   : > { %v4626_v9 = vpop.permute.xlu0 %4625  ;;  %v4652_v61 = vpop.permute.xlu1 %4651 }
 0xde7   : > { %v4629_v25 = vsel %vm1238_vm7, %v4626_v9, %v4628_v56  ;;  %v4630_v44 = vsel %vm1238_vm7, %v4624_v33, %v4626_v9 }
 0xde8   : > { %v4633_v22 = vadd.f32 %v4629_v25, %v4621_v32  ;;  %v4632_v19 = vadd.f32 %v4630_v44, %v4620_v37  ;;  %v4693_v25 = vld [vmem:[%s11582_s12 + $0x20] sm:$0xff]  ;;  %v4694_v32 = vld [vmem:[%s11582_s12 + $0x28] sm:$0xff]  ;;  %v4696_v44 = vld [vmem:[%s11582_s12 + $0x38] sm:$0xff] }
 0xdea   : > { %v4648_v20 = vpop.permute.xlu0 %4647  ;;  %v4636_v21 = vpop.permute.xlu1 %4635 }
 0xdeb   : > { %v4643_v17 = vsel %vm1483_vm8, %v4640_v23, %v4636_v21 }
 0xdec   : > { %v4646_v56 = vadd.f32 %v4643_v17, %v4634_v60 }
 0xdee   : > { %v4650_v41 = vpop.permute.xlu0 %4649  ;;  %v4638_v4 = vpop.permute.xlu1 %4637 }
 0xdef   : > { %v4641_v39 = vsel %vm1483_vm8, %v4638_v4, %v4640_v23  ;;  %v4642_v35 = vsel %vm1483_vm8, %v4636_v21, %v4638_v4  ;;  %v4653_v0 = vsel %vm1508_vm9, %v4650_v41, %v4652_v61  ;;  %v4655_v23 = vsel %vm1508_vm9, %v4652_v61, %v4648_v20  ;;  %v4692_v21 = vld [vmem:[%s11582_s12 + $0x18] sm:$0xff] }
 0xdf0   : > { %v4645_v54 = vadd.f32 %v4641_v39, %v4633_v22  ;;  %v4644_v49 = vadd.f32 %v4642_v35, %v4632_v19  ;;  %v4654_v57 = vsel %vm1508_vm9, %v4648_v20, %v4650_v41  ;;  %v4658_v42 = vadd.f32 %v4655_v23, %v4646_v56  ;;  %v4691_v20 = vld [vmem:[%s11582_s12 + $0x10] sm:$0xff] }
 0xdf2   : > { %v4662_v33 = vpop.permute.xlu1 %4661  ;;  %v4657_v10 = vadd.f32 %v4653_v0, %v4645_v54  ;;  %v4664_v6 = vpop.permute.xlu0 %4663  ;;  %v4656_v53 = vadd.f32 %v4654_v57, %v4644_v49 }
 0xdf3   : > { %v4665_v29 = vsel %vm1533_vm10, %v4662_v33, %v4664_v6 }
 0xdf4   : > { %v4669_v30 = vadd.f32 %v4665_v29, %v4657_v10 }
 0xdf6   : > { %v4672_v27 = vmax.f32 %v4669_v30, 0.0  ;;  %v4660_v13 = vpop.permute.xlu1 %4659 }
 0xdf7   : > { %v4666_v38 = vsel %vm1533_vm10, %v4660_v13, %v4662_v33  ;;  %v4667_v12 = vsel %vm1533_vm10, %v4664_v6, %v4660_v13 }
 0xdf8   : > { %v4668_v1 = vadd.f32 %v4666_v38, %v4656_v53  ;;  %v4670_v9 = vadd.f32 %v4667_v12, %v4658_v42  ;;  %v10494_v52 = vmul.f32 %v4672_v27, %v9122_v48 }
 0xdfa   : > { %v4671_v2 = vmax.f32 %v4668_v1, 0.0  ;;  %v4673_v61 = vmax.f32 %v4670_v9, 0.0  ;;  %4729 = vmatprep.subr.mxu1 %v10494_v52 }
 0xdfc   : > { %v10498_v16 = vmul.f32 %v4671_v2, %v9200_v11  ;;  %v10501_v45 = vmul.f32 %v4673_v61, %v9202_v14 }
 0xdfe   : > { %4730 = vmatpush1.msra.mxu1 %v10498_v16  ;;  %8259 = vmatpush3.msra.mxu0 %v10501_v45 }
 0xdff   : > { %7644 = vmatmul.mubr.msk.f32.vlgmr.msra.gmra.mrb[158].mxu1 %vm1999_vm12, %v4689_v8  ;;  %8261 = vmatmul.mubr.msk.f32.vlgmr.msra.gmra.mrb[160].mxu0 %vm1999_vm12, %v4689_v8 }
 0xe00   : > { %8581 = vmatprep.subr.bf16.mxu1 %v10332_v59  ;;  %8588 = vmatprep.subr.bf16.mxu0 %v8703_v24 }
 0xe01   : > { %8583 = vmatpush1.bf16.msra.mxu1 %v10335_v28  ;;  %8590 = vmatpush3.bf16.msra.mxu0 %v10322_v31 }
 0xe02   : > { %8263 = vmatprep.mubr.msk.f32.mxu0 %vm8704_vm2, %v8694_v5  ;;  %4795 = vmatprep.mubr.f32.mxu1 %v8694_v5 }
 0xe03   : > { %8264 = vmatmul.mubr.msk.f32.gmra.mrb[162].mxu0 %vm1999_vm12, %v4690_v55  ;;  %7645 = vmatmul.mubr.msk.f32.gmra.mrb[160].mxu1 %vm1999_vm12, %v4690_v55 }
 0xe04   : > { %4801 = vmatprep.mubr.f32.mxu1 %v8694_v5  ;;  %8266 = vmatprep.mubr.msk.f32.mxu0 %vm8704_vm2, %v8694_v5 }
 0xe05   : > { %8591 = vmatprep.subr.bf16.mxu0 %v8703_v24 }
 0xe07   : > { %7646 = vmatmul.mubr.msk.f32.gmra.mrb[162].mxu1 %vm1999_vm12, %v4691_v20  ;;  %8267 = vmatmul.mubr.msk.f32.gmra.mrb[164].mxu0 %vm1999_vm12, %v4691_v20 }
 0xe08   : > { %4807 = vmatprep.mubr.f32.mxu1 %v8694_v5  ;;  %8269 = vmatprep.mubr.msk.f32.mxu0 %vm8704_vm2, %v8694_v5 }
 0xe0b   : > { %7647 = vmatmul.mubr.msk.f32.gmra.mrb[164].mxu1 %vm1999_vm12, %v4692_v21  ;;  %8270 = vmatmul.mubr.msk.f32.gmra.mrb[166].mxu0 %vm1999_vm12, %v4692_v21 }
 0xe0c   : > { %4813 = vmatprep.mubr.f32.mxu1 %v8694_v5  ;;  %8272 = vmatprep.mubr.msk.f32.mxu0 %vm8704_vm2, %v8694_v5 }
 0xe0f   : > { %7648 = vmatmul.mubr.msk.f32.gmra.mrb[166].mxu1 %vm1999_vm12, %v4693_v25  ;;  %8273 = vmatmul.mubr.msk.f32.gmra.mrb[168].mxu0 %vm1999_vm12, %v4693_v25 }
 0xe10   : > { %4819 = vmatprep.mubr.f32.mxu1 %v8694_v5  ;;  %8275 = vmatprep.mubr.msk.f32.mxu0 %vm8704_vm2, %v8694_v5 }
 0xe13   : > { %7649 = vmatmul.mubr.msk.f32.gmra.mrb[168].mxu1 %vm1999_vm12, %v4694_v32  ;;  %8276 = vmatmul.mubr.msk.f32.gmra.mrb[170].mxu0 %vm1999_vm12, %v4694_v32 }
 0xe14   : > { %4825 = vmatprep.mubr.f32.mxu1 %v8694_v5  ;;  %8278 = vmatprep.mubr.msk.f32.mxu0 %vm8704_vm2, %v8694_v5 }
 0xe17   : > { %7650 = vmatmul.mubr.msk.f32.gmra.mrb[170].mxu1 %vm1999_vm12, %v4695_v40  ;;  %8279 = vmatmul.mubr.msk.f32.gmra.mrb[172].mxu0 %vm1999_vm12, %v4695_v40 }
 0xe18   : > { %4831 = vmatprep.mubr.f32.mxu1 %v8694_v5  ;;  %8281 = vmatprep.mubr.msk.f32.mxu0 %vm8704_vm2, %v8694_v5 }
 0xe1b   : > { %7651 = vmatmul.mubr.msk.f32.gmra.mrb[172].mxu1 %vm1999_vm12, %v4696_v44  ;;  %8282 = vmatmul.mubr.msk.f32.gmra.mrb[174].mxu0 %vm1999_vm12, %v4696_v44 }
 0xe1c   : > { %4837 = vmatprep.mubr.f32.mxu1 %v8694_v5  ;;  %8284 = vmatprep.mubr.msk.f32.mxu0 %vm8704_vm2, %v8694_v5 }
 0xe1f   : > { %7652 = vmatmul.mubr.msk.f32.gmra.mrb[174].mxu1 %vm1999_vm12, %v4697_v50  ;;  %8285 = vmatmul.mubr.msk.f32.gmra.mrb[176].mxu0 %vm1999_vm12, %v4697_v50 }
 0xe20   : > { %5171 = vmatprep.mubr.f32.mxu1 %v8694_v5  ;;  %8295 = vmatprep.mubr.msk.f32.mxu0 %vm8704_vm2, %v8694_v5 }
 0xed2   : > { %v4791_v37 = vpop.f32.mrb[158].mxu1  ;;  %v4910_v22 = vpop.f32.mrb[160].mxu0 }
 0xed3   : > { %v4793_v41 = vpop.f32.mrb[159].mxu1  ;;  %4958 = vrot.lane.b32.xlu0 %v4910_v22, %s11635_s23  ;;  %v8262_v4 = vpop.f32.mrb[161].mxu0 }
 0xed4   : > { %4956 = vrot.lane.b32.xlu1 %v4793_v41, %s11635_s23 }
 0xed6   : > { %v4915_v17 = vpop.f32.mrb[162].mxu0  ;;  %v4797_v39 = vpop.f32.mrb[160].mxu1 }
 0xed7   : > { %4954 = vrot.lane.b32.xlu0 %v4791_v37, %s11635_s23  ;;  %v4799_v35 = vpop.f32.mrb[161].mxu1  ;;  %v8265_v60 = vpop.f32.mrb[163].mxu0 }
 0xed8   : > { %4967 = vrot.lane.b32.xlu1 %v4915_v17, %s11636_s29 }
 0xeda   : > { %v4803_v19 = vpop.f32.mrb[162].mxu1  ;;  %v4920_v54 = vpop.f32.mrb[164].mxu0 }
 0xedb   : > { %4963 = vrot.lane.b32.xlu0 %v4797_v39, %s11636_s29  ;;  %v4805_v0 = vpop.f32.mrb[163].mxu1  ;;  %v8268_v56 = vpop.f32.mrb[165].mxu0 }
 0xedc   : > { %4965 = vrot.lane.b32.xlu1 %v4799_v35, %s11636_s29 }
 0xede   : > { %v4925_v49 = vpop.f32.mrb[166].mxu0  ;;  %v4809_v33 = vpop.f32.mrb[164].mxu1 }
 0xedf   : > { %4979 = vrot.lane.b32.xlu0 %v4920_v54, %s11631_s1  ;;  %v4811_v10 = vpop.f32.mrb[165].mxu1  ;;  %v8271_v6 = vpop.f32.mrb[167].mxu0 }
 0xee0   : > { %4977 = vrot.lane.b32.xlu1 %v4805_v0, %s11631_s1 }
 0xee2   : > { %v10590_v29 = vpop.f32.mrb[166].mxu1  ;;  %v10592_v30 = vpop.f32.mrb[168].mxu0 }
 0xee3   : > { %4975 = vrot.lane.b32.xlu0 %v4803_v19, %s11631_s1  ;;  %v10595_v23 = vpop.f32.mrb[167].mxu1  ;;  %v8274_v57 = vpop.f32.mrb[169].mxu0 }
 0xee4   : > { %4991 = vrot.lane.b32.xlu1 %v4925_v49, %s11632_s24 }
 0xee6   : > { %v4821_v27 = vpop.f32.mrb[168].mxu1  ;;  %v4935_v53 = vpop.f32.mrb[170].mxu0 }
 0xee7   : > { %4989 = vrot.lane.b32.xlu0 %v4811_v10, %s11632_s24  ;;  %v4823_v42 = vpop.f32.mrb[169].mxu1  ;;  %v8277_v13 = vpop.f32.mrb[171].mxu0 }
 0xee8   : > { %4987 = vrot.lane.b32.xlu1 %v4809_v33, %s11632_s24 }
 0xeea   : > { %v4827_v38 = vpop.f32.mrb[170].mxu1  ;;  %v4940_v12 = vpop.f32.mrb[172].mxu0 }
 0xeeb   : > { %5002 = vrot.lane.b32.xlu0 %v4821_v27, %s11633_s27  ;;  %v4829_v1 = vpop.f32.mrb[171].mxu1  ;;  %v8280_v9 = vpop.f32.mrb[173].mxu0 }
 0xeec   : > { %5006 = vrot.lane.b32.xlu1 %v4935_v53, %s11633_s27 }
 0xeee   : > { %v4833_v2 = vpop.f32.mrb[172].mxu1  ;;  %v4945_v61 = vpop.f32.mrb[174].mxu0 }
 0xeef   : > { %5004 = vrot.lane.b32.xlu0 %v4823_v42, %s11633_s27  ;;  %v4835_v8 = vpop.f32.mrb[173].mxu1  ;;  %v8283_v55 = vpop.f32.mrb[175].mxu0 }
 0xef0   : > { %5014 = vrot.lane.b32.xlu1 %v4827_v38, %s11628_s0 }
 0xef2   : > { %v4839_v20 = vpop.f32.mrb[174].mxu1  ;;  %v4950_v21 = vpop.f32.mrb[176].mxu0 }
 0xef3   : > { %5018 = vrot.lane.b32.xlu0 %v4940_v12, %s11628_s0  ;;  %v4841_v25 = vpop.f32.mrb[175].mxu1  ;;  %v8286_v32 = vpop.f32.mrb[177].mxu0 }
 0xef4   : > { %5016 = vrot.lane.b32.xlu1 %v4829_v1, %s11628_s0 }
 0xef7   : > { %5026 = vrot.lane.b32.xlu0 %v4833_v2, %s11629_s4 }
 0xef8   : > { %5030 = vrot.lane.b32.xlu1 %v4945_v61, %s11629_s4 }
 0xefb   : > { %5028 = vrot.lane.b32.xlu0 %v4835_v8, %s11629_s4 }
 0xefc   : > { %5040 = vrot.lane.b32.xlu1 %v4841_v25, %s11626_s28 }
 0xeff   : > { %5042 = vrot.lane.b32.xlu0 %v4950_v21, %s11626_s28 }
 0xf00   : > { %5038 = vrot.lane.b32.xlu1 %v4839_v20, %s11626_s28 }
 0xf45   : > { %v4959_v40 = vpop.permute.xlu0 %4958 }
 0xf46   : > { %v4957_v44 = vpop.permute.xlu1 %4956 }
 0xf47   : > { %v4960_v33 = vsel %vm918_vm3, %v4957_v44, %v4959_v40 }
 0xf49   : > { %v4955_v50 = vpop.permute.xlu0 %4954 }
 0xf4a   : > { %v4968_v37 = vpop.permute.xlu1 %4967  ;;  %v4961_v27 = vsel %vm918_vm3, %v4955_v50, %v4957_v44  ;;  %v4962_v38 = vsel %vm918_vm3, %v4959_v40, %v4955_v50 }
 0xf4d   : > { %v4964_v22 = vpop.permute.xlu0 %4963 }
 0xf4e   : > { %v4966_v41 = vpop.permute.xlu1 %4965  ;;  %v4971_v10 = vsel %vm937_vm4, %v4968_v37, %v4964_v22 }
 0xf4f   : > { %v4969_v56 = vsel %vm937_vm4, %v4966_v41, %v4968_v37  ;;  %v4970_v49 = vsel %vm937_vm4, %v4964_v22, %v4966_v41  ;;  %v4972_v2 = vadd.f32 %v4971_v10, %v4962_v38 }
 0xf50   : > { %v4974_v53 = vadd.f32 %v4969_v56, %v4960_v33  ;;  %v4973_v12 = vadd.f32 %v4970_v49, %v4961_v27 }
 0xf51   : > { %v4980_v4 = vpop.permute.xlu0 %4979 }
 0xf52   : > { %v4978_v17 = vpop.permute.xlu1 %4977 }
 0xf53   : > { %v4981_v6 = vsel %vm962_vm5, %v4978_v17, %v4980_v4 }
 0xf54   : > { %v4986_v61 = vadd.f32 %v4981_v6, %v4974_v53 }
 0xf55   : > { %v4976_v39 = vpop.permute.xlu0 %4975 }
 0xf56   : > { %v4992_v35 = vpop.permute.xlu1 %4991  ;;  %v4982_v42 = vsel %vm962_vm5, %v4976_v39, %v4978_v17  ;;  %v4983_v1 = vsel %vm962_vm5, %v4980_v4, %v4976_v39 }
 0xf57   : > { %v4985_v55 = vadd.f32 %v4982_v42, %v4973_v12  ;;  %v4984_v25 = vadd.f32 %v4983_v1, %v4972_v2 }
 0xf59   : > { %v4990_v60 = vpop.permute.xlu0 %4989 }
 0xf5a   : > { %v4988_v19 = vpop.permute.xlu1 %4987  ;;  %v4993_v9 = vsel %vm1207_vm6, %v4990_v60, %v4992_v35 }
 0xf5b   : > { %v4994_v8 = vsel %vm1207_vm6, %v4988_v19, %v4990_v60  ;;  %v4995_v20 = vsel %vm1207_vm6, %v4992_v35, %v4988_v19  ;;  %v4998_v32 = vadd.f32 %v4993_v9, %v4986_v61 }
 0xf5c   : > { %v4997_v44 = vadd.f32 %v4994_v8, %v4985_v55  ;;  %v4996_v50 = vadd.f32 %v4995_v20, %v4984_v25 }
 0xf5d   : > { %v5003_v54 = vpop.permute.xlu0 %5002  ;;  %v5001_v22 = vadd.f32 %v4998_v32, %v10592_v30 }
 0xf5e   : > { %v5007_v0 = vpop.permute.xlu1 %5006  ;;  %v5000_v39 = vadd.f32 %v4997_v44, %v10595_v23  ;;  %v4999_v60 = vadd.f32 %v4996_v50, %v10590_v29 }
 0xf5f   : > { %v5010_v17 = vsel %vm1238_vm7, %v5007_v0, %v5003_v54 }
 0xf60   : > { %v5013_v10 = vadd.f32 %v5010_v17, %v5001_v22  ;;  %v5078_v17 = vld [vmem:[%s11583_s13 + $0x38] sm:$0xff] }
 0xf61   : > { %v5005_v57 = vpop.permute.xlu0 %5004 }
 0xf62   : > { %v5015_v13 = vpop.permute.xlu1 %5014  ;;  %v5008_v41 = vsel %vm1238_vm7, %v5005_v57, %v5007_v0  ;;  %v5009_v35 = vsel %vm1238_vm7, %v5003_v54, %v5005_v57 }
 0xf63   : > { %v5012_v56 = vadd.f32 %v5008_v41, %v5000_v39  ;;  %v5011_v0 = vadd.f32 %v5009_v35, %v4999_v60  ;;  %v5079_v39 = vld [vmem:[%s11583_s13 + $0x40] sm:$0xff] }
 0xf65   : > { %v5019_v21 = vpop.permute.xlu0 %5018 }
 0xf66   : > { %v5017_v40 = vpop.permute.xlu1 %5016  ;;  %v5022_v30 = vsel %vm1483_vm8, %v5019_v21, %v5015_v13 }
 0xf67   : > { %v5020_v19 = vsel %vm1483_vm8, %v5017_v40, %v5019_v21  ;;  %v5021_v49 = vsel %vm1483_vm8, %v5015_v13, %v5017_v40  ;;  %v5025_v27 = vadd.f32 %v5022_v30, %v5013_v10 }
 0xf68   : > { %v5024_v54 = vadd.f32 %v5020_v19, %v5012_v56  ;;  %v5023_v53 = vadd.f32 %v5021_v49, %v5011_v0 }
 0xf69   : > { %v5027_v37 = vpop.permute.xlu0 %5026 }
 0xf6a   : > { %v5031_v4 = vpop.permute.xlu1 %5030 }
 0xf6b   : > { %v5034_v29 = vsel %vm1508_vm9, %v5031_v4, %v5027_v37 }
 0xf6c   : > { %v5037_v12 = vadd.f32 %v5034_v29, %v5025_v27 }
 0xf6d   : > { %v5029_v33 = vpop.permute.xlu0 %5028 }
 0xf6e   : > { %v5032_v23 = vsel %vm1508_vm9, %v5029_v33, %v5031_v4  ;;  %v5041_v6 = vpop.permute.xlu1 %5040  ;;  %v5033_v57 = vsel %vm1508_vm9, %v5027_v37, %v5029_v33  ;;  %v5071_v4 = vld [vmem:[%s11583_s13] sm:$0xff] }
 0xf6f   : > { %v5036_v42 = vadd.f32 %v5032_v23, %v5024_v54  ;;  %v5035_v13 = vadd.f32 %v5033_v57, %v5023_v53 }
 0xf71   : > { %v5043_v38 = vpop.permute.xlu0 %5042 }
 0xf72   : > { %v5044_v1 = vsel %vm1533_vm10, %v5041_v6, %v5043_v38  ;;  %v5039_v9 = vpop.permute.xlu1 %5038 }
 0xf73   : > { %v5048_v2 = vadd.f32 %v5044_v1, %v5036_v42  ;;  %v5045_v61 = vsel %vm1533_vm10, %v5039_v9, %v5041_v6  ;;  %v5046_v8 = vsel %vm1533_vm10, %v5043_v38, %v5039_v9 }
 0xf74   : > { %v5047_v55 = vadd.f32 %v5045_v61, %v5035_v13  ;;  %v5049_v20 = vadd.f32 %v5046_v8, %v5037_v12 }
 0xf75   : > { %v5051_v21 = vmax.f32 %v5048_v2, 0.0 }
 0xf76   : > { %v5050_v25 = vmax.f32 %v5047_v55, 0.0  ;;  %v5052_v32 = vmax.f32 %v5049_v20, 0.0 }
 0xf77   : > { %v5054_v40 = vmul.f32 %v5051_v21, %v9122_v48 }
 0xf78   : > { %v5053_v44 = vmul.f32 %v5050_v25, %v9200_v11  ;;  %v5055_v50 = vmul.f32 %v5052_v32, %v9202_v14 }
 0xf79   : > { %v8584_v37 = vpack.c.bf16 %v5054_v40, %v10494_v52  ;;  %v5072_v52 = vld [vmem:[%s11583_s13 + $0x8] sm:$0xff] }
 0xf7a   : > { %v8586_v22 = vpack.c.bf16 %v5053_v44, %v10498_v16  ;;  %v8592_v41 = vpack.c.bf16 %v5055_v50, %v10501_v45  ;;  %v5076_v16 = vld [vmem:[%s11583_s13 + $0x28] sm:$0xff]  ;;  %v5077_v45 = vld [vmem:[%s11583_s13 + $0x30] sm:$0xff] }
 0xf7b   : > { %8585 = vmatprep.subr.bf16.mxu1 %v8584_v37 }
 0xf7c   : > { %8587 = vmatpush1.bf16.msra.mxu1 %v8586_v22  ;;  %8593 = vmatpush3.bf16.msra.mxu0 %v8592_v41 }
 0xf7d   : > { %8595 = vmatprep.subr.bf16.mxu1 %v10332_v59  ;;  %8603 = vmatprep.subr.bf16.mxu0 %v10322_v31  ;;  %v5074_v59 = vld [vmem:[%s11583_s13 + $0x18] sm:$0xff] }
 0xf7f   : > { %7662 = vmatmul.mubr.msk.f32.vlgmr.msra.gmra.mrb[176].mxu1 %vm2382_vm13, %v5071_v4  ;;  %8296 = vmatmul.mubr.msk.f32.vlgmr.msra.gmra.mrb[178].mxu0 %vm2382_vm13, %v5071_v4  ;;  %v10772_v4 = vld [vmem:[%s11584_s14] sm:$0xff] }
 0xf80   : > { %8597 = vmatpush1.bf16.msra.mxu1 %v10335_v28  ;;  %8605 = vmatpush3.bf16.msra.mxu0 %v10322_v31  ;;  %v5073_v31 = vld [vmem:[%s11583_s13 + $0x10] sm:$0xff]  ;;  %v5075_v28 = vld [vmem:[%s11583_s13 + $0x20] sm:$0xff] }
 0xf81   : > { %8599 = vmatprep.subr.bf16.mxu1 %v8584_v37  ;;  %8607 = vmatprep.subr.bf16.mxu0 %v8592_v41 }
 0xf82   : > { %8298 = vmatprep.mubr.msk.f32.mxu0 %vm8704_vm2, %v8694_v5  ;;  %5177 = vmatprep.mubr.f32.mxu1 %v8694_v5 }
 0xf83   : > { %8299 = vmatmul.mubr.msk.f32.gmra.mrb[180].mxu0 %vm2382_vm13, %v5072_v52  ;;  %7663 = vmatmul.mubr.msk.f32.gmra.mrb[178].mxu1 %vm2382_vm13, %v5072_v52 }
 0xf84   : > { %8601 = vmatpush1.bf16.msra.mxu1 %v8586_v22  ;;  %8609 = vmatpush3.bf16.msra.mxu0 %v8592_v41 }
 0xf85   : > { %5183 = vmatprep.mubr.f32.mxu1 %v8694_v5  ;;  %8301 = vmatprep.mubr.msk.f32.mxu0 %vm8704_vm2, %v8694_v5 }
 0xf87   : > { %7664 = vmatmul.mubr.msk.f32.gmra.mrb[180].mxu1 %vm2382_vm13, %v5073_v31  ;;  %8302 = vmatmul.mubr.msk.f32.gmra.mrb[182].mxu0 %vm2382_vm13, %v5073_v31 }
 0xf88   : > { %5189 = vmatprep.mubr.f32.mxu1 %v8694_v5  ;;  %8304 = vmatprep.mubr.msk.f32.mxu0 %vm8704_vm2, %v8694_v5 }
 0xf8b   : > { %7665 = vmatmul.mubr.msk.f32.gmra.mrb[182].mxu1 %vm2382_vm13, %v5074_v59  ;;  %8305 = vmatmul.mubr.msk.f32.gmra.mrb[184].mxu0 %vm2382_vm13, %v5074_v59 }
 0xf8c   : > { %5195 = vmatprep.mubr.f32.mxu1 %v8694_v5  ;;  %8307 = vmatprep.mubr.msk.f32.mxu0 %vm8704_vm2, %v8694_v5 }
 0xf8f   : > { %7666 = vmatmul.mubr.msk.f32.gmra.mrb[184].mxu1 %vm2382_vm13, %v5075_v28  ;;  %8308 = vmatmul.mubr.msk.f32.gmra.mrb[186].mxu0 %vm2382_vm13, %v5075_v28 }
 0xf90   : > { %5201 = vmatprep.mubr.f32.mxu1 %v8694_v5  ;;  %8310 = vmatprep.mubr.msk.f32.mxu0 %vm8704_vm2, %v8694_v5 }
 0xf93   : > { %7667 = vmatmul.mubr.msk.f32.gmra.mrb[186].mxu1 %vm2382_vm13, %v5076_v16  ;;  %8311 = vmatmul.mubr.msk.f32.gmra.mrb[188].mxu0 %vm2382_vm13, %v5076_v16 }
 0xf94   : > { %5207 = vmatprep.mubr.f32.mxu1 %v8694_v5  ;;  %8313 = vmatprep.mubr.msk.f32.mxu0 %vm8704_vm2, %v8694_v5 }
 0xf97   : > { %7668 = vmatmul.mubr.msk.f32.gmra.mrb[188].mxu1 %vm2382_vm13, %v5077_v45  ;;  %8314 = vmatmul.mubr.msk.f32.gmra.mrb[190].mxu0 %vm2382_vm13, %v5077_v45 }
 0xf98   : > { %5213 = vmatprep.mubr.f32.mxu1 %v8694_v5  ;;  %8316 = vmatprep.mubr.msk.f32.mxu0 %vm8704_vm2, %v8694_v5 }
 0xf9b   : > { %7669 = vmatmul.mubr.msk.f32.gmra.mrb[190].mxu1 %vm2382_vm13, %v5078_v17  ;;  %8317 = vmatmul.mubr.msk.f32.gmra.mrb[192].mxu0 %vm2382_vm13, %v5078_v17 }
 0xf9c   : > { %5219 = vmatprep.mubr.f32.mxu1 %v8694_v5  ;;  %8319 = vmatprep.mubr.msk.f32.mxu0 %vm8704_vm2, %v8694_v5 }
 0xf9f   : > { %7670 = vmatmul.mubr.msk.f32.gmra.mrb[192].mxu1 %vm2382_vm13, %v5079_v39  ;;  %8320 = vmatmul.mubr.msk.f32.gmra.mrb[194].mxu0 %vm2382_vm13, %v5079_v39 }
 0xfa0   : > { %5528 = vmatprep.mubr.f32.mxu1 %v8694_v5  ;;  %8332 = vmatprep.mubr.msk.f32.mxu0 %vm2761_vm14, %v10772_v4 }
0x1052   : > { %v5173_v35 = vpop.f32.mrb[176].mxu1  ;;  %v5292_v60 = vpop.f32.mrb[178].mxu0 }
0x1053   : > { %v5175_v19 = vpop.f32.mrb[177].mxu1  ;;  %5340 = vrot.lane.b32.xlu0 %v5292_v60, %s11635_s23  ;;  %v8297_v56 = vpop.f32.mrb[179].mxu0 }
0x1054   : > { %5338 = vrot.lane.b32.xlu1 %v5175_v19, %s11635_s23 }
0x1056   : > { %v5297_v30 = vpop.f32.mrb[180].mxu0  ;;  %v5179_v49 = vpop.f32.mrb[178].mxu1 }
0x1057   : > { %5336 = vrot.lane.b32.xlu0 %v5173_v35, %s11635_s23  ;;  %v5181_v33 = vpop.f32.mrb[179].mxu1  ;;  %v8300_v10 = vpop.f32.mrb[181].mxu0 }
0x1058   : > { %5349 = vrot.lane.b32.xlu1 %v5297_v30, %s11636_s29 }
0x105a   : > { %v5185_v0 = vpop.f32.mrb[180].mxu1  ;;  %v5302_v23 = vpop.f32.mrb[182].mxu0 }
0x105b   : > { %5345 = vrot.lane.b32.xlu0 %v5179_v49, %s11636_s29  ;;  %v5187_v6 = vpop.f32.mrb[181].mxu1  ;;  %v8303_v54 = vpop.f32.mrb[183].mxu0 }
0x105c   : > { %5347 = vrot.lane.b32.xlu1 %v5181_v33, %s11636_s29 }
0x105e   : > { %v5307_v29 = vpop.f32.mrb[184].mxu0  ;;  %v5191_v57 = vpop.f32.mrb[182].mxu1 }
0x105f   : > { %5361 = vrot.lane.b32.xlu0 %v5302_v23, %s11631_s1  ;;  %v5193_v27 = vpop.f32.mrb[183].mxu1  ;;  %v8306_v53 = vpop.f32.mrb[185].mxu0 }
0x1060   : > { %5359 = vrot.lane.b32.xlu1 %v5187_v6, %s11631_s1 }
0x1062   : > { %v10751_v42 = vpop.f32.mrb[184].mxu1  ;;  %v10753_v38 = vpop.f32.mrb[186].mxu0 }
0x1063   : > { %5357 = vrot.lane.b32.xlu0 %v5185_v0, %s11631_s1  ;;  %v10756_v12 = vpop.f32.mrb[185].mxu1  ;;  %v8309_v13 = vpop.f32.mrb[187].mxu0 }
0x1064   : > { %5373 = vrot.lane.b32.xlu1 %v5307_v29, %s11632_s24 }
0x1066   : > { %v5203_v1 = vpop.f32.mrb[186].mxu1  ;;  %v5317_v9 = vpop.f32.mrb[188].mxu0 }
0x1067   : > { %5371 = vrot.lane.b32.xlu0 %v5193_v27, %s11632_s24  ;;  %v5205_v2 = vpop.f32.mrb[187].mxu1  ;;  %v8312_v61 = vpop.f32.mrb[189].mxu0 }
0x1068   : > { %5369 = vrot.lane.b32.xlu1 %v5191_v57, %s11632_s24 }
0x106a   : > { %v5209_v8 = vpop.f32.mrb[188].mxu1  ;;  %v5322_v55 = vpop.f32.mrb[190].mxu0 }
0x106b   : > { %5384 = vrot.lane.b32.xlu0 %v5203_v1, %s11633_s27  ;;  %v5211_v20 = vpop.f32.mrb[189].mxu1  ;;  %v8315_v21 = vpop.f32.mrb[191].mxu0 }
0x106c   : > { %5388 = vrot.lane.b32.xlu1 %v5317_v9, %s11633_s27 }
0x106e   : > { %v5215_v25 = vpop.f32.mrb[190].mxu1  ;;  %v5327_v32 = vpop.f32.mrb[192].mxu0 }
0x106f   : > { %5386 = vrot.lane.b32.xlu0 %v5205_v2, %s11633_s27  ;;  %v5217_v40 = vpop.f32.mrb[191].mxu1  ;;  %v8318_v44 = vpop.f32.mrb[193].mxu0 }
0x1070   : > { %5396 = vrot.lane.b32.xlu1 %v5209_v8, %s11628_s0 }
0x1072   : > { %v5221_v50 = vpop.f32.mrb[192].mxu1  ;;  %v5332_v37 = vpop.f32.mrb[194].mxu0 }
0x1073   : > { %5400 = vrot.lane.b32.xlu0 %v5322_v55, %s11628_s0  ;;  %v5223_v22 = vpop.f32.mrb[193].mxu1  ;;  %v8321_v41 = vpop.f32.mrb[195].mxu0 }
0x1074   : > { %5398 = vrot.lane.b32.xlu1 %v5211_v20, %s11628_s0 }
0x1077   : > { %5408 = vrot.lane.b32.xlu0 %v5215_v25, %s11629_s4 }
0x1078   : > { %5412 = vrot.lane.b32.xlu1 %v5327_v32, %s11629_s4 }
0x107b   : > { %5410 = vrot.lane.b32.xlu0 %v5217_v40, %s11629_s4 }
0x107c   : > { %5422 = vrot.lane.b32.xlu1 %v5223_v22, %s11626_s28 }
0x107f   : > { %5424 = vrot.lane.b32.xlu0 %v5332_v37, %s11626_s28 }
0x1080   : > { %5420 = vrot.lane.b32.xlu1 %v5221_v50, %s11626_s28 }
0x10c5   : > { %v5341_v52 = vpop.permute.xlu0 %5340 }
0x10c6   : > { %v5339_v31 = vpop.permute.xlu1 %5338 }
0x10c7   : > { %v5342_v0 = vsel %vm918_vm3, %v5339_v31, %v5341_v52 }
0x10c9   : > { %v5337_v59 = vpop.permute.xlu0 %5336 }
0x10ca   : > { %v5350_v28 = vpop.permute.xlu1 %5349  ;;  %v5343_v29 = vsel %vm918_vm3, %v5337_v59, %v5339_v31  ;;  %v5344_v13 = vsel %vm918_vm3, %v5341_v52, %v5337_v59 }
0x10cd   : > { %v5346_v16 = vpop.permute.xlu0 %5345 }
0x10ce   : > { %v5348_v45 = vpop.permute.xlu1 %5347  ;;  %v5353_v23 = vsel %vm937_vm4, %v5350_v28, %v5346_v16 }
0x10cf   : > { %v5351_v33 = vsel %vm937_vm4, %v5348_v45, %v5350_v28  ;;  %v5352_v10 = vsel %vm937_vm4, %v5346_v16, %v5348_v45  ;;  %v5354_v61 = vadd.f32 %v5353_v23, %v5344_v13 }
0x10d0   : > { %v5356_v57 = vadd.f32 %v5351_v33, %v5342_v0  ;;  %v5355_v1 = vadd.f32 %v5352_v10, %v5343_v29 }
0x10d1   : > { %v5362_v17 = vpop.permute.xlu0 %5361 }
0x10d2   : > { %v5360_v39 = vpop.permute.xlu1 %5359 }
0x10d3   : > { %v5363_v6 = vsel %vm962_vm5, %v5360_v39, %v5362_v17 }
0x10d4   : > { %v5368_v8 = vadd.f32 %v5363_v6, %v5356_v57 }
0x10d5   : > { %v5358_v35 = vpop.permute.xlu0 %5357 }
0x10d6   : > { %v5374_v60 = vpop.permute.xlu1 %5373  ;;  %v5364_v27 = vsel %vm962_vm5, %v5358_v35, %v5360_v39  ;;  %v5365_v9 = vsel %vm962_vm5, %v5362_v17, %v5358_v35 }
0x10d7   : > { %v5367_v20 = vadd.f32 %v5364_v27, %v5355_v1  ;;  %v5366_v32 = vadd.f32 %v5365_v9, %v5354_v61 }
0x10d9   : > { %v5372_v19 = vpop.permute.xlu0 %5371 }
0x10da   : > { %v5370_v56 = vpop.permute.xlu1 %5369  ;;  %v5375_v2 = vsel %vm1207_vm6, %v5372_v19, %v5374_v60 }
0x10db   : > { %v5376_v55 = vsel %vm1207_vm6, %v5370_v56, %v5372_v19  ;;  %v5377_v21 = vsel %vm1207_vm6, %v5374_v60, %v5370_v56  ;;  %v5380_v40 = vadd.f32 %v5375_v2, %v5368_v8 }
0x10dc   : > { %v5379_v50 = vadd.f32 %v5376_v55, %v5367_v20  ;;  %v5378_v37 = vadd.f32 %v5377_v21, %v5366_v32  ;;  %v5457_v32 = vld [vmem:[%s11584_s14 + $0x8] sm:$0xff] }
0x10dd   : > { %v5385_v30 = vpop.permute.xlu0 %5384  ;;  %v5383_v41 = vadd.f32 %v5380_v40, %v10753_v38 }
0x10de   : > { %v5389_v49 = vpop.permute.xlu1 %5388  ;;  %v5382_v28 = vadd.f32 %v5379_v50, %v10756_v12  ;;  %v5381_v45 = vadd.f32 %v5378_v37, %v10751_v42 }
0x10df   : > { %v5392_v59 = vsel %vm1238_vm7, %v5389_v49, %v5385_v30 }
0x10e0   : > { %v5395_v19 = vadd.f32 %v5392_v59, %v5383_v41 }
0x10e1   : > { %v5387_v54 = vpop.permute.xlu0 %5386 }
0x10e2   : > { %v5397_v53 = vpop.permute.xlu1 %5396  ;;  %v5390_v52 = vsel %vm1238_vm7, %v5387_v54, %v5389_v49  ;;  %v5391_v16 = vsel %vm1238_vm7, %v5385_v30, %v5387_v54 }
0x10e3   : > { %v5394_v39 = vadd.f32 %v5390_v52, %v5382_v28  ;;  %v5393_v56 = vadd.f32 %v5391_v16, %v5381_v45 }
0x10e5   : > { %v5401_v25 = vpop.permute.xlu0 %5400 }
0x10e6   : > { %v5399_v44 = vpop.permute.xlu1 %5398  ;;  %v5404_v38 = vsel %vm1483_vm8, %v5401_v25, %v5397_v53 }
0x10e7   : > { %v5402_v17 = vsel %vm1483_vm8, %v5399_v44, %v5401_v25  ;;  %v5403_v35 = vsel %vm1483_vm8, %v5397_v53, %v5399_v44  ;;  %v5407_v10 = vadd.f32 %v5404_v38, %v5395_v19  ;;  %v5661_v19 = vld [vmem:[%s11585_s15 + $0x18] sm:$0xff] }
0x10e8   : > { %v5406_v30 = vadd.f32 %v5402_v17, %v5394_v39  ;;  %v5405_v0 = vadd.f32 %v5403_v35, %v5393_v56  ;;  %v5659_v35 = vld [vmem:[%s11585_s15 + $0x8] sm:$0xff]  ;;  %v5662_v56 = vld [vmem:[%s11585_s15 + $0x20] sm:$0xff] }
0x10e9   : > { %v5409_v22 = vpop.permute.xlu0 %5408 }
0x10ea   : > { %v5413_v31 = vpop.permute.xlu1 %5412 }
0x10eb   : > { %v5416_v42 = vsel %vm1508_vm9, %v5413_v31, %v5409_v22 }
0x10ec   : > { %v5419_v54 = vadd.f32 %v5416_v42, %v5407_v10  ;;  %v5666_v42 = vld [vmem:[%s11585_s15 + $0x40] sm:$0xff] }
0x10ed   : > { %v5411_v60 = vpop.permute.xlu0 %5410 }
0x10ee   : > { %v5414_v12 = vsel %vm1508_vm9, %v5411_v60, %v5413_v31  ;;  %v5423_v49 = vpop.permute.xlu1 %5422  ;;  %v5415_v33 = vsel %vm1508_vm9, %v5409_v22, %v5411_v60  ;;  %v5660_v60 = vld [vmem:[%s11585_s15 + $0x10] sm:$0xff] }
0x10ef   : > { %v5418_v23 = vadd.f32 %v5414_v12, %v5406_v30  ;;  %v5417_v29 = vadd.f32 %v5415_v33, %v5405_v0  ;;  %v5663_v12 = vld [vmem:[%s11585_s15 + $0x28] sm:$0xff]  ;;  %v5665_v30 = vld [vmem:[%s11585_s15 + $0x38] sm:$0xff] }
0x10f1   : > { %v5425_v6 = vpop.permute.xlu0 %5424 }
0x10f2   : > { %v5426_v57 = vsel %vm1533_vm10, %v5423_v49, %v5425_v6  ;;  %v5421_v27 = vpop.permute.xlu1 %5420 }
0x10f3   : > { %v5430_v53 = vadd.f32 %v5426_v57, %v5418_v23  ;;  %v5427_v13 = vsel %vm1533_vm10, %v5421_v27, %v5423_v49  ;;  %v5428_v1 = vsel %vm1533_vm10, %v5425_v6, %v5421_v27  ;;  %v5664_v49 = vld [vmem:[%s11585_s15 + $0x30] sm:$0xff] }
0x10f4   : > { %v5429_v9 = vadd.f32 %v5427_v13, %v5417_v29  ;;  %v5431_v2 = vadd.f32 %v5428_v1, %v5419_v54 }
0x10f5   : > { %v5433_v61 = vmax.f32 %v5430_v53, 0.0 }
0x10f6   : > { %v5432_v8 = vmax.f32 %v5429_v9, 0.0  ;;  %v5434_v55 = vmax.f32 %v5431_v2, 0.0 }
0x10f7   : > { %v5436_v20 = vmul.f32 %v5433_v61, %v9122_v48 }
0x10f8   : > { %v5435_v21 = vmul.f32 %v5432_v8, %v9200_v11  ;;  %v5437_v25 = vmul.f32 %v5434_v55, %v9202_v14 }
0x10f9   : > { %5472 = vmatprep.subr.mxu1 %v5436_v20 }
0x10fa   : > { %5473 = vmatpush1.msra.mxu1 %v5435_v21  ;;  %8330 = vmatprep.subr.mxu0 %v5437_v25 }
0x10fb   : > { %7680 = vmatmul.mubr.msk.f32.vlgmr.msra.gmra.mrb[194].mxu1 %vm2761_vm14, %v10772_v4  ;;  %8331 = vmatpush3.msra.mxu0 %v5437_v25 }
0x10fc   : > { %8333 = vmatmul.mubr.msk.f32.vlgmr.msra.gmra.mrb[196].mxu0 %vm2761_vm14, %v5457_v32  ;;  %5534 = vmatprep.mubr.f32.mxu1 %v8694_v5 }
0x10fd   : > { %8614 = vmatprep.subr.bf16.mxu1 %v8703_v24  ;;  %5758 = vmatprep.mubr.f32.mxu0 %v8694_v5 }
0x10ff   : > { %7681 = vmatmul.mubr.msk.f32.gmra.mrb[196].mxu1 %vm2761_vm14, %v5457_v32 }
0x1100   : > { %8339 = vmatprep.mubr.msk.f32.mxu1 %vm8704_vm2, %v8694_v5 }
0x11ce   : > { %v5530_v40 = vpop.f32.mrb[194].mxu1 }
0x11cf   : > { %v5532_v44 = vpop.f32.mrb[195].mxu1  ;;  %v8334_v50 = vpop.f32.mrb[196].mxu0  ;;  %v10857_v59 = vsub.f32 %v10313_v26, %v5530_v40 }
0x11d0   : > { %v10847_v37 = vsub.f32 %v10303_v34, %v8334_v50  ;;  %v5607_v4 = vpop.f32.mrb[197].mxu0  ;;  %v10853_v41 = vsub.f32 %v10309_v36, %v5532_v44 }
0x11d1   : > { %v10850_v22 = vsub.f32 %v10306_v62, %v5607_v4  ;;  %v5640_v26 = vmax.f32 %v10857_v59, 0.0 }
0x11d2   : > { %v5645_v52 = vmax.f32 %v10847_v37, 0.0  ;;  %v5536_v31 = vpop.f32.mrb[196].mxu1  ;;  %v5641_v17 = vmax.f32 %v10853_v41, 0.0 }
0x11d3   : > { %v5642_v28 = vmax.f32 %v10850_v22, 0.0  ;;  %v10861_v16 = vsub.f32 %v10317_v43, %v5536_v31  ;;  %v5538_v34 = vpop.f32.mrb[197].mxu1  ;;  %v5658_v43 = vld [vmem:[%s11585_s15] sm:$0xff] }
0x11d4   : > { %v10864_v45 = vsub.f32 %v10320_v46, %v5538_v34 }
0x11d5   : > { %v10866_v62 = vpack.c.bf16 %v5645_v52, %v5642_v28  ;;  %v5643_v36 = vmax.f32 %v10861_v16, 0.0 }
0x11d6   : > { %v5644_v39 = vmax.f32 %v10864_v45, 0.0 }
0x11d7   : > { %8616 = vmatpush3.bf16.msra.mxu1 %v10866_v62  ;;  %v10879_v46 = vpack.c.bf16 %v5643_v36, %v5640_v26 }
0x11d8   : > { %v10876_v38 = vpack.c.bf16 %v5644_v39, %v5641_v17  ;;  %8621 = vmatprep.subr.bf16.mxu1 %v8703_v24 }
0x11da   : > { %8611 = vmatprep.subr.bf16.mxu0 %v10876_v38  ;;  %8340 = vmatmul.mubr.msk.f32.vlgmr.msra.gmra.mrb[198].mxu1 %vm1619_vm11, %v5658_v43 }
0x11db   : > { %8613 = vmatpush1.bf16.msra.mxu0 %v10879_v46  ;;  %8623 = vmatpush3.bf16.msra.mxu1 %v10866_v62 }
0x11dc   : > { %8618 = vmatprep.subr.bf16.mxu0 %v10876_v38  ;;  %8342 = vmatprep.mubr.msk.f32.mxu1 %vm8704_vm2, %v8694_v5 }
0x11dd   : > { %8370 = vmatprep.subr.mxu1 %v8694_v5 }
0x11de   : > { %7684 = vmatmul.mubr.msk.f32.vlgmr.msra.gmra.mrb[198].mxu0 %vm1619_vm11, %v5658_v43  ;;  %8343 = vmatmul.mubr.msk.f32.gmra.mrb[200].mxu1 %vm1619_vm11, %v5659_v35 }
0x11df   : > { %8620 = vmatpush1.bf16.msra.mxu0 %v10879_v46  ;;  %8345 = vmatprep.mubr.msk.f32.mxu1 %vm8704_vm2, %v8694_v5 }
0x11e0   : > { %5764 = vmatprep.mubr.f32.mxu0 %v8694_v5 }
0x11e2   : > { %8346 = vmatmul.mubr.msk.f32.gmra.mrb[202].mxu1 %vm1619_vm11, %v5660_v60  ;;  %7685 = vmatmul.mubr.msk.f32.gmra.mrb[200].mxu0 %vm1619_vm11, %v5659_v35 }
0x11e3   : > { %8348 = vmatprep.mubr.msk.f32.mxu1 %vm8704_vm2, %v8694_v5  ;;  %5770 = vmatprep.mubr.f32.mxu0 %v8694_v5 }
0x11e6   : > { %8349 = vmatmul.mubr.msk.f32.gmra.mrb[204].mxu1 %vm1619_vm11, %v5661_v19  ;;  %7686 = vmatmul.mubr.msk.f32.gmra.mrb[202].mxu0 %vm1619_vm11, %v5660_v60 }
0x11e7   : > { %8351 = vmatprep.mubr.msk.f32.mxu1 %vm8704_vm2, %v8694_v5  ;;  %5776 = vmatprep.mubr.f32.mxu0 %v8694_v5 }
0x11ea   : > { %8352 = vmatmul.mubr.msk.f32.gmra.mrb[206].mxu1 %vm1619_vm11, %v5662_v56  ;;  %7687 = vmatmul.mubr.msk.f32.gmra.mrb[204].mxu0 %vm1619_vm11, %v5661_v19 }
0x11eb   : > { %8354 = vmatprep.mubr.msk.f32.mxu1 %vm8704_vm2, %v8694_v5  ;;  %5782 = vmatprep.mubr.f32.mxu0 %v8694_v5 }
0x11ee   : > { %8355 = vmatmul.mubr.msk.f32.gmra.mrb[208].mxu1 %vm1619_vm11, %v5663_v12  ;;  %7688 = vmatmul.mubr.msk.f32.gmra.mrb[206].mxu0 %vm1619_vm11, %v5662_v56 }
0x11ef   : > { %8357 = vmatprep.mubr.msk.f32.mxu1 %vm8704_vm2, %v8694_v5  ;;  %5788 = vmatprep.mubr.f32.mxu0 %v8694_v5 }
0x11f2   : > { %8358 = vmatmul.mubr.msk.f32.gmra.mrb[210].mxu1 %vm1619_vm11, %v5664_v49  ;;  %7689 = vmatmul.mubr.msk.f32.gmra.mrb[208].mxu0 %vm1619_vm11, %v5663_v12 }
0x11f3   : > { %5794 = vmatprep.mubr.f32.mxu0 %v8694_v5  ;;  %8360 = vmatprep.mubr.msk.f32.mxu1 %vm8704_vm2, %v8694_v5 }
0x11f6   : > { %7690 = vmatmul.mubr.msk.f32.gmra.mrb[210].mxu0 %vm1619_vm11, %v5664_v49  ;;  %8361 = vmatmul.mubr.msk.f32.gmra.mrb[212].mxu1 %vm1619_vm11, %v5665_v30 }
0x11f7   : > { %5800 = vmatprep.mubr.f32.mxu0 %v8694_v5  ;;  %8363 = vmatprep.mubr.msk.f32.mxu1 %vm8704_vm2, %v8694_v5 }
0x11fa   : > { %7691 = vmatmul.mubr.msk.f32.gmra.mrb[212].mxu0 %vm1619_vm11, %v5665_v30  ;;  %8364 = vmatmul.mubr.msk.f32.gmra.mrb[214].mxu1 %vm1619_vm11, %v5666_v42 }
0x11fb   : > { %5806 = vmatprep.mubr.f32.mxu0 %v8694_v5  ;;  %8372 = vmatprep.mubr.msk.f32.mxu1 %vm8704_vm2, %v8694_v5 }
0x11fe   : > { %7692 = vmatmul.mubr.msk.f32.gmra.mrb[214].mxu0 %vm1619_vm11, %v5666_v42 }
0x11ff   : > { %6137 = vmatprep.mubr.f32.mxu0 %v8694_v5 }
0x12ad   : > { %v5879_v33 = vpop.f32.mrb[198].mxu1 }
0x12ae   : > { %5927 = vrot.lane.b32.xlu0 %v5879_v33, %s11635_s23  ;;  %v8341_v10 = vpop.f32.mrb[199].mxu1 }
0x12b1   : > { %v5760_v0 = vpop.f32.mrb[198].mxu0  ;;  %v5884_v23 = vpop.f32.mrb[200].mxu1 }
0x12b2   : > { %5923 = vrot.lane.b32.xlu0 %v5760_v0, %s11635_s23  ;;  %5936 = vrot.lane.b32.xlu1 %v5884_v23, %s11636_s29  ;;  %v8344_v6 = vpop.f32.mrb[201].mxu1  ;;  %v5762_v54 = vpop.f32.mrb[199].mxu0 }
0x12b5   : > { %v5889_v29 = vpop.f32.mrb[202].mxu1  ;;  %v5766_v57 = vpop.f32.mrb[200].mxu0 }
0x12b6   : > { %5925 = vrot.lane.b32.xlu1 %v5762_v54, %s11635_s23  ;;  %5948 = vrot.lane.b32.xlu0 %v5889_v29, %s11631_s1  ;;  %v5768_v27 = vpop.f32.mrb[201].mxu0  ;;  %v8347_v53 = vpop.f32.mrb[203].mxu1 }
0x12b9   : > { %v5772_v13 = vpop.f32.mrb[202].mxu0  ;;  %v5894_v1 = vpop.f32.mrb[204].mxu1 }
0x12ba   : > { %5934 = vrot.lane.b32.xlu1 %v5768_v27, %s11636_s29  ;;  %5932 = vrot.lane.b32.xlu0 %v5766_v57, %s11636_s29  ;;  %v5774_v9 = vpop.f32.mrb[203].mxu0  ;;  %v8350_v2 = vpop.f32.mrb[205].mxu1 }
0x12bd   : > { %v5778_v61 = vpop.f32.mrb[204].mxu0  ;;  %v10963_v8 = vpop.f32.mrb[206].mxu1 }
0x12be   : > { %5944 = vrot.lane.b32.xlu0 %v5772_v13, %s11631_s1  ;;  %5960 = vrot.lane.b32.xlu1 %v5894_v1, %s11632_s24  ;;  %v5780_v55 = vpop.f32.mrb[205].mxu0  ;;  %v8353_v20 = vpop.f32.mrb[207].mxu1 }
0x12c1   : > { %v5904_v21 = vpop.f32.mrb[208].mxu1  ;;  %v10967_v25 = vpop.f32.mrb[206].mxu0 }
0x12c2   : > { %5958 = vrot.lane.b32.xlu0 %v5780_v55, %s11632_s24  ;;  %5946 = vrot.lane.b32.xlu1 %v5774_v9, %s11631_s1  ;;  %v8356_v32 = vpop.f32.mrb[209].mxu1  ;;  %v10971_v40 = vpop.f32.mrb[207].mxu0 }
0x12c5   : > { %v5909_v44 = vpop.f32.mrb[210].mxu1  ;;  %v5790_v50 = vpop.f32.mrb[208].mxu0 }
0x12c6   : > { %5956 = vrot.lane.b32.xlu1 %v5778_v61, %s11632_s24  ;;  %5987 = vrot.lane.b32.xlu0 %v5909_v44, %s11628_s0  ;;  %v8359_v4 = vpop.f32.mrb[211].mxu1  ;;  %v5792_v52 = vpop.f32.mrb[209].mxu0 }
0x12c9   : > { %v5914_v31 = vpop.f32.mrb[212].mxu1  ;;  %v5796_v28 = vpop.f32.mrb[210].mxu0 }
0x12ca   : > { %5975 = vrot.lane.b32.xlu1 %v5904_v21, %s11633_s27  ;;  %5971 = vrot.lane.b32.xlu0 %v5790_v50, %s11633_s27  ;;  %v5798_v34 = vpop.f32.mrb[211].mxu0  ;;  %v8362_v36 = vpop.f32.mrb[213].mxu1 }
0x12cd   : > { %v5802_v17 = vpop.f32.mrb[212].mxu0  ;;  %v5919_v39 = vpop.f32.mrb[214].mxu1 }
0x12ce   : > { %5973 = vrot.lane.b32.xlu0 %v5792_v52, %s11633_s27  ;;  %5999 = vrot.lane.b32.xlu1 %v5914_v31, %s11629_s4  ;;  %v5804_v26 = vpop.f32.mrb[213].mxu0  ;;  %v8365_v43 = vpop.f32.mrb[215].mxu1 }
0x12d1   : > { %v5808_v35 = vpop.f32.mrb[214].mxu0 }
0x12d2   : > { %5995 = vrot.lane.b32.xlu0 %v5802_v17, %s11629_s4  ;;  %5983 = vrot.lane.b32.xlu1 %v5796_v28, %s11628_s0  ;;  %v5810_v60 = vpop.f32.mrb[215].mxu0 }
0x12d6   : > { %5997 = vrot.lane.b32.xlu0 %v5804_v26, %s11629_s4  ;;  %5985 = vrot.lane.b32.xlu1 %v5798_v34, %s11628_s0 }
0x12da   : > { %6009 = vrot.lane.b32.xlu1 %v5810_v60, %s11626_s28  ;;  %6011 = vrot.lane.b32.xlu0 %v5919_v39, %s11626_s28 }
0x12de   : > { %6007 = vrot.lane.b32.xlu1 %v5808_v35, %s11626_s28 }
0x1320   : > { %v5928_v19 = vpop.permute.xlu0 %5927 }
0x1324   : > { %v5924_v56 = vpop.permute.xlu0 %5923  ;;  %v5937_v12 = vpop.permute.xlu1 %5936 }
0x1325   : > { %v5931_v32 = vsel %vm918_vm3, %v5928_v19, %v5924_v56 }
0x1328   : > { %v5926_v49 = vpop.permute.xlu1 %5925  ;;  %v5949_v30 = vpop.permute.xlu0 %5948 }
0x1329   : > { %v5929_v53 = vsel %vm918_vm3, %v5926_v49, %v5928_v19  ;;  %v5930_v9 = vsel %vm918_vm3, %v5924_v56, %v5926_v49 }
0x132c   : > { %v5935_v42 = vpop.permute.xlu1 %5934  ;;  %v5933_v33 = vpop.permute.xlu0 %5932 }
0x132d   : > { %v5938_v57 = vsel %vm937_vm4, %v5935_v42, %v5937_v12  ;;  %v5939_v27 = vsel %vm937_vm4, %v5933_v33, %v5935_v42  ;;  %v5940_v2 = vsel %vm937_vm4, %v5937_v12, %v5933_v33 }
0x132e   : > { %v5943_v20 = vadd.f32 %v5938_v57, %v5929_v53  ;;  %v5942_v21 = vadd.f32 %v5939_v27, %v5930_v9  ;;  %v5941_v4 = vadd.f32 %v5940_v2, %v5931_v32 }
0x1330   : > { %v5945_v10 = vpop.permute.xlu0 %5944  ;;  %v5961_v0 = vpop.permute.xlu1 %5960 }
0x1331   : > { %v5952_v44 = vsel %vm962_vm5, %v5949_v30, %v5945_v10 }
0x1332   : > { %v5953_v17 = vadd.f32 %v5952_v44, %v5941_v4 }
0x1334   : > { %v5959_v23 = vpop.permute.xlu0 %5958  ;;  %v5947_v6 = vpop.permute.xlu1 %5946 }
0x1335   : > { %v5950_v61 = vsel %vm962_vm5, %v5947_v6, %v5949_v30  ;;  %v5951_v55 = vsel %vm962_vm5, %v5945_v10, %v5947_v6  ;;  %v5962_v26 = vsel %vm1207_vm6, %v5959_v23, %v5961_v0 }
0x1336   : > { %v5954_v52 = vadd.f32 %v5951_v55, %v5942_v21  ;;  %v5955_v31 = vadd.f32 %v5950_v61, %v5943_v20 }
0x1338   : > { %v5957_v54 = vpop.permute.xlu1 %5956  ;;  %v5988_v29 = vpop.permute.xlu0 %5987  ;;  %v5967_v43 = vadd.f32 %v5962_v26, %v5955_v31 }
0x1339   : > { %v5963_v50 = vsel %vm1207_vm6, %v5957_v54, %v5959_v23  ;;  %v5964_v36 = vsel %vm1207_vm6, %v5961_v0, %v5957_v54 }
0x133a   : > { %v5966_v39 = vadd.f32 %v5963_v50, %v5954_v52  ;;  %v5965_v35 = vadd.f32 %v5964_v36, %v5953_v17  ;;  %v5970_v42 = vadd.f32 %v5967_v43, %v10963_v8  ;;  %v6037_v43 = vld [vmem:[%s11586_s16] sm:$0xff] }
0x133c   : > { %v5976_v13 = vpop.permute.xlu1 %5975  ;;  %v5972_v1 = vpop.permute.xlu0 %5971  ;;  %v5969_v12 = vadd.f32 %v5966_v39, %v10971_v40  ;;  %v5968_v33 = vadd.f32 %v5965_v35, %v10967_v25  ;;  %v6038_v35 = vld [vmem:[%s11586_s16 + $0x8] sm:$0xff] }
0x133d   : > { %v5979_v49 = vsel %vm1238_vm7, %v5976_v13, %v5972_v1 }
0x133e   : > { %v5982_v57 = vadd.f32 %v5979_v49, %v5970_v42  ;;  %v6043_v49 = vld [vmem:[%s11586_s16 + $0x30] sm:$0xff]  ;;  %v6045_v42 = vld [vmem:[%s11586_s16 + $0x40] sm:$0xff] }
0x1340   : > { %v5974_v28 = vpop.permute.xlu0 %5973  ;;  %v6000_v34 = vpop.permute.xlu1 %5999 }
0x1341   : > { %v5977_v56 = vsel %vm1238_vm7, %v5974_v28, %v5976_v13  ;;  %v5978_v30 = vsel %vm1238_vm7, %v5972_v1, %v5974_v28 }
0x1342   : > { %v5981_v10 = vadd.f32 %v5977_v56, %v5969_v12  ;;  %v5980_v27 = vadd.f32 %v5978_v30, %v5968_v33  ;;  %v6041_v56 = vld [vmem:[%s11586_s16 + $0x20] sm:$0xff]  ;;  %v6042_v12 = vld [vmem:[%s11586_s16 + $0x28] sm:$0xff]  ;;  %v6044_v30 = vld [vmem:[%s11586_s16 + $0x38] sm:$0xff] }
0x1344   : > { %v5996_v60 = vpop.permute.xlu0 %5995  ;;  %v5984_v19 = vpop.permute.xlu1 %5983 }
0x1345   : > { %v5991_v6 = vsel %vm1483_vm8, %v5988_v29, %v5984_v19 }
0x1346   : > { %v5994_v13 = vadd.f32 %v5991_v6, %v5982_v57 }
0x1348   : > { %v5998_v0 = vpop.permute.xlu0 %5997  ;;  %v5986_v23 = vpop.permute.xlu1 %5985 }
0x1349   : > { %v5989_v54 = vsel %vm1483_vm8, %v5986_v23, %v5988_v29  ;;  %v5990_v40 = vsel %vm1483_vm8, %v5984_v19, %v5986_v23  ;;  %v6001_v8 = vsel %vm1508_vm9, %v5998_v0, %v6000_v34  ;;  %v6003_v29 = vsel %vm1508_vm9, %v6000_v34, %v5996_v60  ;;  %v6040_v19 = vld [vmem:[%s11586_s16 + $0x18] sm:$0xff] }
0x134a   : > { %v5993_v53 = vadd.f32 %v5989_v54, %v5981_v10  ;;  %v5992_v25 = vadd.f32 %v5990_v40, %v5980_v27  ;;  %v6002_v20 = vsel %vm1508_vm9, %v5996_v60, %v5998_v0  ;;  %v6006_v44 = vadd.f32 %v6003_v29, %v5994_v13  ;;  %v6039_v60 = vld [vmem:[%s11586_s16 + $0x10] sm:$0xff] }
0x134c   : > { %v6010_v1 = vpop.permute.xlu1 %6009  ;;  %v6005_v9 = vadd.f32 %v6001_v8, %v5993_v53  ;;  %v6012_v2 = vpop.permute.xlu0 %6011  ;;  %v6004_v32 = vadd.f32 %v6002_v20, %v5992_v25 }
0x134d   : > { %v6013_v61 = vsel %vm1533_vm10, %v6010_v1, %v6012_v2 }
0x134e   : > { %v6017_v55 = vadd.f32 %v6013_v61, %v6005_v9 }
0x1350   : > { %v6020_v21 = vmax.f32 %v6017_v55, 0.0  ;;  %v6008_v50 = vpop.permute.xlu1 %6007 }
0x1351   : > { %v6014_v4 = vsel %vm1533_vm10, %v6008_v50, %v6010_v1  ;;  %v6015_v52 = vsel %vm1533_vm10, %v6012_v2, %v6008_v50 }
0x1352   : > { %v6016_v31 = vadd.f32 %v6014_v4, %v6004_v32  ;;  %v6018_v28 = vadd.f32 %v6015_v52, %v6006_v44  ;;  %v11038_v36 = vmul.f32 %v6020_v21, %v9122_v48 }
0x1354   : > { %v6019_v17 = vmax.f32 %v6016_v31, 0.0  ;;  %v6021_v34 = vmax.f32 %v6018_v28, 0.0  ;;  %6077 = vmatprep.subr.mxu0 %v11038_v36 }
0x1356   : > { %v11042_v39 = vmul.f32 %v6019_v17, %v9200_v11  ;;  %v11045_v26 = vmul.f32 %v6021_v34, %v9202_v14 }
0x1358   : > { %6078 = vmatpush1.msra.mxu0 %v11042_v39  ;;  %8371 = vmatpush3.msra.mxu1 %v11045_v26 }
0x1359   : > { %7702 = vmatmul.mubr.msk.f32.vlgmr.msra.gmra.mrb[216].mxu0 %vm1999_vm12, %v6037_v43  ;;  %8373 = vmatmul.mubr.msk.f32.vlgmr.msra.gmra.mrb[216].mxu1 %vm1999_vm12, %v6037_v43 }
0x135a   : > { %8625 = vmatprep.subr.bf16.mxu0 %v10876_v38  ;;  %8632 = vmatprep.subr.bf16.mxu1 %v8703_v24 }
0x135b   : > { %8627 = vmatpush1.bf16.msra.mxu0 %v10879_v46  ;;  %8634 = vmatpush3.bf16.msra.mxu1 %v10866_v62 }
0x135c   : > { %8375 = vmatprep.mubr.msk.f32.mxu1 %vm8704_vm2, %v8694_v5  ;;  %6143 = vmatprep.mubr.f32.mxu0 %v8694_v5 }
0x135d   : > { %8376 = vmatmul.mubr.msk.f32.gmra.mrb[218].mxu1 %vm1999_vm12, %v6038_v35  ;;  %7703 = vmatmul.mubr.msk.f32.gmra.mrb[218].mxu0 %vm1999_vm12, %v6038_v35 }
0x135e   : > { %6149 = vmatprep.mubr.f32.mxu0 %v8694_v5  ;;  %8378 = vmatprep.mubr.msk.f32.mxu1 %vm8704_vm2, %v8694_v5 }
0x135f   : > { %8635 = vmatprep.subr.bf16.mxu1 %v8703_v24 }
0x1361   : > { %7704 = vmatmul.mubr.msk.f32.gmra.mrb[220].mxu0 %vm1999_vm12, %v6039_v60  ;;  %8379 = vmatmul.mubr.msk.f32.gmra.mrb[220].mxu1 %vm1999_vm12, %v6039_v60 }
0x1362   : > { %6155 = vmatprep.mubr.f32.mxu0 %v8694_v5  ;;  %8381 = vmatprep.mubr.msk.f32.mxu1 %vm8704_vm2, %v8694_v5 }
0x1365   : > { %7705 = vmatmul.mubr.msk.f32.gmra.mrb[222].mxu0 %vm1999_vm12, %v6040_v19  ;;  %8382 = vmatmul.mubr.msk.f32.gmra.mrb[222].mxu1 %vm1999_vm12, %v6040_v19 }
0x1366   : > { %6161 = vmatprep.mubr.f32.mxu0 %v8694_v5  ;;  %8384 = vmatprep.mubr.msk.f32.mxu1 %vm8704_vm2, %v8694_v5 }
0x1369   : > { %7706 = vmatmul.mubr.msk.f32.gmra.mrb[224].mxu0 %vm1999_vm12, %v6041_v56  ;;  %8385 = vmatmul.mubr.msk.f32.gmra.mrb[224].mxu1 %vm1999_vm12, %v6041_v56 }
0x136a   : > { %6167 = vmatprep.mubr.f32.mxu0 %v8694_v5  ;;  %8387 = vmatprep.mubr.msk.f32.mxu1 %vm8704_vm2, %v8694_v5 }
0x136d   : > { %7707 = vmatmul.mubr.msk.f32.gmra.mrb[226].mxu0 %vm1999_vm12, %v6042_v12  ;;  %8388 = vmatmul.mubr.msk.f32.gmra.mrb[226].mxu1 %vm1999_vm12, %v6042_v12 }
0x136e   : > { %6173 = vmatprep.mubr.f32.mxu0 %v8694_v5  ;;  %8390 = vmatprep.mubr.msk.f32.mxu1 %vm8704_vm2, %v8694_v5 }
0x1371   : > { %7708 = vmatmul.mubr.msk.f32.gmra.mrb[228].mxu0 %vm1999_vm12, %v6043_v49  ;;  %8391 = vmatmul.mubr.msk.f32.gmra.mrb[228].mxu1 %vm1999_vm12, %v6043_v49 }
0x1372   : > { %6179 = vmatprep.mubr.f32.mxu0 %v8694_v5  ;;  %8393 = vmatprep.mubr.msk.f32.mxu1 %vm8704_vm2, %v8694_v5 }
0x1375   : > { %7709 = vmatmul.mubr.msk.f32.gmra.mrb[230].mxu0 %vm1999_vm12, %v6044_v30  ;;  %8394 = vmatmul.mubr.msk.f32.gmra.mrb[230].mxu1 %vm1999_vm12, %v6044_v30 }
0x1376   : > { %6185 = vmatprep.mubr.f32.mxu0 %v8694_v5  ;;  %8396 = vmatprep.mubr.msk.f32.mxu1 %vm8704_vm2, %v8694_v5 }
0x1379   : > { %7710 = vmatmul.mubr.msk.f32.gmra.mrb[232].mxu0 %vm1999_vm12, %v6045_v42  ;;  %8397 = vmatmul.mubr.msk.f32.gmra.mrb[232].mxu1 %vm1999_vm12, %v6045_v42 }
0x137a   : > { %6519 = vmatprep.mubr.f32.mxu0 %v8694_v5  ;;  %8407 = vmatprep.mubr.msk.f32.mxu1 %vm8704_vm2, %v8694_v5 }
0x142c   : > { %v6139_v33 = vpop.f32.mrb[216].mxu0  ;;  %v6258_v10 = vpop.f32.mrb[216].mxu1 }
0x142d   : > { %v6141_v0 = vpop.f32.mrb[217].mxu0  ;;  %6306 = vrot.lane.b32.xlu0 %v6258_v10, %s11635_s23  ;;  %v8374_v23 = vpop.f32.mrb[217].mxu1 }
0x142e   : > { %6304 = vrot.lane.b32.xlu1 %v6141_v0, %s11635_s23 }
0x1430   : > { %v6263_v6 = vpop.f32.mrb[218].mxu1  ;;  %v6145_v54 = vpop.f32.mrb[218].mxu0 }
0x1431   : > { %6302 = vrot.lane.b32.xlu0 %v6139_v33, %s11635_s23  ;;  %v6147_v40 = vpop.f32.mrb[219].mxu0  ;;  %v8377_v57 = vpop.f32.mrb[219].mxu1 }
0x1432   : > { %6315 = vrot.lane.b32.xlu1 %v6263_v6, %s11636_s29 }
0x1434   : > { %v6151_v27 = vpop.f32.mrb[220].mxu0  ;;  %v6268_v53 = vpop.f32.mrb[220].mxu1 }
0x1435   : > { %6311 = vrot.lane.b32.xlu0 %v6145_v54, %s11636_s29  ;;  %v6153_v8 = vpop.f32.mrb[221].mxu0  ;;  %v8380_v13 = vpop.f32.mrb[221].mxu1 }
0x1436   : > { %6313 = vrot.lane.b32.xlu1 %v6147_v40, %s11636_s29 }
0x1438   : > { %v6273_v25 = vpop.f32.mrb[222].mxu1  ;;  %v6157_v1 = vpop.f32.mrb[222].mxu0 }
0x1439   : > { %6327 = vrot.lane.b32.xlu0 %v6268_v53, %s11631_s1  ;;  %v6159_v9 = vpop.f32.mrb[223].mxu0  ;;  %v8383_v2 = vpop.f32.mrb[223].mxu1 }
0x143a   : > { %6325 = vrot.lane.b32.xlu1 %v6153_v8, %s11631_s1 }
0x143c   : > { %v11134_v61 = vpop.f32.mrb[224].mxu0  ;;  %v11136_v55 = vpop.f32.mrb[224].mxu1 }
0x143d   : > { %6323 = vrot.lane.b32.xlu0 %v6151_v27, %s11631_s1  ;;  %v11139_v29 = vpop.f32.mrb[225].mxu0  ;;  %v8386_v20 = vpop.f32.mrb[225].mxu1 }
0x143e   : > { %6339 = vrot.lane.b32.xlu1 %v6273_v25, %s11632_s24 }
0x1440   : > { %v6169_v21 = vpop.f32.mrb[226].mxu0  ;;  %v6283_v32 = vpop.f32.mrb[226].mxu1 }
0x1441   : > { %6337 = vrot.lane.b32.xlu0 %v6159_v9, %s11632_s24  ;;  %v6171_v44 = vpop.f32.mrb[227].mxu0  ;;  %v8389_v50 = vpop.f32.mrb[227].mxu1 }
0x1442   : > { %6335 = vrot.lane.b32.xlu1 %v6157_v1, %s11632_s24 }
0x1444   : > { %v6175_v4 = vpop.f32.mrb[228].mxu0  ;;  %v6288_v52 = vpop.f32.mrb[228].mxu1 }
0x1445   : > { %6350 = vrot.lane.b32.xlu0 %v6169_v21, %s11633_s27  ;;  %v6177_v31 = vpop.f32.mrb[229].mxu0  ;;  %v8392_v28 = vpop.f32.mrb[229].mxu1 }
0x1446   : > { %6354 = vrot.lane.b32.xlu1 %v6283_v32, %s11633_s27 }
0x1448   : > { %v6181_v17 = vpop.f32.mrb[230].mxu0  ;;  %v6293_v34 = vpop.f32.mrb[230].mxu1 }
0x1449   : > { %6352 = vrot.lane.b32.xlu0 %v6171_v44, %s11633_s27  ;;  %v6183_v43 = vpop.f32.mrb[231].mxu0  ;;  %v8395_v35 = vpop.f32.mrb[231].mxu1 }
0x144a   : > { %6362 = vrot.lane.b32.xlu1 %v6175_v4, %s11628_s0 }
0x144c   : > { %v6187_v60 = vpop.f32.mrb[232].mxu0  ;;  %v6298_v19 = vpop.f32.mrb[232].mxu1 }
0x144d   : > { %6366 = vrot.lane.b32.xlu0 %v6288_v52, %s11628_s0  ;;  %v6189_v56 = vpop.f32.mrb[233].mxu0  ;;  %v8398_v12 = vpop.f32.mrb[233].mxu1 }
0x144e   : > { %6364 = vrot.lane.b32.xlu1 %v6177_v31, %s11628_s0 }
0x1451   : > { %6374 = vrot.lane.b32.xlu0 %v6181_v17, %s11629_s4 }
0x1452   : > { %6378 = vrot.lane.b32.xlu1 %v6293_v34, %s11629_s4 }
0x1455   : > { %6376 = vrot.lane.b32.xlu0 %v6183_v43, %s11629_s4 }
0x1456   : > { %6388 = vrot.lane.b32.xlu1 %v6189_v56, %s11626_s28 }
0x1459   : > { %6390 = vrot.lane.b32.xlu0 %v6298_v19, %s11626_s28 }
0x145a   : > { %6386 = vrot.lane.b32.xlu1 %v6187_v60, %s11626_s28 }
0x149f   : > { %v6307_v49 = vpop.permute.xlu0 %6306 }
0x14a0   : > { %v6305_v30 = vpop.permute.xlu1 %6304 }
0x14a1   : > { %v6308_v1 = vsel %vm918_vm3, %v6305_v30, %v6307_v49 }
0x14a3   : > { %v6303_v42 = vpop.permute.xlu0 %6302 }
0x14a4   : > { %v6316_v33 = vpop.permute.xlu1 %6315  ;;  %v6309_v21 = vsel %vm918_vm3, %v6303_v42, %v6305_v30  ;;  %v6310_v4 = vsel %vm918_vm3, %v6307_v49, %v6303_v42 }
0x14a7   : > { %v6312_v10 = vpop.permute.xlu0 %6311 }
0x14a8   : > { %v6314_v0 = vpop.permute.xlu1 %6313  ;;  %v6319_v9 = vsel %vm937_vm4, %v6316_v33, %v6312_v10 }
0x14a9   : > { %v6317_v13 = vsel %vm937_vm4, %v6314_v0, %v6316_v33  ;;  %v6318_v25 = vsel %vm937_vm4, %v6312_v10, %v6314_v0  ;;  %v6320_v17 = vadd.f32 %v6319_v9, %v6310_v4 }
0x14aa   : > { %v6322_v32 = vadd.f32 %v6317_v13, %v6308_v1  ;;  %v6321_v52 = vadd.f32 %v6318_v25, %v6309_v21 }
0x14ab   : > { %v6328_v23 = vpop.permute.xlu0 %6327 }
0x14ac   : > { %v6326_v6 = vpop.permute.xlu1 %6325 }
0x14ad   : > { %v6329_v2 = vsel %vm962_vm5, %v6326_v6, %v6328_v23 }
0x14ae   : > { %v6334_v34 = vadd.f32 %v6329_v2, %v6322_v32 }
0x14af   : > { %v6324_v54 = vpop.permute.xlu0 %6323 }
0x14b0   : > { %v6340_v40 = vpop.permute.xlu1 %6339  ;;  %v6330_v44 = vsel %vm962_vm5, %v6324_v54, %v6326_v6  ;;  %v6331_v31 = vsel %vm962_vm5, %v6328_v23, %v6324_v54 }
0x14b1   : > { %v6333_v35 = vadd.f32 %v6330_v44, %v6321_v52  ;;  %v6332_v56 = vadd.f32 %v6331_v31, %v6320_v17 }
0x14b3   : > { %v6338_v57 = vpop.permute.xlu0 %6337 }
0x14b4   : > { %v6336_v27 = vpop.permute.xlu1 %6335  ;;  %v6341_v28 = vsel %vm1207_vm6, %v6338_v57, %v6340_v40 }
0x14b5   : > { %v6342_v43 = vsel %vm1207_vm6, %v6336_v27, %v6338_v57  ;;  %v6343_v60 = vsel %vm1207_vm6, %v6340_v40, %v6336_v27  ;;  %v6346_v12 = vadd.f32 %v6341_v28, %v6334_v34 }
0x14b6   : > { %v6345_v30 = vadd.f32 %v6342_v43, %v6333_v35  ;;  %v6344_v42 = vadd.f32 %v6343_v60, %v6332_v56 }
0x14b7   : > { %v6351_v53 = vpop.permute.xlu0 %6350  ;;  %v6349_v10 = vadd.f32 %v6346_v12, %v11136_v55 }
0x14b8   : > { %v6355_v8 = vpop.permute.xlu1 %6354  ;;  %v6348_v54 = vadd.f32 %v6345_v30, %v11139_v29  ;;  %v6347_v57 = vadd.f32 %v6344_v42, %v11134_v61 }
0x14b9   : > { %v6358_v6 = vsel %vm1238_vm7, %v6355_v8, %v6351_v53 }
0x14ba   : > { %v6361_v9 = vadd.f32 %v6358_v6, %v6349_v10  ;;  %v6426_v6 = vld [vmem:[%s11587_s17 + $0x38] sm:$0xff] }
0x14bb   : > { %v6353_v20 = vpop.permute.xlu0 %6352 }
0x14bc   : > { %v6363_v50 = vpop.permute.xlu1 %6362  ;;  %v6356_v0 = vsel %vm1238_vm7, %v6353_v20, %v6355_v8  ;;  %v6357_v40 = vsel %vm1238_vm7, %v6351_v53, %v6353_v20 }
0x14bd   : > { %v6360_v13 = vadd.f32 %v6356_v0, %v6348_v54  ;;  %v6359_v8 = vadd.f32 %v6357_v40, %v6347_v57  ;;  %v6427_v54 = vld [vmem:[%s11587_s17 + $0x40] sm:$0xff] }
0x14bf   : > { %v6367_v19 = vpop.permute.xlu0 %6366 }
0x14c0   : > { %v6365_v49 = vpop.permute.xlu1 %6364  ;;  %v6370_v55 = vsel %vm1483_vm8, %v6367_v19, %v6363_v50 }
0x14c1   : > { %v6368_v27 = vsel %vm1483_vm8, %v6365_v49, %v6367_v19  ;;  %v6369_v25 = vsel %vm1483_vm8, %v6363_v50, %v6365_v49  ;;  %v6373_v21 = vadd.f32 %v6370_v55, %v6361_v9 }
0x14c2   : > { %v6372_v53 = vadd.f32 %v6368_v27, %v6360_v13  ;;  %v6371_v32 = vadd.f32 %v6369_v25, %v6359_v8 }
0x14c3   : > { %v6375_v33 = vpop.permute.xlu0 %6374 }
0x14c4   : > { %v6379_v23 = vpop.permute.xlu1 %6378 }
0x14c5   : > { %v6382_v61 = vsel %vm1508_vm9, %v6379_v23, %v6375_v33 }
0x14c6   : > { %v6385_v52 = vadd.f32 %v6382_v61, %v6373_v21 }
0x14c7   : > { %v6377_v1 = vpop.permute.xlu0 %6376 }
0x14c8   : > { %v6380_v29 = vsel %vm1508_vm9, %v6377_v1, %v6379_v23  ;;  %v6389_v2 = vpop.permute.xlu1 %6388  ;;  %v6381_v20 = vsel %vm1508_vm9, %v6375_v33, %v6377_v1  ;;  %v6419_v23 = vld [vmem:[%s11587_s17] sm:$0xff] }
0x14c9   : > { %v6384_v44 = vadd.f32 %v6380_v29, %v6372_v53  ;;  %v6383_v50 = vadd.f32 %v6381_v20, %v6371_v32 }
0x14cb   : > { %v6391_v4 = vpop.permute.xlu0 %6390 }
0x14cc   : > { %v6392_v31 = vsel %vm1533_vm10, %v6389_v2, %v6391_v4  ;;  %v6387_v28 = vpop.permute.xlu1 %6386 }
0x14cd   : > { %v6396_v17 = vadd.f32 %v6392_v31, %v6384_v44  ;;  %v6393_v34 = vsel %vm1533_vm10, %v6387_v28, %v6389_v2  ;;  %v6394_v43 = vsel %vm1533_vm10, %v6391_v4, %v6387_v28 }
0x14ce   : > { %v6395_v35 = vadd.f32 %v6393_v34, %v6383_v50  ;;  %v6397_v60 = vadd.f32 %v6394_v43, %v6385_v52 }
0x14cf   : > { %v6399_v19 = vmax.f32 %v6396_v17, 0.0 }
0x14d0   : > { %v6398_v56 = vmax.f32 %v6395_v35, 0.0  ;;  %v6400_v12 = vmax.f32 %v6397_v60, 0.0 }
0x14d1   : > { %v6402_v49 = vmul.f32 %v6399_v19, %v9122_v48 }
0x14d2   : > { %v6401_v30 = vmul.f32 %v6398_v56, %v9200_v11  ;;  %v6403_v42 = vmul.f32 %v6400_v12, %v9202_v14 }
0x14d3   : > { %v8628_v33 = vpack.c.bf16 %v6402_v49, %v11038_v36  ;;  %v6420_v36 = vld [vmem:[%s11587_s17 + $0x8] sm:$0xff] }
0x14d4   : > { %v8630_v10 = vpack.c.bf16 %v6401_v30, %v11042_v39  ;;  %v8636_v0 = vpack.c.bf16 %v6403_v42, %v11045_v26  ;;  %v6424_v39 = vld [vmem:[%s11587_s17 + $0x28] sm:$0xff]  ;;  %v6425_v26 = vld [vmem:[%s11587_s17 + $0x30] sm:$0xff] }
0x14d5   : > { %8629 = vmatprep.subr.bf16.mxu0 %v8628_v33 }
0x14d6   : > { %8631 = vmatpush1.bf16.msra.mxu0 %v8630_v10  ;;  %8637 = vmatpush3.bf16.msra.mxu1 %v8636_v0 }
0x14d7   : > { %8639 = vmatprep.subr.bf16.mxu0 %v10876_v38  ;;  %8647 = vmatprep.subr.bf16.mxu1 %v10866_v62  ;;  %v6422_v38 = vld [vmem:[%s11587_s17 + $0x18] sm:$0xff] }
0x14d9   : > { %7720 = vmatmul.mubr.msk.f32.vlgmr.msra.gmra.mrb[234].mxu0 %vm2382_vm13, %v6419_v23  ;;  %8408 = vmatmul.mubr.msk.f32.vlgmr.msra.gmra.mrb[234].mxu1 %vm2382_vm13, %v6419_v23  ;;  %v11316_v23 = vld [vmem:[%s11588_s18] sm:$0xff] }
0x14da   : > { %8641 = vmatpush1.bf16.msra.mxu0 %v10879_v46  ;;  %8649 = vmatpush3.bf16.msra.mxu1 %v10866_v62  ;;  %v6421_v62 = vld [vmem:[%s11587_s17 + $0x10] sm:$0xff]  ;;  %v6423_v46 = vld [vmem:[%s11587_s17 + $0x20] sm:$0xff] }
0x14db   : > { %8643 = vmatprep.subr.bf16.mxu0 %v8628_v33  ;;  %8651 = vmatprep.subr.bf16.mxu1 %v8636_v0 }
0x14dc   : > { %8410 = vmatprep.mubr.msk.f32.mxu1 %vm8704_vm2, %v8694_v5  ;;  %6525 = vmatprep.mubr.f32.mxu0 %v8694_v5 }
0x14dd   : > { %8411 = vmatmul.mubr.msk.f32.gmra.mrb[236].mxu1 %vm2382_vm13, %v6420_v36  ;;  %7721 = vmatmul.mubr.msk.f32.gmra.mrb[236].mxu0 %vm2382_vm13, %v6420_v36 }
0x14de   : > { %8645 = vmatpush1.bf16.msra.mxu0 %v8630_v10  ;;  %8653 = vmatpush3.bf16.msra.mxu1 %v8636_v0 }
0x14df   : > { %6531 = vmatprep.mubr.f32.mxu0 %v8694_v5  ;;  %8413 = vmatprep.mubr.msk.f32.mxu1 %vm8704_vm2, %v8694_v5 }
0x14e1   : > { %7722 = vmatmul.mubr.msk.f32.gmra.mrb[238].mxu0 %vm2382_vm13, %v6421_v62  ;;  %8414 = vmatmul.mubr.msk.f32.gmra.mrb[238].mxu1 %vm2382_vm13, %v6421_v62 }
0x14e2   : > { %6537 = vmatprep.mubr.f32.mxu0 %v8694_v5  ;;  %8416 = vmatprep.mubr.msk.f32.mxu1 %vm8704_vm2, %v8694_v5 }
0x14e5   : > { %7723 = vmatmul.mubr.msk.f32.gmra.mrb[240].mxu0 %vm2382_vm13, %v6422_v38  ;;  %8417 = vmatmul.mubr.msk.f32.gmra.mrb[240].mxu1 %vm2382_vm13, %v6422_v38 }
0x14e6   : > { %6543 = vmatprep.mubr.f32.mxu0 %v8694_v5  ;;  %8419 = vmatprep.mubr.msk.f32.mxu1 %vm8704_vm2, %v8694_v5 }
0x14e9   : > { %7724 = vmatmul.mubr.msk.f32.gmra.mrb[242].mxu0 %vm2382_vm13, %v6423_v46  ;;  %8420 = vmatmul.mubr.msk.f32.gmra.mrb[242].mxu1 %vm2382_vm13, %v6423_v46 }
0x14ea   : > { %6549 = vmatprep.mubr.f32.mxu0 %v8694_v5  ;;  %8422 = vmatprep.mubr.msk.f32.mxu1 %vm8704_vm2, %v8694_v5 }
0x14ed   : > { %7725 = vmatmul.mubr.msk.f32.gmra.mrb[244].mxu0 %vm2382_vm13, %v6424_v39  ;;  %8423 = vmatmul.mubr.msk.f32.gmra.mrb[244].mxu1 %vm2382_vm13, %v6424_v39 }
0x14ee   : > { %6555 = vmatprep.mubr.f32.mxu0 %v8694_v5  ;;  %8425 = vmatprep.mubr.msk.f32.mxu1 %vm8704_vm2, %v8694_v5 }
0x14f1   : > { %7726 = vmatmul.mubr.msk.f32.gmra.mrb[246].mxu0 %vm2382_vm13, %v6425_v26  ;;  %8426 = vmatmul.mubr.msk.f32.gmra.mrb[246].mxu1 %vm2382_vm13, %v6425_v26 }
0x14f2   : > { %6561 = vmatprep.mubr.f32.mxu0 %v8694_v5  ;;  %8428 = vmatprep.mubr.msk.f32.mxu1 %vm8704_vm2, %v8694_v5 }
0x14f5   : > { %7727 = vmatmul.mubr.msk.f32.gmra.mrb[248].mxu0 %vm2382_vm13, %v6426_v6  ;;  %8429 = vmatmul.mubr.msk.f32.gmra.mrb[248].mxu1 %vm2382_vm13, %v6426_v6 }
0x14f6   : > { %6567 = vmatprep.mubr.f32.mxu0 %v8694_v5  ;;  %8431 = vmatprep.mubr.msk.f32.mxu1 %vm8704_vm2, %v8694_v5 }
0x14f9   : > { %7728 = vmatmul.mubr.msk.f32.gmra.mrb[250].mxu0 %vm2382_vm13, %v6427_v54  ;;  %8432 = vmatmul.mubr.msk.f32.gmra.mrb[250].mxu1 %vm2382_vm13, %v6427_v54 }
0x14fa   : > { %6876 = vmatprep.mubr.f32.mxu0 %v8694_v5  ;;  %8444 = vmatprep.mubr.msk.f32.mxu1 %vm2761_vm14, %v11316_v23 }
0x15ac   : > { %v6521_v40 = vpop.f32.mrb[234].mxu0  ;;  %v6640_v57 = vpop.f32.mrb[234].mxu1 }
0x15ad   : > { %v6523_v27 = vpop.f32.mrb[235].mxu0  ;;  %6688 = vrot.lane.b32.xlu0 %v6640_v57, %s11635_s23  ;;  %v8409_v13 = vpop.f32.mrb[235].mxu1 }
0x15ae   : > { %6686 = vrot.lane.b32.xlu1 %v6523_v27, %s11635_s23 }
0x15b0   : > { %v6645_v55 = vpop.f32.mrb[236].mxu1  ;;  %v6527_v25 = vpop.f32.mrb[236].mxu0 }
0x15b1   : > { %6684 = vrot.lane.b32.xlu0 %v6521_v40, %s11635_s23  ;;  %v6529_v1 = vpop.f32.mrb[237].mxu0  ;;  %v8412_v9 = vpop.f32.mrb[237].mxu1 }
0x15b2   : > { %6697 = vrot.lane.b32.xlu1 %v6645_v55, %s11636_s29 }
0x15b4   : > { %v6533_v8 = vpop.f32.mrb[238].mxu0  ;;  %v6650_v29 = vpop.f32.mrb[238].mxu1 }
0x15b5   : > { %6693 = vrot.lane.b32.xlu0 %v6527_v25, %s11636_s29  ;;  %v6535_v2 = vpop.f32.mrb[239].mxu0  ;;  %v8415_v53 = vpop.f32.mrb[239].mxu1 }
0x15b6   : > { %6695 = vrot.lane.b32.xlu1 %v6529_v1, %s11636_s29 }
0x15b8   : > { %v6655_v61 = vpop.f32.mrb[240].mxu1  ;;  %v6539_v20 = vpop.f32.mrb[240].mxu0 }
0x15b9   : > { %6709 = vrot.lane.b32.xlu0 %v6650_v29, %s11631_s1  ;;  %v6541_v21 = vpop.f32.mrb[241].mxu0  ;;  %v8418_v32 = vpop.f32.mrb[241].mxu1 }
0x15ba   : > { %6707 = vrot.lane.b32.xlu1 %v6535_v2, %s11631_s1 }
0x15bc   : > { %v11295_v44 = vpop.f32.mrb[242].mxu0  ;;  %v11297_v4 = vpop.f32.mrb[242].mxu1 }
0x15bd   : > { %6705 = vrot.lane.b32.xlu0 %v6533_v8, %s11631_s1  ;;  %v11300_v52 = vpop.f32.mrb[243].mxu0  ;;  %v8421_v50 = vpop.f32.mrb[243].mxu1 }
0x15be   : > { %6721 = vrot.lane.b32.xlu1 %v6655_v61, %s11632_s24 }
0x15c0   : > { %v6551_v31 = vpop.f32.mrb[244].mxu0  ;;  %v6665_v28 = vpop.f32.mrb[244].mxu1 }
0x15c1   : > { %6719 = vrot.lane.b32.xlu0 %v6541_v21, %s11632_s24  ;;  %v6553_v17 = vpop.f32.mrb[245].mxu0  ;;  %v8424_v34 = vpop.f32.mrb[245].mxu1 }
0x15c2   : > { %6717 = vrot.lane.b32.xlu1 %v6539_v20, %s11632_s24 }
0x15c4   : > { %v6557_v43 = vpop.f32.mrb[246].mxu0  ;;  %v6670_v35 = vpop.f32.mrb[246].mxu1 }
0x15c5   : > { %6732 = vrot.lane.b32.xlu0 %v6551_v31, %s11633_s27  ;;  %v6559_v60 = vpop.f32.mrb[247].mxu0  ;;  %v8427_v19 = vpop.f32.mrb[247].mxu1 }
0x15c6   : > { %6736 = vrot.lane.b32.xlu1 %v6665_v28, %s11633_s27 }
0x15c8   : > { %v6563_v56 = vpop.f32.mrb[248].mxu0  ;;  %v6675_v12 = vpop.f32.mrb[248].mxu1 }
0x15c9   : > { %6734 = vrot.lane.b32.xlu0 %v6553_v17, %s11633_s27  ;;  %v6565_v49 = vpop.f32.mrb[249].mxu0  ;;  %v8430_v30 = vpop.f32.mrb[249].mxu1 }
0x15ca   : > { %6744 = vrot.lane.b32.xlu1 %v6557_v43, %s11628_s0 }
0x15cc   : > { %v6569_v42 = vpop.f32.mrb[250].mxu0  ;;  %v6680_v33 = vpop.f32.mrb[250].mxu1 }
0x15cd   : > { %6748 = vrot.lane.b32.xlu0 %v6670_v35, %s11628_s0  ;;  %v6571_v10 = vpop.f32.mrb[251].mxu0  ;;  %v8433_v0 = vpop.f32.mrb[251].mxu1 }
0x15ce   : > { %6746 = vrot.lane.b32.xlu1 %v6559_v60, %s11628_s0 }
0x15d1   : > { %6756 = vrot.lane.b32.xlu0 %v6563_v56, %s11629_s4 }
0x15d2   : > { %6760 = vrot.lane.b32.xlu1 %v6675_v12, %s11629_s4 }
0x15d5   : > { %6758 = vrot.lane.b32.xlu0 %v6565_v49, %s11629_s4 }
0x15d6   : > { %6770 = vrot.lane.b32.xlu1 %v6571_v10, %s11626_s28 }
0x15d9   : > { %6772 = vrot.lane.b32.xlu0 %v6680_v33, %s11626_s28 }
0x15da   : > { %6768 = vrot.lane.b32.xlu1 %v6569_v42, %s11626_s28 }
0x161f   : > { %v6689_v36 = vpop.permute.xlu0 %6688 }
0x1620   : > { %v6687_v62 = vpop.permute.xlu1 %6686 }
0x1621   : > { %v6690_v8 = vsel %vm918_vm3, %v6687_v62, %v6689_v36 }
0x1623   : > { %v6685_v38 = vpop.permute.xlu0 %6684 }
0x1624   : > { %v6698_v46 = vpop.permute.xlu1 %6697  ;;  %v6691_v61 = vsel %vm918_vm3, %v6685_v38, %v6687_v62  ;;  %v6692_v50 = vsel %vm918_vm3, %v6689_v36, %v6685_v38 }
0x1627   : > { %v6694_v39 = vpop.permute.xlu0 %6693 }
0x1628   : > { %v6696_v26 = vpop.permute.xlu1 %6695  ;;  %v6701_v29 = vsel %vm937_vm4, %v6698_v46, %v6694_v39 }
0x1629   : > { %v6699_v1 = vsel %vm937_vm4, %v6696_v26, %v6698_v46  ;;  %v6700_v9 = vsel %vm937_vm4, %v6694_v39, %v6696_v26  ;;  %v6702_v34 = vadd.f32 %v6701_v29, %v6692_v50 }
0x162a   : > { %v6704_v20 = vadd.f32 %v6699_v1, %v6690_v8  ;;  %v6703_v31 = vadd.f32 %v6700_v9, %v6691_v61 }
0x162b   : > { %v6710_v6 = vpop.permute.xlu0 %6709 }
0x162c   : > { %v6708_v54 = vpop.permute.xlu1 %6707 }
0x162d   : > { %v6711_v2 = vsel %vm962_vm5, %v6708_v54, %v6710_v6 }
0x162e   : > { %v6716_v43 = vadd.f32 %v6711_v2, %v6704_v20 }
0x162f   : > { %v6706_v40 = vpop.permute.xlu0 %6705 }
0x1630   : > { %v6722_v57 = vpop.permute.xlu1 %6721  ;;  %v6712_v21 = vsel %vm962_vm5, %v6706_v40, %v6708_v54  ;;  %v6713_v28 = vsel %vm962_vm5, %v6710_v6, %v6706_v40 }
0x1631   : > { %v6715_v60 = vadd.f32 %v6712_v21, %v6703_v31  ;;  %v6714_v12 = vadd.f32 %v6713_v28, %v6702_v34 }
0x1633   : > { %v6720_v27 = vpop.permute.xlu0 %6719 }
0x1634   : > { %v6718_v13 = vpop.permute.xlu1 %6717  ;;  %v6723_v17 = vsel %vm1207_vm6, %v6720_v27, %v6722_v57 }
0x1635   : > { %v6724_v35 = vsel %vm1207_vm6, %v6718_v13, %v6720_v27  ;;  %v6725_v19 = vsel %vm1207_vm6, %v6722_v57, %v6718_v13  ;;  %v6728_v49 = vadd.f32 %v6723_v17, %v6716_v43 }
0x1636   : > { %v6727_v42 = vadd.f32 %v6724_v35, %v6715_v60  ;;  %v6726_v33 = vadd.f32 %v6725_v19, %v6714_v12  ;;  %v6805_v12 = vld [vmem:[%s11588_s18 + $0x8] sm:$0xff] }
0x1637   : > { %v6733_v55 = vpop.permute.xlu0 %6732  ;;  %v6731_v0 = vadd.f32 %v6728_v49, %v11297_v4 }
0x1638   : > { %v6737_v25 = vpop.permute.xlu1 %6736  ;;  %v6730_v46 = vadd.f32 %v6727_v42, %v11300_v52  ;;  %v6729_v26 = vadd.f32 %v6726_v33, %v11295_v44 }
0x1639   : > { %v6740_v38 = vsel %vm1238_vm7, %v6737_v25, %v6733_v55 }
0x163a   : > { %v6743_v27 = vadd.f32 %v6740_v38, %v6731_v0 }
0x163b   : > { %v6735_v53 = vpop.permute.xlu0 %6734 }
0x163c   : > { %v6745_v32 = vpop.permute.xlu1 %6744  ;;  %v6738_v36 = vsel %vm1238_vm7, %v6735_v53, %v6737_v25  ;;  %v6739_v39 = vsel %vm1238_vm7, %v6733_v55, %v6735_v53 }
0x163d   : > { %v6742_v54 = vadd.f32 %v6738_v36, %v6730_v46  ;;  %v6741_v13 = vadd.f32 %v6739_v39, %v6729_v26 }
0x163f   : > { %v6749_v56 = vpop.permute.xlu0 %6748 }
0x1640   : > { %v6747_v30 = vpop.permute.xlu1 %6746  ;;  %v6752_v4 = vsel %vm1483_vm8, %v6749_v56, %v6745_v32 }
0x1641   : > { %v6750_v6 = vsel %vm1483_vm8, %v6747_v30, %v6749_v56  ;;  %v6751_v40 = vsel %vm1483_vm8, %v6745_v32, %v6747_v30  ;;  %v6755_v9 = vadd.f32 %v6752_v4, %v6743_v27  ;;  %v7020_v4 = vld [vmem:[%s11589_s19 + $0x40] sm:$0xff] }
0x1642   : > { %v6754_v55 = vadd.f32 %v6750_v6, %v6742_v54  ;;  %v6753_v8 = vadd.f32 %v6751_v40, %v6741_v13  ;;  %v7019_v54 = vld [vmem:[%s11589_s19 + $0x38] sm:$0xff] }
0x1643   : > { %v6757_v10 = vpop.permute.xlu0 %6756 }
0x1644   : > { %v6761_v62 = vpop.permute.xlu1 %6760 }
0x1645   : > { %v6764_v44 = vsel %vm1508_vm9, %v6761_v62, %v6757_v10 }
0x1646   : > { %v6767_v53 = vadd.f32 %v6764_v44, %v6755_v9 }
0x1647   : > { %v6759_v57 = vpop.permute.xlu0 %6758 }
0x1648   : > { %v6762_v52 = vsel %vm1508_vm9, %v6759_v57, %v6761_v62  ;;  %v6771_v25 = vpop.permute.xlu1 %6770  ;;  %v6763_v1 = vsel %vm1508_vm9, %v6757_v10, %v6759_v57 }
0x1649   : > { %v6766_v29 = vadd.f32 %v6762_v52, %v6754_v55  ;;  %v6765_v61 = vadd.f32 %v6763_v1, %v6753_v8 }
0x164b   : > { %v6773_v2 = vpop.permute.xlu0 %6772 }
0x164c   : > { %v6774_v20 = vsel %vm1533_vm10, %v6771_v25, %v6773_v2  ;;  %v6769_v21 = vpop.permute.xlu1 %6768 }
0x164d   : > { %v6778_v32 = vadd.f32 %v6774_v20, %v6766_v29  ;;  %v6775_v50 = vsel %vm1533_vm10, %v6769_v21, %v6771_v25  ;;  %v6776_v31 = vsel %vm1533_vm10, %v6773_v2, %v6769_v21 }
0x164e   : > { %v6777_v28 = vadd.f32 %v6775_v50, %v6765_v61  ;;  %v6779_v17 = vadd.f32 %v6776_v31, %v6767_v53 }
0x164f   : > { %v6781_v34 = vmax.f32 %v6778_v32, 0.0 }
0x1650   : > { %v6780_v43 = vmax.f32 %v6777_v28, 0.0  ;;  %v6782_v35 = vmax.f32 %v6779_v17, 0.0 }
0x1651   : > { %v6784_v60 = vmul.f32 %v6781_v34, %v9122_v48  ;;  %v7373_v48 = vld [vmem:[%s11590_s20] sm:$0x3] }
0x1652   : > { %v6783_v19 = vmul.f32 %v6780_v43, %v9200_v11  ;;  %v6785_v56 = vmul.f32 %v6782_v35, %v9202_v14  ;;  %v8705_v11 = vmov 0  }
0x1653   : > { %6820 = vmatprep.subr.mxu0 %v6784_v60  ;;  %8683 = vset.pattern.permute.xlu0 %v8705_v11 }
0x1654   : > { %6821 = vmatpush1.msra.mxu0 %v6783_v19  ;;  %8442 = vmatprep.subr.mxu1 %v6785_v56 }
0x1655   : > { %7738 = vmatmul.mubr.msk.f32.vlgmr.msra.gmra.mrb[252].mxu0 %vm2761_vm14, %v11316_v23  ;;  %8443 = vmatpush3.msra.mxu1 %v6785_v56 }
0x1656   : > { %8445 = vmatmul.mubr.msk.f32.vlgmr.msra.gmra.mrb[252].mxu1 %vm2761_vm14, %v6805_v12  ;;  %6882 = vmatprep.mubr.f32.mxu0 %v8694_v5 }
0x1657   : > { %8658 = vmatprep.subr.bf16.mxu0 %v8703_v24  ;;  %7112 = vmatprep.mubr.f32.mxu1 %v8694_v5 }
0x1658   : > { %7376 = vperm.xlu0 %8683, %v7373_v48  }
0x1659   : > { %7739 = vmatmul.mubr.msk.f32.gmra.mrb[254].mxu0 %vm2761_vm14, %v6805_v12 }
0x165a   : > { %8451 = vmatprep.mubr.msk.f32.mxu0 %vm8704_vm2, %v8694_v5 }
0x1728   : > { %v6878_v14 = vpop.f32.mrb[252].mxu0 }
0x1729   : > { %v6880_v23 = vpop.f32.mrb[253].mxu0  ;;  %v8446_v49 = vpop.f32.mrb[252].mxu1  ;;  %v6970_v42 = vsub.f32 %v10857_v59, %v6878_v14 }
0x172a   : > { %v6975_v30 = vsub.f32 %v10847_v37, %v8446_v49  ;;  %v6955_v24 = vpop.f32.mrb[253].mxu1  ;;  %v6971_v10 = vsub.f32 %v10853_v41, %v6880_v23 }
0x172b   : > { %v6972_v33 = vsub.f32 %v10850_v22, %v6955_v24  ;;  %v6994_v26 = vsub.f32 %v9228_v15, %v6970_v42  ;;  %v7016_v15 = vld [vmem:[%s11589_s19 + $0x20] sm:$0xff]  ;;  %v11504_v24 = vpop.permute.xlu0 %7376 }
0x172c   : > { %v6999_v0 = vsub.f32 %v9225_v58, %v6975_v30  ;;  %v6884_v36 = vpop.f32.mrb[254].mxu0  ;;  %v6995_v59 = vsub.f32 %v9208_v18, %v6971_v10  ;;  %v7012_v58 = vld [vmem:[%s11589_s19] sm:$0xff]  ;;  %v7013_v18 = vld [vmem:[%s11589_s19 + $0x8] sm:$0xff] }
0x172d   : > { %v6996_v62 = vsub.f32 %v9231_v3, %v6972_v33  ;;  %v6973_v38 = vsub.f32 %v10861_v16, %v6884_v36  ;;  %v6886_v46 = vpop.f32.mrb[255].mxu0  ;;  %v7017_v16 = vld [vmem:[%s11589_s19 + $0x28] sm:$0xff] }
0x172e   : > { %v6974_v39 = vsub.f32 %v10864_v45, %v6886_v46  ;;  %v7018_v45 = vld [vmem:[%s11589_s19 + $0x30] sm:$0xff] }
0x172f   : > { %v8659_v37 = vpack.c.bf16 %v6999_v0, %v6996_v62  ;;  %v6997_v6 = vsub.f32 %v9222_v51, %v6973_v38  ;;  %v7015_v51 = vld [vmem:[%s11589_s19 + $0x18] sm:$0xff] }
0x1730   : > { %v6998_v22 = vsub.f32 %v9205_v47, %v6974_v39  ;;  %v7014_v47 = vld [vmem:[%s11589_s19 + $0x10] sm:$0xff] }
0x1731   : > { %v8656_v41 = vpack.c.bf16 %v6997_v6, %v6994_v26  ;;  %8660 = vmatpush3.bf16.msra.mxu0 %v8659_v37 }
0x1732   : > { %v8654_v3 = vpack.c.bf16 %v6998_v22, %v6995_v59 }
0x1734   : > { %8655 = vmatprep.subr.bf16.mxu1 %v8654_v3  ;;  %8452 = vmatmul.mubr.msk.f32.vlgmr.msra.gmra.mrb[0].mxu0 %vm1619_vm11, %v7012_v58 }
0x1735   : > { %8657 = vmatpush1.bf16.msra.mxu1 %v8656_v41  ;;  %8454 = vmatprep.mubr.msk.f32.mxu0 %vm8704_vm2, %v8694_v5 }
0x1738   : > { %7742 = vmatmul.mubr.msk.f32.vlgmr.msra.gmra.mrb[254].mxu1 %vm1619_vm11, %v7012_v58  ;;  %8455 = vmatmul.mubr.msk.f32.gmra.mrb[2].mxu0 %vm1619_vm11, %v7013_v18 }
0x1739   : > { %8457 = vmatprep.mubr.msk.f32.mxu0 %vm8704_vm2, %v8694_v5  ;;  %7118 = vmatprep.mubr.f32.mxu1 %v8694_v5 }
0x173c   : > { %8458 = vmatmul.mubr.msk.f32.gmra.mrb[4].mxu0 %vm1619_vm11, %v7014_v47  ;;  %7743 = vmatmul.mubr.msk.f32.gmra.mrb[0].mxu1 %vm1619_vm11, %v7013_v18 }
0x173d   : > { %7124 = vmatprep.mubr.f32.mxu1 %v8694_v5  ;;  %8460 = vmatprep.mubr.msk.f32.mxu0 %vm8704_vm2, %v8694_v5 }
0x1740   : > { %7744 = vmatmul.mubr.msk.f32.gmra.mrb[2].mxu1 %vm1619_vm11, %v7014_v47  ;;  %8461 = vmatmul.mubr.msk.f32.gmra.mrb[6].mxu0 %vm1619_vm11, %v7015_v51 }
0x1741   : > { %7130 = vmatprep.mubr.f32.mxu1 %v8694_v5  ;;  %8463 = vmatprep.mubr.msk.f32.mxu0 %vm8704_vm2, %v8694_v5 }
0x1744   : > { %7745 = vmatmul.mubr.msk.f32.gmra.mrb[4].mxu1 %vm1619_vm11, %v7015_v51  ;;  %8464 = vmatmul.mubr.msk.f32.gmra.mrb[8].mxu0 %vm1619_vm11, %v7016_v15 }
0x1745   : > { %7136 = vmatprep.mubr.f32.mxu1 %v8694_v5  ;;  %8466 = vmatprep.mubr.msk.f32.mxu0 %vm8704_vm2, %v8694_v5 }
0x1748   : > { %7746 = vmatmul.mubr.msk.f32.gmra.mrb[6].mxu1 %vm1619_vm11, %v7016_v15  ;;  %8467 = vmatmul.mubr.msk.f32.gmra.mrb[10].mxu0 %vm1619_vm11, %v7017_v16 }
0x1749   : > { %7142 = vmatprep.mubr.f32.mxu1 %v8694_v5  ;;  %8469 = vmatprep.mubr.msk.f32.mxu0 %vm8704_vm2, %v8694_v5 }
0x174c   : > { %7747 = vmatmul.mubr.msk.f32.gmra.mrb[8].mxu1 %vm1619_vm11, %v7017_v16  ;;  %8470 = vmatmul.mubr.msk.f32.gmra.mrb[12].mxu0 %vm1619_vm11, %v7018_v45 }
0x174d   : > { %8472 = vmatprep.mubr.msk.f32.mxu0 %vm8704_vm2, %v8694_v5  ;;  %7148 = vmatprep.mubr.f32.mxu1 %v8694_v5 }
0x1750   : > { %8473 = vmatmul.mubr.msk.f32.gmra.mrb[14].mxu0 %vm1619_vm11, %v7019_v54  ;;  %7748 = vmatmul.mubr.msk.f32.gmra.mrb[10].mxu1 %vm1619_vm11, %v7018_v45 }
0x1751   : > { %7154 = vmatprep.mubr.f32.mxu1 %v8694_v5  ;;  %8475 = vmatprep.mubr.msk.f32.mxu0 %vm8704_vm2, %v8694_v5 }
0x1754   : > { %7749 = vmatmul.mubr.msk.f32.gmra.mrb[12].mxu1 %vm1619_vm11, %v7019_v54  ;;  %8476 = vmatmul.mubr.msk.f32.gmra.mrb[16].mxu0 %vm1619_vm11, %v7020_v4 }
0x1755   : > { %7160 = vmatprep.mubr.f32.mxu1 %v8694_v5 }
0x1758   : > { %7750 = vmatmul.mubr.msk.f32.gmra.mrb[14].mxu1 %vm1619_vm11, %v7020_v4 }
0x1807   : > { %v7233_v40 = vpop.f32.mrb[0].mxu0 }
0x1808   : > { %7281 = vrot.lane.b32.xlu0 %v7233_v40, %s11635_s23  ;;  %v8453_v57 = vpop.f32.mrb[1].mxu0 }
0x180b   : > { %v7114_v27 = vpop.f32.mrb[254].mxu1  ;;  %v7238_v13 = vpop.f32.mrb[2].mxu0 }
0x180c   : > { %7277 = vrot.lane.b32.xlu0 %v7114_v27, %s11635_s23  ;;  %7290 = vrot.lane.b32.xlu1 %v7238_v13, %s11636_s29  ;;  %v8456_v52 = vpop.f32.mrb[3].mxu0  ;;  %v7116_v25 = vpop.f32.mrb[255].mxu1 }
0x180f   : > { %v7243_v55 = vpop.f32.mrb[4].mxu0  ;;  %v7120_v44 = vpop.f32.mrb[0].mxu1 }
0x1810   : > { %7279 = vrot.lane.b32.xlu1 %v7116_v25, %s11635_s23  ;;  %7302 = vrot.lane.b32.xlu0 %v7243_v55, %s11631_s1  ;;  %v7122_v5 = vpop.f32.mrb[1].mxu1  ;;  %v8459_v1 = vpop.f32.mrb[5].mxu0 }
0x1813   : > { %v7126_v9 = vpop.f32.mrb[2].mxu1  ;;  %v7248_v8 = vpop.f32.mrb[6].mxu0 }
0x1814   : > { %7286 = vrot.lane.b32.xlu1 %v7120_v44, %s11636_s29  ;;  %7288 = vrot.lane.b32.xlu0 %v7122_v5, %s11636_s29  ;;  %v7128_v29 = vpop.f32.mrb[3].mxu1  ;;  %v8462_v2 = vpop.f32.mrb[7].mxu0 }
0x1817   : > { %v7132_v53 = vpop.f32.mrb[4].mxu1  ;;  %v11481_v61 = vpop.f32.mrb[8].mxu0 }
0x1818   : > { %7298 = vrot.lane.b32.xlu0 %v7126_v9, %s11631_s1  ;;  %7314 = vrot.lane.b32.xlu1 %v7248_v8, %s11632_s24  ;;  %v7134_v20 = vpop.f32.mrb[5].mxu1  ;;  %v8465_v21 = vpop.f32.mrb[9].mxu0 }
0x181b   : > { %v7258_v32 = vpop.f32.mrb[10].mxu0  ;;  %v11485_v50 = vpop.f32.mrb[6].mxu1 }
0x181c   : > { %7312 = vrot.lane.b32.xlu0 %v7134_v20, %s11632_s24  ;;  %7300 = vrot.lane.b32.xlu1 %v7128_v29, %s11631_s1  ;;  %v11489_v31 = vpop.f32.mrb[7].mxu1  ;;  %v8468_v28 = vpop.f32.mrb[11].mxu0 }
0x181f   : > { %v7144_v17 = vpop.f32.mrb[8].mxu1  ;;  %v7263_v34 = vpop.f32.mrb[12].mxu0 }
0x1820   : > { %7310 = vrot.lane.b32.xlu1 %v7132_v53, %s11632_s24  ;;  %7329 = vrot.lane.b32.xlu0 %v7258_v32, %s11633_s27  ;;  %v8471_v43 = vpop.f32.mrb[13].mxu0  ;;  %v7146_v35 = vpop.f32.mrb[9].mxu1 }
0x1823   : > { %v7268_v60 = vpop.f32.mrb[14].mxu0  ;;  %v7150_v19 = vpop.f32.mrb[10].mxu1 }
0x1824   : > { %7325 = vrot.lane.b32.xlu0 %v7144_v17, %s11633_s27  ;;  %7341 = vrot.lane.b32.xlu1 %v7263_v34, %s11628_s0  ;;  %v7152_v56 = vpop.f32.mrb[11].mxu1  ;;  %v8474_v12 = vpop.f32.mrb[15].mxu0 }
0x1827   : > { %v7156_v48 = vpop.f32.mrb[12].mxu1  ;;  %v7273_v11 = vpop.f32.mrb[16].mxu0 }
0x1828   : > { %7327 = vrot.lane.b32.xlu1 %v7146_v35, %s11633_s27  ;;  %7353 = vrot.lane.b32.xlu0 %v7268_v60, %s11629_s4  ;;  %v7158_v14 = vpop.f32.mrb[13].mxu1  ;;  %v8477_v23 = vpop.f32.mrb[17].mxu0 }
0x182b   : > { %v7162_v49 = vpop.f32.mrb[14].mxu1 }
0x182c   : > { %7337 = vrot.lane.b32.xlu1 %v7150_v19, %s11628_s0  ;;  %7339 = vrot.lane.b32.xlu0 %v7152_v56, %s11628_s0  ;;  %v7164_v30 = vpop.f32.mrb[15].mxu1 }
0x1830   : > { %7349 = vrot.lane.b32.xlu1 %v7156_v48, %s11629_s4  ;;  %7363 = vrot.lane.b32.xlu0 %v7164_v30, %s11626_s28 }
0x1834   : > { %7351 = vrot.lane.b32.xlu1 %v7158_v14, %s11629_s4 }
0x1838   : > { %7361 = vrot.lane.b32.xlu1 %v7162_v49, %s11626_s28 }
0x183c   : > { %7365 = vrot.lane.b32.xlu1 %v7273_v11, %s11626_s28  ;;  %s11637_s28 = smul.u32 6, %s11639_s25 }
0x183e   : > { %s656_s1 = scalar_lea.vmem %s11591_s21, %s11637_s28 }
0x187a   : > { %v7282_v42 = vpop.permute.xlu0 %7281 }
0x187e   : > { %v7278_v33 = vpop.permute.xlu0 %7277  ;;  %v7291_v10 = vpop.permute.xlu1 %7290 }
0x187f   : > { %v7285_v47 = vsel %vm918_vm3, %v7282_v42, %v7278_v33 }
0x1882   : > { %v7280_v0 = vpop.permute.xlu1 %7279  ;;  %v7303_v36 = vpop.permute.xlu0 %7302 }
0x1883   : > { %v7283_v51 = vsel %vm918_vm3, %v7280_v0, %v7282_v42  ;;  %v7284_v27 = vsel %vm918_vm3, %v7278_v33, %v7280_v0 }
0x1886   : > { %v7287_v62 = vpop.permute.xlu1 %7286  ;;  %v7289_v38 = vpop.permute.xlu0 %7288 }
0x1887   : > { %v7294_v3 = vsel %vm937_vm4, %v7291_v10, %v7287_v62  ;;  %v7292_v18 = vsel %vm937_vm4, %v7289_v38, %v7291_v10  ;;  %v7293_v15 = vsel %vm937_vm4, %v7287_v62, %v7289_v38 }
0x1888   : > { %v7295_v54 = vadd.f32 %v7294_v3, %v7285_v47  ;;  %v7297_v4 = vadd.f32 %v7292_v18, %v7283_v51  ;;  %v7296_v25 = vadd.f32 %v7293_v15, %v7284_v27 }
0x188a   : > { %v7299_v46 = vpop.permute.xlu0 %7298  ;;  %v7315_v39 = vpop.permute.xlu1 %7314 }
0x188b   : > { %v7306_v16 = vsel %vm962_vm5, %v7303_v36, %v7299_v46 }
0x188c   : > { %v7307_v55 = vadd.f32 %v7306_v16, %v7295_v54 }
0x188e   : > { %v7313_v26 = vpop.permute.xlu0 %7312  ;;  %v7301_v37 = vpop.permute.xlu1 %7300 }
0x188f   : > { %v7304_v45 = vsel %vm962_vm5, %v7301_v37, %v7303_v36  ;;  %v7305_v13 = vsel %vm962_vm5, %v7299_v46, %v7301_v37  ;;  %v7316_v29 = vsel %vm1207_vm6, %v7313_v26, %v7315_v39 }
0x1890   : > { %v7309_v44 = vadd.f32 %v7304_v45, %v7297_v4  ;;  %v7308_v1 = vadd.f32 %v7305_v13, %v7296_v25 }
0x1892   : > { %v7311_v6 = vpop.permute.xlu1 %7310  ;;  %v7330_v59 = vpop.permute.xlu0 %7329  ;;  %v7321_v2 = vadd.f32 %v7316_v29, %v7309_v44 }
0x1893   : > { %v7318_v52 = vsel %vm1207_vm6, %v7315_v39, %v7311_v6  ;;  %v7317_v5 = vsel %vm1207_vm6, %v7311_v6, %v7313_v26 }
0x1894   : > { %v7319_v9 = vadd.f32 %v7318_v52, %v7307_v55  ;;  %v7320_v53 = vadd.f32 %v7317_v5, %v7308_v1  ;;  %v7324_v35 = vadd.f32 %v7321_v2, %v11481_v61 }
0x1896   : > { %v7342_v22 = vpop.permute.xlu1 %7341  ;;  %v7326_v41 = vpop.permute.xlu0 %7325  ;;  %v7322_v32 = vadd.f32 %v7319_v9, %v11485_v50  ;;  %v7323_v60 = vadd.f32 %v7320_v53, %v11489_v31 }
0x1897   : > { %v7333_v17 = vsel %vm1238_vm7, %v7330_v59, %v7326_v41 }
0x1898   : > { %v7336_v11 = vadd.f32 %v7333_v17, %v7324_v35 }
0x189a   : > { %v7328_v58 = vpop.permute.xlu1 %7327  ;;  %v7354_v40 = vpop.permute.xlu0 %7353 }
0x189b   : > { %v7332_v21 = vsel %vm1238_vm7, %v7326_v41, %v7328_v58  ;;  %v7331_v34 = vsel %vm1238_vm7, %v7328_v58, %v7330_v59 }
0x189c   : > { %v7334_v19 = vadd.f32 %v7332_v21, %v7322_v32  ;;  %v7335_v14 = vadd.f32 %v7331_v34, %v7323_v60 }
0x189e   : > { %v7338_v57 = vpop.permute.xlu1 %7337  ;;  %v7340_v20 = vpop.permute.xlu0 %7339 }
0x189f   : > { %v7344_v43 = vsel %vm1483_vm8, %v7338_v57, %v7340_v20  ;;  %v7345_v12 = vsel %vm1483_vm8, %v7342_v22, %v7338_v57  ;;  %v7343_v50 = vsel %vm1483_vm8, %v7340_v20, %v7342_v22 }
0x18a0   : > { %v7346_v23 = vadd.f32 %v7344_v43, %v7334_v19  ;;  %v7348_v42 = vadd.f32 %v7345_v12, %v7336_v11  ;;  %v7347_v33 = vadd.f32 %v7343_v50, %v7335_v14 }
0x18a2   : > { %v7350_v8 = vpop.permute.xlu1 %7349  ;;  %v7364_v56 = vpop.permute.xlu0 %7363 }
0x18a3   : > { %v7357_v61 = vsel %vm1508_vm9, %v7354_v40, %v7350_v8 }
0x18a4   : > { %v7360_v0 = vadd.f32 %v7357_v61, %v7348_v42 }
0x18a6   : > { %v7352_v28 = vpop.permute.xlu1 %7351 }
0x18a7   : > { %v7356_v48 = vsel %vm1508_vm9, %v7350_v8, %v7352_v28  ;;  %v7355_v31 = vsel %vm1508_vm9, %v7352_v28, %v7354_v40 }
0x18a8   : > { %v7358_v10 = vadd.f32 %v7356_v48, %v7346_v23  ;;  %v7359_v36 = vadd.f32 %v7355_v31, %v7347_v33 }
0x18aa   : > { %v7362_v49 = vpop.permute.xlu1 %7361 }
0x18ab   : > { %v7368_v30 = vsel %vm1533_vm10, %v7362_v49, %v7364_v56 }
0x18ac   : > { %v7370_v62 = vadd.f32 %v7368_v30, %v7358_v10 }
0x18ae   : > { %v7366_v38 = vpop.permute.xlu1 %7365  ;;  %v7379_v6 = vadd.f32 %v11504_v24, %v7370_v62 }
0x18af   : > { %v7367_v46 = vsel %vm1533_vm10, %v7364_v56, %v7366_v38  ;;  %v7369_v39 = vsel %vm1533_vm10, %v7366_v38, %v7362_v49 }
0x18b0   : > { %v7371_v26 = vadd.f32 %v7367_v46, %v7359_v36  ;;  %v7372_v37 = vadd.f32 %v7369_v39, %v7360_v0 }
0x18b2   : > { %v7380_v59 = vadd.f32 %v11504_v24, %v7371_v26  ;;  %v7381_v22 = vadd.f32 %v11504_v24, %v7372_v37 }
0x18b4   : > { %v7385_v41 = vcombine.low %v7379_v6, %v7380_v59  ;;  %v7399_v3 = vrot.slane %v7381_v22, %v8836_v7 }
0x18b6   : > { %v7392_v58 = vrot.slane %v7385_v41, %v8836_v7 }
0x18b8   : > { %v7400_v63 = vcombine.low %v7392_v58, %v7399_v3 }
0x18ba   : > { %7402 = vst [vmem:[%s656_s1] sm:$0x3f] %v7400_v63 }
0x18bb PF: > { %s31_s2 = sadd.s32 1, %s8691_s2  }
0x18bc   : > { %p28_p4 = scmp.ge.s32.totalorder %s31_s2, 4  }
0x18be   :  { %30 = sbr.rel (!%p28_p4) target bundleno = 8 (0x8), region = 134 }

</bundles_post_ra>
